<compile_context>
chip_gen: v6e
topology: v6e:2x2x1
jax: 0.10.0
libtpu: 0.0.40
codegen_flags: <defaults>
</compile_context>

<pallas_src>
import functools
from collections import OrderedDict

import jax
import jax.numpy as jnp
from jax.experimental import pallas as pl
from jax.experimental.pallas import tpu as pltpu

LANE = 128  # TPU lane width (last dim)

TAP_ORDER_3X3 = tuple((dy, dx) for dy in range(3) for dx in range(3))
TAP_ORDER_1X1 = ((0, 0),)


# ----------------------------------------------------------------------------
# small helpers
# ----------------------------------------------------------------------------
def _round_up(n, m):
    return ((n + m - 1) // m) * m


def _pad_channels_to(x, target):
    c = x.shape[-1]
    if target > c:
        x = jnp.pad(x, [(0, 0)] * (x.ndim - 1) + [(0, target - c)])
    return x


def _vmem_limit(need_bytes):
    cap = 64 << 20
    try:  # per-generation cap (v7x has only 64 MiB physical VMEM per core)
        cap = int(pltpu.get_tpu_info().vmem_capacity_bytes) * 3 // 4
    except Exception:
        pass
    return int(min(max(need_bytes + (2 << 20), 16 << 20), max(cap, 16 << 20)))


def _upsample_nearest(x, ho, wo):
    """Nearest upsample matching F.interpolate(mode='nearest')."""
    n, h, w, c = x.shape
    if (ho, wo) == (h, w):
        return x
    if ho == 2 * h and wo == 2 * w:  # FPN case: exact 2x -> broadcast, no gather
        y = jnp.broadcast_to(x[:, :, None, :, None, :], (n, h, 2, w, 2, c))
        return y.reshape(n, 2 * h, 2 * w, c)
    ih = (jnp.arange(ho) * h) // ho
    iw = (jnp.arange(wo) * w) // wo
    return x[:, ih][:, :, iw]


# ----------------------------------------------------------------------------
# guard-column, batch-folded flattened layouts (glue, single pad per tensor)
# ----------------------------------------------------------------------------
def _s1_rows_per_image(h, w):
    return 1 + (h + 2) * (w + 1)


def _guarded_rows_s1(x_nhwc, tail=0):
    """Flattened stride-1 3x3 source: per image [1 lead zero] + (H+2) rows of
    (W real + 1 guard zero); top/bottom rows are all zero.  Batch is folded
    into the row dimension so shifted tap slices never need masking."""
    n, h, w, c = x_nhwc.shape
    xg = jnp.pad(x_nhwc, ((0, 0), (1, 1), (0, 1), (0, 0)))   # H pad + right guard
    flat = xg.reshape(n, (h + 2) * (w + 1), c)
    flat = jnp.pad(flat, ((0, 0), (1, 0), (0, 0)))            # lead zero row
    rows = flat.reshape(n * _s1_rows_per_image(h, w), c)
    if tail:
        rows = jnp.pad(rows, ((0, tail), (0, 0)))
    return rows


def _rows_to_nhwc(rows, n, per_img_rows, h, w, row_offset):
    """Extract valid pixels from a batch-folded row layout back to NHWC."""
    c = rows.shape[-1]
    o = rows.reshape(n, per_img_rows, c)[:, row_offset:row_offset + h * (w + 1), :]
    return o.reshape(n, h, w + 1, c)[:, :, :w, :]


def _valid_mask_s1(n, h, w):
    """(N*S, 1) f32: 1.0 at real-pixel rows, 0.0 at guard columns / pad rows."""
    s = _s1_rows_per_image(h, w)
    r = jnp.arange(s, dtype=jnp.int32)
    a = (r - 1) // (w + 1)
    b = (r - 1) % (w + 1)
    valid = (r >= 1) & (a >= 1) & (a <= h) & (b < w)
    m = valid.astype(jnp.float32).reshape(1, s, 1)
    return jnp.broadcast_to(m, (n, s, 1)).reshape(n * s, 1)


# ----------------------------------------------------------------------------
# Pallas kernel 1: generic tap-conv (KxK conv = sum of shifted MXU matmuls)
# ----------------------------------------------------------------------------
def _tap_conv_kernel(*refs, n_src, taps, m_out, relu):
    srcs = refs[:n_src]
    w_ref = refs[n_src]
    b_ref = refs[n_src + 1]
    o_ref = refs[n_src + 2]

    sid0, off0 = taps[0]
    acc = jnp.dot(srcs[sid0][pl.ds(off0, m_out), :], w_ref[0],
                  preferred_element_type=jnp.float32)
    for t in range(1, len(taps)):
        sid, off = taps[t]
        acc = acc + jnp.dot(srcs[sid][pl.ds(off, m_out), :], w_ref[t],
                            preferred_element_type=jnp.float32)
    acc = acc + b_ref[...]
    if relu:
        acc = jnp.maximum(acc, 0.0)
    o_ref[...] = acc.astype(o_ref.dtype)


def _tap_conv_call(sources, taps, w_mat, b_mat, *, m_out, relu, flops):
    cin_p = sources[0].shape[-1]
    t, _, cout_p = w_mat.shape
    n_co = cout_p // LANE
    n_src = len(sources)

    in_specs = [pl.BlockSpec(s.shape, lambda j: (0, 0)) for s in sources]
    in_specs.append(pl.BlockSpec((t, cin_p, LANE), lambda j: (0, 0, j)))
    in_specs.append(pl.BlockSpec((1, LANE), lambda j: (0, j)))
    operands = list(sources) + [w_mat, b_mat]

    block_bytes = sum(int(op.size) * op.dtype.itemsize for op in operands)
    block_bytes += m_out * LANE * 2
    bytes_accessed = sum(int(op.size) * op.dtype.itemsize for op in operands)
    bytes_accessed += m_out * cout_p * 2

    kernel = functools.partial(_tap_conv_kernel, n_src=n_src, taps=tuple(taps),
                               m_out=m_out, relu=relu)
    return pl.pallas_call(
        kernel,
        out_shape=jax.ShapeDtypeStruct((m_out, cout_p), jnp.bfloat16),
        grid=(n_co,),
        in_specs=in_specs,
        out_specs=pl.BlockSpec((m_out, LANE), lambda j: (0, j)),
        compiler_params=pltpu.CompilerParams(
            dimension_semantics=("parallel",),
            vmem_limit_bytes=_vmem_limit(2 * block_bytes)),
        cost_estimate=pl.CostEstimate(flops=int(flops), transcendentals=0,
                                      bytes_accessed=int(bytes_accessed)),
    )(*operands)


# ----------------------------------------------------------------------------
# Pallas kernel 2: fused FPN level (lateral 1x1 + residual + 3x3 output conv)
# ----------------------------------------------------------------------------
def _fpn_merge_kernel(*refs, taps3, m_out, has_res):
    lat_ref, w1_ref, b1_ref, mask_ref, w3_ref, b3_ref = refs[:6]
    k = 6
    res_ref = refs[k] if has_res else None
    if has_res:
        k += 1
    inner_ref, out_ref, buf = refs[k], refs[k + 1], refs[k + 2]

    inner = jnp.dot(lat_ref[...], w1_ref[0], preferred_element_type=jnp.float32)
    inner = inner + b1_ref[...]
    if has_res:
        inner = inner + res_ref[...].astype(jnp.float32)
    inner = inner * mask_ref[...]      # zero guard cols / pad rows (conv padding)
    inner_bf = inner.astype(jnp.bfloat16)
    inner_ref[...] = inner_bf

    # stage merged feature into a halo'd scratch for the fused 3x3 taps
    tail = buf.shape[0] - m_out
    buf[pl.ds(0, m_out), :] = inner_bf
    buf[pl.ds(m_out, tail), :] = jnp.zeros((tail, buf.shape[1]), jnp.bfloat16)

    acc = jnp.dot(buf[pl.ds(taps3[0], m_out), :], w3_ref[0],
                  preferred_element_type=jnp.float32)
    for t in range(1, len(taps3)):
        acc = acc + jnp.dot(buf[pl.ds(taps3[t], m_out), :], w3_ref[t],
                            preferred_element_type=jnp.float32)
    acc = acc + b3_ref[...]
    out_ref[...] = acc.astype(out_ref.dtype)


def _fpn_merge(lat_rows, res_rows, w1, b1, w3, b3, mask, *, n, h, w,
               cin_real, cout_real):
    m_out = lat_rows.shape[0]
    cout_p = w1.shape[-1]
    assert cout_p == LANE  # TODO(synk): multi-Cout-tile fused FPN kernel
    has_res = res_rows is not None

    taps3 = tuple((w + 2) + (dy - 1) * (w + 1) + (dx - 1)
                  for dy, dx in TAP_ORDER_3X3)

    operands = [lat_rows, w1, b1, mask, w3, b3]
    in_specs = [
        pl.BlockSpec(lat_rows.shape, lambda j: (0, 0)),
        pl.BlockSpec(w1.shape, lambda j: (0, 0, 0)),
        pl.BlockSpec(b1.shape, lambda j: (0, 0)),
        pl.BlockSpec(mask.shape, lambda j: (0, 0)),
        pl.BlockSpec(w3.shape, lambda j: (0, 0, 0)),
        pl.BlockSpec(b3.shape, lambda j: (0, 0)),
    ]
    if has_res:
        operands.append(res_rows)
        in_specs.append(pl.BlockSpec(res_rows.shape, lambda j: (0, 0)))

    scratch_rows = m_out + 2 * w + 4
    block_bytes = sum(int(op.size) * op.dtype.itemsize for op in operands)
    block_bytes += 2 * m_out * cout_p * 2 + scratch_rows * LANE * 2
    flops = 2 * n * h * w * cout_real * (cin_real + 9 * cout_real)
    bytes_accessed = sum(int(op.size) * op.dtype.itemsize for op in operands)
    bytes_accessed += 2 * m_out * cout_p * 2

    kernel = functools.partial(_fpn_merge_kernel, taps3=taps3, m_out=m_out,
                               has_res=has_res)
    inner_rows, out_rows = pl.pallas_call(
        kernel,
        out_shape=(jax.ShapeDtypeStruct((m_out, cout_p), jnp.bfloat16),
                   jax.ShapeDtypeStruct((m_out, cout_p), jnp.bfloat16)),
        grid=(1,),
        in_specs=in_specs,
        out_specs=(pl.BlockSpec((m_out, LANE), lambda j: (0, j)),
                   pl.BlockSpec((m_out, LANE), lambda j: (0, j))),
        scratch_shapes=[pltpu.VMEM((scratch_rows, LANE), jnp.bfloat16)],
        compiler_params=pltpu.CompilerParams(
            dimension_semantics=("arbitrary",),
            vmem_limit_bytes=_vmem_limit(2 * block_bytes)),
        cost_estimate=pl.CostEstimate(flops=int(flops), transcendentals=0,
                                      bytes_accessed=int(bytes_accessed)),
    )(*operands)
    return inner_rows, out_rows


# ----------------------------------------------------------------------------
# backbone stride-2 3x3 conv (2x2 phase split, guard-column, batch-folded)
# ----------------------------------------------------------------------------
def conv3x3_s2(x_nhwc, w_mat, b_mat, *, relu, cin_real, cout_real):
    n, h, w, cp = x_nhwc.shape
    assert h % 2 == 0 and w % 2 == 0, "stride-2 path assumes even H/W"
    ho, wo = h // 2, w // 2
    s2 = (ho + 1) * (wo + 1)
    m_out = n * s2
    tail = wo + 2

    srcs = []
    for p in (0, 1):
        for q in (0, 1):
            ph = x_nhwc[:, p::2, q::2, :]                         # (n, ho, wo, cp)
            ph = jnp.pad(ph, ((0, 0), (1, 0), (1, 0), (0, 0)))    # top row + left guard
            rows = ph.reshape(n * s2, cp)
            srcs.append(jnp.pad(rows, ((0, tail), (0, 0))))

    taps = []
    for dy in range(3):
        p, da = (1, -1) if dy == 0 else ((0, 0) if dy == 1 else (1, 0))
        for dx in range(3):
            q, db = (1, -1) if dx == 0 else ((0, 0) if dx == 1 else (1, 0))
            taps.append((2 * p + q, (wo + 2) + da * (wo + 1) + db))

    flops = 2 * n * ho * wo * cin_real * cout_real * 9
    out_rows = _tap_conv_call(srcs, tuple(taps), w_mat, b_mat,
                              m_out=m_out, relu=relu, flops=flops)
    return _rows_to_nhwc(out_rows, n, s2, ho, wo, 0)


# ----------------------------------------------------------------------------
# parameter init (deterministic, synthetic) + packing (lane-padded, per-tap)
# ----------------------------------------------------------------------------
def _init_conv(key, cout, cin, kh, kw):
    k_w, k_b = jax.random.split(key)
    fan_in = cin * kh * kw
    w = jax.random.normal(k_w, (cout, cin, kh, kw), jnp.float32) / jnp.sqrt(
        jnp.float32(fan_in))
    b = jax.random.normal(k_b, (cout,), jnp.float32) * 0.01
    return w, b


def _pack_conv(w_oihw, b, cin_pad, cout_pad, tap_order):
    cout, cin, _, _ = w_oihw.shape
    slabs = []
    for dy, dx in tap_order:
        wt = jnp.transpose(w_oihw[:, :, dy, dx], (1, 0))          # (cin, cout)
        wt = jnp.pad(wt, ((0, cin_pad - cin), (0, cout_pad - cout)))
        slabs.append(wt)
    w_mat = jnp.stack(slabs, axis=0).astype(jnp.bfloat16)         # (T, cin_p, cout_p)
    b_mat = jnp.pad(b, (0, cout_pad - cout)).astype(jnp.float32).reshape(1, cout_pad)
    return w_mat, b_mat


class BackboneWithFPNPallas:
    """Mirrors BackboneWithFPN(backbone_type='intermediate', use_fpn=True,
    extra_blocks=LastLevelMaxPool()) with a 3-stage conv backbone."""

    def __init__(self, key, in_ch=4, in_channels_list=(8, 16, 32), out_channels=16):
        assert out_channels <= LANE  # TODO(synk): multi-Cout-tile fused FPN kernel
        self.in_channels_list = tuple(in_channels_list)
        self.out_channels = out_channels

        n_levels = len(in_channels_list)
        keys = jax.random.split(key, 3 * n_levels)
        cout_pad = _round_up(out_channels, LANE)

        # --- body: 3-stage backbone (Conv3x3 s2 p1 + ReLU per stage) ---
        self.body_packed = OrderedDict()
        self.body_raw = []
        prev = in_ch
        for i, c in enumerate(in_channels_list):
            w, b = _init_conv(keys[i], c, prev, 3, 3)
            self.body_raw.append((w, b))
            wp, bp = _pack_conv(w, b, _round_up(prev, LANE), _round_up(c, LANE),
                                TAP_ORDER_3X3)
            self.body_packed[f"layer{i + 1}"] = (wp, bp, prev, c)
            prev = c
        self.return_layers = {f"layer{i + 1}": str(i) for i in range(n_levels)}

        # --- FPN: 1x1 lateral ("inner") + 3x3 output ("layer") convs ---
        self.inner_packed, self.layer_packed = [], []
        self.inner_raw, self.layer_raw = [], []
        for i, c in enumerate(in_channels_list):
            w, b = _init_conv(keys[n_levels + 2 * i], out_channels, c, 1, 1)
            self.inner_raw.append((w, b))
            w1, b1 = _pack_conv(w, b, _round_up(c, LANE), cout_pad, TAP_ORDER_1X1)
            self.inner_packed.append((w1, b1, c))
            w, b = _init_conv(keys[n_levels + 2 * i + 1], out_channels,
                              out_channels, 3, 3)
            self.layer_raw.append((w, b))
            self.layer_packed.append(_pack_conv(w, b, cout_pad, cout_pad,
                                                TAP_ORDER_3X3))

    # ---- body == IntermediateLayerGetter.forward ----
    def _body(self, x_nhwc, return_list=None):
        return_layers = self.return_layers if return_list is None else return_list
        out = OrderedDict()
        x = x_nhwc
        for name, (w_mat, b_mat, cin_r, cout_r) in self.body_packed.items():
            x = conv3x3_s2(x, w_mat, b_mat, relu=True,
                           cin_real=cin_r, cout_real=cout_r)
            if name in return_layers:
                out[return_layers[name]] = x
        return out

    # ---- fpn == FeaturePyramidNetwork.forward + LastLevelMaxPool ----
    def _fpn(self, feats):
        names = list(feats.keys())
        xs = list(feats.values())
        results = [None] * len(xs)

        last_inner = None
        for idx in range(len(xs) - 1, -1, -1):
            lat = xs[idx]
            n, h, w, _ = lat.shape
            lat_rows = _guarded_rows_s1(lat)
            res_rows = None
            if last_inner is not None:
                td = _upsample_nearest(last_inner, h, w)          # broadcast 2x
                res_rows = _guarded_rows_s1(td)
            w1, b1, cin_r = self.inner_packed[idx]
            w3, b3 = self.layer_packed[idx]
            mask = _valid_mask_s1(n, h, w)
            inner_rows, out_rows = _fpn_merge(
                lat_rows, res_rows, w1, b1, w3, b3, mask,
                n=n, h=h, w=w, cin_real=cin_r, cout_real=self.out_channels)
            s1 = _s1_rows_per_image(h, w)
            last_inner = _rows_to_nhwc(inner_rows, n, s1, h, w, w + 2)
            results[idx] = _rows_to_nhwc(out_rows, n, s1, h, w, 0)

        # LastLevelMaxPool: max_pool2d(x, 1, 2, 0) == strided subsample (0 FLOPs)
        names = names + ["pool"]
        results = results + [results[-1][:, ::2, ::2, :]]
        return OrderedDict(zip(names, results))

    def __call__(self, x_nchw, return_list=None):
        # NCHW -> NHWC, pad channels to 128 lanes, bf16 internal storage
        x = jnp.transpose(x_nchw, (0, 2, 3, 1))
        x = _pad_channels_to(x, _round_up(x.shape[-1], LANE)).astype(jnp.bfloat16)
        feats = self._body(x, return_list)
        outs = self._fpn(feats)
        res = OrderedDict()
        for k, v in outs.items():
            v = v[..., :self.out_channels]
            res[k] = jnp.transpose(v, (0, 3, 1, 2)).astype(x_nchw.dtype)
        return res


# ----------------------------------------------------------------------------
# pure-JAX reference (mirrors the kernel's bf16 rounding points)
# ----------------------------------------------------------------------------
def _reference_forward(x_nchw, model):
    f32, bf16 = jnp.float32, jnp.bfloat16
    hp = jax.lax.Precision.HIGHEST

    def conv(x, w, b, stride, pad):
        w = w.astype(bf16).astype(f32)
        y = jax.lax.conv_general_dilated(
            x, jnp.transpose(w, (2, 3, 1, 0)), (stride, stride),
            ((pad, pad), (pad, pad)),
            dimension_numbers=("NHWC", "HWIO", "NHWC"), precision=hp)
        return y + b.astype(f32)

    x = jnp.transpose(x_nchw, (0, 2, 3, 1)).astype(bf16).astype(f32)
    feats = []
    h = x
    for (w, b) in model.body_raw:
        h = jax.nn.relu(conv(h, w, b, 2, 1)).astype(bf16).astype(f32)
        feats.append(h)

    results = [None] * len(feats)
    last = None
    for idx in range(len(feats) - 1, -1, -1):
        wi, bi = model.inner_raw[idx]
        inner = conv(feats[idx], wi, bi, 1, 0)
        if last is not None:
            inner = inner + _upsample_nearest(last, feats[idx].shape[1],
                                              feats[idx].shape[2])
        inner_b = inner.astype(bf16).astype(f32)
        wl, bl = model.layer_raw[idx]
        results[idx] = conv(inner_b, wl, bl, 1, 1).astype(bf16).astype(f32)
        last = inner_b

    out = OrderedDict((str(i), results[i]) for i in range(len(results)))
    out["pool"] = results[-1][:, ::2, ::2, :]
    return OrderedDict((k, jnp.transpose(v, (0, 3, 1, 2)).astype(x_nchw.dtype))
                       for k, v in out.items())


# ----------------------------------------------------------------------------
if __name__ == "__main__":
    key = jax.random.PRNGKey(0)
    k_params, k_x = jax.random.split(key)

    model = BackboneWithFPNPallas(k_params, in_ch=4,
                                  in_channels_list=(8, 16, 32), out_channels=16)

    x = jax.random.normal(k_x, (2, 4, 16, 16), jnp.float32)   # NCHW like PyTorch

    fwd = jax.jit(lambda inp: model(inp))
    out = fwd(x)
    jax.block_until_ready(list(out.values()))

    expected = {
        "0": (2, 16, 8, 8),
        "1": (2, 16, 4, 4),
        "2": (2, 16, 2, 2),
        "pool": (2, 16, 1, 1),
    }
    for k, shape in expected.items():
        assert out[k].shape == shape, (k, out[k].shape, shape)
        assert bool(jnp.all(jnp.isfinite(out[k]))), k

    ref = jax.jit(lambda inp: _reference_forward(inp, model))(x)
    jax.block_until_ready(list(ref.values()))
    for k in expected:
        err = float(jnp.max(jnp.abs(out[k] - ref[k])))
        assert err < 5e-2, (k, err)

    print("KERNEL_OK")
</pallas_src>

<mosaic_0001>
module attributes {stable_mosaic.version = 11 : i64} {
  func.func @_tap_conv_kernel(%arg0: i32, %arg1: memref<172x128xbf16, #tpu.memory_space<vmem>>, %arg2: memref<172x128xbf16, #tpu.memory_space<vmem>>, %arg3: memref<172x128xbf16, #tpu.memory_space<vmem>>, %arg4: memref<172x128xbf16, #tpu.memory_space<vmem>>, %arg5: memref<9x128x128xbf16, #tpu.memory_space<vmem>>, %arg6: memref<1x128xf32, #tpu.memory_space<vmem>>, %arg7: memref<162x128xbf16, #tpu.memory_space<vmem>>) attributes {dimension_semantics = [#tpu.dimension_semantics<parallel>], iteration_bounds = array<i64: 1>, scalar_prefetch = 0 : i64, scratch_operands = 0 : i64, tpu.core_type = #tpu.core_type<tc>, window_params = [{pipeline_mode = #tpu.pipeline_mode<synchronous>, transform_indices = @transform_0, window_bounds = array<i64: 172, 128>}, {pipeline_mode = #tpu.pipeline_mode<synchronous>, transform_indices = @transform_1, window_bounds = array<i64: 172, 128>}, {pipeline_mode = #tpu.pipeline_mode<synchronous>, transform_indices = @transform_2, window_bounds = array<i64: 172, 128>}, {pipeline_mode = #tpu.pipeline_mode<synchronous>, transform_indices = @transform_3, window_bounds = array<i64: 172, 128>}, {transform_indices = @transform_4, window_bounds = array<i64: 9, 128, 128>}, {transform_indices = @transform_5, window_bounds = array<i64: 1, 128>}, {transform_indices = @transform_6, window_bounds = array<i64: 162, 128>}]} {
    %c0 = arith.constant 0 : index
    %c0_0 = arith.constant 0 : index
    %0 = vector.load %arg4[%c0, %c0_0] : memref<172x128xbf16, #tpu.memory_space<vmem>>, vector<162x128xbf16>
    %c0_1 = arith.constant 0 : index
    %c0_2 = arith.constant 0 : index
    %c0_3 = arith.constant 0 : index
    %1 = vector.load %arg5[%c0_1, %c0_2, %c0_3] : memref<9x128x128xbf16, #tpu.memory_space<vmem>>, vector<1x128x128xbf16>
    %2 = vector.shape_cast %1 : vector<1x128x128xbf16> to vector<128x128xbf16>
    %cst = arith.constant dense<0.000000e+00> : vector<162x128xf32>
    %3 = tpu.matmul %0, %2, %cst {dimension_numbers = #tpu.dot_dimension_numbers<[1], [0], [0], [1], [0, 0, 1, 1], [], []>} : vector<162x128xbf16>, vector<128x128xbf16>, vector<162x128xf32> -> vector<162x128xf32>
    %c1 = arith.constant 1 : index
    %c0_4 = arith.constant 0 : index
    %4 = vector.load %arg3[%c1, %c0_4] : memref<172x128xbf16, #tpu.memory_space<vmem>>, vector<162x128xbf16>
    %c1_5 = arith.constant 1 : index
    %c0_6 = arith.constant 0 : index
    %c0_7 = arith.constant 0 : index
    %5 = vector.load %arg5[%c1_5, %c0_6, %c0_7] : memref<9x128x128xbf16, #tpu.memory_space<vmem>>, vector<1x128x128xbf16>
    %6 = vector.shape_cast %5 : vector<1x128x128xbf16> to vector<128x128xbf16>
    %cst_8 = arith.constant dense<0.000000e+00> : vector<162x128xf32>
    %7 = tpu.matmul %4, %6, %cst_8 {dimension_numbers = #tpu.dot_dimension_numbers<[1], [0], [0], [1], [0, 0, 1, 1], [], []>} : vector<162x128xbf16>, vector<128x128xbf16>, vector<162x128xf32> -> vector<162x128xf32>
    %8 = arith.addf %3, %7 : vector<162x128xf32>
    %c1_9 = arith.constant 1 : index
    %c0_10 = arith.constant 0 : index
    %9 = vector.load %arg4[%c1_9, %c0_10] : memref<172x128xbf16, #tpu.memory_space<vmem>>, vector<162x128xbf16>
    %c2 = arith.constant 2 : index
    %c0_11 = arith.constant 0 : index
    %c0_12 = arith.constant 0 : index
    %10 = vector.load %arg5[%c2, %c0_11, %c0_12] : memref<9x128x128xbf16, #tpu.memory_space<vmem>>, vector<1x128x128xbf16>
    %11 = vector.shape_cast %10 : vector<1x128x128xbf16> to vector<128x128xbf16>
    %cst_13 = arith.constant dense<0.000000e+00> : vector<162x128xf32>
    %12 = tpu.matmul %9, %11, %cst_13 {dimension_numbers = #tpu.dot_dimension_numbers<[1], [0], [0], [1], [0, 0, 1, 1], [], []>} : vector<162x128xbf16>, vector<128x128xbf16>, vector<162x128xf32> -> vector<162x128xf32>
    %13 = arith.addf %8, %12 : vector<162x128xf32>
    %c9 = arith.constant 9 : index
    %c0_14 = arith.constant 0 : index
    %14 = vector.load %arg2[%c9, %c0_14] : memref<172x128xbf16, #tpu.memory_space<vmem>>, vector<162x128xbf16>
    %c3 = arith.constant 3 : index
    %c0_15 = arith.constant 0 : index
    %c0_16 = arith.constant 0 : index
    %15 = vector.load %arg5[%c3, %c0_15, %c0_16] : memref<9x128x128xbf16, #tpu.memory_space<vmem>>, vector<1x128x128xbf16>
    %16 = vector.shape_cast %15 : vector<1x128x128xbf16> to vector<128x128xbf16>
    %cst_17 = arith.constant dense<0.000000e+00> : vector<162x128xf32>
    %17 = tpu.matmul %14, %16, %cst_17 {dimension_numbers = #tpu.dot_dimension_numbers<[1], [0], [0], [1], [0, 0, 1, 1], [], []>} : vector<162x128xbf16>, vector<128x128xbf16>, vector<162x128xf32> -> vector<162x128xf32>
    %18 = arith.addf %13, %17 : vector<162x128xf32>
    %c10 = arith.constant 10 : index
    %c0_18 = arith.constant 0 : index
    %19 = vector.load %arg1[%c10, %c0_18] : memref<172x128xbf16, #tpu.memory_space<vmem>>, vector<162x128xbf16>
    %c4 = arith.constant 4 : index
    %c0_19 = arith.constant 0 : index
    %c0_20 = arith.constant 0 : index
    %20 = vector.load %arg5[%c4, %c0_19, %c0_20] : memref<9x128x128xbf16, #tpu.memory_space<vmem>>, vector<1x128x128xbf16>
    %21 = vector.shape_cast %20 : vector<1x128x128xbf16> to vector<128x128xbf16>
    %cst_21 = arith.constant dense<0.000000e+00> : vector<162x128xf32>
    %22 = tpu.matmul %19, %21, %cst_21 {dimension_numbers = #tpu.dot_dimension_numbers<[1], [0], [0], [1], [0, 0, 1, 1], [], []>} : vector<162x128xbf16>, vector<128x128xbf16>, vector<162x128xf32> -> vector<162x128xf32>
    %23 = arith.addf %18, %22 : vector<162x128xf32>
    %c10_22 = arith.constant 10 : index
    %c0_23 = arith.constant 0 : index
    %24 = vector.load %arg2[%c10_22, %c0_23] : memref<172x128xbf16, #tpu.memory_space<vmem>>, vector<162x128xbf16>
    %c5 = arith.constant 5 : index
    %c0_24 = arith.constant 0 : index
    %c0_25 = arith.constant 0 : index
    %25 = vector.load %arg5[%c5, %c0_24, %c0_25] : memref<9x128x128xbf16, #tpu.memory_space<vmem>>, vector<1x128x128xbf16>
    %26 = vector.shape_cast %25 : vector<1x128x128xbf16> to vector<128x128xbf16>
    %cst_26 = arith.constant dense<0.000000e+00> : vector<162x128xf32>
    %27 = tpu.matmul %24, %26, %cst_26 {dimension_numbers = #tpu.dot_dimension_numbers<[1], [0], [0], [1], [0, 0, 1, 1], [], []>} : vector<162x128xbf16>, vector<128x128xbf16>, vector<162x128xf32> -> vector<162x128xf32>
    %28 = arith.addf %23, %27 : vector<162x128xf32>
    %c9_27 = arith.constant 9 : index
    %c0_28 = arith.constant 0 : index
    %29 = vector.load %arg4[%c9_27, %c0_28] : memref<172x128xbf16, #tpu.memory_space<vmem>>, vector<162x128xbf16>
    %c6 = arith.constant 6 : index
    %c0_29 = arith.constant 0 : index
    %c0_30 = arith.constant 0 : index
    %30 = vector.load %arg5[%c6, %c0_29, %c0_30] : memref<9x128x128xbf16, #tpu.memory_space<vmem>>, vector<1x128x128xbf16>
    %31 = vector.shape_cast %30 : vector<1x128x128xbf16> to vector<128x128xbf16>
    %cst_31 = arith.constant dense<0.000000e+00> : vector<162x128xf32>
    %32 = tpu.matmul %29, %31, %cst_31 {dimension_numbers = #tpu.dot_dimension_numbers<[1], [0], [0], [1], [0, 0, 1, 1], [], []>} : vector<162x128xbf16>, vector<128x128xbf16>, vector<162x128xf32> -> vector<162x128xf32>
    %33 = arith.addf %28, %32 : vector<162x128xf32>
    %c10_32 = arith.constant 10 : index
    %c0_33 = arith.constant 0 : index
    %34 = vector.load %arg3[%c10_32, %c0_33] : memref<172x128xbf16, #tpu.memory_space<vmem>>, vector<162x128xbf16>
    %c7 = arith.constant 7 : index
    %c0_34 = arith.constant 0 : index
    %c0_35 = arith.constant 0 : index
    %35 = vector.load %arg5[%c7, %c0_34, %c0_35] : memref<9x128x128xbf16, #tpu.memory_space<vmem>>, vector<1x128x128xbf16>
    %36 = vector.shape_cast %35 : vector<1x128x128xbf16> to vector<128x128xbf16>
    %cst_36 = arith.constant dense<0.000000e+00> : vector<162x128xf32>
    %37 = tpu.matmul %34, %36, %cst_36 {dimension_numbers = #tpu.dot_dimension_numbers<[1], [0], [0], [1], [0, 0, 1, 1], [], []>} : vector<162x128xbf16>, vector<128x128xbf16>, vector<162x128xf32> -> vector<162x128xf32>
    %38 = arith.addf %33, %37 : vector<162x128xf32>
    %c10_37 = arith.constant 10 : index
    %c0_38 = arith.constant 0 : index
    %39 = vector.load %arg4[%c10_37, %c0_38] : memref<172x128xbf16, #tpu.memory_space<vmem>>, vector<162x128xbf16>
    %c8 = arith.constant 8 : index
    %c0_39 = arith.constant 0 : index
    %c0_40 = arith.constant 0 : index
    %40 = vector.load %arg5[%c8, %c0_39, %c0_40] : memref<9x128x128xbf16, #tpu.memory_space<vmem>>, vector<1x128x128xbf16>
    %41 = vector.shape_cast %40 : vector<1x128x128xbf16> to vector<128x128xbf16>
    %cst_41 = arith.constant dense<0.000000e+00> : vector<162x128xf32>
    %42 = tpu.matmul %39, %41, %cst_41 {dimension_numbers = #tpu.dot_dimension_numbers<[1], [0], [0], [1], [0, 0, 1, 1], [], []>} : vector<162x128xbf16>, vector<128x128xbf16>, vector<162x128xf32> -> vector<162x128xf32>
    %43 = arith.addf %38, %42 : vector<162x128xf32>
    %c0_42 = arith.constant 0 : index
    %c0_43 = arith.constant 0 : index
    %44 = vector.load %arg6[%c0_42, %c0_43] : memref<1x128xf32, #tpu.memory_space<vmem>>, vector<1x128xf32>
    %45 = vector.broadcast %44 : vector<1x128xf32> to vector<162x128xf32>
    %46 = arith.addf %43, %45 : vector<162x128xf32>
    %cst_44 = arith.constant 0.000000e+00 : f32
    %47 = vector.broadcast %cst_44 : f32 to vector<162x128xf32>
    %48 = arith.maximumf %46, %47 : vector<162x128xf32>
    %49 = arith.truncf %48 : vector<162x128xf32> to vector<162x128xbf16>
    %c0_45 = arith.constant 0 : index
    %c0_46 = arith.constant 0 : index
    %50 = vector.load %arg7[%c0_45, %c0_46] : memref<162x128xbf16, #tpu.memory_space<vmem>>, vector<162x128xbf16>
    tpu.vector_store %arg7[%c0_45, %c0_46], %49 {strides = array<i32>} : memref<162x128xbf16, #tpu.memory_space<vmem>>, vector<162x128xbf16>,
    return
  }
  func.func @transform_0(%arg0: i32) -> (i32, i32) {
    %c0_i32 = arith.constant 0 : i32
    %c0_i32_0 = arith.constant 0 : i32
    %c0_i32_1 = arith.constant 0 : i32
    return %c0_i32, %c0_i32_0 : i32, i32
  }
  func.func @transform_1(%arg0: i32) -> (i32, i32) {
    %c0_i32 = arith.constant 0 : i32
    %c0_i32_0 = arith.constant 0 : i32
    %c0_i32_1 = arith.constant 0 : i32
    return %c0_i32, %c0_i32_0 : i32, i32
  }
  func.func @transform_2(%arg0: i32) -> (i32, i32) {
    %c0_i32 = arith.constant 0 : i32
    %c0_i32_0 = arith.constant 0 : i32
    %c0_i32_1 = arith.constant 0 : i32
    return %c0_i32, %c0_i32_0 : i32, i32
  }
  func.func @transform_3(%arg0: i32) -> (i32, i32) {
    %c0_i32 = arith.constant 0 : i32
    %c0_i32_0 = arith.constant 0 : i32
    %c0_i32_1 = arith.constant 0 : i32
    return %c0_i32, %c0_i32_0 : i32, i32
  }
  func.func @transform_4(%arg0: i32) -> (i32, i32, i32) {
    %c0_i32 = arith.constant 0 : i32
    %c0_i32_0 = arith.constant 0 : i32
    %c0_i32_1 = arith.constant 0 : i32
    return %c0_i32, %c0_i32_0, %arg0 : i32, i32, i32
  }
  func.func @transform_5(%arg0: i32) -> (i32, i32) {
    %c0_i32 = arith.constant 0 : i32
    %c0_i32_0 = arith.constant 0 : i32
    return %c0_i32, %arg0 : i32, i32
  }
  func.func @transform_6(%arg0: i32) -> (i32, i32) {
    %c0_i32 = arith.constant 0 : i32
    %c0_i32_0 = arith.constant 0 : i32
    return %c0_i32, %arg0 : i32, i32
  }
}

module attributes {stable_mosaic.version = 11 : i64} {
  func.func @_tap_conv_kernel(%arg0: i32, %arg1: memref<56x128xbf16, #tpu.memory_space<vmem>>, %arg2: memref<56x128xbf16, #tpu.memory_space<vmem>>, %arg3: memref<56x128xbf16, #tpu.memory_space<vmem>>, %arg4: memref<56x128xbf16, #tpu.memory_space<vmem>>, %arg5: memref<9x128x128xbf16, #tpu.memory_space<vmem>>, %arg6: memref<1x128xf32, #tpu.memory_space<vmem>>, %arg7: memref<50x128xbf16, #tpu.memory_space<vmem>>) attributes {dimension_semantics = [#tpu.dimension_semantics<parallel>], iteration_bounds = array<i64: 1>, scalar_prefetch = 0 : i64, scratch_operands = 0 : i64, tpu.core_type = #tpu.core_type<tc>, window_params = [{pipeline_mode = #tpu.pipeline_mode<synchronous>, transform_indices = @transform_0, window_bounds = array<i64: 56, 128>}, {pipeline_mode = #tpu.pipeline_mode<synchronous>, transform_indices = @transform_1, window_bounds = array<i64: 56, 128>}, {pipeline_mode = #tpu.pipeline_mode<synchronous>, transform_indices = @transform_2, window_bounds = array<i64: 56, 128>}, {pipeline_mode = #tpu.pipeline_mode<synchronous>, transform_indices = @transform_3, window_bounds = array<i64: 56, 128>}, {transform_indices = @transform_4, window_bounds = array<i64: 9, 128, 128>}, {transform_indices = @transform_5, window_bounds = array<i64: 1, 128>}, {transform_indices = @transform_6, window_bounds = array<i64: 50, 128>}]} {
    %c0 = arith.constant 0 : index
    %c0_0 = arith.constant 0 : index
    %0 = vector.load %arg4[%c0, %c0_0] : memref<56x128xbf16, #tpu.memory_space<vmem>>, vector<50x128xbf16>
    %c0_1 = arith.constant 0 : index
    %c0_2 = arith.constant 0 : index
    %c0_3 = arith.constant 0 : index
    %1 = vector.load %arg5[%c0_1, %c0_2, %c0_3] : memref<9x128x128xbf16, #tpu.memory_space<vmem>>, vector<1x128x128xbf16>
    %2 = vector.shape_cast %1 : vector<1x128x128xbf16> to vector<128x128xbf16>
    %cst = arith.constant dense<0.000000e+00> : vector<50x128xf32>
    %3 = tpu.matmul %0, %2, %cst {dimension_numbers = #tpu.dot_dimension_numbers<[1], [0], [0], [1], [0, 0, 1, 1], [], []>} : vector<50x128xbf16>, vector<128x128xbf16>, vector<50x128xf32> -> vector<50x128xf32>
    %c1 = arith.constant 1 : index
    %c0_4 = arith.constant 0 : index
    %4 = vector.load %arg3[%c1, %c0_4] : memref<56x128xbf16, #tpu.memory_space<vmem>>, vector<50x128xbf16>
    %c1_5 = arith.constant 1 : index
    %c0_6 = arith.constant 0 : index
    %c0_7 = arith.constant 0 : index
    %5 = vector.load %arg5[%c1_5, %c0_6, %c0_7] : memref<9x128x128xbf16, #tpu.memory_space<vmem>>, vector<1x128x128xbf16>
    %6 = vector.shape_cast %5 : vector<1x128x128xbf16> to vector<128x128xbf16>
    %cst_8 = arith.constant dense<0.000000e+00> : vector<50x128xf32>
    %7 = tpu.matmul %4, %6, %cst_8 {dimension_numbers = #tpu.dot_dimension_numbers<[1], [0], [0], [1], [0, 0, 1, 1], [], []>} : vector<50x128xbf16>, vector<128x128xbf16>, vector<50x128xf32> -> vector<50x128xf32>
    %8 = arith.addf %3, %7 : vector<50x128xf32>
    %c1_9 = arith.constant 1 : index
    %c0_10 = arith.constant 0 : index
    %9 = vector.load %arg4[%c1_9, %c0_10] : memref<56x128xbf16, #tpu.memory_space<vmem>>, vector<50x128xbf16>
    %c2 = arith.constant 2 : index
    %c0_11 = arith.constant 0 : index
    %c0_12 = arith.constant 0 : index
    %10 = vector.load %arg5[%c2, %c0_11, %c0_12] : memref<9x128x128xbf16, #tpu.memory_space<vmem>>, vector<1x128x128xbf16>
    %11 = vector.shape_cast %10 : vector<1x128x128xbf16> to vector<128x128xbf16>
    %cst_13 = arith.constant dense<0.000000e+00> : vector<50x128xf32>
    %12 = tpu.matmul %9, %11, %cst_13 {dimension_numbers = #tpu.dot_dimension_numbers<[1], [0], [0], [1], [0, 0, 1, 1], [], []>} : vector<50x128xbf16>, vector<128x128xbf16>, vector<50x128xf32> -> vector<50x128xf32>
    %13 = arith.addf %8, %12 : vector<50x128xf32>
    %c5 = arith.constant 5 : index
    %c0_14 = arith.constant 0 : index
    %14 = vector.load %arg2[%c5, %c0_14] : memref<56x128xbf16, #tpu.memory_space<vmem>>, vector<50x128xbf16>
    %c3 = arith.constant 3 : index
    %c0_15 = arith.constant 0 : index
    %c0_16 = arith.constant 0 : index
    %15 = vector.load %arg5[%c3, %c0_15, %c0_16] : memref<9x128x128xbf16, #tpu.memory_space<vmem>>, vector<1x128x128xbf16>
    %16 = vector.shape_cast %15 : vector<1x128x128xbf16> to vector<128x128xbf16>
    %cst_17 = arith.constant dense<0.000000e+00> : vector<50x128xf32>
    %17 = tpu.matmul %14, %16, %cst_17 {dimension_numbers = #tpu.dot_dimension_numbers<[1], [0], [0], [1], [0, 0, 1, 1], [], []>} : vector<50x128xbf16>, vector<128x128xbf16>, vector<50x128xf32> -> vector<50x128xf32>
    %18 = arith.addf %13, %17 : vector<50x128xf32>
    %c6 = arith.constant 6 : index
    %c0_18 = arith.constant 0 : index
    %19 = vector.load %arg1[%c6, %c0_18] : memref<56x128xbf16, #tpu.memory_space<vmem>>, vector<50x128xbf16>
    %c4 = arith.constant 4 : index
    %c0_19 = arith.constant 0 : index
    %c0_20 = arith.constant 0 : index
    %20 = vector.load %arg5[%c4, %c0_19, %c0_20] : memref<9x128x128xbf16, #tpu.memory_space<vmem>>, vector<1x128x128xbf16>
    %21 = vector.shape_cast %20 : vector<1x128x128xbf16> to vector<128x128xbf16>
    %cst_21 = arith.constant dense<0.000000e+00> : vector<50x128xf32>
    %22 = tpu.matmul %19, %21, %cst_21 {dimension_numbers = #tpu.dot_dimension_numbers<[1], [0], [0], [1], [0, 0, 1, 1], [], []>} : vector<50x128xbf16>, vector<128x128xbf16>, vector<50x128xf32> -> vector<50x128xf32>
    %23 = arith.addf %18, %22 : vector<50x128xf32>
    %c6_22 = arith.constant 6 : index
    %c0_23 = arith.constant 0 : index
    %24 = vector.load %arg2[%c6_22, %c0_23] : memref<56x128xbf16, #tpu.memory_space<vmem>>, vector<50x128xbf16>
    %c5_24 = arith.constant 5 : index
    %c0_25 = arith.constant 0 : index
    %c0_26 = arith.constant 0 : index
    %25 = vector.load %arg5[%c5_24, %c0_25, %c0_26] : memref<9x128x128xbf16, #tpu.memory_space<vmem>>, vector<1x128x128xbf16>
    %26 = vector.shape_cast %25 : vector<1x128x128xbf16> to vector<128x128xbf16>
    %cst_27 = arith.constant dense<0.000000e+00> : vector<50x128xf32>
    %27 = tpu.matmul %24, %26, %cst_27 {dimension_numbers = #tpu.dot_dimension_numbers<[1], [0], [0], [1], [0, 0, 1, 1], [], []>} : vector<50x128xbf16>, vector<128x128xbf16>, vector<50x128xf32> -> vector<50x128xf32>
    %28 = arith.addf %23, %27 : vector<50x128xf32>
    %c5_28 = arith.constant 5 : index
    %c0_29 = arith.constant 0 : index
    %29 = vector.load %arg4[%c5_28, %c0_29] : memref<56x128xbf16, #tpu.memory_space<vmem>>, vector<50x128xbf16>
    %c6_30 = arith.constant 6 : index
    %c0_31 = arith.constant 0 : index
    %c0_32 = arith.constant 0 : index
    %30 = vector.load %arg5[%c6_30, %c0_31, %c0_32] : memref<9x128x128xbf16, #tpu.memory_space<vmem>>, vector<1x128x128xbf16>
    %31 = vector.shape_cast %30 : vector<1x128x128xbf16> to vector<128x128xbf16>
    %cst_33 = arith.constant dense<0.000000e+00> : vector<50x128xf32>
    %32 = tpu.matmul %29, %31, %cst_33 {dimension_numbers = #tpu.dot_dimension_numbers<[1], [0], [0], [1], [0, 0, 1, 1], [], []>} : vector<50x128xbf16>, vector<128x128xbf16>, vector<50x128xf32> -> vector<50x128xf32>
    %33 = arith.addf %28, %32 : vector<50x128xf32>
    %c6_34 = arith.constant 6 : index
    %c0_35 = arith.constant 0 : index
    %34 = vector.load %arg3[%c6_34, %c0_35] : memref<56x128xbf16, #tpu.memory_space<vmem>>, vector<50x128xbf16>
    %c7 = arith.constant 7 : index
    %c0_36 = arith.constant 0 : index
    %c0_37 = arith.constant 0 : index
    %35 = vector.load %arg5[%c7, %c0_36, %c0_37] : memref<9x128x128xbf16, #tpu.memory_space<vmem>>, vector<1x128x128xbf16>
    %36 = vector.shape_cast %35 : vector<1x128x128xbf16> to vector<128x128xbf16>
    %cst_38 = arith.constant dense<0.000000e+00> : vector<50x128xf32>
    %37 = tpu.matmul %34, %36, %cst_38 {dimension_numbers = #tpu.dot_dimension_numbers<[1], [0], [0], [1], [0, 0, 1, 1], [], []>} : vector<50x128xbf16>, vector<128x128xbf16>, vector<50x128xf32> -> vector<50x128xf32>
    %38 = arith.addf %33, %37 : vector<50x128xf32>
    %c6_39 = arith.constant 6 : index
    %c0_40 = arith.constant 0 : index
    %39 = vector.load %arg4[%c6_39, %c0_40] : memref<56x128xbf16, #tpu.memory_space<vmem>>, vector<50x128xbf16>
    %c8 = arith.constant 8 : index
    %c0_41 = arith.constant 0 : index
    %c0_42 = arith.constant 0 : index
    %40 = vector.load %arg5[%c8, %c0_41, %c0_42] : memref<9x128x128xbf16, #tpu.memory_space<vmem>>, vector<1x128x128xbf16>
    %41 = vector.shape_cast %40 : vector<1x128x128xbf16> to vector<128x128xbf16>
    %cst_43 = arith.constant dense<0.000000e+00> : vector<50x128xf32>
    %42 = tpu.matmul %39, %41, %cst_43 {dimension_numbers = #tpu.dot_dimension_numbers<[1], [0], [0], [1], [0, 0, 1, 1], [], []>} : vector<50x128xbf16>, vector<128x128xbf16>, vector<50x128xf32> -> vector<50x128xf32>
    %43 = arith.addf %38, %42 : vector<50x128xf32>
    %c0_44 = arith.constant 0 : index
    %c0_45 = arith.constant 0 : index
    %44 = vector.load %arg6[%c0_44, %c0_45] : memref<1x128xf32, #tpu.memory_space<vmem>>, vector<1x128xf32>
    %45 = vector.broadcast %44 : vector<1x128xf32> to vector<50x128xf32>
    %46 = arith.addf %43, %45 : vector<50x128xf32>
    %cst_46 = arith.constant 0.000000e+00 : f32
    %47 = vector.broadcast %cst_46 : f32 to vector<50x128xf32>
    %48 = arith.maximumf %46, %47 : vector<50x128xf32>
    %49 = arith.truncf %48 : vector<50x128xf32> to vector<50x128xbf16>
    %c0_47 = arith.constant 0 : index
    %c0_48 = arith.constant 0 : index
    %50 = vector.load %arg7[%c0_47, %c0_48] : memref<50x128xbf16, #tpu.memory_space<vmem>>, vector<50x128xbf16>
    tpu.vector_store %arg7[%c0_47, %c0_48], %49 {strides = array<i32>} : memref<50x128xbf16, #tpu.memory_space<vmem>>, vector<50x128xbf16>,
    return
  }
  func.func @transform_0(%arg0: i32) -> (i32, i32) {
    %c0_i32 = arith.constant 0 : i32
    %c0_i32_0 = arith.constant 0 : i32
    %c0_i32_1 = arith.constant 0 : i32
    return %c0_i32, %c0_i32_0 : i32, i32
  }
  func.func @transform_1(%arg0: i32) -> (i32, i32) {
    %c0_i32 = arith.constant 0 : i32
    %c0_i32_0 = arith.constant 0 : i32
    %c0_i32_1 = arith.constant 0 : i32
    return %c0_i32, %c0_i32_0 : i32, i32
  }
  func.func @transform_2(%arg0: i32) -> (i32, i32) {
    %c0_i32 = arith.constant 0 : i32
    %c0_i32_0 = arith.constant 0 : i32
    %c0_i32_1 = arith.constant 0 : i32
    return %c0_i32, %c0_i32_0 : i32, i32
  }
  func.func @transform_3(%arg0: i32) -> (i32, i32) {
    %c0_i32 = arith.constant 0 : i32
    %c0_i32_0 = arith.constant 0 : i32
    %c0_i32_1 = arith.constant 0 : i32
    return %c0_i32, %c0_i32_0 : i32, i32
  }
  func.func @transform_4(%arg0: i32) -> (i32, i32, i32) {
    %c0_i32 = arith.constant 0 : i32
    %c0_i32_0 = arith.constant 0 : i32
    %c0_i32_1 = arith.constant 0 : i32
    return %c0_i32, %c0_i32_0, %arg0 : i32, i32, i32
  }
  func.func @transform_5(%arg0: i32) -> (i32, i32) {
    %c0_i32 = arith.constant 0 : i32
    %c0_i32_0 = arith.constant 0 : i32
    return %c0_i32, %arg0 : i32, i32
  }
  func.func @transform_6(%arg0: i32) -> (i32, i32) {
    %c0_i32 = arith.constant 0 : i32
    %c0_i32_0 = arith.constant 0 : i32
    return %c0_i32, %arg0 : i32, i32
  }
}

module attributes {stable_mosaic.version = 11 : i64} {
  func.func @_tap_conv_kernel(%arg0: i32, %arg1: memref<22x128xbf16, #tpu.memory_space<vmem>>, %arg2: memref<22x128xbf16, #tpu.memory_space<vmem>>, %arg3: memref<22x128xbf16, #tpu.memory_space<vmem>>, %arg4: memref<22x128xbf16, #tpu.memory_space<vmem>>, %arg5: memref<9x128x128xbf16, #tpu.memory_space<vmem>>, %arg6: memref<1x128xf32, #tpu.memory_space<vmem>>, %arg7: memref<18x128xbf16, #tpu.memory_space<vmem>>) attributes {dimension_semantics = [#tpu.dimension_semantics<parallel>], iteration_bounds = array<i64: 1>, scalar_prefetch = 0 : i64, scratch_operands = 0 : i64, tpu.core_type = #tpu.core_type<tc>, window_params = [{pipeline_mode = #tpu.pipeline_mode<synchronous>, transform_indices = @transform_0, window_bounds = array<i64: 22, 128>}, {pipeline_mode = #tpu.pipeline_mode<synchronous>, transform_indices = @transform_1, window_bounds = array<i64: 22, 128>}, {pipeline_mode = #tpu.pipeline_mode<synchronous>, transform_indices = @transform_2, window_bounds = array<i64: 22, 128>}, {pipeline_mode = #tpu.pipeline_mode<synchronous>, transform_indices = @transform_3, window_bounds = array<i64: 22, 128>}, {transform_indices = @transform_4, window_bounds = array<i64: 9, 128, 128>}, {transform_indices = @transform_5, window_bounds = array<i64: 1, 128>}, {transform_indices = @transform_6, window_bounds = array<i64: 18, 128>}]} {
    %c0 = arith.constant 0 : index
    %c0_0 = arith.constant 0 : index
    %0 = vector.load %arg4[%c0, %c0_0] : memref<22x128xbf16, #tpu.memory_space<vmem>>, vector<18x128xbf16>
    %c0_1 = arith.constant 0 : index
    %c0_2 = arith.constant 0 : index
    %c0_3 = arith.constant 0 : index
    %1 = vector.load %arg5[%c0_1, %c0_2, %c0_3] : memref<9x128x128xbf16, #tpu.memory_space<vmem>>, vector<1x128x128xbf16>
    %2 = vector.shape_cast %1 : vector<1x128x128xbf16> to vector<128x128xbf16>
    %cst = arith.constant dense<0.000000e+00> : vector<18x128xf32>
    %3 = tpu.matmul %0, %2, %cst {dimension_numbers = #tpu.dot_dimension_numbers<[1], [0], [0], [1], [0, 0, 1, 1], [], []>} : vector<18x128xbf16>, vector<128x128xbf16>, vector<18x128xf32> -> vector<18x128xf32>
    %c1 = arith.constant 1 : index
    %c0_4 = arith.constant 0 : index
    %4 = vector.load %arg3[%c1, %c0_4] : memref<22x128xbf16, #tpu.memory_space<vmem>>, vector<18x128xbf16>
    %c1_5 = arith.constant 1 : index
    %c0_6 = arith.constant 0 : index
    %c0_7 = arith.constant 0 : index
    %5 = vector.load %arg5[%c1_5, %c0_6, %c0_7] : memref<9x128x128xbf16, #tpu.memory_space<vmem>>, vector<1x128x128xbf16>
    %6 = vector.shape_cast %5 : vector<1x128x128xbf16> to vector<128x128xbf16>
    %cst_8 = arith.constant dense<0.000000e+00> : vector<18x128xf32>
    %7 = tpu.matmul %4, %6, %cst_8 {dimension_numbers = #tpu.dot_dimension_numbers<[1], [0], [0], [1], [0, 0, 1, 1], [], []>} : vector<18x128xbf16>, vector<128x128xbf16>, vector<18x128xf32> -> vector<18x128xf32>
    %8 = arith.addf %3, %7 : vector<18x128xf32>
    %c1_9 = arith.constant 1 : index
    %c0_10 = arith.constant 0 : index
    %9 = vector.load %arg4[%c1_9, %c0_10] : memref<22x128xbf16, #tpu.memory_space<vmem>>, vector<18x128xbf16>
    %c2 = arith.constant 2 : index
    %c0_11 = arith.constant 0 : index
    %c0_12 = arith.constant 0 : index
    %10 = vector.load %arg5[%c2, %c0_11, %c0_12] : memref<9x128x128xbf16, #tpu.memory_space<vmem>>, vector<1x128x128xbf16>
    %11 = vector.shape_cast %10 : vector<1x128x128xbf16> to vector<128x128xbf16>
    %cst_13 = arith.constant dense<0.000000e+00> : vector<18x128xf32>
    %12 = tpu.matmul %9, %11, %cst_13 {dimension_numbers = #tpu.dot_dimension_numbers<[1], [0], [0], [1], [0, 0, 1, 1], [], []>} : vector<18x128xbf16>, vector<128x128xbf16>, vector<18x128xf32> -> vector<18x128xf32>
    %13 = arith.addf %8, %12 : vector<18x128xf32>
    %c3 = arith.constant 3 : index
    %c0_14 = arith.constant 0 : index
    %14 = vector.load %arg2[%c3, %c0_14] : memref<22x128xbf16, #tpu.memory_space<vmem>>, vector<18x128xbf16>
    %c3_15 = arith.constant 3 : index
    %c0_16 = arith.constant 0 : index
    %c0_17 = arith.constant 0 : index
    %15 = vector.load %arg5[%c3_15, %c0_16, %c0_17] : memref<9x128x128xbf16, #tpu.memory_space<vmem>>, vector<1x128x128xbf16>
    %16 = vector.shape_cast %15 : vector<1x128x128xbf16> to vector<128x128xbf16>
    %cst_18 = arith.constant dense<0.000000e+00> : vector<18x128xf32>
    %17 = tpu.matmul %14, %16, %cst_18 {dimension_numbers = #tpu.dot_dimension_numbers<[1], [0], [0], [1], [0, 0, 1, 1], [], []>} : vector<18x128xbf16>, vector<128x128xbf16>, vector<18x128xf32> -> vector<18x128xf32>
    %18 = arith.addf %13, %17 : vector<18x128xf32>
    %c4 = arith.constant 4 : index
    %c0_19 = arith.constant 0 : index
    %19 = vector.load %arg1[%c4, %c0_19] : memref<22x128xbf16, #tpu.memory_space<vmem>>, vector<18x128xbf16>
    %c4_20 = arith.constant 4 : index
    %c0_21 = arith.constant 0 : index
    %c0_22 = arith.constant 0 : index
    %20 = vector.load %arg5[%c4_20, %c0_21, %c0_22] : memref<9x128x128xbf16, #tpu.memory_space<vmem>>, vector<1x128x128xbf16>
    %21 = vector.shape_cast %20 : vector<1x128x128xbf16> to vector<128x128xbf16>
    %cst_23 = arith.constant dense<0.000000e+00> : vector<18x128xf32>
    %22 = tpu.matmul %19, %21, %cst_23 {dimension_numbers = #tpu.dot_dimension_numbers<[1], [0], [0], [1], [0, 0, 1, 1], [], []>} : vector<18x128xbf16>, vector<128x128xbf16>, vector<18x128xf32> -> vector<18x128xf32>
    %23 = arith.addf %18, %22 : vector<18x128xf32>
    %c4_24 = arith.constant 4 : index
    %c0_25 = arith.constant 0 : index
    %24 = vector.load %arg2[%c4_24, %c0_25] : memref<22x128xbf16, #tpu.memory_space<vmem>>, vector<18x128xbf16>
    %c5 = arith.constant 5 : index
    %c0_26 = arith.constant 0 : index
    %c0_27 = arith.constant 0 : index
    %25 = vector.load %arg5[%c5, %c0_26, %c0_27] : memref<9x128x128xbf16, #tpu.memory_space<vmem>>, vector<1x128x128xbf16>
    %26 = vector.shape_cast %25 : vector<1x128x128xbf16> to vector<128x128xbf16>
    %cst_28 = arith.constant dense<0.000000e+00> : vector<18x128xf32>
    %27 = tpu.matmul %24, %26, %cst_28 {dimension_numbers = #tpu.dot_dimension_numbers<[1], [0], [0], [1], [0, 0, 1, 1], [], []>} : vector<18x128xbf16>, vector<128x128xbf16>, vector<18x128xf32> -> vector<18x128xf32>
    %28 = arith.addf %23, %27 : vector<18x128xf32>
    %c3_29 = arith.constant 3 : index
    %c0_30 = arith.constant 0 : index
    %29 = vector.load %arg4[%c3_29, %c0_30] : memref<22x128xbf16, #tpu.memory_space<vmem>>, vector<18x128xbf16>
    %c6 = arith.constant 6 : index
    %c0_31 = arith.constant 0 : index
    %c0_32 = arith.constant 0 : index
    %30 = vector.load %arg5[%c6, %c0_31, %c0_32] : memref<9x128x128xbf16, #tpu.memory_space<vmem>>, vector<1x128x128xbf16>
    %31 = vector.shape_cast %30 : vector<1x128x128xbf16> to vector<128x128xbf16>
    %cst_33 = arith.constant dense<0.000000e+00> : vector<18x128xf32>
    %32 = tpu.matmul %29, %31, %cst_33 {dimension_numbers = #tpu.dot_dimension_numbers<[1], [0], [0], [1], [0, 0, 1, 1], [], []>} : vector<18x128xbf16>, vector<128x128xbf16>, vector<18x128xf32> -> vector<18x128xf32>
    %33 = arith.addf %28, %32 : vector<18x128xf32>
    %c4_34 = arith.constant 4 : index
    %c0_35 = arith.constant 0 : index
    %34 = vector.load %arg3[%c4_34, %c0_35] : memref<22x128xbf16, #tpu.memory_space<vmem>>, vector<18x128xbf16>
    %c7 = arith.constant 7 : index
    %c0_36 = arith.constant 0 : index
    %c0_37 = arith.constant 0 : index
    %35 = vector.load %arg5[%c7, %c0_36, %c0_37] : memref<9x128x128xbf16, #tpu.memory_space<vmem>>, vector<1x128x128xbf16>
    %36 = vector.shape_cast %35 : vector<1x128x128xbf16> to vector<128x128xbf16>
    %cst_38 = arith.constant dense<0.000000e+00> : vector<18x128xf32>
    %37 = tpu.matmul %34, %36, %cst_38 {dimension_numbers = #tpu.dot_dimension_numbers<[1], [0], [0], [1], [0, 0, 1, 1], [], []>} : vector<18x128xbf16>, vector<128x128xbf16>, vector<18x128xf32> -> vector<18x128xf32>
    %38 = arith.addf %33, %37 : vector<18x128xf32>
    %c4_39 = arith.constant 4 : index
    %c0_40 = arith.constant 0 : index
    %39 = vector.load %arg4[%c4_39, %c0_40] : memref<22x128xbf16, #tpu.memory_space<vmem>>, vector<18x128xbf16>
    %c8 = arith.constant 8 : index
    %c0_41 = arith.constant 0 : index
    %c0_42 = arith.constant 0 : index
    %40 = vector.load %arg5[%c8, %c0_41, %c0_42] : memref<9x128x128xbf16, #tpu.memory_space<vmem>>, vector<1x128x128xbf16>
    %41 = vector.shape_cast %40 : vector<1x128x128xbf16> to vector<128x128xbf16>
    %cst_43 = arith.constant dense<0.000000e+00> : vector<18x128xf32>
    %42 = tpu.matmul %39, %41, %cst_43 {dimension_numbers = #tpu.dot_dimension_numbers<[1], [0], [0], [1], [0, 0, 1, 1], [], []>} : vector<18x128xbf16>, vector<128x128xbf16>, vector<18x128xf32> -> vector<18x128xf32>
    %43 = arith.addf %38, %42 : vector<18x128xf32>
    %c0_44 = arith.constant 0 : index
    %c0_45 = arith.constant 0 : index
    %44 = vector.load %arg6[%c0_44, %c0_45] : memref<1x128xf32, #tpu.memory_space<vmem>>, vector<1x128xf32>
    %45 = vector.broadcast %44 : vector<1x128xf32> to vector<18x128xf32>
    %46 = arith.addf %43, %45 : vector<18x128xf32>
    %cst_46 = arith.constant 0.000000e+00 : f32
    %47 = vector.broadcast %cst_46 : f32 to vector<18x128xf32>
    %48 = arith.maximumf %46, %47 : vector<18x128xf32>
    %49 = arith.truncf %48 : vector<18x128xf32> to vector<18x128xbf16>
    %c0_47 = arith.constant 0 : index
    %c0_48 = arith.constant 0 : index
    %50 = vector.load %arg7[%c0_47, %c0_48] : memref<18x128xbf16, #tpu.memory_space<vmem>>, vector<18x128xbf16>
    tpu.vector_store %arg7[%c0_47, %c0_48], %49 {strides = array<i32>} : memref<18x128xbf16, #tpu.memory_space<vmem>>, vector<18x128xbf16>,
    return
  }
  func.func @transform_0(%arg0: i32) -> (i32, i32) {
    %c0_i32 = arith.constant 0 : i32
    %c0_i32_0 = arith.constant 0 : i32
    %c0_i32_1 = arith.constant 0 : i32
    return %c0_i32, %c0_i32_0 : i32, i32
  }
  func.func @transform_1(%arg0: i32) -> (i32, i32) {
    %c0_i32 = arith.constant 0 : i32
    %c0_i32_0 = arith.constant 0 : i32
    %c0_i32_1 = arith.constant 0 : i32
    return %c0_i32, %c0_i32_0 : i32, i32
  }
  func.func @transform_2(%arg0: i32) -> (i32, i32) {
    %c0_i32 = arith.constant 0 : i32
    %c0_i32_0 = arith.constant 0 : i32
    %c0_i32_1 = arith.constant 0 : i32
    return %c0_i32, %c0_i32_0 : i32, i32
  }
  func.func @transform_3(%arg0: i32) -> (i32, i32) {
    %c0_i32 = arith.constant 0 : i32
    %c0_i32_0 = arith.constant 0 : i32
    %c0_i32_1 = arith.constant 0 : i32
    return %c0_i32, %c0_i32_0 : i32, i32
  }
  func.func @transform_4(%arg0: i32) -> (i32, i32, i32) {
    %c0_i32 = arith.constant 0 : i32
    %c0_i32_0 = arith.constant 0 : i32
    %c0_i32_1 = arith.constant 0 : i32
    return %c0_i32, %c0_i32_0, %arg0 : i32, i32, i32
  }
  func.func @transform_5(%arg0: i32) -> (i32, i32) {
    %c0_i32 = arith.constant 0 : i32
    %c0_i32_0 = arith.constant 0 : i32
    return %c0_i32, %arg0 : i32, i32
  }
  func.func @transform_6(%arg0: i32) -> (i32, i32) {
    %c0_i32 = arith.constant 0 : i32
    %c0_i32_0 = arith.constant 0 : i32
    return %c0_i32, %arg0 : i32, i32
  }
}

module attributes {stable_mosaic.version = 11 : i64} {
  func.func @_fpn_merge_kernel(%arg0: i32, %arg1: memref<26x128xbf16, #tpu.memory_space<vmem>>, %arg2: memref<1x128x128xbf16, #tpu.memory_space<vmem>>, %arg3: memref<1x128xf32, #tpu.memory_space<vmem>>, %arg4: memref<26x1xf32, #tpu.memory_space<vmem>>, %arg5: memref<9x128x128xbf16, #tpu.memory_space<vmem>>, %arg6: memref<1x128xf32, #tpu.memory_space<vmem>>, %arg7: memref<26x128xbf16, #tpu.memory_space<vmem>>, %arg8: memref<26x128xbf16, #tpu.memory_space<vmem>>, %arg9: memref<34x128xbf16, #tpu.memory_space<vmem>>) attributes {dimension_semantics = [#tpu.dimension_semantics<arbitrary>], iteration_bounds = array<i64: 1>, scalar_prefetch = 0 : i64, scratch_operands = 1 : i64, tpu.core_type = #tpu.core_type<tc>, window_params = [{pipeline_mode = #tpu.pipeline_mode<synchronous>, transform_indices = @transform_0, window_bounds = array<i64: 26, 128>}, {pipeline_mode = #tpu.pipeline_mode<synchronous>, transform_indices = @transform_1, window_bounds = array<i64: 1, 128, 128>}, {pipeline_mode = #tpu.pipeline_mode<synchronous>, transform_indices = @transform_2, window_bounds = array<i64: 1, 128>}, {pipeline_mode = #tpu.pipeline_mode<synchronous>, transform_indices = @transform_3, window_bounds = array<i64: 26, 1>}, {pipeline_mode = #tpu.pipeline_mode<synchronous>, transform_indices = @transform_4, window_bounds = array<i64: 9, 128, 128>}, {pipeline_mode = #tpu.pipeline_mode<synchronous>, transform_indices = @transform_5, window_bounds = array<i64: 1, 128>}, {transform_indices = @transform_6, window_bounds = array<i64: 26, 128>}, {transform_indices = @transform_7, window_bounds = array<i64: 26, 128>}]} {
    %c0 = arith.constant 0 : index
    %c0_0 = arith.constant 0 : index
    %0 = vector.load %arg1[%c0, %c0_0] : memref<26x128xbf16, #tpu.memory_space<vmem>>, vector<26x128xbf16>
    %c0_1 = arith.constant 0 : index
    %c0_2 = arith.constant 0 : index
    %c0_3 = arith.constant 0 : index
    %1 = vector.load %arg2[%c0_1, %c0_2, %c0_3] : memref<1x128x128xbf16, #tpu.memory_space<vmem>>, vector<1x128x128xbf16>
    %2 = vector.shape_cast %1 : vector<1x128x128xbf16> to vector<128x128xbf16>
    %cst = arith.constant dense<0.000000e+00> : vector<26x128xf32>
    %3 = tpu.matmul %0, %2, %cst {dimension_numbers = #tpu.dot_dimension_numbers<[1], [0], [0], [1], [0, 0, 1, 1], [], []>} : vector<26x128xbf16>, vector<128x128xbf16>, vector<26x128xf32> -> vector<26x128xf32>
    %c0_4 = arith.constant 0 : index
    %c0_5 = arith.constant 0 : index
    %4 = vector.load %arg3[%c0_4, %c0_5] : memref<1x128xf32, #tpu.memory_space<vmem>>, vector<1x128xf32>
    %5 = vector.broadcast %4 : vector<1x128xf32> to vector<26x128xf32>
    %6 = arith.addf %3, %5 : vector<26x128xf32>
    %c0_6 = arith.constant 0 : index
    %c0_7 = arith.constant 0 : index
    %7 = vector.load %arg4[%c0_6, %c0_7] : memref<26x1xf32, #tpu.memory_space<vmem>>, vector<26x1xf32>
    %8 = vector.broadcast %7 : vector<26x1xf32> to vector<26x128xf32>
    %9 = arith.mulf %6, %8 : vector<26x128xf32>
    %10 = arith.truncf %9 : vector<26x128xf32> to vector<26x128xbf16>
    %c0_8 = arith.constant 0 : index
    %c0_9 = arith.constant 0 : index
    %11 = vector.load %arg7[%c0_8, %c0_9] : memref<26x128xbf16, #tpu.memory_space<vmem>>, vector<26x128xbf16>
    tpu.vector_store %arg7[%c0_8, %c0_9], %10 {strides = array<i32>} : memref<26x128xbf16, #tpu.memory_space<vmem>>, vector<26x128xbf16>,
    %c0_10 = arith.constant 0 : index
    %c0_11 = arith.constant 0 : index
    %12 = vector.load %arg9[%c0_10, %c0_11] : memref<34x128xbf16, #tpu.memory_space<vmem>>, vector<26x128xbf16>
    tpu.vector_store %arg9[%c0_10, %c0_11], %10 {strides = array<i32>} : memref<34x128xbf16, #tpu.memory_space<vmem>>, vector<26x128xbf16>,
    %cst_12 = arith.constant 0.000000e+00 : bf16
    %13 = vector.broadcast %cst_12 : bf16 to vector<8x128xbf16>
    %c26 = arith.constant 26 : index
    %c0_13 = arith.constant 0 : index
    %14 = vector.load %arg9[%c26, %c0_13] : memref<34x128xbf16, #tpu.memory_space<vmem>>, vector<8x128xbf16>
    tpu.vector_store %arg9[%c26, %c0_13], %13 {strides = array<i32>} : memref<34x128xbf16, #tpu.memory_space<vmem>>, vector<8x128xbf16>,
    %c0_14 = arith.constant 0 : index
    %c0_15 = arith.constant 0 : index
    %15 = vector.load %arg9[%c0_14, %c0_15] : memref<34x128xbf16, #tpu.memory_space<vmem>>, vector<26x128xbf16>
    %c0_16 = arith.constant 0 : index
    %c0_17 = arith.constant 0 : index
    %c0_18 = arith.constant 0 : index
    %16 = vector.load %arg5[%c0_16, %c0_17, %c0_18] : memref<9x128x128xbf16, #tpu.memory_space<vmem>>, vector<1x128x128xbf16>
    %17 = vector.shape_cast %16 : vector<1x128x128xbf16> to vector<128x128xbf16>
    %cst_19 = arith.constant dense<0.000000e+00> : vector<26x128xf32>
    %18 = tpu.matmul %15, %17, %cst_19 {dimension_numbers = #tpu.dot_dimension_numbers<[1], [0], [0], [1], [0, 0, 1, 1], [], []>} : vector<26x128xbf16>, vector<128x128xbf16>, vector<26x128xf32> -> vector<26x128xf32>
    %c1 = arith.constant 1 : index
    %c0_20 = arith.constant 0 : index
    %19 = vector.load %arg9[%c1, %c0_20] : memref<34x128xbf16, #tpu.memory_space<vmem>>, vector<26x128xbf16>
    %c1_21 = arith.constant 1 : index
    %c0_22 = arith.constant 0 : index
    %c0_23 = arith.constant 0 : index
    %20 = vector.load %arg5[%c1_21, %c0_22, %c0_23] : memref<9x128x128xbf16, #tpu.memory_space<vmem>>, vector<1x128x128xbf16>
    %21 = vector.shape_cast %20 : vector<1x128x128xbf16> to vector<128x128xbf16>
    %cst_24 = arith.constant dense<0.000000e+00> : vector<26x128xf32>
    %22 = tpu.matmul %19, %21, %cst_24 {dimension_numbers = #tpu.dot_dimension_numbers<[1], [0], [0], [1], [0, 0, 1, 1], [], []>} : vector<26x128xbf16>, vector<128x128xbf16>, vector<26x128xf32> -> vector<26x128xf32>
    %23 = arith.addf %18, %22 : vector<26x128xf32>
    %c2 = arith.constant 2 : index
    %c0_25 = arith.constant 0 : index
    %24 = vector.load %arg9[%c2, %c0_25] : memref<34x128xbf16, #tpu.memory_space<vmem>>, vector<26x128xbf16>
    %c2_26 = arith.constant 2 : index
    %c0_27 = arith.constant 0 : index
    %c0_28 = arith.constant 0 : index
    %25 = vector.load %arg5[%c2_26, %c0_27, %c0_28] : memref<9x128x128xbf16, #tpu.memory_space<vmem>>, vector<1x128x128xbf16>
    %26 = vector.shape_cast %25 : vector<1x128x128xbf16> to vector<128x128xbf16>
    %cst_29 = arith.constant dense<0.000000e+00> : vector<26x128xf32>
    %27 = tpu.matmul %24, %26, %cst_29 {dimension_numbers = #tpu.dot_dimension_numbers<[1], [0], [0], [1], [0, 0, 1, 1], [], []>} : vector<26x128xbf16>, vector<128x128xbf16>, vector<26x128xf32> -> vector<26x128xf32>
    %28 = arith.addf %23, %27 : vector<26x128xf32>
    %c3 = arith.constant 3 : index
    %c0_30 = arith.constant 0 : index
    %29 = vector.load %arg9[%c3, %c0_30] : memref<34x128xbf16, #tpu.memory_space<vmem>>, vector<26x128xbf16>
    %c3_31 = arith.constant 3 : index
    %c0_32 = arith.constant 0 : index
    %c0_33 = arith.constant 0 : index
    %30 = vector.load %arg5[%c3_31, %c0_32, %c0_33] : memref<9x128x128xbf16, #tpu.memory_space<vmem>>, vector<1x128x128xbf16>
    %31 = vector.shape_cast %30 : vector<1x128x128xbf16> to vector<128x128xbf16>
    %cst_34 = arith.constant dense<0.000000e+00> : vector<26x128xf32>
    %32 = tpu.matmul %29, %31, %cst_34 {dimension_numbers = #tpu.dot_dimension_numbers<[1], [0], [0], [1], [0, 0, 1, 1], [], []>} : vector<26x128xbf16>, vector<128x128xbf16>, vector<26x128xf32> -> vector<26x128xf32>
    %33 = arith.addf %28, %32 : vector<26x128xf32>
    %c4 = arith.constant 4 : index
    %c0_35 = arith.constant 0 : index
    %34 = vector.load %arg9[%c4, %c0_35] : memref<34x128xbf16, #tpu.memory_space<vmem>>, vector<26x128xbf16>
    %c4_36 = arith.constant 4 : index
    %c0_37 = arith.constant 0 : index
    %c0_38 = arith.constant 0 : index
    %35 = vector.load %arg5[%c4_36, %c0_37, %c0_38] : memref<9x128x128xbf16, #tpu.memory_space<vmem>>, vector<1x128x128xbf16>
    %36 = vector.shape_cast %35 : vector<1x128x128xbf16> to vector<128x128xbf16>
    %cst_39 = arith.constant dense<0.000000e+00> : vector<26x128xf32>
    %37 = tpu.matmul %34, %36, %cst_39 {dimension_numbers = #tpu.dot_dimension_numbers<[1], [0], [0], [1], [0, 0, 1, 1], [], []>} : vector<26x128xbf16>, vector<128x128xbf16>, vector<26x128xf32> -> vector<26x128xf32>
    %38 = arith.addf %33, %37 : vector<26x128xf32>
    %c5 = arith.constant 5 : index
    %c0_40 = arith.constant 0 : index
    %39 = vector.load %arg9[%c5, %c0_40] : memref<34x128xbf16, #tpu.memory_space<vmem>>, vector<26x128xbf16>
    %c5_41 = arith.constant 5 : index
    %c0_42 = arith.constant 0 : index
    %c0_43 = arith.constant 0 : index
    %40 = vector.load %arg5[%c5_41, %c0_42, %c0_43] : memref<9x128x128xbf16, #tpu.memory_space<vmem>>, vector<1x128x128xbf16>
    %41 = vector.shape_cast %40 : vector<1x128x128xbf16> to vector<128x128xbf16>
    %cst_44 = arith.constant dense<0.000000e+00> : vector<26x128xf32>
    %42 = tpu.matmul %39, %41, %cst_44 {dimension_numbers = #tpu.dot_dimension_numbers<[1], [0], [0], [1], [0, 0, 1, 1], [], []>} : vector<26x128xbf16>, vector<128x128xbf16>, vector<26x128xf32> -> vector<26x128xf32>
    %43 = arith.addf %38, %42 : vector<26x128xf32>
    %c6 = arith.constant 6 : index
    %c0_45 = arith.constant 0 : index
    %44 = vector.load %arg9[%c6, %c0_45] : memref<34x128xbf16, #tpu.memory_space<vmem>>, vector<26x128xbf16>
    %c6_46 = arith.constant 6 : index
    %c0_47 = arith.constant 0 : index
    %c0_48 = arith.constant 0 : index
    %45 = vector.load %arg5[%c6_46, %c0_47, %c0_48] : memref<9x128x128xbf16, #tpu.memory_space<vmem>>, vector<1x128x128xbf16>
    %46 = vector.shape_cast %45 : vector<1x128x128xbf16> to vector<128x128xbf16>
    %cst_49 = arith.constant dense<0.000000e+00> : vector<26x128xf32>
    %47 = tpu.matmul %44, %46, %cst_49 {dimension_numbers = #tpu.dot_dimension_numbers<[1], [0], [0], [1], [0, 0, 1, 1], [], []>} : vector<26x128xbf16>, vector<128x128xbf16>, vector<26x128xf32> -> vector<26x128xf32>
    %48 = arith.addf %43, %47 : vector<26x128xf32>
    %c7 = arith.constant 7 : index
    %c0_50 = arith.constant 0 : index
    %49 = vector.load %arg9[%c7, %c0_50] : memref<34x128xbf16, #tpu.memory_space<vmem>>, vector<26x128xbf16>
    %c7_51 = arith.constant 7 : index
    %c0_52 = arith.constant 0 : index
    %c0_53 = arith.constant 0 : index
    %50 = vector.load %arg5[%c7_51, %c0_52, %c0_53] : memref<9x128x128xbf16, #tpu.memory_space<vmem>>, vector<1x128x128xbf16>
    %51 = vector.shape_cast %50 : vector<1x128x128xbf16> to vector<128x128xbf16>
    %cst_54 = arith.constant dense<0.000000e+00> : vector<26x128xf32>
    %52 = tpu.matmul %49, %51, %cst_54 {dimension_numbers = #tpu.dot_dimension_numbers<[1], [0], [0], [1], [0, 0, 1, 1], [], []>} : vector<26x128xbf16>, vector<128x128xbf16>, vector<26x128xf32> -> vector<26x128xf32>
    %53 = arith.addf %48, %52 : vector<26x128xf32>
    %c8 = arith.constant 8 : index
    %c0_55 = arith.constant 0 : index
    %54 = vector.load %arg9[%c8, %c0_55] : memref<34x128xbf16, #tpu.memory_space<vmem>>, vector<26x128xbf16>
    %c8_56 = arith.constant 8 : index
    %c0_57 = arith.constant 0 : index
    %c0_58 = arith.constant 0 : index
    %55 = vector.load %arg5[%c8_56, %c0_57, %c0_58] : memref<9x128x128xbf16, #tpu.memory_space<vmem>>, vector<1x128x128xbf16>
    %56 = vector.shape_cast %55 : vector<1x128x128xbf16> to vector<128x128xbf16>
    %cst_59 = arith.constant dense<0.000000e+00> : vector<26x128xf32>
    %57 = tpu.matmul %54, %56, %cst_59 {dimension_numbers = #tpu.dot_dimension_numbers<[1], [0], [0], [1], [0, 0, 1, 1], [], []>} : vector<26x128xbf16>, vector<128x128xbf16>, vector<26x128xf32> -> vector<26x128xf32>
    %58 = arith.addf %53, %57 : vector<26x128xf32>
    %c0_60 = arith.constant 0 : index
    %c0_61 = arith.constant 0 : index
    %59 = vector.load %arg6[%c0_60, %c0_61] : memref<1x128xf32, #tpu.memory_space<vmem>>, vector<1x128xf32>
    %60 = vector.broadcast %59 : vector<1x128xf32> to vector<26x128xf32>
    %61 = arith.addf %58, %60 : vector<26x128xf32>
    %62 = arith.truncf %61 : vector<26x128xf32> to vector<26x128xbf16>
    %c0_62 = arith.constant 0 : index
    %c0_63 = arith.constant 0 : index
    %63 = vector.load %arg8[%c0_62, %c0_63] : memref<26x128xbf16, #tpu.memory_space<vmem>>, vector<26x128xbf16>
    tpu.vector_store %arg8[%c0_62, %c0_63], %62 {strides = array<i32>} : memref<26x128xbf16, #tpu.memory_space<vmem>>, vector<26x128xbf16>,
    return
  }
  func.func @transform_0(%arg0: i32) -> (i32, i32) {
    %c0_i32 = arith.constant 0 : i32
    %c0_i32_0 = arith.constant 0 : i32
    %c0_i32_1 = arith.constant 0 : i32
    return %c0_i32, %c0_i32_0 : i32, i32
  }
  func.func @transform_1(%arg0: i32) -> (i32, i32, i32) {
    %c0_i32 = arith.constant 0 : i32
    %c0_i32_0 = arith.constant 0 : i32
    %c0_i32_1 = arith.constant 0 : i32
    %c0_i32_2 = arith.constant 0 : i32
    return %c0_i32, %c0_i32_0, %c0_i32_1 : i32, i32, i32
  }
  func.func @transform_2(%arg0: i32) -> (i32, i32) {
    %c0_i32 = arith.constant 0 : i32
    %c0_i32_0 = arith.constant 0 : i32
    %c0_i32_1 = arith.constant 0 : i32
    return %c0_i32, %c0_i32_0 : i32, i32
  }
  func.func @transform_3(%arg0: i32) -> (i32, i32) {
    %c0_i32 = arith.constant 0 : i32
    %c0_i32_0 = arith.constant 0 : i32
    %c0_i32_1 = arith.constant 0 : i32
    return %c0_i32, %c0_i32_0 : i32, i32
  }
  func.func @transform_4(%arg0: i32) -> (i32, i32, i32) {
    %c0_i32 = arith.constant 0 : i32
    %c0_i32_0 = arith.constant 0 : i32
    %c0_i32_1 = arith.constant 0 : i32
    %c0_i32_2 = arith.constant 0 : i32
    return %c0_i32, %c0_i32_0, %c0_i32_1 : i32, i32, i32
  }
  func.func @transform_5(%arg0: i32) -> (i32, i32) {
    %c0_i32 = arith.constant 0 : i32
    %c0_i32_0 = arith.constant 0 : i32
    %c0_i32_1 = arith.constant 0 : i32
    return %c0_i32, %c0_i32_0 : i32, i32
  }
  func.func @transform_6(%arg0: i32) -> (i32, i32) {
    %c0_i32 = arith.constant 0 : i32
    %c0_i32_0 = arith.constant 0 : i32
    return %c0_i32, %arg0 : i32, i32
  }
  func.func @transform_7(%arg0: i32) -> (i32, i32) {
    %c0_i32 = arith.constant 0 : i32
    %c0_i32_0 = arith.constant 0 : i32
    return %c0_i32, %arg0 : i32, i32
  }
}

module attributes {stable_mosaic.version = 11 : i64} {
  func.func @_fpn_merge_kernel(%arg0: i32, %arg1: memref<182x128xbf16, #tpu.memory_space<vmem>>, %arg2: memref<1x128x128xbf16, #tpu.memory_space<vmem>>, %arg3: memref<1x128xf32, #tpu.memory_space<vmem>>, %arg4: memref<182x1xf32, #tpu.memory_space<vmem>>, %arg5: memref<9x128x128xbf16, #tpu.memory_space<vmem>>, %arg6: memref<1x128xf32, #tpu.memory_space<vmem>>, %arg7: memref<182x128xbf16, #tpu.memory_space<vmem>>, %arg8: memref<182x128xbf16, #tpu.memory_space<vmem>>, %arg9: memref<182x128xbf16, #tpu.memory_space<vmem>>, %arg10: memref<202x128xbf16, #tpu.memory_space<vmem>>) attributes {dimension_semantics = [#tpu.dimension_semantics<arbitrary>], iteration_bounds = array<i64: 1>, scalar_prefetch = 0 : i64, scratch_operands = 1 : i64, tpu.core_type = #tpu.core_type<tc>, window_params = [{pipeline_mode = #tpu.pipeline_mode<synchronous>, transform_indices = @transform_0, window_bounds = array<i64: 182, 128>}, {pipeline_mode = #tpu.pipeline_mode<synchronous>, transform_indices = @transform_1, window_bounds = array<i64: 1, 128, 128>}, {pipeline_mode = #tpu.pipeline_mode<synchronous>, transform_indices = @transform_2, window_bounds = array<i64: 1, 128>}, {pipeline_mode = #tpu.pipeline_mode<synchronous>, transform_indices = @transform_3, window_bounds = array<i64: 182, 1>}, {pipeline_mode = #tpu.pipeline_mode<synchronous>, transform_indices = @transform_4, window_bounds = array<i64: 9, 128, 128>}, {pipeline_mode = #tpu.pipeline_mode<synchronous>, transform_indices = @transform_5, window_bounds = array<i64: 1, 128>}, {pipeline_mode = #tpu.pipeline_mode<synchronous>, transform_indices = @transform_6, window_bounds = array<i64: 182, 128>}, {transform_indices = @transform_7, window_bounds = array<i64: 182, 128>}, {transform_indices = @transform_8, window_bounds = array<i64: 182, 128>}]} {
    %c0 = arith.constant 0 : index
    %c0_0 = arith.constant 0 : index
    %0 = vector.load %arg1[%c0, %c0_0] : memref<182x128xbf16, #tpu.memory_space<vmem>>, vector<182x128xbf16>
    %c0_1 = arith.constant 0 : index
    %c0_2 = arith.constant 0 : index
    %c0_3 = arith.constant 0 : index
    %1 = vector.load %arg2[%c0_1, %c0_2, %c0_3] : memref<1x128x128xbf16, #tpu.memory_space<vmem>>, vector<1x128x128xbf16>
    %2 = vector.shape_cast %1 : vector<1x128x128xbf16> to vector<128x128xbf16>
    %cst = arith.constant dense<0.000000e+00> : vector<182x128xf32>
    %3 = tpu.matmul %0, %2, %cst {dimension_numbers = #tpu.dot_dimension_numbers<[1], [0], [0], [1], [0, 0, 1, 1], [], []>} : vector<182x128xbf16>, vector<128x128xbf16>, vector<182x128xf32> -> vector<182x128xf32>
    %c0_4 = arith.constant 0 : index
    %c0_5 = arith.constant 0 : index
    %4 = vector.load %arg3[%c0_4, %c0_5] : memref<1x128xf32, #tpu.memory_space<vmem>>, vector<1x128xf32>
    %5 = vector.broadcast %4 : vector<1x128xf32> to vector<182x128xf32>
    %6 = arith.addf %3, %5 : vector<182x128xf32>
    %c0_6 = arith.constant 0 : index
    %c0_7 = arith.constant 0 : index
    %7 = vector.load %arg7[%c0_6, %c0_7] : memref<182x128xbf16, #tpu.memory_space<vmem>>, vector<182x128xbf16>
    %8 = arith.extf %7 : vector<182x128xbf16> to vector<182x128xf32>
    %9 = arith.addf %6, %8 : vector<182x128xf32>
    %c0_8 = arith.constant 0 : index
    %c0_9 = arith.constant 0 : index
    %10 = vector.load %arg4[%c0_8, %c0_9] : memref<182x1xf32, #tpu.memory_space<vmem>>, vector<182x1xf32>
    %11 = vector.broadcast %10 : vector<182x1xf32> to vector<182x128xf32>
    %12 = arith.mulf %9, %11 : vector<182x128xf32>
    %13 = arith.truncf %12 : vector<182x128xf32> to vector<182x128xbf16>
    %c0_10 = arith.constant 0 : index
    %c0_11 = arith.constant 0 : index
    %14 = vector.load %arg8[%c0_10, %c0_11] : memref<182x128xbf16, #tpu.memory_space<vmem>>, vector<182x128xbf16>
    tpu.vector_store %arg8[%c0_10, %c0_11], %13 {strides = array<i32>} : memref<182x128xbf16, #tpu.memory_space<vmem>>, vector<182x128xbf16>,
    %c0_12 = arith.constant 0 : index
    %c0_13 = arith.constant 0 : index
    %15 = vector.load %arg10[%c0_12, %c0_13] : memref<202x128xbf16, #tpu.memory_space<vmem>>, vector<182x128xbf16>
    tpu.vector_store %arg10[%c0_12, %c0_13], %13 {strides = array<i32>} : memref<202x128xbf16, #tpu.memory_space<vmem>>, vector<182x128xbf16>,
    %cst_14 = arith.constant 0.000000e+00 : bf16
    %16 = vector.broadcast %cst_14 : bf16 to vector<20x128xbf16>
    %c182 = arith.constant 182 : index
    %c0_15 = arith.constant 0 : index
    %17 = vector.load %arg10[%c182, %c0_15] : memref<202x128xbf16, #tpu.memory_space<vmem>>, vector<20x128xbf16>
    tpu.vector_store %arg10[%c182, %c0_15], %16 {strides = array<i32>} : memref<202x128xbf16, #tpu.memory_space<vmem>>, vector<20x128xbf16>,
    %c0_16 = arith.constant 0 : index
    %c0_17 = arith.constant 0 : index
    %18 = vector.load %arg10[%c0_16, %c0_17] : memref<202x128xbf16, #tpu.memory_space<vmem>>, vector<182x128xbf16>
    %c0_18 = arith.constant 0 : index
    %c0_19 = arith.constant 0 : index
    %c0_20 = arith.constant 0 : index
    %19 = vector.load %arg5[%c0_18, %c0_19, %c0_20] : memref<9x128x128xbf16, #tpu.memory_space<vmem>>, vector<1x128x128xbf16>
    %20 = vector.shape_cast %19 : vector<1x128x128xbf16> to vector<128x128xbf16>
    %cst_21 = arith.constant dense<0.000000e+00> : vector<182x128xf32>
    %21 = tpu.matmul %18, %20, %cst_21 {dimension_numbers = #tpu.dot_dimension_numbers<[1], [0], [0], [1], [0, 0, 1, 1], [], []>} : vector<182x128xbf16>, vector<128x128xbf16>, vector<182x128xf32> -> vector<182x128xf32>
    %c1 = arith.constant 1 : index
    %c0_22 = arith.constant 0 : index
    %22 = vector.load %arg10[%c1, %c0_22] : memref<202x128xbf16, #tpu.memory_space<vmem>>, vector<182x128xbf16>
    %c1_23 = arith.constant 1 : index
    %c0_24 = arith.constant 0 : index
    %c0_25 = arith.constant 0 : index
    %23 = vector.load %arg5[%c1_23, %c0_24, %c0_25] : memref<9x128x128xbf16, #tpu.memory_space<vmem>>, vector<1x128x128xbf16>
    %24 = vector.shape_cast %23 : vector<1x128x128xbf16> to vector<128x128xbf16>
    %cst_26 = arith.constant dense<0.000000e+00> : vector<182x128xf32>
    %25 = tpu.matmul %22, %24, %cst_26 {dimension_numbers = #tpu.dot_dimension_numbers<[1], [0], [0], [1], [0, 0, 1, 1], [], []>} : vector<182x128xbf16>, vector<128x128xbf16>, vector<182x128xf32> -> vector<182x128xf32>
    %26 = arith.addf %21, %25 : vector<182x128xf32>
    %c2 = arith.constant 2 : index
    %c0_27 = arith.constant 0 : index
    %27 = vector.load %arg10[%c2, %c0_27] : memref<202x128xbf16, #tpu.memory_space<vmem>>, vector<182x128xbf16>
    %c2_28 = arith.constant 2 : index
    %c0_29 = arith.constant 0 : index
    %c0_30 = arith.constant 0 : index
    %28 = vector.load %arg5[%c2_28, %c0_29, %c0_30] : memref<9x128x128xbf16, #tpu.memory_space<vmem>>, vector<1x128x128xbf16>
    %29 = vector.shape_cast %28 : vector<1x128x128xbf16> to vector<128x128xbf16>
    %cst_31 = arith.constant dense<0.000000e+00> : vector<182x128xf32>
    %30 = tpu.matmul %27, %29, %cst_31 {dimension_numbers = #tpu.dot_dimension_numbers<[1], [0], [0], [1], [0, 0, 1, 1], [], []>} : vector<182x128xbf16>, vector<128x128xbf16>, vector<182x128xf32> -> vector<182x128xf32>
    %31 = arith.addf %26, %30 : vector<182x128xf32>
    %c9 = arith.constant 9 : index
    %c0_32 = arith.constant 0 : index
    %32 = vector.load %arg10[%c9, %c0_32] : memref<202x128xbf16, #tpu.memory_space<vmem>>, vector<182x128xbf16>
    %c3 = arith.constant 3 : index
    %c0_33 = arith.constant 0 : index
    %c0_34 = arith.constant 0 : index
    %33 = vector.load %arg5[%c3, %c0_33, %c0_34] : memref<9x128x128xbf16, #tpu.memory_space<vmem>>, vector<1x128x128xbf16>
    %34 = vector.shape_cast %33 : vector<1x128x128xbf16> to vector<128x128xbf16>
    %cst_35 = arith.constant dense<0.000000e+00> : vector<182x128xf32>
    %35 = tpu.matmul %32, %34, %cst_35 {dimension_numbers = #tpu.dot_dimension_numbers<[1], [0], [0], [1], [0, 0, 1, 1], [], []>} : vector<182x128xbf16>, vector<128x128xbf16>, vector<182x128xf32> -> vector<182x128xf32>
    %36 = arith.addf %31, %35 : vector<182x128xf32>
    %c10 = arith.constant 10 : index
    %c0_36 = arith.constant 0 : index
    %37 = vector.load %arg10[%c10, %c0_36] : memref<202x128xbf16, #tpu.memory_space<vmem>>, vector<182x128xbf16>
    %c4 = arith.constant 4 : index
    %c0_37 = arith.constant 0 : index
    %c0_38 = arith.constant 0 : index
    %38 = vector.load %arg5[%c4, %c0_37, %c0_38] : memref<9x128x128xbf16, #tpu.memory_space<vmem>>, vector<1x128x128xbf16>
    %39 = vector.shape_cast %38 : vector<1x128x128xbf16> to vector<128x128xbf16>
    %cst_39 = arith.constant dense<0.000000e+00> : vector<182x128xf32>
    %40 = tpu.matmul %37, %39, %cst_39 {dimension_numbers = #tpu.dot_dimension_numbers<[1], [0], [0], [1], [0, 0, 1, 1], [], []>} : vector<182x128xbf16>, vector<128x128xbf16>, vector<182x128xf32> -> vector<182x128xf32>
    %41 = arith.addf %36, %40 : vector<182x128xf32>
    %c11 = arith.constant 11 : index
    %c0_40 = arith.constant 0 : index
    %42 = vector.load %arg10[%c11, %c0_40] : memref<202x128xbf16, #tpu.memory_space<vmem>>, vector<182x128xbf16>
    %c5 = arith.constant 5 : index
    %c0_41 = arith.constant 0 : index
    %c0_42 = arith.constant 0 : index
    %43 = vector.load %arg5[%c5, %c0_41, %c0_42] : memref<9x128x128xbf16, #tpu.memory_space<vmem>>, vector<1x128x128xbf16>
    %44 = vector.shape_cast %43 : vector<1x128x128xbf16> to vector<128x128xbf16>
    %cst_43 = arith.constant dense<0.000000e+00> : vector<182x128xf32>
    %45 = tpu.matmul %42, %44, %cst_43 {dimension_numbers = #tpu.dot_dimension_numbers<[1], [0], [0], [1], [0, 0, 1, 1], [], []>} : vector<182x128xbf16>, vector<128x128xbf16>, vector<182x128xf32> -> vector<182x128xf32>
    %46 = arith.addf %41, %45 : vector<182x128xf32>
    %c18 = arith.constant 18 : index
    %c0_44 = arith.constant 0 : index
    %47 = vector.load %arg10[%c18, %c0_44] : memref<202x128xbf16, #tpu.memory_space<vmem>>, vector<182x128xbf16>
    %c6 = arith.constant 6 : index
    %c0_45 = arith.constant 0 : index
    %c0_46 = arith.constant 0 : index
    %48 = vector.load %arg5[%c6, %c0_45, %c0_46] : memref<9x128x128xbf16, #tpu.memory_space<vmem>>, vector<1x128x128xbf16>
    %49 = vector.shape_cast %48 : vector<1x128x128xbf16> to vector<128x128xbf16>
    %cst_47 = arith.constant dense<0.000000e+00> : vector<182x128xf32>
    %50 = tpu.matmul %47, %49, %cst_47 {dimension_numbers = #tpu.dot_dimension_numbers<[1], [0], [0], [1], [0, 0, 1, 1], [], []>} : vector<182x128xbf16>, vector<128x128xbf16>, vector<182x128xf32> -> vector<182x128xf32>
    %51 = arith.addf %46, %50 : vector<182x128xf32>
    %c19 = arith.constant 19 : index
    %c0_48 = arith.constant 0 : index
    %52 = vector.load %arg10[%c19, %c0_48] : memref<202x128xbf16, #tpu.memory_space<vmem>>, vector<182x128xbf16>
    %c7 = arith.constant 7 : index
    %c0_49 = arith.constant 0 : index
    %c0_50 = arith.constant 0 : index
    %53 = vector.load %arg5[%c7, %c0_49, %c0_50] : memref<9x128x128xbf16, #tpu.memory_space<vmem>>, vector<1x128x128xbf16>
    %54 = vector.shape_cast %53 : vector<1x128x128xbf16> to vector<128x128xbf16>
    %cst_51 = arith.constant dense<0.000000e+00> : vector<182x128xf32>
    %55 = tpu.matmul %52, %54, %cst_51 {dimension_numbers = #tpu.dot_dimension_numbers<[1], [0], [0], [1], [0, 0, 1, 1], [], []>} : vector<182x128xbf16>, vector<128x128xbf16>, vector<182x128xf32> -> vector<182x128xf32>
    %56 = arith.addf %51, %55 : vector<182x128xf32>
    %c20 = arith.constant 20 : index
    %c0_52 = arith.constant 0 : index
    %57 = vector.load %arg10[%c20, %c0_52] : memref<202x128xbf16, #tpu.memory_space<vmem>>, vector<182x128xbf16>
    %c8 = arith.constant 8 : index
    %c0_53 = arith.constant 0 : index
    %c0_54 = arith.constant 0 : index
    %58 = vector.load %arg5[%c8, %c0_53, %c0_54] : memref<9x128x128xbf16, #tpu.memory_space<vmem>>, vector<1x128x128xbf16>
    %59 = vector.shape_cast %58 : vector<1x128x128xbf16> to vector<128x128xbf16>
    %cst_55 = arith.constant dense<0.000000e+00> : vector<182x128xf32>
    %60 = tpu.matmul %57, %59, %cst_55 {dimension_numbers = #tpu.dot_dimension_numbers<[1], [0], [0], [1], [0, 0, 1, 1], [], []>} : vector<182x128xbf16>, vector<128x128xbf16>, vector<182x128xf32> -> vector<182x128xf32>
    %61 = arith.addf %56, %60 : vector<182x128xf32>
    %c0_56 = arith.constant 0 : index
    %c0_57 = arith.constant 0 : index
    %62 = vector.load %arg6[%c0_56, %c0_57] : memref<1x128xf32, #tpu.memory_space<vmem>>, vector<1x128xf32>
    %63 = vector.broadcast %62 : vector<1x128xf32> to vector<182x128xf32>
    %64 = arith.addf %61, %63 : vector<182x128xf32>
    %65 = arith.truncf %64 : vector<182x128xf32> to vector<182x128xbf16>
    %c0_58 = arith.constant 0 : index
    %c0_59 = arith.constant 0 : index
    %66 = vector.load %arg9[%c0_58, %c0_59] : memref<182x128xbf16, #tpu.memory_space<vmem>>, vector<182x128xbf16>
    tpu.vector_store %arg9[%c0_58, %c0_59], %65 {strides = array<i32>} : memref<182x128xbf16, #tpu.memory_space<vmem>>, vector<182x128xbf16>,
    return
  }
  func.func @transform_0(%arg0: i32) -> (i32, i32) {
    %c0_i32 = arith.constant 0 : i32
    %c0_i32_0 = arith.constant 0 : i32
    %c0_i32_1 = arith.constant 0 : i32
    return %c0_i32, %c0_i32_0 : i32, i32
  }
  func.func @transform_1(%arg0: i32) -> (i32, i32, i32) {
    %c0_i32 = arith.constant 0 : i32
    %c0_i32_0 = arith.constant 0 : i32
    %c0_i32_1 = arith.constant 0 : i32
    %c0_i32_2 = arith.constant 0 : i32
    return %c0_i32, %c0_i32_0, %c0_i32_1 : i32, i32, i32
  }
  func.func @transform_2(%arg0: i32) -> (i32, i32) {
    %c0_i32 = arith.constant 0 : i32
    %c0_i32_0 = arith.constant 0 : i32
    %c0_i32_1 = arith.constant 0 : i32
    return %c0_i32, %c0_i32_0 : i32, i32
  }
  func.func @transform_3(%arg0: i32) -> (i32, i32) {
    %c0_i32 = arith.constant 0 : i32
    %c0_i32_0 = arith.constant 0 : i32
    %c0_i32_1 = arith.constant 0 : i32
    return %c0_i32, %c0_i32_0 : i32, i32
  }
  func.func @transform_4(%arg0: i32) -> (i32, i32, i32) {
    %c0_i32 = arith.constant 0 : i32
    %c0_i32_0 = arith.constant 0 : i32
    %c0_i32_1 = arith.constant 0 : i32
    %c0_i32_2 = arith.constant 0 : i32
    return %c0_i32, %c0_i32_0, %c0_i32_1 : i32, i32, i32
  }
  func.func @transform_5(%arg0: i32) -> (i32, i32) {
    %c0_i32 = arith.constant 0 : i32
    %c0_i32_0 = arith.constant 0 : i32
    %c0_i32_1 = arith.constant 0 : i32
    return %c0_i32, %c0_i32_0 : i32, i32
  }
  func.func @transform_6(%arg0: i32) -> (i32, i32) {
    %c0_i32 = arith.constant 0 : i32
    %c0_i32_0 = arith.constant 0 : i32
    %c0_i32_1 = arith.constant 0 : i32
    return %c0_i32, %c0_i32_0 : i32, i32
  }
  func.func @transform_7(%arg0: i32) -> (i32, i32) {
    %c0_i32 = arith.constant 0 : i32
    %c0_i32_0 = arith.constant 0 : i32
    return %c0_i32, %arg0 : i32, i32
  }
  func.func @transform_8(%arg0: i32) -> (i32, i32) {
    %c0_i32 = arith.constant 0 : i32
    %c0_i32_0 = arith.constant 0 : i32
    return %c0_i32, %arg0 : i32, i32
  }
}

module attributes {stable_mosaic.version = 11 : i64} {
  func.func @_fpn_merge_kernel(%arg0: i32, %arg1: memref<62x128xbf16, #tpu.memory_space<vmem>>, %arg2: memref<1x128x128xbf16, #tpu.memory_space<vmem>>, %arg3: memref<1x128xf32, #tpu.memory_space<vmem>>, %arg4: memref<62x1xf32, #tpu.memory_space<vmem>>, %arg5: memref<9x128x128xbf16, #tpu.memory_space<vmem>>, %arg6: memref<1x128xf32, #tpu.memory_space<vmem>>, %arg7: memref<62x128xbf16, #tpu.memory_space<vmem>>, %arg8: memref<62x128xbf16, #tpu.memory_space<vmem>>, %arg9: memref<62x128xbf16, #tpu.memory_space<vmem>>, %arg10: memref<74x128xbf16, #tpu.memory_space<vmem>>) attributes {dimension_semantics = [#tpu.dimension_semantics<arbitrary>], iteration_bounds = array<i64: 1>, scalar_prefetch = 0 : i64, scratch_operands = 1 : i64, tpu.core_type = #tpu.core_type<tc>, window_params = [{pipeline_mode = #tpu.pipeline_mode<synchronous>, transform_indices = @transform_0, window_bounds = array<i64: 62, 128>}, {pipeline_mode = #tpu.pipeline_mode<synchronous>, transform_indices = @transform_1, window_bounds = array<i64: 1, 128, 128>}, {pipeline_mode = #tpu.pipeline_mode<synchronous>, transform_indices = @transform_2, window_bounds = array<i64: 1, 128>}, {pipeline_mode = #tpu.pipeline_mode<synchronous>, transform_indices = @transform_3, window_bounds = array<i64: 62, 1>}, {pipeline_mode = #tpu.pipeline_mode<synchronous>, transform_indices = @transform_4, window_bounds = array<i64: 9, 128, 128>}, {pipeline_mode = #tpu.pipeline_mode<synchronous>, transform_indices = @transform_5, window_bounds = array<i64: 1, 128>}, {pipeline_mode = #tpu.pipeline_mode<synchronous>, transform_indices = @transform_6, window_bounds = array<i64: 62, 128>}, {transform_indices = @transform_7, window_bounds = array<i64: 62, 128>}, {transform_indices = @transform_8, window_bounds = array<i64: 62, 128>}]} {
    %c0 = arith.constant 0 : index
    %c0_0 = arith.constant 0 : index
    %0 = vector.load %arg1[%c0, %c0_0] : memref<62x128xbf16, #tpu.memory_space<vmem>>, vector<62x128xbf16>
    %c0_1 = arith.constant 0 : index
    %c0_2 = arith.constant 0 : index
    %c0_3 = arith.constant 0 : index
    %1 = vector.load %arg2[%c0_1, %c0_2, %c0_3] : memref<1x128x128xbf16, #tpu.memory_space<vmem>>, vector<1x128x128xbf16>
    %2 = vector.shape_cast %1 : vector<1x128x128xbf16> to vector<128x128xbf16>
    %cst = arith.constant dense<0.000000e+00> : vector<62x128xf32>
    %3 = tpu.matmul %0, %2, %cst {dimension_numbers = #tpu.dot_dimension_numbers<[1], [0], [0], [1], [0, 0, 1, 1], [], []>} : vector<62x128xbf16>, vector<128x128xbf16>, vector<62x128xf32> -> vector<62x128xf32>
    %c0_4 = arith.constant 0 : index
    %c0_5 = arith.constant 0 : index
    %4 = vector.load %arg3[%c0_4, %c0_5] : memref<1x128xf32, #tpu.memory_space<vmem>>, vector<1x128xf32>
    %5 = vector.broadcast %4 : vector<1x128xf32> to vector<62x128xf32>
    %6 = arith.addf %3, %5 : vector<62x128xf32>
    %c0_6 = arith.constant 0 : index
    %c0_7 = arith.constant 0 : index
    %7 = vector.load %arg7[%c0_6, %c0_7] : memref<62x128xbf16, #tpu.memory_space<vmem>>, vector<62x128xbf16>
    %8 = arith.extf %7 : vector<62x128xbf16> to vector<62x128xf32>
    %9 = arith.addf %6, %8 : vector<62x128xf32>
    %c0_8 = arith.constant 0 : index
    %c0_9 = arith.constant 0 : index
    %10 = vector.load %arg4[%c0_8, %c0_9] : memref<62x1xf32, #tpu.memory_space<vmem>>, vector<62x1xf32>
    %11 = vector.broadcast %10 : vector<62x1xf32> to vector<62x128xf32>
    %12 = arith.mulf %9, %11 : vector<62x128xf32>
    %13 = arith.truncf %12 : vector<62x128xf32> to vector<62x128xbf16>
    %c0_10 = arith.constant 0 : index
    %c0_11 = arith.constant 0 : index
    %14 = vector.load %arg8[%c0_10, %c0_11] : memref<62x128xbf16, #tpu.memory_space<vmem>>, vector<62x128xbf16>
    tpu.vector_store %arg8[%c0_10, %c0_11], %13 {strides = array<i32>} : memref<62x128xbf16, #tpu.memory_space<vmem>>, vector<62x128xbf16>,
    %c0_12 = arith.constant 0 : index
    %c0_13 = arith.constant 0 : index
    %15 = vector.load %arg10[%c0_12, %c0_13] : memref<74x128xbf16, #tpu.memory_space<vmem>>, vector<62x128xbf16>
    tpu.vector_store %arg10[%c0_12, %c0_13], %13 {strides = array<i32>} : memref<74x128xbf16, #tpu.memory_space<vmem>>, vector<62x128xbf16>,
    %cst_14 = arith.constant 0.000000e+00 : bf16
    %16 = vector.broadcast %cst_14 : bf16 to vector<12x128xbf16>
    %c62 = arith.constant 62 : index
    %c0_15 = arith.constant 0 : index
    %17 = vector.load %arg10[%c62, %c0_15] : memref<74x128xbf16, #tpu.memory_space<vmem>>, vector<12x128xbf16>
    tpu.vector_store %arg10[%c62, %c0_15], %16 {strides = array<i32>} : memref<74x128xbf16, #tpu.memory_space<vmem>>, vector<12x128xbf16>,
    %c0_16 = arith.constant 0 : index
    %c0_17 = arith.constant 0 : index
    %18 = vector.load %arg10[%c0_16, %c0_17] : memref<74x128xbf16, #tpu.memory_space<vmem>>, vector<62x128xbf16>
    %c0_18 = arith.constant 0 : index
    %c0_19 = arith.constant 0 : index
    %c0_20 = arith.constant 0 : index
    %19 = vector.load %arg5[%c0_18, %c0_19, %c0_20] : memref<9x128x128xbf16, #tpu.memory_space<vmem>>, vector<1x128x128xbf16>
    %20 = vector.shape_cast %19 : vector<1x128x128xbf16> to vector<128x128xbf16>
    %cst_21 = arith.constant dense<0.000000e+00> : vector<62x128xf32>
    %21 = tpu.matmul %18, %20, %cst_21 {dimension_numbers = #tpu.dot_dimension_numbers<[1], [0], [0], [1], [0, 0, 1, 1], [], []>} : vector<62x128xbf16>, vector<128x128xbf16>, vector<62x128xf32> -> vector<62x128xf32>
    %c1 = arith.constant 1 : index
    %c0_22 = arith.constant 0 : index
    %22 = vector.load %arg10[%c1, %c0_22] : memref<74x128xbf16, #tpu.memory_space<vmem>>, vector<62x128xbf16>
    %c1_23 = arith.constant 1 : index
    %c0_24 = arith.constant 0 : index
    %c0_25 = arith.constant 0 : index
    %23 = vector.load %arg5[%c1_23, %c0_24, %c0_25] : memref<9x128x128xbf16, #tpu.memory_space<vmem>>, vector<1x128x128xbf16>
    %24 = vector.shape_cast %23 : vector<1x128x128xbf16> to vector<128x128xbf16>
    %cst_26 = arith.constant dense<0.000000e+00> : vector<62x128xf32>
    %25 = tpu.matmul %22, %24, %cst_26 {dimension_numbers = #tpu.dot_dimension_numbers<[1], [0], [0], [1], [0, 0, 1, 1], [], []>} : vector<62x128xbf16>, vector<128x128xbf16>, vector<62x128xf32> -> vector<62x128xf32>
    %26 = arith.addf %21, %25 : vector<62x128xf32>
    %c2 = arith.constant 2 : index
    %c0_27 = arith.constant 0 : index
    %27 = vector.load %arg10[%c2, %c0_27] : memref<74x128xbf16, #tpu.memory_space<vmem>>, vector<62x128xbf16>
    %c2_28 = arith.constant 2 : index
    %c0_29 = arith.constant 0 : index
    %c0_30 = arith.constant 0 : index
    %28 = vector.load %arg5[%c2_28, %c0_29, %c0_30] : memref<9x128x128xbf16, #tpu.memory_space<vmem>>, vector<1x128x128xbf16>
    %29 = vector.shape_cast %28 : vector<1x128x128xbf16> to vector<128x128xbf16>
    %cst_31 = arith.constant dense<0.000000e+00> : vector<62x128xf32>
    %30 = tpu.matmul %27, %29, %cst_31 {dimension_numbers = #tpu.dot_dimension_numbers<[1], [0], [0], [1], [0, 0, 1, 1], [], []>} : vector<62x128xbf16>, vector<128x128xbf16>, vector<62x128xf32> -> vector<62x128xf32>
    %31 = arith.addf %26, %30 : vector<62x128xf32>
    %c5 = arith.constant 5 : index
    %c0_32 = arith.constant 0 : index
    %32 = vector.load %arg10[%c5, %c0_32] : memref<74x128xbf16, #tpu.memory_space<vmem>>, vector<62x128xbf16>
    %c3 = arith.constant 3 : index
    %c0_33 = arith.constant 0 : index
    %c0_34 = arith.constant 0 : index
    %33 = vector.load %arg5[%c3, %c0_33, %c0_34] : memref<9x128x128xbf16, #tpu.memory_space<vmem>>, vector<1x128x128xbf16>
    %34 = vector.shape_cast %33 : vector<1x128x128xbf16> to vector<128x128xbf16>
    %cst_35 = arith.constant dense<0.000000e+00> : vector<62x128xf32>
    %35 = tpu.matmul %32, %34, %cst_35 {dimension_numbers = #tpu.dot_dimension_numbers<[1], [0], [0], [1], [0, 0, 1, 1], [], []>} : vector<62x128xbf16>, vector<128x128xbf16>, vector<62x128xf32> -> vector<62x128xf32>
    %36 = arith.addf %31, %35 : vector<62x128xf32>
    %c6 = arith.constant 6 : index
    %c0_36 = arith.constant 0 : index
    %37 = vector.load %arg10[%c6, %c0_36] : memref<74x128xbf16, #tpu.memory_space<vmem>>, vector<62x128xbf16>
    %c4 = arith.constant 4 : index
    %c0_37 = arith.constant 0 : index
    %c0_38 = arith.constant 0 : index
    %38 = vector.load %arg5[%c4, %c0_37, %c0_38] : memref<9x128x128xbf16, #tpu.memory_space<vmem>>, vector<1x128x128xbf16>
    %39 = vector.shape_cast %38 : vector<1x128x128xbf16> to vector<128x128xbf16>
    %cst_39 = arith.constant dense<0.000000e+00> : vector<62x128xf32>
    %40 = tpu.matmul %37, %39, %cst_39 {dimension_numbers = #tpu.dot_dimension_numbers<[1], [0], [0], [1], [0, 0, 1, 1], [], []>} : vector<62x128xbf16>, vector<128x128xbf16>, vector<62x128xf32> -> vector<62x128xf32>
    %41 = arith.addf %36, %40 : vector<62x128xf32>
    %c7 = arith.constant 7 : index
    %c0_40 = arith.constant 0 : index
    %42 = vector.load %arg10[%c7, %c0_40] : memref<74x128xbf16, #tpu.memory_space<vmem>>, vector<62x128xbf16>
    %c5_41 = arith.constant 5 : index
    %c0_42 = arith.constant 0 : index
    %c0_43 = arith.constant 0 : index
    %43 = vector.load %arg5[%c5_41, %c0_42, %c0_43] : memref<9x128x128xbf16, #tpu.memory_space<vmem>>, vector<1x128x128xbf16>
    %44 = vector.shape_cast %43 : vector<1x128x128xbf16> to vector<128x128xbf16>
    %cst_44 = arith.constant dense<0.000000e+00> : vector<62x128xf32>
    %45 = tpu.matmul %42, %44, %cst_44 {dimension_numbers = #tpu.dot_dimension_numbers<[1], [0], [0], [1], [0, 0, 1, 1], [], []>} : vector<62x128xbf16>, vector<128x128xbf16>, vector<62x128xf32> -> vector<62x128xf32>
    %46 = arith.addf %41, %45 : vector<62x128xf32>
    %c10 = arith.constant 10 : index
    %c0_45 = arith.constant 0 : index
    %47 = vector.load %arg10[%c10, %c0_45] : memref<74x128xbf16, #tpu.memory_space<vmem>>, vector<62x128xbf16>
    %c6_46 = arith.constant 6 : index
    %c0_47 = arith.constant 0 : index
    %c0_48 = arith.constant 0 : index
    %48 = vector.load %arg5[%c6_46, %c0_47, %c0_48] : memref<9x128x128xbf16, #tpu.memory_space<vmem>>, vector<1x128x128xbf16>
    %49 = vector.shape_cast %48 : vector<1x128x128xbf16> to vector<128x128xbf16>
    %cst_49 = arith.constant dense<0.000000e+00> : vector<62x128xf32>
    %50 = tpu.matmul %47, %49, %cst_49 {dimension_numbers = #tpu.dot_dimension_numbers<[1], [0], [0], [1], [0, 0, 1, 1], [], []>} : vector<62x128xbf16>, vector<128x128xbf16>, vector<62x128xf32> -> vector<62x128xf32>
    %51 = arith.addf %46, %50 : vector<62x128xf32>
    %c11 = arith.constant 11 : index
    %c0_50 = arith.constant 0 : index
    %52 = vector.load %arg10[%c11, %c0_50] : memref<74x128xbf16, #tpu.memory_space<vmem>>, vector<62x128xbf16>
    %c7_51 = arith.constant 7 : index
    %c0_52 = arith.constant 0 : index
    %c0_53 = arith.constant 0 : index
    %53 = vector.load %arg5[%c7_51, %c0_52, %c0_53] : memref<9x128x128xbf16, #tpu.memory_space<vmem>>, vector<1x128x128xbf16>
    %54 = vector.shape_cast %53 : vector<1x128x128xbf16> to vector<128x128xbf16>
    %cst_54 = arith.constant dense<0.000000e+00> : vector<62x128xf32>
    %55 = tpu.matmul %52, %54, %cst_54 {dimension_numbers = #tpu.dot_dimension_numbers<[1], [0], [0], [1], [0, 0, 1, 1], [], []>} : vector<62x128xbf16>, vector<128x128xbf16>, vector<62x128xf32> -> vector<62x128xf32>
    %56 = arith.addf %51, %55 : vector<62x128xf32>
    %c12 = arith.constant 12 : index
    %c0_55 = arith.constant 0 : index
    %57 = vector.load %arg10[%c12, %c0_55] : memref<74x128xbf16, #tpu.memory_space<vmem>>, vector<62x128xbf16>
    %c8 = arith.constant 8 : index
    %c0_56 = arith.constant 0 : index
    %c0_57 = arith.constant 0 : index
    %58 = vector.load %arg5[%c8, %c0_56, %c0_57] : memref<9x128x128xbf16, #tpu.memory_space<vmem>>, vector<1x128x128xbf16>
    %59 = vector.shape_cast %58 : vector<1x128x128xbf16> to vector<128x128xbf16>
    %cst_58 = arith.constant dense<0.000000e+00> : vector<62x128xf32>
    %60 = tpu.matmul %57, %59, %cst_58 {dimension_numbers = #tpu.dot_dimension_numbers<[1], [0], [0], [1], [0, 0, 1, 1], [], []>} : vector<62x128xbf16>, vector<128x128xbf16>, vector<62x128xf32> -> vector<62x128xf32>
    %61 = arith.addf %56, %60 : vector<62x128xf32>
    %c0_59 = arith.constant 0 : index
    %c0_60 = arith.constant 0 : index
    %62 = vector.load %arg6[%c0_59, %c0_60] : memref<1x128xf32, #tpu.memory_space<vmem>>, vector<1x128xf32>
    %63 = vector.broadcast %62 : vector<1x128xf32> to vector<62x128xf32>
    %64 = arith.addf %61, %63 : vector<62x128xf32>
    %65 = arith.truncf %64 : vector<62x128xf32> to vector<62x128xbf16>
    %c0_61 = arith.constant 0 : index
    %c0_62 = arith.constant 0 : index
    %66 = vector.load %arg9[%c0_61, %c0_62] : memref<62x128xbf16, #tpu.memory_space<vmem>>, vector<62x128xbf16>
    tpu.vector_store %arg9[%c0_61, %c0_62], %65 {strides = array<i32>} : memref<62x128xbf16, #tpu.memory_space<vmem>>, vector<62x128xbf16>,
    return
  }
  func.func @transform_0(%arg0: i32) -> (i32, i32) {
    %c0_i32 = arith.constant 0 : i32
    %c0_i32_0 = arith.constant 0 : i32
    %c0_i32_1 = arith.constant 0 : i32
    return %c0_i32, %c0_i32_0 : i32, i32
  }
  func.func @transform_1(%arg0: i32) -> (i32, i32, i32) {
    %c0_i32 = arith.constant 0 : i32
    %c0_i32_0 = arith.constant 0 : i32
    %c0_i32_1 = arith.constant 0 : i32
    %c0_i32_2 = arith.constant 0 : i32
    return %c0_i32, %c0_i32_0, %c0_i32_1 : i32, i32, i32
  }
  func.func @transform_2(%arg0: i32) -> (i32, i32) {
    %c0_i32 = arith.constant 0 : i32
    %c0_i32_0 = arith.constant 0 : i32
    %c0_i32_1 = arith.constant 0 : i32
    return %c0_i32, %c0_i32_0 : i32, i32
  }
  func.func @transform_3(%arg0: i32) -> (i32, i32) {
    %c0_i32 = arith.constant 0 : i32
    %c0_i32_0 = arith.constant 0 : i32
    %c0_i32_1 = arith.constant 0 : i32
    return %c0_i32, %c0_i32_0 : i32, i32
  }
  func.func @transform_4(%arg0: i32) -> (i32, i32, i32) {
    %c0_i32 = arith.constant 0 : i32
    %c0_i32_0 = arith.constant 0 : i32
    %c0_i32_1 = arith.constant 0 : i32
    %c0_i32_2 = arith.constant 0 : i32
    return %c0_i32, %c0_i32_0, %c0_i32_1 : i32, i32, i32
  }
  func.func @transform_5(%arg0: i32) -> (i32, i32) {
    %c0_i32 = arith.constant 0 : i32
    %c0_i32_0 = arith.constant 0 : i32
    %c0_i32_1 = arith.constant 0 : i32
    return %c0_i32, %c0_i32_0 : i32, i32
  }
  func.func @transform_6(%arg0: i32) -> (i32, i32) {
    %c0_i32 = arith.constant 0 : i32
    %c0_i32_0 = arith.constant 0 : i32
    %c0_i32_1 = arith.constant 0 : i32
    return %c0_i32, %c0_i32_0 : i32, i32
  }
  func.func @transform_7(%arg0: i32) -> (i32, i32) {
    %c0_i32 = arith.constant 0 : i32
    %c0_i32_0 = arith.constant 0 : i32
    return %c0_i32, %arg0 : i32, i32
  }
  func.func @transform_8(%arg0: i32) -> (i32, i32) {
    %c0_i32 = arith.constant 0 : i32
    %c0_i32_0 = arith.constant 0 : i32
    return %c0_i32, %arg0 : i32, i32
  }
}

</mosaic_0001>

<bundles_post_ra>
// kernel: _lambda_.9
= control target key start
LH: loop header
LB: loop body
LE: loop exit
PB: predicated region body
PF: predicated region fallthrough
CT: control target
= control target key end

     0   :  { %v2125_v1 = vmov 0   ;;  %vm264_vm0 = vsmask.f32 7424  ;;  %vm630_vm1 = vsmask.f32 6400  ;;  %vm502_vm2 = vcmask 1046528   ;;  %s2513_s1 = inlined_call_operand.vmem [shape: bf16[1,128,128], index: 1, kind: input, shape index: {}]   ;;  %s2514_s0 = inlined_call_operand.vmem [shape: bf16[26,128], index: 0, kind: input, shape index: {}]   ;;  %s2515_s3 = inlined_call_operand.vmem [shape: f32[26,1], index: 3, kind: input, shape index: {}]   ;;  %s2516_s4 = inlined_call_operand.vmem [shape: bf16[9,128,128], index: 4, kind: input, shape index: {}]   ;;  %s2517_s2 = inlined_call_operand.vmem [shape: f32[1,128], index: 2, kind: input, shape index: {}]   ;;  %s2518_s6 = inlined_call_operand.vmem [shape: bf16[26,128], index: 6, kind: output, shape index: {0}]   ;;  %s2519_s5 = inlined_call_operand.vmem [shape: f32[1,128], index: 5, kind: input, shape index: {}]   ;;  %s2520_s7 = inlined_call_operand.vmem [shape: bf16[26,128], index: 7, kind: output, shape index: {1}]  }
   0x1   :  { %v2030_v0 = vld [vmem:[%s2513_s1 + $0x38] sm:$0xff]   ;;  %2028 = vset.pattern.permute.xlu0 %v2125_v1  ;;  %214 = vst [vmem:[#allocation2 + $0xc] sm:$0xe] %v2125_v1  ;;  %215 = vst [vmem:[#allocation2 + $0x10] sm:$0x1] %v2125_v1  ;;  %2029 = vset.pattern.permute.xlu1 %v2125_v1  ;;  %v2031_v2 = vld [vmem:[%s2513_s1 + $0x30] sm:$0xff]  }
   0x2   :  { %1827 = vmatprep.subr.bf16.mxu0 %v2030_v0  ;;  %v2032_v3 = vld [vmem:[%s2513_s1 + $0x28] sm:$0xff]   ;;  %v2033_v4 = vld [vmem:[%s2513_s1 + $0x20] sm:$0xff]   ;;  %v164_v7 = vld [vmem:[%s2515_s3 + $0x10] sm:$0xff]  ;;  %vm900_vm3 = vsmask.f32 5376  ;;  %vm772_vm4 = vcmask 1045504  }
   0x3   :  { %1828 = vmatpush3.bf16.msra.mxu0 %v2030_v0  ;;  %v2038_v5 = vld [vmem:[%s2514_s0] sm:$0xff]   ;;  %v2034_v8 = vld [vmem:[%s2513_s1 + $0x18] sm:$0xff]   ;;  %178 = vperm.xlu1 %2029, %v164_v7   ;;  %v163_v9 = vld [vmem:[%s2515_s3 + $0x8] sm:$0xff]  ;;  %vm1184_vm5 = vsmask.f32 4352  ;;  %vm1042_vm6 = vcmask 1044480  }
   0x4   :  { %1829 = vmatprep.subr.bf16.mxu0 %v2031_v2  ;;  %1843 = vmatprep.mubr.bf16.mxu0 %v2038_v5  ;;  %v162_v6 = vld [vmem:[%s2515_s3] sm:$0xff]  ;;  %v165_v10 = vld [vmem:[%s2515_s3 + $0x18] sm:$0x3]  ;;  %v2035_v12 = vld [vmem:[%s2513_s1 + $0x10] sm:$0xff]  }
   0x5   :  { %168 = vperm.xlu0 %2028, %v162_v6   ;;  %v2042_v11 = vld [vmem:[%s2516_s4 + $0x78] sm:$0xff]   ;;  %v2036_v13 = vld [vmem:[%s2513_s1 + $0x8] sm:$0xff]   ;;  %v2037_v14 = vld [vmem:[%s2513_s1] sm:$0xff]  }
   0x6   :  { %1847 = vmatprep.subr.bf16.mxu1 %v2042_v11  ;;  %v2040_v15 = vld [vmem:[%s2516_s4 + $0x38] sm:$0xff]   ;;  %v2039_v16 = vld [vmem:[%s2514_s0 + $0x8] sm:$0x1f]   ;;  %v2041_v17 = vld [vmem:[%s2516_s4 + $0x30] sm:$0xff]  }
   0x7   :  { %1830 = vmatpush3.bf16.msra.mxu0 %v2031_v2  ;;  %183 = vperm.xlu1 %2029, %v165_v10   ;;  %v2043_v18 = vld [vmem:[%s2516_s4 + $0x28] sm:$0xff]   ;;  %v2044_v19 = vld [vmem:[%s2516_s4 + $0x70] sm:$0xff]   ;;  %v2045_v20 = vld [vmem:[%s2516_s4 + $0x20] sm:$0xff]  }
   0x8   :  { %1831 = vmatprep.subr.bf16.mxu0 %v2032_v3  ;;  %1848 = vmatpush3.bf16.msra.mxu1 %v2042_v11  ;;  %v2046_v21 = vld [vmem:[%s2516_s4 + $0x68] sm:$0xff]   ;;  %v2047_v22 = vld [vmem:[%s2516_s4 + $0x18] sm:$0xff]   ;;  %v2048_v23 = vld [vmem:[%s2516_s4 + $0x60] sm:$0xff]  }
   0x9   :  { %173 = vperm.xlu0 %2028, %v163_v9   ;;  %1849 = vmatprep.subr.bf16.mxu1 %v2044_v19  ;;  %v2049_v24 = vld [vmem:[%s2516_s4 + $0x10] sm:$0xff]   ;;  %v2050_v25 = vld [vmem:[%s2516_s4 + $0x58] sm:$0xff]   ;;  %v2051_v26 = vld [vmem:[%s2516_s4 + $0x8] sm:$0xff]  }
   0xa   :  { %v2052_v27 = vld [vmem:[%s2516_s4 + $0x50] sm:$0xff]   ;;  %v2053_v28 = vld [vmem:[%s2516_s4] sm:$0xff]   ;;  %v2054_v29 = vld [vmem:[%s2516_s4 + $0x48] sm:$0xff]  }
   0xb   :  { %1832 = vmatpush3.bf16.msra.mxu0 %v2032_v3  ;;  %v2058_v30 = vld [vmem:[%s2516_s4 + $0xf8] sm:$0xff]   ;;  %v2060_v31 = vld [vmem:[%s2516_s4 + $0x40] sm:$0xff]   ;;  %v2061_v3 = vld [vmem:[%s2516_s4 + $0xf0] sm:$0xff]  }
   0xc   :  { %1833 = vmatprep.subr.bf16.mxu0 %v2033_v4  ;;  %1850 = vmatpush3.bf16.msra.mxu1 %v2044_v19  ;;  %v2262_v32 = vld [vmem:[%s2516_s4 + $0xb8] sm:$0xff]   ;;  %v1471_v33 = vld [vmem:[%s2517_s2] ss:$0 sm:$0xff] }
   0xd   :  { %1851 = vmatprep.subr.bf16.mxu1 %v2046_v21 }
   0xf   :  { %1834 = vmatpush3.bf16.msra.mxu0 %v2033_v4 }
  0x10   :  { %1835 = vmatprep.subr.bf16.mxu0 %v2034_v8  ;;  %1852 = vmatpush3.bf16.msra.mxu1 %v2046_v21 }
  0x11   :  { %1853 = vmatprep.subr.bf16.mxu1 %v2048_v23 }
  0x13   :  { %1836 = vmatpush3.bf16.msra.mxu0 %v2034_v8 }
  0x14   :  { %1837 = vmatprep.subr.bf16.mxu0 %v2035_v12  ;;  %1854 = vmatpush3.bf16.msra.mxu1 %v2048_v23 }
  0x15   :  { %1855 = vmatprep.subr.bf16.mxu1 %v2050_v25 }
  0x17   :  { %1838 = vmatpush3.bf16.msra.mxu0 %v2035_v12 }
  0x18   :  { %1839 = vmatprep.subr.bf16.mxu0 %v2036_v13  ;;  %1856 = vmatpush3.bf16.msra.mxu1 %v2050_v25 }
  0x19   :  { %1857 = vmatprep.subr.bf16.mxu1 %v2052_v27 }
  0x1b   :  { %1840 = vmatpush3.bf16.msra.mxu0 %v2036_v13 }
  0x1c   :  { %1841 = vmatprep.subr.bf16.mxu0 %v2037_v14  ;;  %1858 = vmatpush3.bf16.msra.mxu1 %v2052_v27 }
  0x1d   :  { %1859 = vmatprep.subr.bf16.mxu1 %v2054_v29 }
  0x1f   :  { %1842 = vmatpush3.bf16.msra.mxu0 %v2037_v14 }
  0x20   :  { %1867 = vmatprep.subr.bf16.mxu0 %v2040_v15  ;;  %1860 = vmatpush3.bf16.msra.mxu1 %v2054_v29  ;;  %v2069_v29 = vld [vmem:[%s2516_s4 + $0xd8] sm:$0xff]  }
  0x21   :  { %1861 = vmatprep.subr.bf16.mxu1 %v2060_v31 }
  0x22   :  { %1844 = vmatmul.mubr.bf16.vlgmr.msra.gmra.mxu0 %v2039_v16 }
  0x23   :  { %1868 = vmatpush3.bf16.msra.mxu0 %v2040_v15  ;;  %v2065_v15 = vld [vmem:[%s2516_s4 + $0xe8] sm:$0xff]  }
  0x24   :  { %1869 = vmatprep.subr.bf16.mxu0 %v2041_v17  ;;  %1862 = vmatpush3.bf16.msra.mxu1 %v2060_v31  ;;  %v2070_v31 = vld [vmem:[%s2516_s4 + $0xa0] sm:$0xff]  }
  0x25   :  { %1887 = vmatprep.subr.bf16.mxu1 %v2262_v32 }
  0x27   :  { %1870 = vmatpush3.bf16.msra.mxu0 %v2041_v17 }
  0x28   :  { %1871 = vmatprep.subr.bf16.mxu0 %v2043_v18 }
  0x2b   :  { %1872 = vmatpush3.bf16.msra.mxu0 %v2043_v18 }
  0x2c   :  { %1873 = vmatprep.subr.bf16.mxu0 %v2045_v20 }
  0x2f   :  { %1874 = vmatpush3.bf16.msra.mxu0 %v2045_v20 }
  0x30   :  { %1875 = vmatprep.subr.bf16.mxu0 %v2047_v22 }
  0x33   :  { %1876 = vmatpush3.bf16.msra.mxu0 %v2047_v22 }
  0x34   :  { %1877 = vmatprep.subr.bf16.mxu0 %v2049_v24 }
  0x37   :  { %1878 = vmatpush3.bf16.msra.mxu0 %v2049_v24  ;;  %v2066_v24 = vld [vmem:[%s2516_s4 + $0xb0] sm:$0xff]  }
  0x38   :  { %1879 = vmatprep.subr.bf16.mxu0 %v2051_v26 }
  0x3b   :  { %1880 = vmatpush3.bf16.msra.mxu0 %v2051_v26  ;;  %v2067_v26 = vld [vmem:[%s2516_s4 + $0xe0] sm:$0xff]  }
  0x3c   :  { %1881 = vmatprep.subr.bf16.mxu0 %v2053_v28 }
  0x3f   :  { %1882 = vmatpush3.bf16.msra.mxu0 %v2053_v28  ;;  %v2068_v28 = vld [vmem:[%s2516_s4 + $0xa8] sm:$0xff]  }
  0x40   :  { %1907 = vmatprep.subr.bf16.mxu0 %v2058_v30 }
  0x7e   :  { %v179_v34 = vpop.permute.xlu1 %178 }
  0x80   :  { %v169_v37 = vpop.permute.xlu0 %168 }
  0x82   :  { %v184_v41 = vpop.permute.xlu1 %183 }
  0x84   :  { %v174_v48 = vpop.permute.xlu0 %173 }
  0xe2   :  { %v1845_v35 = vpop.f32.mrf.mxu0 }
  0xe3   :  { %v156_v36 = vadd.f32 %v1845_v35, %v1471_v33  ;;  %v2072_v35 = vld [vmem:[%s2516_s4 + $0x98] sm:$0xff]  }
  0xe4   :  { %v147_v38 = vpop.f32.mrf.mxu0 }
  0xe5   :  { %v188_v39 = vmul.f32 %v179_v34, %v156_v36  ;;  %v148_v43 = vadd.f32 %v1471_v33, %v147_v38  ;;  %v2073_v36 = vld [vmem:[%s2516_s4 + $0xc8] sm:$0xff]  }
  0xe6   :  { %v1846_v40 = vpop.f32.mrf.mxu0 }
  0xe7   :  { %v1706_v42 = vpack.c.bf16 %v188_v39, %v188_v39  ;;  %v159_v44 = vadd.f32 %v1846_v40, %v1471_v33  ;;  %v186_v49 = vmul.f32 %v169_v37, %v148_v43  ;;  %v2074_v40 = vld [vmem:[%s2516_s4 + $0x90] sm:$0xff]  }
  0xe8   :  { %v150_v45 = vpop.f32.mrf.mxu0 }
  0xe9   :  { %208 = vst [vmem:[%s2518_s6 + $0x8] sm:$0xf] %v1706_v42  ;;  %212 = vst [vmem:[#allocation2 + $0x8] sm:$0xf] %v1706_v42  ;;  %v189_v46 = vmul.f32 %v184_v41, %v159_v44  ;;  %v151_v47 = vadd.f32 %v1471_v33, %v150_v45  ;;  %v2075_v41 = vld [vmem:[%s2516_s4 + $0xc0] sm:$0xff]  }
  0xeb   :  { %v1707_v50 = vpack.c.bf16 %v189_v46, %v189_v46  ;;  %v187_v51 = vmul.f32 %v174_v48, %v151_v47  ;;  %v2076_v46 = vld [vmem:[%s2516_s4 + $0x88] sm:$0xff]   ;;  %v2077_v47 = vld [vmem:[%s2516_s4 + $0x178] sm:$0xff]  }
  0xed   :  { %209 = vst [vmem:[%s2518_s6 + $0xc] sm:$0x1] %v1707_v50  ;;  %213 = vst [vmem:[#allocation2 + $0xc] sm:$0x1] %v1707_v50  ;;  %v1715_v52 = vpack.c.bf16 %v187_v51, %v186_v49 }
  0xef   :  { %1716 = vst [vmem:[%s2518_s6] sm:$0xff] %v1715_v52   ;;  %1721 = vst [vmem:[#allocation2] sm:$0xff] %v1715_v52   ;;  %v2079_v52 = vld [vmem:[%s2516_s4 + $0x80] sm:$0xff]  }
  0xf0   :  { %v2277_v53 = vld [vmem:[#allocation2 + $0x8] sm:$0xf] }
  0xf4   :  { %v236_v54 = vld [vmem:[#allocation2 + $0xc] sm:$0x3] }
  0xf5   :  { %v609_v55 = vld [vmem:[#allocation2 + $0xc] sm:$0x7]  ;;  %v2280_v57 = vcombine.low %v2277_v53, %v236_v54 }
  0xf6   :  { %v219_v56 = vld [vmem:[#allocation2 + $0xc] sm:$0x1]  ;;  %v2283_v58 = vcombine.low %v2277_v53, %v609_v55  ;;  %v216_v59 = vld [vmem:[#allocation2] sm:$0xf]  ;;  %v2285_v60 = vld [vmem:[#allocation2 + $0x4] sm:$0xf] }
  0xf7   :  { %v481_v61 = vld [vmem:[#allocation2] sm:$0xe]  ;;  %v1502_v62 = vcombine.low %v216_v59, %v2285_v60  ;;  %v273_v0 = vshll.u32 %v2280_v57, 16  ;;  %v1512_v2 = vcombine.low %v2277_v53, %v219_v56  ;;  %v277_v17 = vshrl.u32 %v2280_v57, 16  ;;  %v879_v33 = vld [vmem:[#allocation2 + $0xc] sm:$0xf] }
  0xf8   :  { %v1537_v63 = vcombine.low %v481_v61, %v2285_v60  ;;  %v640_v1 = vshrl.u32 %v2283_v58, 16  ;;  %v643_v4 = vshll.u32 %v2283_v58, 16  ;;  %v504_v23 = vrot.slane %v2280_v57, 1  ;;  %v2081_v55 = vld [vmem:[%s2516_s4 + $0x138] sm:$0xff]   ;;  %v2082_v56 = vld [vmem:[%s2516_s4 + $0x168] sm:$0xff]   ;;  %v2087_v57 = vld [vmem:[%s2516_s4 + $0x120] sm:$0xff]  }
  0xf9   :  { %1883 = vmatprep.mubr.bf16.mxu0 %v1502_v62  ;;  %v268_v5 = vshll.u32 %v1502_v62, 16  ;;  %v266_v10 = vshrl.u32 %v1502_v62, 16  ;;  %v275_v12 = vrot.slane %v273_v0, 1  ;;  %v2333_v37 = vcombine.low %v2277_v53, %v879_v33  ;;  %v2080_v53 = vld [vmem:[%s2516_s4 + $0x170] sm:$0xff]  }
  0xfa   :  { %v632_v6 = vshrl.u32 %v1537_v63, 16  ;;  %1884 = vmatmul.mubr.bf16.vlgmr.msra.gmra.mxu0 %v1512_v2  ;;  %v635_v7 = vshll.u32 %v1537_v63, 16  ;;  %v642_v8 = vrot.slane %v640_v1, 1  ;;  %v645_v9 = vrot.slane %v643_v4, 2  ;;  %v2083_v62 = vld [vmem:[%s2516_s4 + $0x130] sm:$0xff]   ;;  %v2085_v1 = vld [vmem:[%s2516_s4 + $0x128] sm:$0xff]  }
  0xfb   :  { %1908 = vmatpush3.bf16.msra.mxu0 %v2058_v30  ;;  %v270_v11 = vrot.slane %v268_v5, 1  ;;  %v503_v18 = vrot.slane %v1537_v63, 1  ;;  %v279_v22 = vor.u32 %v277_v17, %v275_v12  ;;  %v751_v30 = vld [vmem:[#allocation2] sm:$0xc]  ;;  %v910_v42 = vshrl.u32 %v2333_v37, 16  ;;  %v2086_v2 = vld [vmem:[%s2516_s4 + $0x158] sm:$0xff]  }
  0xfc   :  { %v634_v13 = vrot.slane %v632_v6, 1  ;;  %1909 = vmatprep.subr.bf16.mxu0 %v2061_v3  ;;  %v637_v14 = vrot.slane %v635_v7, 2  ;;  %v2300_v20 = vor.u32 %v645_v9, %v642_v8  ;;  %v1587_v34 = vcombine.low %v751_v30, %v2285_v60  ;;  %v2084_v63 = vld [vmem:[%s2516_s4 + $0x160] sm:$0xff]   ;;  %v2088_v5 = vld [vmem:[%s2516_s4 + $0x150] sm:$0xff]   ;;  %v2390_v6 = vld [vmem:[#allocation2 + $0xc] sm:$0xf] }
  0xfd   :  { %v271_v16 = vor.u32 %v270_v11, %v266_v10  ;;  %v505_v27 = vsel %vm502_vm2, %v503_v18, %v504_v23  ;;  %v913_v43 = vshll.u32 %v2333_v37, 16  ;;  %v912_v48 = vrot.slane %v910_v42, 2  ;;  %v2385_v4 = vld [vmem:[#allocation2 + $0x4] sm:$0xf]  ;;  %v2089_v8 = vld [vmem:[%s2516_s4 + $0x118] sm:$0xff]   ;;  %v2090_v10 = vld [vmem:[%s2516_s4 + $0x148] sm:$0xff]  }
  0xfe   :  { %v638_v19 = vor.u32 %v637_v14, %v634_v13  ;;  %v902_v38 = vshrl.u32 %v1587_v34, 16  ;;  %v905_v39 = vshll.u32 %v1587_v34, 16  ;;  %v773_v59 = vrot.slane %v1587_v34, 2  ;;  %v2396_v9 = vld [vmem:[#allocation2 + $0x8] sm:$0xf]  ;;  %v2091_v14 = vld [vmem:[%s2516_s4 + $0x110] sm:$0xff]  }
  0xff   :  { %1910 = vmatpush3.bf16.msra.mxu0 %v2061_v3  ;;  %v276_v21 = vsel %vm264_vm0, %v271_v16, %v275_v12  ;;  %v915_v49 = vrot.slane %v913_v43, 3  ;;  %v774_v61 = vrot.slane %v2283_v58, 2  ;;  %v1149_v3 = vld [vmem:[#allocation2] sm:$0x8]  ;;  %v1663_v11 = vcombine.low %v2396_v9, %v2390_v6  ;;  %v2102_v34 = vld [vmem:[%s2516_s4 + $0x1b0] sm:$0xff]  }
 0x100   :  { %1863 = vmatprep.mubr.bf16.mxu1 %v276_v21  ;;  %v647_v25 = vsel %vm630_vm1, %v638_v19, %v2300_v20  ;;  %1911 = vmatprep.subr.bf16.mxu0 %v2065_v15  ;;  %v904_v44 = vrot.slane %v902_v38, 2  ;;  %v907_v45 = vrot.slane %v905_v39, 3  ;;  %v1662_v7 = vcombine.low %v1149_v3, %v2385_v4  ;;  %v2094_v21 = vld [vmem:[%s2516_s4 + $0x1f8] sm:$0xff]   ;;  %v2106_v58 = vld [vmem:[%s2516_s4 + $0x1a0] sm:$0xff]   ;;  %v2107_v39 = vld [vmem:[%s2516_s4 + $0x1d0] sm:$0xff]  }
 0x101   :  { %1923 = vmatprep.mubr.bf16.mxu0 %v647_v25  ;;  %1864 = vmatmul.mubr.bf16.vlgmr.msra.gmra.mxu1 %v279_v22  ;;  %v2349_v51 = vor.u32 %v915_v49, %v912_v48  ;;  %v775_v0 = vsel %vm772_vm4, %v773_v59, %v774_v61  ;;  %v1194_v16 = vshrl.u32 %v1663_v11, 16  ;;  %v1197_v17 = vshll.u32 %v1663_v11, 16  ;;  %v1021_v25 = vld [vmem:[#allocation2] sm:$0x8]  ;;  %v2105_v38 = vld [vmem:[%s2516_s4 + $0x1d8] sm:$0xff]   ;;  %v2121_v59 = vld [vmem:[%s2516_s4 + $0x210] sm:$0xff]  }
 0x102   :  { %1888 = vmatpush3.bf16.msra.mxu1 %v2262_v32  ;;  %1903 = vmatprep.mubr.bf16.mxu1 %v505_v27  ;;  %v2071_v32 = vld [vmem:[%s2516_s4 + $0xd0] sm:$0xff]   ;;  %v908_v50 = vor.u32 %v907_v45, %v904_v44  ;;  %v1186_v12 = vshrl.u32 %v1662_v7, 16  ;;  %v1189_v13 = vshll.u32 %v1662_v7, 16  ;;  %v2097_v27 = vld [vmem:[%s2516_s4 + $0x100] sm:$0xff]  }
 0x103   :  { %1912 = vmatpush3.bf16.msra.mxu0 %v2065_v15  ;;  %1889 = vmatprep.subr.bf16.mxu1 %v2066_v24  ;;  %v2092_v15 = vld [vmem:[%s2516_s4 + $0x140] sm:$0xff]   ;;  %v1196_v22 = vrot.slane %v1194_v16, 3  ;;  %v1153_v42 = vld [vmem:[#allocation2 + $0x10] sm:$0x1] }
 0x104   :  { %1913 = vmatprep.subr.bf16.mxu0 %v2067_v26  ;;  %v917_v54 = vsel %vm900_vm3, %v908_v50, %v2349_v51  ;;  %v1188_v18 = vrot.slane %v1186_v12, 3  ;;  %v1191_v19 = vrot.slane %v1189_v13, 4  ;;  %v1664_v43 = vcombine.low %v1153_v42, %v1153_v42  ;;  %v2110_v44 = vld [vmem:[%s2516_s4 + $0x190] sm:$0xff]   ;;  %v2111_v45 = vld [vmem:[%s2516_s4 + $0x1c0] sm:$0xff]  }
 0x105   :  { %v2114_v49 = vld [vmem:[%s2516_s4 + $0x180] sm:$0xff]  }
 0x106   :  { %1890 = vmatpush3.bf16.msra.mxu1 %v2066_v24  ;;  %v1192_v24 = vor.u32 %v1191_v19, %v1188_v18 }
 0x107   :  { %1914 = vmatpush3.bf16.msra.mxu0 %v2067_v26  ;;  %1891 = vmatprep.subr.bf16.mxu1 %v2068_v28 }
 0x108   :  { %1915 = vmatprep.subr.bf16.mxu0 %v2069_v29 }
 0x10a   :  { %1892 = vmatpush3.bf16.msra.mxu1 %v2068_v28  ;;  %v2098_v28 = vld [vmem:[%s2516_s4 + $0x1f0] sm:$0xff]  }
 0x10b   :  { %1916 = vmatpush3.bf16.msra.mxu0 %v2069_v29  ;;  %1893 = vmatprep.subr.bf16.mxu1 %v2070_v31  ;;  %v1637_v29 = vcombine.low %v1021_v25, %v2285_v60  ;;  %v1044_v60 = vrot.slane %v2333_v37, 3  ;;  %v2104_v37 = vld [vmem:[%s2516_s4 + $0x1a8] sm:$0xff]  }
 0x10c   :  { %1917 = vmatprep.subr.bf16.mxu0 %v2071_v32 }
 0x10d   :  { %v1043_v33 = vrot.slane %v1637_v29, 3 }
 0x10e   :  { %1894 = vmatpush3.bf16.msra.mxu1 %v2070_v31  ;;  %v2099_v31 = vld [vmem:[%s2516_s4 + $0x1b8] sm:$0xff]  }
 0x10f   :  { %1918 = vmatpush3.bf16.msra.mxu0 %v2071_v32  ;;  %1895 = vmatprep.subr.bf16.mxu1 %v2072_v35  ;;  %v2101_v32 = vld [vmem:[%s2516_s4 + $0x1e8] sm:$0xff]  }
 0x110   :  { %1919 = vmatprep.subr.bf16.mxu0 %v2073_v36 }
 0x112   :  { %1896 = vmatpush3.bf16.msra.mxu1 %v2072_v35  ;;  %v2103_v35 = vld [vmem:[%s2516_s4 + $0x1e0] sm:$0xff]  }
 0x113   :  { %1920 = vmatpush3.bf16.msra.mxu0 %v2073_v36  ;;  %1897 = vmatprep.subr.bf16.mxu1 %v2074_v40  ;;  %v1045_v36 = vsel %vm1042_vm6, %v1043_v33, %v1044_v60 }
 0x114   :  { %1921 = vmatprep.subr.bf16.mxu0 %v2075_v41 }
 0x116   :  { %1898 = vmatpush3.bf16.msra.mxu1 %v2074_v40  ;;  %v2108_v40 = vld [vmem:[%s2516_s4 + $0x198] sm:$0xff]  }
 0x117   :  { %1922 = vmatpush3.bf16.msra.mxu0 %v2075_v41  ;;  %1899 = vmatprep.subr.bf16.mxu1 %v2076_v46  ;;  %v2109_v41 = vld [vmem:[%s2516_s4 + $0x1c8] sm:$0xff]  }
 0x118   :  { %1947 = vmatprep.subr.bf16.mxu0 %v2077_v47 }
 0x11a   :  { %1900 = vmatpush3.bf16.msra.mxu1 %v2076_v46  ;;  %1924 = vmatmul.mubr.bf16.vlgmr.msra.gmra.mxu0 %v2300_v20  ;;  %v2093_v20 = vld [vmem:[%s2516_s4 + $0x108] sm:$0xff]   ;;  %v1203_v46 = vshll.u32 %v1664_v43, 16 }
 0x11b   :  { %1948 = vmatpush3.bf16.msra.mxu0 %v2077_v47  ;;  %1963 = vmatprep.mubr.bf16.mxu0 %v917_v54  ;;  %v2112_v47 = vld [vmem:[%s2516_s4 + $0x188] sm:$0xff]  }
 0x11c   :  { %1901 = vmatprep.subr.bf16.mxu1 %v2079_v52  ;;  %1949 = vmatprep.subr.bf16.mxu0 %v2080_v53  ;;  %v1205_v48 = vrot.slane %v1203_v46, 4  ;;  %v2118_v54 = vld [vmem:[%s2516_s4 + $0x228] sm:$0xff]  }
 0x11e   :  { %1902 = vmatpush3.bf16.msra.mxu1 %v2079_v52  ;;  %v2117_v52 = vld [vmem:[%s2516_s4 + $0x230] sm:$0xff]  }
 0x11f   :  { %1950 = vmatpush3.bf16.msra.mxu0 %v2080_v53  ;;  %1927 = vmatprep.subr.bf16.mxu1 %v2081_v55  ;;  %v1689_v53 = vcombine.low %v2385_v4, %v2396_v9 }
 0x120   :  { %1951 = vmatprep.subr.bf16.mxu0 %v2082_v56 }
 0x121   :  { %1904 = vmatmul.mubr.bf16.vlgmr.msra.gmra.mxu1 %v504_v23  ;;  %v1199_v23 = vrot.slane %v1197_v17, 4 }
 0x122   :  { %1928 = vmatpush3.bf16.msra.mxu1 %v2081_v55  ;;  %1943 = vmatprep.mubr.bf16.mxu1 %v775_v0  ;;  %v2119_v55 = vld [vmem:[%s2516_s4 + $0x220] sm:$0xff]  }
 0x123   :  { %1952 = vmatpush3.bf16.msra.mxu0 %v2082_v56  ;;  %1929 = vmatprep.subr.bf16.mxu1 %v2083_v62  ;;  %v2415_v26 = vor.u32 %v1199_v23, %v1196_v22  ;;  %v2120_v56 = vld [vmem:[%s2516_s4 + $0x218] sm:$0xff]  }
 0x124   :  { %1953 = vmatprep.subr.bf16.mxu0 %v2084_v63 }
 0x125   :  { %v1201_v30 = vsel %vm1184_vm5, %v1192_v24, %v2415_v26  ;;  %v1206_v50 = vsel %vm1184_vm5, %v2415_v26, %v1205_v48 }
 0x126   :  { %1930 = vmatpush3.bf16.msra.mxu1 %v2083_v62  ;;  %v2123_v62 = vld [vmem:[%s2516_s4 + $0x200] sm:$0xff]  }
 0x127   :  { %1954 = vmatpush3.bf16.msra.mxu0 %v2084_v63  ;;  %1931 = vmatprep.subr.bf16.mxu1 %v2085_v1  ;;  %v1690_v63 = vcombine.low %v2390_v6, %v1153_v42 }
 0x128   :  { %1955 = vmatprep.subr.bf16.mxu0 %v2086_v2 }
 0x12a   :  { %1932 = vmatpush3.bf16.msra.mxu1 %v2085_v1 }
 0x12b   :  { %1956 = vmatpush3.bf16.msra.mxu0 %v2086_v2  ;;  %1933 = vmatprep.subr.bf16.mxu1 %v2087_v57 }
 0x12c   :  { %1957 = vmatprep.subr.bf16.mxu0 %v2088_v5 }
 0x12e   :  { %1934 = vmatpush3.bf16.msra.mxu1 %v2087_v57 }
 0x12f   :  { %1958 = vmatpush3.bf16.msra.mxu0 %v2088_v5  ;;  %1935 = vmatprep.subr.bf16.mxu1 %v2089_v8 }
 0x130   :  { %1959 = vmatprep.subr.bf16.mxu0 %v2090_v10 }
 0x132   :  { %1936 = vmatpush3.bf16.msra.mxu1 %v2089_v8 }
 0x133   :  { %1960 = vmatpush3.bf16.msra.mxu0 %v2090_v10  ;;  %1937 = vmatprep.subr.bf16.mxu1 %v2091_v14 }
 0x134   :  { %1961 = vmatprep.subr.bf16.mxu0 %v2092_v15 }
 0x136   :  { %1938 = vmatpush3.bf16.msra.mxu1 %v2091_v14 }
 0x137   :  { %1962 = vmatpush3.bf16.msra.mxu0 %v2092_v15  ;;  %1939 = vmatprep.subr.bf16.mxu1 %v2093_v20 }
 0x138   :  { %1987 = vmatprep.subr.bf16.mxu0 %v2094_v21 }
 0x13a   :  { %1940 = vmatpush3.bf16.msra.mxu1 %v2093_v20  ;;  %1964 = vmatmul.mubr.bf16.vlgmr.msra.gmra.mxu0 %v2349_v51  ;;  %v2115_v51 = vld [vmem:[%s2516_s4 + $0x238] sm:$0xff]  }
 0x13b   :  { %1988 = vmatpush3.bf16.msra.mxu0 %v2094_v21  ;;  %2003 = vmatprep.mubr.bf16.mxu0 %v1201_v30 }
 0x13c   :  { %1941 = vmatprep.subr.bf16.mxu1 %v2097_v27  ;;  %1989 = vmatprep.subr.bf16.mxu0 %v2098_v28 }
 0x13e   :  { %1942 = vmatpush3.bf16.msra.mxu1 %v2097_v27 }
 0x13f   :  { %1990 = vmatpush3.bf16.msra.mxu0 %v2098_v28  ;;  %1967 = vmatprep.subr.bf16.mxu1 %v2099_v31 }
 0x140   :  { %1991 = vmatprep.subr.bf16.mxu0 %v2101_v32 }
 0x141   :  { %1944 = vmatmul.mubr.bf16.vlgmr.msra.gmra.mxu1 %v774_v61  ;;  %v2122_v61 = vld [vmem:[%s2516_s4 + $0x208] sm:$0xff]  }
 0x142   :  { %1968 = vmatpush3.bf16.msra.mxu1 %v2099_v31  ;;  %1983 = vmatprep.mubr.bf16.mxu1 %v1045_v36 }
 0x143   :  { %1992 = vmatpush3.bf16.msra.mxu0 %v2101_v32  ;;  %1969 = vmatprep.subr.bf16.mxu1 %v2102_v34 }
 0x144   :  { %1993 = vmatprep.subr.bf16.mxu0 %v2103_v35 }
 0x146   :  { %1970 = vmatpush3.bf16.msra.mxu1 %v2102_v34 }
 0x147   :  { %1994 = vmatpush3.bf16.msra.mxu0 %v2103_v35  ;;  %1971 = vmatprep.subr.bf16.mxu1 %v2104_v37 }
 0x148   :  { %1995 = vmatprep.subr.bf16.mxu0 %v2105_v38 }
 0x14a   :  { %1972 = vmatpush3.bf16.msra.mxu1 %v2104_v37 }
 0x14b   :  { %1996 = vmatpush3.bf16.msra.mxu0 %v2105_v38  ;;  %1973 = vmatprep.subr.bf16.mxu1 %v2106_v58 }
 0x14c   :  { %1997 = vmatprep.subr.bf16.mxu0 %v2107_v39 }
 0x14e   :  { %1974 = vmatpush3.bf16.msra.mxu1 %v2106_v58 }
 0x14f   :  { %1998 = vmatpush3.bf16.msra.mxu0 %v2107_v39  ;;  %1975 = vmatprep.subr.bf16.mxu1 %v2108_v40 }
 0x150   :  { %1999 = vmatprep.subr.bf16.mxu0 %v2109_v41 }
 0x152   :  { %1976 = vmatpush3.bf16.msra.mxu1 %v2108_v40 }
 0x153   :  { %2000 = vmatpush3.bf16.msra.mxu0 %v2109_v41  ;;  %1977 = vmatprep.subr.bf16.mxu1 %v2110_v44 }
 0x154   :  { %2001 = vmatprep.subr.bf16.mxu0 %v2111_v45 }
 0x156   :  { %1978 = vmatpush3.bf16.msra.mxu1 %v2110_v44 }
 0x157   :  { %2002 = vmatpush3.bf16.msra.mxu0 %v2111_v45  ;;  %1979 = vmatprep.subr.bf16.mxu1 %v2112_v47 }
 0x15a   :  { %1980 = vmatpush3.bf16.msra.mxu1 %v2112_v47  ;;  %2004 = vmatmul.mubr.bf16.vlgmr.msra.gmra.mxu0 %v1206_v50 }
 0x15b   :  { %1981 = vmatprep.subr.bf16.mxu1 %v2114_v49 }
 0x15e   :  { %1982 = vmatpush3.bf16.msra.mxu1 %v2114_v49 }
 0x15f   :  { %2007 = vmatprep.subr.bf16.mxu1 %v2115_v51 }
 0x161   :  { %1984 = vmatmul.mubr.bf16.vlgmr.msra.gmra.mxu1 %v1044_v60 }
 0x162   :  { %2008 = vmatpush3.bf16.msra.mxu1 %v2115_v51  ;;  %2023 = vmatprep.mubr.bf16.mxu1 %v1689_v53  ;;  %v1699_v53 = vld [vmem:[%s2519_s5] ss:$0 sm:$0xff] }
 0x163   :  { %2009 = vmatprep.subr.bf16.mxu1 %v2117_v52 }
 0x166   :  { %2010 = vmatpush3.bf16.msra.mxu1 %v2117_v52 }
 0x167   :  { %2011 = vmatprep.subr.bf16.mxu1 %v2118_v54 }
 0x16a   :  { %2012 = vmatpush3.bf16.msra.mxu1 %v2118_v54 }
 0x16b   :  { %2013 = vmatprep.subr.bf16.mxu1 %v2119_v55 }
 0x16e   :  { %2014 = vmatpush3.bf16.msra.mxu1 %v2119_v55 }
 0x16f   :  { %2015 = vmatprep.subr.bf16.mxu1 %v2120_v56 }
 0x172   :  { %2016 = vmatpush3.bf16.msra.mxu1 %v2120_v56 }
 0x173   :  { %2017 = vmatprep.subr.bf16.mxu1 %v2121_v59 }
 0x176   :  { %2018 = vmatpush3.bf16.msra.mxu1 %v2121_v59 }
 0x177   :  { %2019 = vmatprep.subr.bf16.mxu1 %v2122_v61 }
 0x17a   :  { %2020 = vmatpush3.bf16.msra.mxu1 %v2122_v61 }
 0x17b   :  { %2021 = vmatprep.subr.bf16.mxu1 %v2123_v62 }
 0x17e   :  { %2022 = vmatpush3.bf16.msra.mxu1 %v2123_v62 }
 0x181   :  { %2024 = vmatmul.mubr.bf16.vlgmr.msra.gmra.mxu1 %v1690_v63 }
 0x1ba   :  { %v1885_v2 = vpop.f32.mrf.mxu0 }
 0x1bc   :  { %v466_v3 = vpop.f32.mrf.mxu0 }
 0x1be   :  { %v1886_v5 = vpop.f32.mrf.mxu0 }
 0x1c0   :  { %v469_v8 = vpop.f32.mrf.mxu0 }
 0x1c1   :  { %v1865_v0 = vpop.f32.mrf.mxu1 }
 0x1c2   :  { %v475_v19 = vadd.f32 %v1885_v2, %v1865_v0 }
 0x1c3   :  { %v364_v1 = vpop.f32.mrf.mxu1 }
 0x1c4   :  { %v467_v23 = vadd.f32 %v466_v3, %v364_v1 }
 0x1c5   :  { %v1866_v57 = vpop.f32.mrf.mxu1 }
 0x1c6   :  { %v478_v24 = vadd.f32 %v1886_v5, %v1866_v57 }
 0x1c7   :  { %v367_v4 = vpop.f32.mrf.mxu1 }
 0x1c8   :  { %v470_v27 = vadd.f32 %v469_v8, %v367_v4 }
 0x1da   :  { %v1925_v10 = vpop.f32.mrf.mxu0 }
 0x1dc   :  { %v732_v12 = vpop.f32.mrf.mxu0 }
 0x1de   :  { %v1926_v14 = vpop.f32.mrf.mxu0 }
 0x1e0   :  { %v735_v16 = vpop.f32.mrf.mxu0 }
 0x1e1   :  { %v1905_v7 = vpop.f32.mrf.mxu1 }
 0x1e2   :  { %v607_v21 = vadd.f32 %v1905_v7, %v475_v19 }
 0x1e3   :  { %v590_v9 = vpop.f32.mrf.mxu1 }
 0x1e4   :  { %v605_v28 = vadd.f32 %v590_v9, %v467_v23  ;;  %v749_v30 = vadd.f32 %v1925_v10, %v607_v21 }
 0x1e5   :  { %v1906_v11 = vpop.f32.mrf.mxu1 }
 0x1e6   :  { %v608_v29 = vadd.f32 %v1906_v11, %v478_v24  ;;  %v747_v34 = vadd.f32 %v732_v12, %v605_v28 }
 0x1e7   :  { %v593_v13 = vpop.f32.mrf.mxu1 }
 0x1e8   :  { %v606_v31 = vadd.f32 %v593_v13, %v470_v27  ;;  %v750_v35 = vadd.f32 %v1926_v14, %v608_v29 }
 0x1ea   :  { %v748_v58 = vadd.f32 %v735_v16, %v606_v31 }
 0x1fa   :  { %v1965_v6 = vpop.f32.mrf.mxu0 }
 0x1fc   :  { %v1002_v20 = vpop.f32.mrf.mxu0 }
 0x1fe   :  { %v1966_v25 = vpop.f32.mrf.mxu0 }
 0x200   :  { %v1005_v33 = vpop.f32.mrf.mxu0 }
 0x201   :  { %v1945_v15 = vpop.f32.mrf.mxu1 }
 0x202   :  { %v877_v32 = vadd.f32 %v1945_v15, %v749_v30 }
 0x203   :  { %v860_v17 = vpop.f32.mrf.mxu1 }
 0x204   :  { %v875_v37 = vadd.f32 %v860_v17, %v747_v34  ;;  %v1019_v39 = vadd.f32 %v1965_v6, %v877_v32 }
 0x205   :  { %v1946_v18 = vpop.f32.mrf.mxu1 }
 0x206   :  { %v878_v38 = vadd.f32 %v1946_v18, %v750_v35  ;;  %v1017_v44 = vadd.f32 %v1002_v20, %v875_v37 }
 0x207   :  { %v863_v22 = vpop.f32.mrf.mxu1 }
 0x208   :  { %v876_v41 = vadd.f32 %v863_v22, %v748_v58  ;;  %v1020_v45 = vadd.f32 %v1966_v25, %v878_v38 }
 0x20a   :  { %v1018_v49 = vadd.f32 %v1005_v33, %v876_v41 }
 0x21a   :  { %v2005_v36 = vpop.f32.mrf.mxu0 }
 0x21c   :  { %v1291_v43 = vpop.f32.mrf.mxu0 }
 0x21e   :  { %v2006_v51 = vpop.f32.mrf.mxu0 }
 0x220   :  { %v1294_v63 = vpop.f32.mrf.mxu0 }
 0x221   :  { %v1985_v26 = vpop.f32.mrf.mxu1 }
 0x222   :  { %v1147_v42 = vadd.f32 %v1985_v26, %v1019_v39 }
 0x223   :  { %v1130_v60 = vpop.f32.mrf.mxu1 }
 0x224   :  { %v1145_v47 = vadd.f32 %v1130_v60, %v1017_v44  ;;  %v1308_v50 = vadd.f32 %v2005_v36, %v1147_v42 }
 0x225   :  { %v1986_v40 = vpop.f32.mrf.mxu1 }
 0x226   :  { %v1148_v48 = vadd.f32 %v1986_v40, %v1020_v45  ;;  %v1306_v61 = vadd.f32 %v1291_v43, %v1145_v47 }
 0x227   :  { %v1133_v46 = vpop.f32.mrf.mxu1 }
 0x228   :  { %v1146_v54 = vadd.f32 %v1133_v46, %v1018_v49  ;;  %v1309_v62 = vadd.f32 %v2006_v51, %v1148_v48 }
 0x22a   :  { %v1307_v3 = vadd.f32 %v1294_v63, %v1146_v54 }
 0x241   :  { %v2025_v52 = vpop.f32.mrf.mxu1 }
 0x242   :  { %v1430_v55 = vadd.f32 %v2025_v52, %v1308_v50 }
 0x243   :  { %v1413_v56 = vpop.f32.mrf.mxu1 }
 0x244   :  { %v1441_v59 = vadd.f32 %v1699_v53, %v1430_v55  ;;  %v1428_v2 = vadd.f32 %v1413_v56, %v1306_v61 }
 0x245   :  { %v2026_v0 = vpop.f32.mrf.mxu1 }
 0x246   :  { %v1710_v1 = vpack.c.bf16 %v1441_v59, %v1441_v59  ;;  %v1431_v57 = vadd.f32 %v2026_v0, %v1309_v62  ;;  %v1439_v8 = vadd.f32 %v1699_v53, %v1428_v2 }
 0x247   :  { %v1416_v4 = vpop.f32.mrf.mxu1 }
 0x248   :  { %1461 = vst [vmem:[%s2520_s7 + $0x8] sm:$0xf] %v1710_v1  ;;  %v1442_v5 = vadd.f32 %v1699_v53, %v1431_v57  ;;  %v1429_v7 = vadd.f32 %v1416_v4, %v1307_v3 }
 0x24a   :  { %v1711_v9 = vpack.c.bf16 %v1442_v5, %v1442_v5  ;;  %v1440_v10 = vadd.f32 %v1699_v53, %v1429_v7 }
 0x24c   :  { %1462 = vst [vmem:[%s2520_s7 + $0xc] sm:$0x1] %v1711_v9  ;;  %v1725_v11 = vpack.c.bf16 %v1440_v10, %v1439_v8 }
 0x24e   :  { %1726 = vst [vmem:[%s2520_s7] sm:$0xff] %v1725_v11  }

// kernel: _lambda_.8
= control target key start
LH: loop header
LB: loop body
LE: loop exit
PB: predicated region body
PF: predicated region fallthrough
CT: control target
= control target key end

     0   :  { %vm71_vm0 = vsmask.f32 7424  ;;  %vm456_vm1 = vsmask.f32 6400  ;;  %vm603_vm2 = vcmask 1045504   ;;  %s2218_s4 = inlined_call_operand.vmem [shape: bf16[9,128,128], index: 4, kind: input, shape index: {}]   ;;  %s2219_s2 = inlined_call_operand.vmem [shape: bf16[22,128], index: 2, kind: input, shape index: {}]   ;;  %s2220_s3 = inlined_call_operand.vmem [shape: bf16[22,128], index: 3, kind: input, shape index: {}]   ;;  %s2221_s1 = inlined_call_operand.vmem [shape: bf16[22,128], index: 1, kind: input, shape index: {}]   ;;  %s2222_s0 = inlined_call_operand.vmem [shape: bf16[22,128], index: 0, kind: input, shape index: {}]   ;;  %s2223_s5 = inlined_call_operand.vmem [shape: f32[1,128], index: 5, kind: input, shape index: {}]   ;;  %s2224_s6 = inlined_call_operand.vmem [shape: bf16[18,128], index: 6, kind: output, shape index: {}]  }
   0x1   :  { %v1760_v0 = vld [vmem:[%s2218_s4 + $0x78] sm:$0xff]   ;;  %v1762_v2 = vld [vmem:[%s2218_s4 + $0x70] sm:$0xff]   ;;  %v1764_v4 = vld [vmem:[%s2218_s4 + $0x68] sm:$0xff]  }
   0x2   :  { %v1761_v1 = vld [vmem:[%s2218_s4 + $0x38] sm:$0xff]   ;;  %1580 = vmatprep.subr.bf16.mxu0 %v1760_v0  ;;  %v1763_v3 = vld [vmem:[%s2218_s4 + $0x30] sm:$0xff]   ;;  %v1765_v5 = vld [vmem:[%s2218_s4 + $0x28] sm:$0xff]  }
   0x3   :  { %1600 = vmatprep.subr.bf16.mxu1 %v1761_v1  ;;  %1581 = vmatpush3.bf16.msra.mxu0 %v1760_v0  ;;  %v1766_v6 = vld [vmem:[%s2218_s4 + $0x60] sm:$0xff]   ;;  %v1768_v8 = vld [vmem:[%s2218_s4 + $0x58] sm:$0xff]   ;;  %v1770_v10 = vld [vmem:[%s2218_s4 + $0x50] sm:$0xff]  }
   0x4   :  { %1601 = vmatpush3.bf16.msra.mxu1 %v1761_v1  ;;  %1582 = vmatprep.subr.bf16.mxu0 %v1762_v2  ;;  %v1767_v7 = vld [vmem:[%s2218_s4 + $0x20] sm:$0xff]   ;;  %v1769_v9 = vld [vmem:[%s2218_s4 + $0x18] sm:$0xff]   ;;  %v1771_v13 = vld [vmem:[%s2218_s4 + $0x10] sm:$0xff]  }
   0x5   :  { %1602 = vmatprep.subr.bf16.mxu1 %v1763_v3  ;;  %v43_v11 = vld [vmem:[%s2219_s2] sm:$0xf]  ;;  %v1921_v12 = vld [vmem:[%s2219_s2 + $0x4] sm:$0xf]  ;;  %v1772_v22 = vld [vmem:[%s2218_s4 + $0x48] sm:$0xff]  }
   0x6   :  { %v1279_v14 = vcombine.low %v43_v11, %v1921_v12  ;;  %v1777_v15 = vld [vmem:[%s2219_s2 + $0x8] ss:$0 sps:$4 sm:$0x33]   ;;  %v24_v16 = vld [vmem:[%s2220_s3] sm:$0xf]  ;;  %v1781_v31 = vld [vmem:[%s2218_s4 + $0xb8] sm:$0xff]  }
   0x7   :  { %1583 = vmatpush3.bf16.msra.mxu0 %v1762_v2  ;;  %v1936_v17 = vld [vmem:[%s2220_s3 + $0x4] sm:$0xf]  ;;  %v80_v20 = vshll.u32 %v1777_v15, 16  ;;  %v1773_v23 = vld [vmem:[%s2218_s4 + $0x8] sm:$0xff]   ;;  %v84_v30 = vshrl.u32 %v1777_v15, 16  ;;  %v1782_v33 = vld [vmem:[%s2218_s4 + $0xf8] sm:$0xff]  }
   0x8   :  { %1603 = vmatpush3.bf16.msra.mxu1 %v1763_v3  ;;  %1584 = vmatprep.subr.bf16.mxu0 %v1764_v4  ;;  %v73_v18 = vshrl.u32 %v1279_v14, 16  ;;  %v75_v19 = vshll.u32 %v1279_v14, 16  ;;  %v1289_v21 = vcombine.low %v24_v16, %v1936_v17  ;;  %v1774_v27 = vld [vmem:[%s2218_s4 + $0x40] sm:$0xff]   ;;  %v1780_v32 = vld [vmem:[%s2220_s3 + $0x8] ss:$0 sps:$4 sm:$0x11]  }
   0x9   :  { %1604 = vmatprep.subr.bf16.mxu1 %v1765_v5  ;;  %v82_v25 = vrot.slane %v80_v20, 1  ;;  %v1775_v28 = vld [vmem:[%s2218_s4] sm:$0xff]   ;;  %v1783_v36 = vld [vmem:[%s2218_s4 + $0xb0] sm:$0xff]   ;;  %v1785_v40 = vld [vmem:[%s2218_s4 + $0xa8] sm:$0xff]  }
   0xa   :  { %v77_v24 = vrot.slane %v75_v19, 1  ;;  %1616 = vmatprep.mubr.bf16.mxu1 %v1289_v21  ;;  %v315_v34 = vshll.u32 %v1289_v21, 16  ;;  %v1784_v37 = vld [vmem:[%s2218_s4 + $0xf0] sm:$0xff]   ;;  %v313_v38 = vshrl.u32 %v1289_v21, 16  ;;  %v1786_v41 = vld [vmem:[%s2218_s4 + $0xe8] sm:$0xff]   ;;  %v1787_v47 = vld [vmem:[%s2218_s4 + $0xa0] sm:$0xff]  }
   0xb   :  { %1585 = vmatpush3.bf16.msra.mxu0 %v1764_v4  ;;  %v86_v35 = vor.u32 %v84_v30, %v82_v25  ;;  %v1976_v42 = vld [vmem:[%s2220_s3 + $0x8] ss:$0 sps:$4 sm:$0x33]   ;;  %v428_v43 = vld [vmem:[%s2221_s1] sm:$0xe]  ;;  %v1789_v61 = vld [vmem:[%s2218_s4 + $0x98] sm:$0xff]  }
   0xc   :  { %1605 = vmatpush3.bf16.msra.mxu1 %v1765_v5  ;;  %1586 = vmatprep.subr.bf16.mxu0 %v1766_v6  ;;  %v78_v26 = vor.u32 %v77_v24, %v73_v18  ;;  %v317_v39 = vrot.slane %v315_v34, 1  ;;  %v320_v45 = vshll.u32 %v1976_v42, 16  ;;  %v1985_v46 = vld [vmem:[%s2221_s1 + $0x4] sm:$0xf]  ;;  %v1790_v62 = vld [vmem:[%s2218_s4 + $0xd8] sm:$0xff]   ;;  %v1791_v2 = vld [vmem:[%s2218_s4 + $0x90] sm:$0xff]  }
   0xd   :  { %1606 = vmatprep.subr.bf16.mxu1 %v1767_v7  ;;  %v1340_v48 = vcombine.low %v428_v43, %v1985_v46  ;;  %v1994_v49 = vld [vmem:[%s2221_s1 + $0x8] ss:$0 sps:$4 sm:$0x77]   ;;  %v1788_v50 = vld [vmem:[%s2218_s4 + $0xe0] sm:$0xff]   ;;  %v1792_v3 = vld [vmem:[%s2218_s4 + $0xd0] sm:$0xff]  }
   0xe   :  { %v83_v29 = vsel %vm71_vm0, %v78_v26, %v82_v25  ;;  %v318_v44 = vor.u32 %v317_v39, %v313_v38  ;;  %v322_v51 = vrot.slane %v320_v45, 1  ;;  %v466_v54 = vshrl.u32 %v1994_v49, 16  ;;  %v1793_v4 = vld [vmem:[%s2218_s4 + $0x88] sm:$0xff]   ;;  %v708_v11 = vld [vmem:[%s2221_s1] sm:$0xc]  ;;  %v1801_v15 = vld [vmem:[%s2218_s4 + $0x178] sm:$0xff]  }
   0xf   :  { %1587 = vmatpush3.bf16.msra.mxu0 %v1766_v6  ;;  %1596 = vmatprep.mubr.bf16.mxu0 %v83_v29  ;;  %v458_v52 = vshrl.u32 %v1340_v48, 16  ;;  %v461_v53 = vshll.u32 %v1340_v48, 16  ;;  %v469_v55 = vshll.u32 %v1994_v49, 16  ;;  %v1794_v5 = vld [vmem:[%s2218_s4 + $0xc8] sm:$0xff]   ;;  %v1795_v6 = vld [vmem:[%s2218_s4 + $0x80] sm:$0xff]   ;;  %v1392_v14 = vcombine.low %v708_v11, %v1985_v46  ;;  %v1836_v11 = vld [vmem:[%s2218_s4 + $0x238] sm:$0xff]  }
  0x10   :  { %1607 = vmatpush3.bf16.msra.mxu1 %v1767_v7  ;;  %1588 = vmatprep.subr.bf16.mxu0 %v1768_v8  ;;  %v323_v56 = vsel %vm71_vm0, %v318_v44, %v322_v51  ;;  %v468_v59 = vrot.slane %v466_v54, 1  ;;  %v1796_v7 = vld [vmem:[%s2218_s4 + $0xc0] sm:$0xff]   ;;  %v730_v21 = vrot.slane %v1994_v49, 2  ;;  %v1804_v26 = vld [vmem:[%s2218_s4 + $0x128] sm:$0xff]  }
  0x11   :  { %1608 = vmatprep.subr.bf16.mxu1 %v1769_v9  ;;  %v460_v57 = vrot.slane %v458_v52, 1  ;;  %v463_v58 = vrot.slane %v461_v53, 2  ;;  %v471_v60 = vrot.slane %v469_v55, 2  ;;  %v729_v20 = vrot.slane %v1392_v14, 2  ;;  %v1807_v29 = vld [vmem:[%s2218_s4 + $0x160] sm:$0xff]   ;;  %v1813_v43 = vld [vmem:[%s2218_s4 + $0x148] sm:$0xff]  }
  0x12   :  { %v976_v30 = vld [vmem:[%s2219_s2] sm:$0xc]  ;;  %v2085_v34 = vld [vmem:[%s2219_s2 + $0x8] ss:$0 sps:$4 sm:$0x77]   ;;  %v1818_v55 = vld [vmem:[%s2218_s4 + $0x1b8] sm:$0xff]  }
  0x13   :  { %1589 = vmatpush3.bf16.msra.mxu0 %v1768_v8  ;;  %v464_v63 = vor.u32 %v463_v58, %v460_v57  ;;  %v472_v0 = vor.u32 %v471_v60, %v468_v59  ;;  %v324_v8 = vshrl.u32 %v1976_v42, 16  ;;  %v731_v25 = vsel %vm603_vm2, %v729_v20, %v730_v21  ;;  %v2097_v38 = vld [vmem:[%s2220_s3 + $0x8] ss:$0 sps:$4 sm:$0x77]   ;;  %v1814_v48 = vld [vmem:[%s2218_s4 + $0x100] sm:$0xff]   ;;  %v1821_v59 = vld [vmem:[%s2218_s4 + $0x1b0] sm:$0xff]  }
  0x14   :  { %1609 = vmatpush3.bf16.msra.mxu1 %v1769_v9  ;;  %1590 = vmatprep.subr.bf16.mxu0 %v1770_v10  ;;  %v2031_v9 = vld [vmem:[%s2222_s0 + $0x8] ss:$0 sps:$4 sm:$0x77]   ;;  %v867_v46 = vshrl.u32 %v2097_v38, 16  ;;  %v1822_v60 = vld [vmem:[%s2218_s4 + $0x1f0] sm:$0xff]   ;;  %v1825_v49 = vld [vmem:[%s2218_s4 + $0x1a0] sm:$0xff]  }
  0x15   :  { %1610 = vmatprep.subr.bf16.mxu1 %v1771_v13  ;;  %v473_v1 = vsel %vm456_vm1, %v464_v63, %v472_v0  ;;  %v326_v16 = vor.u32 %v324_v8, %v322_v51  ;;  %v605_v19 = vrot.slane %v2031_v9, 2  ;;  %v1812_v42 = vld [vmem:[%s2218_s4 + $0x108] sm:$0xff]   ;;  %v1833_v8 = vld [vmem:[%s2218_s4 + $0x180] sm:$0xff]   ;;  %v1127_v14 = vrot.slane %v2097_v38, 2  ;;  %v1843_v20 = vld [vmem:[%s2218_s4 + $0x210] sm:$0xff]  }
  0x16   :  { %v869_v53 = vrot.slane %v867_v46, 1  ;;  %v1824_v63 = vld [vmem:[%s2218_s4 + $0x1e8] sm:$0xff]   ;;  %v1834_v9 = vld [vmem:[%s2218_s4 + $0x1c0] sm:$0xff]  }
  0x17   :  { %1591 = vmatpush3.bf16.msra.mxu0 %v1770_v10  ;;  %v1816_v10 = vld [vmem:[%s2222_s0] sm:$0xfc]  }
  0x18   :  { %1611 = vmatpush3.bf16.msra.mxu1 %v1771_v13  ;;  %1592 = vmatprep.subr.bf16.mxu0 %v1772_v22  ;;  %v1798_v13 = vld [vmem:[%s2218_s4 + $0x138] sm:$0xff]   ;;  %v604_v18 = vrot.slane %v1816_v10, 2 }
  0x19   :  { %1612 = vmatprep.subr.bf16.mxu1 %v1773_v23 }
  0x1a   :  { %v606_v24 = vsel %vm603_vm2, %v604_v18, %v605_v19  ;;  %v1841_v18 = vld [vmem:[%s2218_s4 + $0x220] sm:$0xff]  }
  0x1b   :  { %1593 = vmatpush3.bf16.msra.mxu0 %v1772_v22  ;;  %v1802_v22 = vld [vmem:[%s2218_s4 + $0x130] sm:$0xff]  }
  0x1c   :  { %1613 = vmatpush3.bf16.msra.mxu1 %v1773_v23  ;;  %1594 = vmatprep.subr.bf16.mxu0 %v1774_v27  ;;  %v1803_v23 = vld [vmem:[%s2218_s4 + $0x170] sm:$0xff]  }
  0x1d   :  { %1614 = vmatprep.subr.bf16.mxu1 %v1775_v28 }
  0x1f   :  { %1595 = vmatpush3.bf16.msra.mxu0 %v1774_v27  ;;  %v1805_v27 = vld [vmem:[%s2218_s4 + $0x168] sm:$0xff]  }
  0x20   :  { %1615 = vmatpush3.bf16.msra.mxu1 %v1775_v28  ;;  %1620 = vmatprep.subr.bf16.mxu0 %v1781_v31  ;;  %v1806_v28 = vld [vmem:[%s2218_s4 + $0x120] sm:$0xff]  }
  0x21   :  { %1640 = vmatprep.subr.bf16.mxu1 %v1782_v33 }
  0x22   :  { %1597 = vmatmul.mubr.bf16.vlgmr.msra.gmra.mxu0 %v86_v35 }
  0x23   :  { %1617 = vmatmul.mubr.bf16.vlgmr.msra.gmra.mxu1 %v1780_v32  ;;  %1621 = vmatpush3.bf16.msra.mxu0 %v1781_v31  ;;  %v1808_v31 = vld [vmem:[%s2218_s4 + $0x118] sm:$0xff]  }
  0x24   :  { %1641 = vmatpush3.bf16.msra.mxu1 %v1782_v33  ;;  %1622 = vmatprep.subr.bf16.mxu0 %v1783_v36  ;;  %v1809_v32 = vld [vmem:[%s2218_s4 + $0x158] sm:$0xff]   ;;  %v1443_v33 = vcombine.low %v976_v30, %v1921_v12  ;;  %v1810_v12 = vld [vmem:[%s2218_s4 + $0x110] sm:$0xff]  }
  0x25   :  { %1642 = vmatprep.subr.bf16.mxu1 %v1784_v37  ;;  %1636 = vmatprep.mubr.bf16.mxu0 %v323_v56  ;;  %v1820_v56 = vld [vmem:[%s2218_s4 + $0x1f8] sm:$0xff]  }
  0x26   :  { %1656 = vmatprep.mubr.bf16.mxu1 %v473_v1  ;;  %v1001_v35 = vrot.slane %v1443_v33, 2  ;;  %v1827_v1 = vld [vmem:[%s2218_s4 + $0x198] sm:$0xff]  }
  0x27   :  { %1623 = vmatpush3.bf16.msra.mxu0 %v1783_v36  ;;  %v1002_v36 = vrot.slane %v2085_v34, 2 }
  0x28   :  { %1643 = vmatpush3.bf16.msra.mxu1 %v1784_v37  ;;  %1624 = vmatprep.subr.bf16.mxu0 %v1785_v40  ;;  %v833_v37 = vld [vmem:[%s2220_s3] sm:$0xe] }
  0x29   :  { %1644 = vmatprep.subr.bf16.mxu1 %v1786_v41  ;;  %v1003_v39 = vsel %vm603_vm2, %v1001_v35, %v1002_v36 }
  0x2b   :  { %1625 = vmatpush3.bf16.msra.mxu0 %v1785_v40  ;;  %v1811_v40 = vld [vmem:[%s2218_s4 + $0x150] sm:$0xff]  }
  0x2c   :  { %1645 = vmatpush3.bf16.msra.mxu1 %v1786_v41  ;;  %1626 = vmatprep.subr.bf16.mxu0 %v1787_v47  ;;  %v1417_v41 = vcombine.low %v833_v37, %v1936_v17 }
  0x2d   :  { %1646 = vmatprep.subr.bf16.mxu1 %v1788_v50 }
  0x2e   :  { %v859_v44 = vshrl.u32 %v1417_v41, 16  ;;  %v862_v45 = vshll.u32 %v1417_v41, 16 }
  0x2f   :  { %1627 = vmatpush3.bf16.msra.mxu0 %v1787_v47  ;;  %v870_v47 = vshll.u32 %v2097_v38, 16 }
  0x30   :  { %1647 = vmatpush3.bf16.msra.mxu1 %v1788_v50  ;;  %1628 = vmatprep.subr.bf16.mxu0 %v1789_v61  ;;  %v1815_v50 = vld [vmem:[%s2218_s4 + $0x140] sm:$0xff]   ;;  %v861_v51 = vrot.slane %v859_v44, 1  ;;  %v864_v52 = vrot.slane %v862_v45, 2 }
  0x31   :  { %1648 = vmatprep.subr.bf16.mxu1 %v1790_v62  ;;  %v872_v54 = vrot.slane %v870_v47, 2 }
  0x32   :  { %v865_v57 = vor.u32 %v864_v52, %v861_v51 }
  0x33   :  { %1629 = vmatpush3.bf16.msra.mxu0 %v1789_v61  ;;  %v2126_v58 = vor.u32 %v872_v54, %v869_v53 }
  0x34   :  { %1649 = vmatpush3.bf16.msra.mxu1 %v1790_v62  ;;  %1630 = vmatprep.subr.bf16.mxu0 %v1791_v2  ;;  %v1823_v62 = vld [vmem:[%s2218_s4 + $0x1a8] sm:$0xff]  }
  0x35   :  { %1650 = vmatprep.subr.bf16.mxu1 %v1792_v3  ;;  %v874_v61 = vsel %vm456_vm1, %v865_v57, %v2126_v58 }
  0x37   :  { %1631 = vmatpush3.bf16.msra.mxu0 %v1791_v2  ;;  %v1828_v2 = vld [vmem:[%s2218_s4 + $0x1d8] sm:$0xff]  }
  0x38   :  { %1651 = vmatpush3.bf16.msra.mxu1 %v1792_v3  ;;  %1632 = vmatprep.subr.bf16.mxu0 %v1793_v4  ;;  %v1829_v3 = vld [vmem:[%s2218_s4 + $0x190] sm:$0xff]  }
  0x39   :  { %1652 = vmatprep.subr.bf16.mxu1 %v1794_v5 }
  0x3b   :  { %1633 = vmatpush3.bf16.msra.mxu0 %v1793_v4  ;;  %v1830_v4 = vld [vmem:[%s2218_s4 + $0x1d0] sm:$0xff]  }
  0x3c   :  { %1653 = vmatpush3.bf16.msra.mxu1 %v1794_v5  ;;  %1634 = vmatprep.subr.bf16.mxu0 %v1795_v6  ;;  %v1831_v5 = vld [vmem:[%s2218_s4 + $0x188] sm:$0xff]  }
  0x3d   :  { %1654 = vmatprep.subr.bf16.mxu1 %v1796_v7 }
  0x3f   :  { %1635 = vmatpush3.bf16.msra.mxu0 %v1795_v6  ;;  %v1832_v6 = vld [vmem:[%s2218_s4 + $0x1c8] sm:$0xff]  }
  0x40   :  { %1655 = vmatpush3.bf16.msra.mxu1 %v1796_v7  ;;  %1660 = vmatprep.subr.bf16.mxu0 %v1798_v13  ;;  %v1105_v7 = vld [vmem:[%s2220_s3] sm:$0xc] }
  0x41   :  { %1680 = vmatprep.subr.bf16.mxu1 %v1801_v15  ;;  %v1469_v10 = vcombine.low %v1105_v7, %v1936_v17 }
  0x42   :  { %1637 = vmatmul.mubr.bf16.vlgmr.msra.gmra.mxu0 %v326_v16  ;;  %v1840_v16 = vld [vmem:[%s2218_s4 + $0x228] sm:$0xff]  }
  0x43   :  { %1661 = vmatpush3.bf16.msra.mxu0 %v1798_v13  ;;  %1657 = vmatmul.mubr.bf16.vlgmr.msra.gmra.mxu1 %v472_v0  ;;  %v1826_v0 = vld [vmem:[%s2218_s4 + $0x1e0] sm:$0xff]   ;;  %v1126_v13 = vrot.slane %v1469_v10, 2 }
  0x44   :  { %1681 = vmatpush3.bf16.msra.mxu1 %v1801_v15  ;;  %1662 = vmatprep.subr.bf16.mxu0 %v1802_v22  ;;  %v1839_v15 = vld [vmem:[%s2218_s4 + $0x230] sm:$0xff]  }
  0x45   :  { %1682 = vmatprep.subr.bf16.mxu1 %v1803_v23  ;;  %1676 = vmatprep.mubr.bf16.mxu0 %v606_v24  ;;  %v1128_v17 = vsel %vm603_vm2, %v1126_v13, %v1127_v14 }
  0x46   :  { %1696 = vmatprep.mubr.bf16.mxu1 %v731_v25 }
  0x47   :  { %1663 = vmatpush3.bf16.msra.mxu0 %v1802_v22  ;;  %v1845_v22 = vld [vmem:[%s2218_s4 + $0x200] sm:$0xff]  }
  0x48   :  { %1683 = vmatpush3.bf16.msra.mxu1 %v1803_v23  ;;  %1664 = vmatprep.subr.bf16.mxu0 %v1804_v26 }
  0x49   :  { %1684 = vmatprep.subr.bf16.mxu1 %v1805_v27 }
  0x4b   :  { %1665 = vmatpush3.bf16.msra.mxu0 %v1804_v26 }
  0x4c   :  { %1685 = vmatpush3.bf16.msra.mxu1 %v1805_v27  ;;  %1666 = vmatprep.subr.bf16.mxu0 %v1806_v28 }
  0x4d   :  { %1686 = vmatprep.subr.bf16.mxu1 %v1807_v29 }
  0x4f   :  { %1667 = vmatpush3.bf16.msra.mxu0 %v1806_v28 }
  0x50   :  { %1687 = vmatpush3.bf16.msra.mxu1 %v1807_v29  ;;  %1668 = vmatprep.subr.bf16.mxu0 %v1808_v31 }
  0x51   :  { %1688 = vmatprep.subr.bf16.mxu1 %v1809_v32 }
  0x53   :  { %1669 = vmatpush3.bf16.msra.mxu0 %v1808_v31 }
  0x54   :  { %1689 = vmatpush3.bf16.msra.mxu1 %v1809_v32  ;;  %1670 = vmatprep.subr.bf16.mxu0 %v1810_v12 }
  0x55   :  { %1690 = vmatprep.subr.bf16.mxu1 %v1811_v40 }
  0x57   :  { %1671 = vmatpush3.bf16.msra.mxu0 %v1810_v12 }
  0x58   :  { %1691 = vmatpush3.bf16.msra.mxu1 %v1811_v40  ;;  %1672 = vmatprep.subr.bf16.mxu0 %v1812_v42 }
  0x59   :  { %1692 = vmatprep.subr.bf16.mxu1 %v1813_v43 }
  0x5b   :  { %1673 = vmatpush3.bf16.msra.mxu0 %v1812_v42 }
  0x5c   :  { %1693 = vmatpush3.bf16.msra.mxu1 %v1813_v43  ;;  %1674 = vmatprep.subr.bf16.mxu0 %v1814_v48 }
  0x5d   :  { %1694 = vmatprep.subr.bf16.mxu1 %v1815_v50 }
  0x5f   :  { %1675 = vmatpush3.bf16.msra.mxu0 %v1814_v48 }
  0x60   :  { %1695 = vmatpush3.bf16.msra.mxu1 %v1815_v50  ;;  %1700 = vmatprep.subr.bf16.mxu0 %v1818_v55 }
  0x61   :  { %1720 = vmatprep.subr.bf16.mxu1 %v1820_v56 }
  0x62   :  { %1677 = vmatmul.mubr.bf16.vlgmr.msra.gmra.mxu0 %v605_v19  ;;  %v1842_v19 = vld [vmem:[%s2218_s4 + $0x218] sm:$0xff]  }
  0x63   :  { %1701 = vmatpush3.bf16.msra.mxu0 %v1818_v55  ;;  %1697 = vmatmul.mubr.bf16.vlgmr.msra.gmra.mxu1 %v730_v21  ;;  %v1844_v21 = vld [vmem:[%s2218_s4 + $0x208] sm:$0xff]  }
  0x64   :  { %1721 = vmatpush3.bf16.msra.mxu1 %v1820_v56  ;;  %1702 = vmatprep.subr.bf16.mxu0 %v1821_v59 }
  0x65   :  { %1722 = vmatprep.subr.bf16.mxu1 %v1822_v60  ;;  %1716 = vmatprep.mubr.bf16.mxu0 %v874_v61 }
  0x66   :  { %1736 = vmatprep.mubr.bf16.mxu1 %v1003_v39 }
  0x67   :  { %1703 = vmatpush3.bf16.msra.mxu0 %v1821_v59 }
  0x68   :  { %1723 = vmatpush3.bf16.msra.mxu1 %v1822_v60  ;;  %1704 = vmatprep.subr.bf16.mxu0 %v1823_v62 }
  0x69   :  { %1724 = vmatprep.subr.bf16.mxu1 %v1824_v63 }
  0x6b   :  { %1705 = vmatpush3.bf16.msra.mxu0 %v1823_v62 }
  0x6c   :  { %1725 = vmatpush3.bf16.msra.mxu1 %v1824_v63  ;;  %1706 = vmatprep.subr.bf16.mxu0 %v1825_v49 }
  0x6d   :  { %1726 = vmatprep.subr.bf16.mxu1 %v1826_v0 }
  0x6f   :  { %1707 = vmatpush3.bf16.msra.mxu0 %v1825_v49 }
  0x70   :  { %1727 = vmatpush3.bf16.msra.mxu1 %v1826_v0  ;;  %1708 = vmatprep.subr.bf16.mxu0 %v1827_v1 }
  0x71   :  { %1728 = vmatprep.subr.bf16.mxu1 %v1828_v2 }
  0x73   :  { %1709 = vmatpush3.bf16.msra.mxu0 %v1827_v1 }
  0x74   :  { %1729 = vmatpush3.bf16.msra.mxu1 %v1828_v2  ;;  %1710 = vmatprep.subr.bf16.mxu0 %v1829_v3 }
  0x75   :  { %1730 = vmatprep.subr.bf16.mxu1 %v1830_v4 }
  0x77   :  { %1711 = vmatpush3.bf16.msra.mxu0 %v1829_v3 }
  0x78   :  { %1731 = vmatpush3.bf16.msra.mxu1 %v1830_v4  ;;  %1712 = vmatprep.subr.bf16.mxu0 %v1831_v5 }
  0x79   :  { %1732 = vmatprep.subr.bf16.mxu1 %v1832_v6 }
  0x7b   :  { %1713 = vmatpush3.bf16.msra.mxu0 %v1831_v5 }
  0x7c   :  { %1733 = vmatpush3.bf16.msra.mxu1 %v1832_v6  ;;  %1714 = vmatprep.subr.bf16.mxu0 %v1833_v8 }
  0x7d   :  { %1734 = vmatprep.subr.bf16.mxu1 %v1834_v9 }
  0x7f   :  { %1715 = vmatpush3.bf16.msra.mxu0 %v1833_v8  ;;  %v1478_v8 = vld [vmem:[%s2223_s5] ss:$0 sm:$0xff] }
  0x80   :  { %1735 = vmatpush3.bf16.msra.mxu1 %v1834_v9  ;;  %1740 = vmatprep.subr.bf16.mxu0 %v1836_v11 }
  0x82   :  { %1717 = vmatmul.mubr.bf16.vlgmr.msra.gmra.mxu0 %v2126_v58 }
  0x83   :  { %1741 = vmatpush3.bf16.msra.mxu0 %v1836_v11  ;;  %1737 = vmatmul.mubr.bf16.vlgmr.msra.gmra.mxu1 %v1002_v36 }
  0x84   :  { %1742 = vmatprep.subr.bf16.mxu0 %v1839_v15  ;;  %1756 = vmatprep.mubr.bf16.mxu0 %v1128_v17 }
  0x87   :  { %1743 = vmatpush3.bf16.msra.mxu0 %v1839_v15 }
  0x88   :  { %1744 = vmatprep.subr.bf16.mxu0 %v1840_v16 }
  0x8b   :  { %1745 = vmatpush3.bf16.msra.mxu0 %v1840_v16 }
  0x8c   :  { %1746 = vmatprep.subr.bf16.mxu0 %v1841_v18 }
  0x8f   :  { %1747 = vmatpush3.bf16.msra.mxu0 %v1841_v18 }
  0x90   :  { %1748 = vmatprep.subr.bf16.mxu0 %v1842_v19 }
  0x93   :  { %1749 = vmatpush3.bf16.msra.mxu0 %v1842_v19 }
  0x94   :  { %1750 = vmatprep.subr.bf16.mxu0 %v1843_v20 }
  0x97   :  { %1751 = vmatpush3.bf16.msra.mxu0 %v1843_v20 }
  0x98   :  { %1752 = vmatprep.subr.bf16.mxu0 %v1844_v21 }
  0x9b   :  { %1753 = vmatpush3.bf16.msra.mxu0 %v1844_v21 }
  0x9c   :  { %1754 = vmatprep.subr.bf16.mxu0 %v1845_v22 }
  0x9f   :  { %1755 = vmatpush3.bf16.msra.mxu0 %v1845_v22 }
  0xa2   :  { %1757 = vmatmul.mubr.bf16.vlgmr.msra.gmra.mxu0 %v1127_v14 }
  0xe2   :  { %v1598_v23 = vpop.f32.mrf.mxu0 }
  0xe3   :  { %v1618_v24 = vpop.f32.mrf.mxu1 }
  0xe4   :  { %v286_v25 = vadd.f32 %v1618_v24, %v1598_v23  ;;  %v171_v26 = vpop.f32.mrf.mxu0 }
  0xe5   :  { %v277_v27 = vpop.f32.mrf.mxu1 }
  0xe6   :  { %v278_v28 = vadd.f32 %v277_v27, %v171_v26  ;;  %v1599_v29 = vpop.f32.mrf.mxu0 }
  0xe7   :  { %v1619_v30 = vpop.f32.mrf.mxu1 }
  0xe8   :  { %v174_v31 = vpop.f32.mrf.mxu0 }
  0xe9   :  { %v280_v32 = vpop.f32.mrf.mxu1 }
  0xea   :  { %v281_v33 = vadd.f32 %v280_v32, %v174_v31 }
 0x102   :  { %v1638_v34 = vpop.f32.mrf.mxu0 }
 0x103   :  { %v427_v35 = vadd.f32 %v1638_v34, %v286_v25  ;;  %v1658_v36 = vpop.f32.mrf.mxu1 }
 0x104   :  { %v411_v37 = vpop.f32.mrf.mxu0 }
 0x105   :  { %v425_v12 = vadd.f32 %v411_v37, %v278_v28  ;;  %v574_v38 = vadd.f32 %v1658_v36, %v427_v35  ;;  %v558_v39 = vpop.f32.mrf.mxu1 }
 0x106   :  { %v1639_v40 = vpop.f32.mrf.mxu0 }
 0x107   :  { %v572_v41 = vadd.f32 %v558_v39, %v425_v12  ;;  %v1659_v42 = vpop.f32.mrf.mxu1 }
 0x108   :  { %v414_v43 = vpop.f32.mrf.mxu0 }
 0x109   :  { %v561_v44 = vpop.f32.mrf.mxu1  ;;  %v426_v60 = vadd.f32 %v414_v43, %v281_v33 }
 0x10b   :  { %v573_v63 = vadd.f32 %v561_v44, %v426_v60 }
 0x122   :  { %v1678_v45 = vpop.f32.mrf.mxu0 }
 0x123   :  { %v1698_v46 = vpop.f32.mrf.mxu1  ;;  %v707_v61 = vadd.f32 %v1678_v45, %v574_v38 }
 0x124   :  { %v691_v47 = vpop.f32.mrf.mxu0 }
 0x125   :  { %v816_v48 = vpop.f32.mrf.mxu1  ;;  %v705_v62 = vadd.f32 %v691_v47, %v572_v41  ;;  %v832_v49 = vadd.f32 %v1698_v46, %v707_v61 }
 0x126   :  { %v1679_v50 = vpop.f32.mrf.mxu0 }
 0x127   :  { %v1699_v51 = vpop.f32.mrf.mxu1  ;;  %v830_v0 = vadd.f32 %v816_v48, %v705_v62 }
 0x128   :  { %v694_v52 = vpop.f32.mrf.mxu0 }
 0x129   :  { %v819_v53 = vpop.f32.mrf.mxu1  ;;  %v706_v1 = vadd.f32 %v694_v52, %v573_v63 }
 0x12b   :  { %v831_v5 = vadd.f32 %v819_v53, %v706_v1 }
 0x142   :  { %v1718_v54 = vpop.f32.mrf.mxu0 }
 0x143   :  { %v1738_v55 = vpop.f32.mrf.mxu1  ;;  %v975_v2 = vadd.f32 %v1718_v54, %v832_v49 }
 0x144   :  { %v959_v56 = vpop.f32.mrf.mxu0 }
 0x145   :  { %v1088_v57 = vpop.f32.mrf.mxu1  ;;  %v973_v3 = vadd.f32 %v959_v56, %v830_v0  ;;  %v1104_v6 = vadd.f32 %v1738_v55, %v975_v2 }
 0x146   :  { %v1719_v58 = vpop.f32.mrf.mxu0 }
 0x147   :  { %v1739_v59 = vpop.f32.mrf.mxu1  ;;  %v1102_v9 = vadd.f32 %v1088_v57, %v973_v3 }
 0x148   :  { %v962_v4 = vpop.f32.mrf.mxu0 }
 0x149   :  { %v974_v10 = vadd.f32 %v962_v4, %v831_v5  ;;  %v1091_v13 = vpop.f32.mrf.mxu1 }
 0x14b   :  { %v1103_v18 = vadd.f32 %v1091_v13, %v974_v10 }
 0x162   :  { %v1758_v7 = vpop.f32.mrf.mxu0 }
 0x163   :  { %v1229_v11 = vadd.f32 %v1758_v7, %v1104_v6 }
 0x164   :  { %v1213_v14 = vpop.f32.mrf.mxu0 }
 0x165   :  { %v1239_v15 = vadd.f32 %v1478_v8, %v1229_v11  ;;  %v1227_v17 = vadd.f32 %v1213_v14, %v1102_v9 }
 0x166   :  { %v1759_v16 = vpop.f32.mrf.mxu0 }
 0x167   :  { %v1242_v19 = vmax.f32 %v1239_v15, 0.0  ;;  %v1237_v22 = vadd.f32 %v1478_v8, %v1227_v17 }
 0x168   :  { %v1216_v20 = vpop.f32.mrf.mxu0 }
 0x169   :  { %v1484_v21 = vpack.c.bf16 %v1242_v19, %v1242_v19  ;;  %v1228_v23 = vadd.f32 %v1216_v20, %v1103_v18  ;;  %v1240_v25 = vmax.f32 %v1237_v22, 0.0 }
 0x16b   :  { %1258 = vst [vmem:[%s2224_s6 + $0x8] sm:$0x1] %v1484_v21  ;;  %v1238_v24 = vadd.f32 %v1478_v8, %v1228_v23 }
 0x16d   :  { %v1241_v26 = vmax.f32 %v1238_v24, 0.0 }
 0x16f   :  { %v1488_v27 = vpack.c.bf16 %v1241_v26, %v1240_v25 }
 0x171   :  { %1489 = vst [vmem:[%s2224_s6] sm:$0xff] %v1488_v27  }

// kernel: _lambda_.7
= control target key start
LH: loop header
LB: loop body
LE: loop exit
PB: predicated region body
PF: predicated region fallthrough
CT: control target
= control target key end

     0   :  { %vm89_vm0 = vsmask.f32 7424  ;;  %vm588_vm1 = vsmask.f32 5376  ;;  %vm789_vm2 = vcmask 1044480   ;;  %s2788_s4 = inlined_call_operand.vmem [shape: bf16[9,128,128], index: 4, kind: input, shape index: {}]   ;;  %s2789_s2 = inlined_call_operand.vmem [shape: bf16[56,128], index: 2, kind: input, shape index: {}]   ;;  %s2790_s3 = inlined_call_operand.vmem [shape: bf16[56,128], index: 3, kind: input, shape index: {}]   ;;  %s2791_s1 = inlined_call_operand.vmem [shape: bf16[56,128], index: 1, kind: input, shape index: {}]   ;;  %s2792_s0 = inlined_call_operand.vmem [shape: bf16[56,128], index: 0, kind: input, shape index: {}]   ;;  %s2793_s5 = inlined_call_operand.vmem [shape: f32[1,128], index: 5, kind: input, shape index: {}]   ;;  %s2794_s6 = inlined_call_operand.vmem [shape: bf16[50,128], index: 6, kind: output, shape index: {}]  }
   0x1   :  { %v2206_v0 = vld [vmem:[%s2788_s4 + $0x78] sm:$0xff]   ;;  %v2208_v2 = vld [vmem:[%s2788_s4 + $0x70] sm:$0xff]   ;;  %v2210_v4 = vld [vmem:[%s2788_s4 + $0x68] sm:$0xff]  }
   0x2   :  { %v2207_v1 = vld [vmem:[%s2788_s4 + $0x38] sm:$0xff]   ;;  %1974 = vmatprep.subr.bf16.mxu0 %v2206_v0  ;;  %v2209_v3 = vld [vmem:[%s2788_s4 + $0x30] sm:$0xff]   ;;  %v2211_v5 = vld [vmem:[%s2788_s4 + $0x28] sm:$0xff]  }
   0x3   :  { %1998 = vmatprep.subr.bf16.mxu1 %v2207_v1  ;;  %1975 = vmatpush3.bf16.msra.mxu0 %v2206_v0  ;;  %v2212_v6 = vld [vmem:[%s2788_s4 + $0x60] sm:$0xff]   ;;  %v2214_v8 = vld [vmem:[%s2788_s4 + $0x58] sm:$0xff]   ;;  %v2216_v10 = vld [vmem:[%s2788_s4 + $0x50] sm:$0xff]  }
   0x4   :  { %1999 = vmatpush3.bf16.msra.mxu1 %v2207_v1  ;;  %1976 = vmatprep.subr.bf16.mxu0 %v2208_v2  ;;  %v2213_v7 = vld [vmem:[%s2788_s4 + $0x20] sm:$0xff]   ;;  %v2215_v9 = vld [vmem:[%s2788_s4 + $0x18] sm:$0xff]   ;;  %v2217_v11 = vld [vmem:[%s2788_s4 + $0x10] sm:$0xff]  }
   0x5   :  { %2000 = vmatprep.subr.bf16.mxu1 %v2209_v3  ;;  %v47_v12 = vld [vmem:[%s2789_s2] sm:$0xf]  ;;  %v2378_v13 = vld [vmem:[%s2789_s2 + $0x4] sm:$0xf]  ;;  %v2384_v15 = vld [vmem:[%s2789_s2 + $0x8] sm:$0xff]  }
   0x6   :  { %v1627_v14 = vcombine.low %v47_v12, %v2378_v13  ;;  %v24_v16 = vld [vmem:[%s2790_s3] sm:$0xf]  ;;  %v2392_v17 = vld [vmem:[%s2790_s3 + $0x4] sm:$0xf]  ;;  %v98_v20 = vshll.u32 %v2384_v15, 16  ;;  %v2401_v22 = vld [vmem:[%s2789_s2 + $0x10] sm:$0xff]  }
   0x7   :  { %1977 = vmatpush3.bf16.msra.mxu0 %v2208_v2  ;;  %v2396_v21 = vcombine.low %v24_v16, %v2392_v17  ;;  %v2218_v23 = vld [vmem:[%s2788_s4 + $0x48] sm:$0xff]   ;;  %v102_v28 = vshrl.u32 %v2384_v15, 16  ;;  %v106_v29 = vshll.u32 %v2401_v22, 16  ;;  %v2220_v30 = vld [vmem:[%s2788_s4 + $0x40] sm:$0xff]   ;;  %v2228_v35 = vld [vmem:[%s2788_s4 + $0xb8] sm:$0xff]   ;;  %v110_v38 = vshrl.u32 %v2401_v22, 16 }
   0x8   :  { %2001 = vmatpush3.bf16.msra.mxu1 %v2209_v3  ;;  %1978 = vmatprep.subr.bf16.mxu0 %v2210_v4  ;;  %v91_v18 = vshrl.u32 %v1627_v14, 16  ;;  %v93_v19 = vshll.u32 %v1627_v14, 16  ;;  %v2219_v24 = vld [vmem:[%s2788_s4 + $0x8] sm:$0xff]   ;;  %v100_v26 = vrot.slane %v98_v20, 1  ;;  %v2221_v31 = vld [vmem:[%s2788_s4] sm:$0xff]   ;;  %v2229_v37 = vld [vmem:[%s2788_s4 + $0xf8] sm:$0xff]  }
   0x9   :  { %2002 = vmatprep.subr.bf16.mxu1 %v2211_v5  ;;  %2014 = vmatprep.mubr.bf16.mxu1 %v2396_v21  ;;  %v108_v34 = vrot.slane %v106_v29, 1  ;;  %v2425_v36 = vld [vmem:[%s2790_s3 + $0x8] sm:$0xff]   ;;  %v395_v39 = vshll.u32 %v2396_v21, 16  ;;  %v2230_v40 = vld [vmem:[%s2788_s4 + $0xb0] sm:$0xff]   ;;  %v393_v43 = vshrl.u32 %v2396_v21, 16  ;;  %v2234_v59 = vld [vmem:[%s2788_s4 + $0xa0] sm:$0xff]  }
   0xa   :  { %v95_v25 = vrot.slane %v93_v19, 1  ;;  %v104_v33 = vor.u32 %v102_v28, %v100_v26  ;;  %v2231_v42 = vld [vmem:[%s2788_s4 + $0xf0] sm:$0xff]   ;;  %v2238_v44 = vld [vmem:[%s2789_s2 + $0x18] ss:$0 sps:$4 sm:$0x33]   ;;  %v400_v50 = vshll.u32 %v2425_v36, 16 }
   0xb   :  { %1979 = vmatpush3.bf16.msra.mxu0 %v2210_v4  ;;  %v2446_v45 = vld [vmem:[%s2790_s3 + $0x10] sm:$0xff]   ;;  %v112_v46 = vor.u32 %v110_v38, %v108_v34  ;;  %v114_v47 = vshll.u32 %v2238_v44, 16  ;;  %v118_v48 = vshrl.u32 %v2238_v44, 16  ;;  %v397_v49 = vrot.slane %v395_v39, 1  ;;  %v2232_v51 = vld [vmem:[%s2788_s4 + $0xa8] sm:$0xff]   ;;  %v2235_v60 = vld [vmem:[%s2788_s4 + $0xe0] sm:$0xff]  }
   0xc   :  { %2003 = vmatpush3.bf16.msra.mxu1 %v2211_v5  ;;  %1980 = vmatprep.subr.bf16.mxu0 %v2212_v6  ;;  %v96_v27 = vor.u32 %v95_v25, %v91_v18  ;;  %v109_v41 = vsel %vm89_vm0, %v104_v33, %v108_v34  ;;  %v2233_v53 = vld [vmem:[%s2788_s4 + $0xe8] sm:$0xff]   ;;  %v2240_v54 = vld [vmem:[%s2790_s3 + $0x18] ss:$0 sps:$4 sm:$0x11]   ;;  %v2463_v58 = vrot.slane %v400_v50, 1  ;;  %v2498_v16 = vld [vmem:[%s2791_s1 + $0x10] sm:$0xff]  }
   0xd   :  { %2004 = vmatprep.subr.bf16.mxu1 %v2213_v7  ;;  %v116_v52 = vrot.slane %v114_v47, 1  ;;  %v398_v57 = vor.u32 %v397_v49, %v393_v43  ;;  %v546_v61 = vld [vmem:[%s2791_s1] sm:$0xc]  ;;  %v2477_v62 = vld [vmem:[%s2791_s1 + $0x4] sm:$0xf]  ;;  %v2483_v0 = vld [vmem:[%s2791_s1 + $0x8] sm:$0xff]  }
   0xe   :  { %v101_v32 = vsel %vm89_vm0, %v96_v27, %v100_v26  ;;  %v1692_v63 = vcombine.low %v546_v61, %v2477_v62  ;;  %v598_v4 = vshrl.u32 %v2483_v0, 16  ;;  %v601_v5 = vshll.u32 %v2483_v0, 16  ;;  %v2241_v18 = vld [vmem:[%s2788_s4 + $0x90] sm:$0xff]   ;;  %v2243_v21 = vld [vmem:[%s2788_s4 + $0x88] sm:$0xff]   ;;  %v2521_v27 = vld [vmem:[%s2791_s1 + $0x18] ss:$0 sps:$4 sm:$0xff]  }
   0xf   :  { %1981 = vmatpush3.bf16.msra.mxu0 %v2212_v6  ;;  %1990 = vmatprep.mubr.bf16.mxu0 %v101_v32  ;;  %v117_v55 = vsel %vm89_vm0, %v112_v46, %v116_v52  ;;  %v120_v56 = vor.u32 %v118_v48, %v116_v52  ;;  %v403_v1 = vsel %vm89_vm0, %v398_v57, %v2463_v58  ;;  %v2236_v6 = vld [vmem:[%s2788_s4 + $0x98] sm:$0xff]   ;;  %v2242_v19 = vld [vmem:[%s2788_s4 + $0xd0] sm:$0xff]   ;;  %v610_v25 = vshll.u32 %v2498_v16, 16  ;;  %v2244_v28 = vld [vmem:[%s2788_s4 + $0xc8] sm:$0xff]  }
  0x10   :  { %2005 = vmatpush3.bf16.msra.mxu1 %v2213_v7  ;;  %1982 = vmatprep.subr.bf16.mxu0 %v2214_v8  ;;  %v590_v2 = vshrl.u32 %v1692_v63, 16  ;;  %v593_v3 = vshll.u32 %v1692_v63, 16  ;;  %v2237_v7 = vld [vmem:[%s2788_s4 + $0xd8] sm:$0xff]   ;;  %v404_v29 = vshrl.u32 %v2425_v36, 16  ;;  %v2245_v32 = vld [vmem:[%s2788_s4 + $0x80] sm:$0xff]   ;;  %v619_v33 = vshll.u32 %v2521_v27, 16 }
  0x11   :  { %2006 = vmatprep.subr.bf16.mxu1 %v2215_v9  ;;  %v2516_v26 = vld [vmem:[%s2790_s3 + $0x18] ss:$0 sps:$4 sm:$0x33]   ;;  %v2246_v34 = vld [vmem:[%s2788_s4 + $0xc0] sm:$0xff]   ;;  %v612_v38 = vrot.slane %v610_v25, 3  ;;  %v1270_v43 = vrot.slane %v2384_v15, 3 }
  0x12   :  { %v416_v39 = vshll.u32 %v2516_v26, 16  ;;  %v2250_v46 = vld [vmem:[%s2788_s4 + $0x138] sm:$0xff]   ;;  %v1272_v48 = vrot.slane %v2401_v22, 3  ;;  %v1421_v52 = vrot.slane %v2425_v36, 3  ;;  %v2268_v61 = vld [vmem:[%s2792_s0] sm:$0xf8]  }
  0x13   :  { %1983 = vmatpush3.bf16.msra.mxu0 %v2214_v8  ;;  %v592_v8 = vrot.slane %v590_v2, 2  ;;  %v2251_v47 = vld [vmem:[%s2788_s4 + $0x178] sm:$0xff]   ;;  %v2580_v2 = vld [vmem:[%s2792_s0 + $0x8] sm:$0xff]   ;;  %v2283_v15 = vld [vmem:[%s2788_s4 + $0x190] sm:$0xff]  }
  0x14   :  { %2007 = vmatpush3.bf16.msra.mxu1 %v2215_v9  ;;  %1984 = vmatprep.subr.bf16.mxu0 %v2216_v10  ;;  %v595_v9 = vrot.slane %v593_v3, 3  ;;  %v2264_v25 = vld [vmem:[%s2788_s4 + $0x108] sm:$0xff]   ;;  %v2296_v22 = vld [vmem:[%s2788_s4 + $0x218] sm:$0xff]  }
  0x15   :  { %2008 = vmatprep.subr.bf16.mxu1 %v2217_v11 }
  0x16   :  { %v596_v12 = vor.u32 %v595_v9, %v592_v8  ;;  %v790_v9 = vrot.slane %v2268_v61, 3 }
  0x17   :  { %1985 = vmatpush3.bf16.msra.mxu0 %v2216_v10  ;;  %v600_v10 = vrot.slane %v598_v4, 2  ;;  %v2255_v4 = vld [vmem:[%s2788_s4 + $0x128] sm:$0xff]  }
  0x18   :  { %2009 = vmatpush3.bf16.msra.mxu1 %v2217_v11  ;;  %1986 = vmatprep.subr.bf16.mxu0 %v2218_v23  ;;  %v603_v11 = vrot.slane %v601_v5, 3 }
  0x19   :  { %2010 = vmatprep.subr.bf16.mxu1 %v2219_v24 }
  0x1a   :  { %v604_v14 = vor.u32 %v603_v11, %v600_v10  ;;  %v791_v10 = vrot.slane %v2580_v2, 3  ;;  %v1105_v2 = vrot.slane %v400_v50, 3 }
  0x1b   :  { %1987 = vmatpush3.bf16.msra.mxu0 %v2218_v23  ;;  %v408_v23 = vshll.u32 %v2446_v45, 16 }
  0x1c   :  { %2011 = vmatpush3.bf16.msra.mxu1 %v2219_v24  ;;  %1988 = vmatprep.subr.bf16.mxu0 %v2220_v30  ;;  %v605_v20 = vsel %vm588_vm1, %v596_v12, %v604_v14  ;;  %v607_v24 = vshrl.u32 %v2498_v16, 16  ;;  %v942_v12 = vrot.slane %v2483_v0, 3  ;;  %v2260_v0 = vld [vmem:[%s2788_s4 + $0x118] sm:$0xff]  }
  0x1d   :  { %2012 = vmatprep.subr.bf16.mxu1 %v2221_v31 }
  0x1f   :  { %1989 = vmatpush3.bf16.msra.mxu0 %v2220_v30  ;;  %v412_v30 = vshrl.u32 %v2446_v45, 16 }
  0x20   :  { %2013 = vmatpush3.bf16.msra.mxu1 %v2221_v31  ;;  %2022 = vmatprep.subr.bf16.mxu0 %v2228_v35  ;;  %v616_v31 = vshrl.u32 %v2521_v27, 16 }
  0x21   :  { %2046 = vmatprep.subr.bf16.mxu1 %v2229_v37 }
  0x22   :  { %1991 = vmatmul.mubr.bf16.vlgmr.msra.gmra.mxu0 %v109_v41  ;;  %v406_v41 = vor.u32 %v404_v29, %v2463_v58  ;;  %v2253_v58 = vld [vmem:[%s2788_s4 + $0x170] sm:$0xff]  }
  0x23   :  { %2015 = vmatmul.mubr.bf16.vlgmr.msra.gmra.mxu1 %v2425_v36  ;;  %2023 = vmatpush3.bf16.msra.mxu0 %v2228_v35  ;;  %v410_v35 = vrot.slane %v408_v23, 1 }
  0x24   :  { %2047 = vmatpush3.bf16.msra.mxu1 %v2229_v37  ;;  %2024 = vmatprep.subr.bf16.mxu0 %v2230_v40  ;;  %v609_v37 = vrot.slane %v607_v24, 2  ;;  %v2263_v24 = vld [vmem:[%s2788_s4 + $0x150] sm:$0xff]  }
  0x25   :  { %2048 = vmatprep.subr.bf16.mxu1 %v2231_v42  ;;  %2018 = vmatprep.mubr.bf16.mxu1 %v2446_v45  ;;  %v414_v49 = vor.u32 %v412_v30, %v410_v35 }
  0x26   :  { %1994 = vmatprep.mubr.bf16.mxu0 %v117_v55  ;;  %v613_v44 = vor.u32 %v612_v38, %v609_v37  ;;  %v2644_v37 = vld [vmem:[%s2790_s3 + $0x18] ss:$0 sps:$4 sm:$0xff]  }
  0x27   :  { %2025 = vmatpush3.bf16.msra.mxu0 %v2230_v40  ;;  %v618_v40 = vrot.slane %v616_v31, 2  ;;  %v2266_v31 = vld [vmem:[%s2788_s4 + $0x100] sm:$0xff]  }
  0x28   :  { %2049 = vmatpush3.bf16.msra.mxu1 %v2231_v42  ;;  %2026 = vmatprep.subr.bf16.mxu0 %v2232_v51  ;;  %v621_v42 = vrot.slane %v619_v33, 3  ;;  %v614_v57 = vsel %vm588_vm1, %v604_v14, %v613_v44  ;;  %v2259_v14 = vld [vmem:[%s2788_s4 + $0x160] sm:$0xff]  }
  0x29   :  { %2050 = vmatprep.subr.bf16.mxu1 %v2233_v53  ;;  %v2267_v33 = vld [vmem:[%s2788_s4 + $0x140] sm:$0xff]  }
  0x2a   :  { %1995 = vmatmul.mubr.bf16.gmra.mxu0 %v120_v56  ;;  %v622_v55 = vor.u32 %v621_v42, %v618_v40  ;;  %v2562_v56 = vsel %vm789_vm2, %v1270_v43, %v1272_v48  ;;  %v944_v40 = vrot.slane %v2498_v16, 3  ;;  %v1399_v42 = vld [vmem:[%s2790_s3] sm:$0x8] }
  0x2b   :  { %2027 = vmatpush3.bf16.msra.mxu0 %v2232_v51  ;;  %2019 = vmatmul.mubr.bf16.gmra.mxu1 %v2240_v54  ;;  %v418_v51 = vrot.slane %v416_v39, 1  ;;  %v2252_v54 = vld [vmem:[%s2788_s4 + $0x130] sm:$0xff]   ;;  %v1425_v39 = vrot.slane %v2644_v37, 3 }
  0x2c   :  { %2051 = vmatpush3.bf16.msra.mxu1 %v2233_v53  ;;  %2028 = vmatprep.subr.bf16.mxu0 %v2234_v59  ;;  %v411_v53 = vsel %vm89_vm0, %v406_v41, %v410_v35  ;;  %v623_v5 = vsel %vm588_vm1, %v613_v44, %v622_v55  ;;  %v2276_v35 = vld [vmem:[%s2792_s0 + $0x18] ss:$0 sps:$4 sm:$0xff]  }
  0x2d   :  { %2052 = vmatprep.subr.bf16.mxu1 %v2235_v60  ;;  %2038 = vmatprep.mubr.bf16.mxu0 %v403_v1  ;;  %v419_v63 = vsel %vm89_vm0, %v414_v49, %v418_v51  ;;  %v420_v1 = vshrl.u32 %v2516_v26, 16  ;;  %v1071_v26 = vld [vmem:[%s2790_s3] sm:$0xc]  ;;  %v2272_v41 = vld [vmem:[%s2788_s4 + $0x1b8] sm:$0xff]   ;;  %v795_v49 = vrot.slane %v2276_v35, 3  ;;  %v2293_v35 = vld [vmem:[%s2788_s4 + $0x228] sm:$0xff]  }
  0x2e   :  { %2062 = vmatprep.mubr.bf16.mxu1 %v605_v20  ;;  %v2261_v20 = vld [vmem:[%s2788_s4 + $0x158] sm:$0xff]  }
  0x2f   :  { %2029 = vmatpush3.bf16.msra.mxu0 %v2234_v59  ;;  %v920_v59 = vld [vmem:[%s2791_s1] sm:$0x8]  ;;  %v422_v8 = vor.u32 %v420_v1, %v418_v51  ;;  %v2273_v44 = vld [vmem:[%s2788_s4 + $0x1f8] sm:$0xff]   ;;  %v1104_v1 = vrot.slane %v404_v29, 2  ;;  %v2278_v29 = vld [vmem:[%s2788_s4 + $0x1e8] sm:$0xff]  }
  0x30   :  { %2053 = vmatpush3.bf16.msra.mxu1 %v2235_v60  ;;  %2030 = vmatprep.subr.bf16.mxu0 %v2236_v6  ;;  %v1423_v60 = vrot.slane %v2446_v45, 3  ;;  %v2294_v45 = vld [vmem:[%s2789_s2 + $0x18] ss:$0 sps:$4 sm:$0xff]  }
  0x31   :  { %2054 = vmatprep.subr.bf16.mxu1 %v2237_v7  ;;  %v1106_v50 = vor.u32 %v1105_v2, %v1104_v1 }
  0x32   :  { %v2587_v3 = vsel %vm789_vm2, %v1421_v52, %v1423_v60  ;;  %v2663_v16 = vsel %vm789_vm2, %v1423_v60, %v1425_v39 }
  0x33   :  { %2031 = vmatpush3.bf16.msra.mxu0 %v2236_v6  ;;  %v1748_v6 = vcombine.low %v920_v59, %v2477_v62  ;;  %v2258_v62 = vld [vmem:[%s2788_s4 + $0x120] sm:$0xff]   ;;  %v2275_v59 = vld [vmem:[%s2788_s4 + $0x1f0] sm:$0xff]  }
  0x34   :  { %2055 = vmatpush3.bf16.msra.mxu1 %v2237_v7  ;;  %2032 = vmatprep.subr.bf16.mxu0 %v2241_v18  ;;  %v2256_v7 = vld [vmem:[%s2788_s4 + $0x168] sm:$0xff]  }
  0x35   :  { %2056 = vmatprep.subr.bf16.mxu1 %v2242_v19  ;;  %v941_v11 = vrot.slane %v1748_v6, 3 }
  0x37   :  { %2033 = vmatpush3.bf16.msra.mxu0 %v2241_v18  ;;  %v792_v18 = vsel %vm789_vm2, %v790_v9, %v791_v10 }
  0x38   :  { %2057 = vmatpush3.bf16.msra.mxu1 %v2242_v19  ;;  %2034 = vmatprep.subr.bf16.mxu0 %v2243_v21  ;;  %v943_v19 = vsel %vm789_vm2, %v941_v11, %v942_v12  ;;  %v2282_v11 = vld [vmem:[%s2788_s4 + $0x1d8] sm:$0xff]  }
  0x39   :  { %2058 = vmatprep.subr.bf16.mxu1 %v2244_v28 }
  0x3b   :  { %2035 = vmatpush3.bf16.msra.mxu0 %v2243_v21  ;;  %v2262_v21 = vld [vmem:[%s2788_s4 + $0x110] sm:$0xff]  }
  0x3c   :  { %2059 = vmatpush3.bf16.msra.mxu1 %v2244_v28  ;;  %2036 = vmatprep.subr.bf16.mxu0 %v2245_v32  ;;  %v2265_v28 = vld [vmem:[%s2788_s4 + $0x148] sm:$0xff]  }
  0x3d   :  { %2060 = vmatprep.subr.bf16.mxu1 %v2246_v34 }
  0x3f   :  { %2037 = vmatpush3.bf16.msra.mxu0 %v2245_v32  ;;  %v2271_v32 = vld [vmem:[%s2792_s0 + $0x10] sm:$0xff]  }
  0x40   :  { %2061 = vmatpush3.bf16.msra.mxu1 %v2246_v34  ;;  %2070 = vmatprep.subr.bf16.mxu0 %v2250_v46  ;;  %v1773_v34 = vcombine.low %v1071_v26, %v2392_v17  ;;  %v793_v38 = vrot.slane %v2271_v32, 3  ;;  %v2291_v32 = vld [vmem:[%s2788_s4 + $0x230] sm:$0xff]  }
  0x41   :  { %2094 = vmatprep.subr.bf16.mxu1 %v2251_v47 }
  0x42   :  { %2039 = vmatmul.mubr.bf16.vlgmr.msra.gmra.mxu0 %v411_v53  ;;  %v1100_v51 = vshll.u32 %v1773_v34, 16  ;;  %v794_v53 = vsel %vm789_vm2, %v791_v10, %v793_v38  ;;  %v796_v61 = vsel %vm789_vm2, %v793_v38, %v795_v49  ;;  %v2281_v10 = vld [vmem:[%s2788_s4 + $0x198] sm:$0xff]   ;;  %v2298_v38 = vld [vmem:[%s2788_s4 + $0x208] sm:$0xff]  }
  0x43   :  { %2063 = vmatmul.mubr.bf16.vlgmr.msra.gmra.mxu1 %v614_v57  ;;  %2071 = vmatpush3.bf16.msra.mxu0 %v2250_v46  ;;  %v1097_v46 = vshrl.u32 %v1773_v34, 16  ;;  %v945_v57 = vsel %vm789_vm2, %v942_v12, %v944_v40  ;;  %v2285_v12 = vld [vmem:[%s2788_s4 + $0x188] sm:$0xff]  }
  0x44   :  { %2095 = vmatpush3.bf16.msra.mxu1 %v2251_v47  ;;  %2072 = vmatprep.subr.bf16.mxu0 %v2252_v54  ;;  %v1825_v47 = vcombine.low %v1399_v42, %v2392_v17  ;;  %v2274_v17 = vld [vmem:[%s2788_s4 + $0x1b0] sm:$0xff]  }
  0x45   :  { %2096 = vmatprep.subr.bf16.mxu1 %v2253_v58  ;;  %2042 = vmatprep.mubr.bf16.mxu0 %v419_v63  ;;  %v1099_v60 = vrot.slane %v1097_v46, 2  ;;  %v1102_v63 = vrot.slane %v1100_v51, 3 }
  0x46   :  { %2066 = vmatprep.mubr.bf16.mxu1 %v623_v5 }
  0x47   :  { %2073 = vmatpush3.bf16.msra.mxu0 %v2252_v54  ;;  %v946_v54 = vrot.slane %v2521_v27, 3  ;;  %v1103_v36 = vor.u32 %v1102_v63, %v1099_v60 }
  0x48   :  { %2097 = vmatpush3.bf16.msra.mxu1 %v2253_v58  ;;  %2074 = vmatprep.subr.bf16.mxu0 %v2255_v4  ;;  %v1244_v58 = vld [vmem:[%s2789_s2] sm:$0x8] }
  0x49   :  { %2098 = vmatprep.subr.bf16.mxu1 %v2256_v7  ;;  %v1799_v5 = vcombine.low %v1244_v58, %v2378_v13  ;;  %v2279_v13 = vld [vmem:[%s2788_s4 + $0x1a0] sm:$0xff]  }
  0x4a   :  { %2043 = vmatmul.mubr.bf16.gmra.mxu0 %v422_v8  ;;  %v1107_v8 = vsel %vm588_vm1, %v1103_v36, %v1106_v50 }
  0x4b   :  { %2075 = vmatpush3.bf16.msra.mxu0 %v2255_v4  ;;  %2067 = vmatmul.mubr.bf16.gmra.mxu1 %v622_v55  ;;  %v1420_v55 = vrot.slane %v1825_v47, 3  ;;  %v947_v4 = vsel %vm789_vm2, %v944_v40, %v946_v54  ;;  %v1269_v6 = vrot.slane %v1799_v5, 3  ;;  %v2299_v40 = vld [vmem:[%s2788_s4 + $0x200] sm:$0xff]  }
  0x4c   :  { %2099 = vmatpush3.bf16.msra.mxu1 %v2256_v7  ;;  %2076 = vmatprep.subr.bf16.mxu0 %v2258_v62  ;;  %v2280_v7 = vld [vmem:[%s2788_s4 + $0x1e0] sm:$0xff]  }
  0x4d   :  { %2100 = vmatprep.subr.bf16.mxu1 %v2259_v14  ;;  %2086 = vmatprep.mubr.bf16.mxu0 %v792_v18  ;;  %v2680_v27 = vsel %vm789_vm2, %v1420_v55, %v1421_v52  ;;  %v2277_v52 = vld [vmem:[%s2788_s4 + $0x1a8] sm:$0xff]   ;;  %v1271_v9 = vsel %vm789_vm2, %v1269_v6, %v1270_v43  ;;  %v2284_v43 = vld [vmem:[%s2788_s4 + $0x1d0] sm:$0xff]   ;;  %v1116_v18 = vshll.u32 %v2644_v37, 16 }
  0x4e   :  { %2110 = vmatprep.mubr.bf16.mxu1 %v943_v19  ;;  %v1108_v19 = vrot.slane %v412_v30, 2 }
  0x4f   :  { %2077 = vmatpush3.bf16.msra.mxu0 %v2258_v62  ;;  %v2286_v62 = vld [vmem:[%s2788_s4 + $0x1c8] sm:$0xff]  }
  0x50   :  { %2101 = vmatpush3.bf16.msra.mxu1 %v2259_v14  ;;  %2078 = vmatprep.subr.bf16.mxu0 %v2260_v0  ;;  %v1113_v14 = vshrl.u32 %v2644_v37, 16 }
  0x51   :  { %2102 = vmatprep.subr.bf16.mxu1 %v2261_v20 }
  0x53   :  { %2079 = vmatpush3.bf16.msra.mxu0 %v2260_v0  ;;  %v1109_v0 = vrot.slane %v408_v23, 3  ;;  %v2290_v23 = vld [vmem:[%s2788_s4 + $0x238] sm:$0xff]  }
  0x54   :  { %2103 = vmatpush3.bf16.msra.mxu1 %v2261_v20  ;;  %2080 = vmatprep.subr.bf16.mxu0 %v2262_v21  ;;  %v2287_v20 = vld [vmem:[%s2788_s4 + $0x180] sm:$0xff]  }
  0x55   :  { %2104 = vmatprep.subr.bf16.mxu1 %v2263_v24  ;;  %v1110_v26 = vor.u32 %v1109_v0, %v1108_v19 }
  0x57   :  { %2081 = vmatpush3.bf16.msra.mxu0 %v2262_v21  ;;  %v2288_v21 = vld [vmem:[%s2788_s4 + $0x1c0] sm:$0xff]  }
  0x58   :  { %2105 = vmatpush3.bf16.msra.mxu1 %v2263_v24  ;;  %2082 = vmatprep.subr.bf16.mxu0 %v2264_v25  ;;  %v1115_v24 = vrot.slane %v1113_v14, 2 }
  0x59   :  { %2106 = vmatprep.subr.bf16.mxu1 %v2265_v28 }
  0x5b   :  { %2083 = vmatpush3.bf16.msra.mxu0 %v2264_v25  ;;  %v1118_v25 = vrot.slane %v1116_v18, 3 }
  0x5c   :  { %2107 = vmatpush3.bf16.msra.mxu1 %v2265_v28  ;;  %2084 = vmatprep.subr.bf16.mxu0 %v2266_v31  ;;  %v1111_v28 = vsel %vm588_vm1, %v1106_v50, %v1110_v26 }
  0x5d   :  { %2108 = vmatprep.subr.bf16.mxu1 %v2267_v33  ;;  %v1119_v30 = vor.u32 %v1118_v25, %v1115_v24 }
  0x5f   :  { %2085 = vmatpush3.bf16.msra.mxu0 %v2266_v31  ;;  %v1274_v31 = vrot.slane %v2294_v45, 3 }
  0x60   :  { %2109 = vmatpush3.bf16.msra.mxu1 %v2267_v33  ;;  %2118 = vmatprep.subr.bf16.mxu0 %v2272_v41  ;;  %v1120_v33 = vsel %vm588_vm1, %v1110_v26, %v1119_v30 }
  0x61   :  { %2142 = vmatprep.subr.bf16.mxu1 %v2273_v44  ;;  %v1275_v34 = vsel %vm789_vm2, %v1272_v48, %v1274_v31  ;;  %v2297_v48 = vld [vmem:[%s2788_s4 + $0x210] sm:$0xff]  }
  0x62   :  { %2087 = vmatmul.mubr.bf16.vlgmr.msra.gmra.mxu0 %v794_v53 }
  0x63   :  { %2111 = vmatmul.mubr.bf16.vlgmr.msra.gmra.mxu1 %v945_v57  ;;  %2119 = vmatpush3.bf16.msra.mxu0 %v2272_v41 }
  0x64   :  { %2143 = vmatpush3.bf16.msra.mxu1 %v2273_v44  ;;  %2120 = vmatprep.subr.bf16.mxu0 %v2274_v17 }
  0x65   :  { %2144 = vmatprep.subr.bf16.mxu1 %v2275_v59  ;;  %2090 = vmatprep.mubr.bf16.mxu0 %v796_v61 }
  0x66   :  { %2114 = vmatprep.mubr.bf16.mxu1 %v947_v4 }
  0x67   :  { %2121 = vmatpush3.bf16.msra.mxu0 %v2274_v17 }
  0x68   :  { %2145 = vmatpush3.bf16.msra.mxu1 %v2275_v59  ;;  %2122 = vmatprep.subr.bf16.mxu0 %v2277_v52 }
  0x69   :  { %2146 = vmatprep.subr.bf16.mxu1 %v2278_v29 }
  0x6a   :  { %2091 = vmatmul.mubr.bf16.gmra.mxu0 %v795_v49 }
  0x6b   :  { %2123 = vmatpush3.bf16.msra.mxu0 %v2277_v52  ;;  %2115 = vmatmul.mubr.bf16.gmra.mxu1 %v946_v54 }
  0x6c   :  { %2147 = vmatpush3.bf16.msra.mxu1 %v2278_v29  ;;  %2124 = vmatprep.subr.bf16.mxu0 %v2279_v13 }
  0x6d   :  { %2148 = vmatprep.subr.bf16.mxu1 %v2280_v7  ;;  %2134 = vmatprep.mubr.bf16.mxu0 %v1107_v8 }
  0x6e   :  { %2158 = vmatprep.mubr.bf16.mxu1 %v1271_v9 }
  0x6f   :  { %2125 = vmatpush3.bf16.msra.mxu0 %v2279_v13 }
  0x70   :  { %2149 = vmatpush3.bf16.msra.mxu1 %v2280_v7  ;;  %2126 = vmatprep.subr.bf16.mxu0 %v2281_v10 }
  0x71   :  { %2150 = vmatprep.subr.bf16.mxu1 %v2282_v11 }
  0x73   :  { %2127 = vmatpush3.bf16.msra.mxu0 %v2281_v10 }
  0x74   :  { %2151 = vmatpush3.bf16.msra.mxu1 %v2282_v11  ;;  %2128 = vmatprep.subr.bf16.mxu0 %v2283_v15 }
  0x75   :  { %2152 = vmatprep.subr.bf16.mxu1 %v2284_v43 }
  0x77   :  { %2129 = vmatpush3.bf16.msra.mxu0 %v2283_v15 }
  0x78   :  { %2153 = vmatpush3.bf16.msra.mxu1 %v2284_v43  ;;  %2130 = vmatprep.subr.bf16.mxu0 %v2285_v12 }
  0x79   :  { %2154 = vmatprep.subr.bf16.mxu1 %v2286_v62 }
  0x7b   :  { %2131 = vmatpush3.bf16.msra.mxu0 %v2285_v12 }
  0x7c   :  { %2155 = vmatpush3.bf16.msra.mxu1 %v2286_v62  ;;  %2132 = vmatprep.subr.bf16.mxu0 %v2287_v20 }
  0x7d   :  { %2156 = vmatprep.subr.bf16.mxu1 %v2288_v21 }
  0x7f   :  { %2133 = vmatpush3.bf16.msra.mxu0 %v2287_v20 }
  0x80   :  { %2157 = vmatpush3.bf16.msra.mxu1 %v2288_v21  ;;  %2166 = vmatprep.subr.bf16.mxu0 %v2290_v23 }
  0x81   :  { %2190 = vmatprep.subr.bf16.mxu1 %v2290_v23 }
  0x82   :  { %2135 = vmatmul.mubr.bf16.vlgmr.msra.gmra.mxu0 %v1111_v28 }
  0x83   :  { %2159 = vmatmul.mubr.bf16.vlgmr.msra.gmra.mxu1 %v2562_v56  ;;  %2167 = vmatpush3.bf16.msra.mxu0 %v2290_v23  ;;  %v2295_v56 = vld [vmem:[%s2788_s4 + $0x220] sm:$0xff]  }
  0x84   :  { %2198 = vmatpush3.bf16.msra.mxu1 %v2290_v23  ;;  %2168 = vmatprep.subr.bf16.mxu0 %v2291_v32 }
  0x85   :  { %2191 = vmatprep.subr.bf16.mxu1 %v2291_v32  ;;  %2138 = vmatprep.mubr.bf16.mxu0 %v1120_v33 }
  0x86   :  { %2162 = vmatprep.mubr.bf16.mxu1 %v1275_v34 }
  0x87   :  { %2169 = vmatpush3.bf16.msra.mxu0 %v2291_v32 }
  0x88   :  { %2199 = vmatpush3.bf16.msra.mxu1 %v2291_v32  ;;  %2170 = vmatprep.subr.bf16.mxu0 %v2293_v35 }
  0x89   :  { %2192 = vmatprep.subr.bf16.mxu1 %v2293_v35 }
  0x8a   :  { %2139 = vmatmul.mubr.bf16.gmra.mxu0 %v1119_v30 }
  0x8b   :  { %2171 = vmatpush3.bf16.msra.mxu0 %v2293_v35  ;;  %2163 = vmatmul.mubr.bf16.gmra.mxu1 %v1274_v31 }
  0x8c   :  { %2200 = vmatpush3.bf16.msra.mxu1 %v2293_v35  ;;  %2172 = vmatprep.subr.bf16.mxu0 %v2295_v56 }
  0x8d   :  { %2193 = vmatprep.subr.bf16.mxu1 %v2295_v56  ;;  %2182 = vmatprep.mubr.bf16.mxu0 %v2680_v27 }
  0x8e   :  { %2186 = vmatprep.mubr.bf16.mxu1 %v2663_v16 }
  0x8f   :  { %2173 = vmatpush3.bf16.msra.mxu0 %v2295_v56 }
  0x90   :  { %2201 = vmatpush3.bf16.msra.mxu1 %v2295_v56  ;;  %2174 = vmatprep.subr.bf16.mxu0 %v2296_v22 }
  0x91   :  { %2194 = vmatprep.subr.bf16.mxu1 %v2296_v22 }
  0x93   :  { %2175 = vmatpush3.bf16.msra.mxu0 %v2296_v22 }
  0x94   :  { %2202 = vmatpush3.bf16.msra.mxu1 %v2296_v22  ;;  %2176 = vmatprep.subr.bf16.mxu0 %v2297_v48 }
  0x95   :  { %2195 = vmatprep.subr.bf16.mxu1 %v2297_v48 }
  0x97   :  { %2177 = vmatpush3.bf16.msra.mxu0 %v2297_v48 }
  0x98   :  { %2203 = vmatpush3.bf16.msra.mxu1 %v2297_v48  ;;  %2178 = vmatprep.subr.bf16.mxu0 %v2298_v38 }
  0x99   :  { %2196 = vmatprep.subr.bf16.mxu1 %v2298_v38 }
  0x9b   :  { %2179 = vmatpush3.bf16.msra.mxu0 %v2298_v38 }
  0x9c   :  { %2204 = vmatpush3.bf16.msra.mxu1 %v2298_v38  ;;  %2180 = vmatprep.subr.bf16.mxu0 %v2299_v40 }
  0x9d   :  { %2197 = vmatprep.subr.bf16.mxu1 %v2299_v40 }
  0x9f   :  { %2181 = vmatpush3.bf16.msra.mxu0 %v2299_v40 }
  0xa0   :  { %2205 = vmatpush3.bf16.msra.mxu1 %v2299_v40 }
  0xa2   :  { %2183 = vmatmul.mubr.bf16.vlgmr.msra.gmra.mxu0 %v2587_v3 }
  0xa3   :  { %2187 = vmatmul.mubr.bf16.vlgmr.msra.gmra.mxu1 %v1425_v39 }
  0xe2   :  { %v1992_v41 = vpop.f32.mrf.mxu0 }
  0xe3   :  { %v2016_v42 = vpop.f32.mrf.mxu1 }
  0xe4   :  { %v350_v44 = vadd.f32 %v2016_v42, %v1992_v41  ;;  %v207_v46 = vpop.f32.mrf.mxu0 }
  0xe5   :  { %v341_v47 = vpop.f32.mrf.mxu1 }
  0xe6   :  { %v342_v16 = vadd.f32 %v341_v47, %v207_v46  ;;  %v1993_v49 = vpop.f32.mrf.mxu0 }
  0xe7   :  { %v2017_v51 = vpop.f32.mrf.mxu1 }
  0xe8   :  { %v353_v53 = vadd.f32 %v2017_v51, %v1993_v49  ;;  %v210_v54 = vpop.f32.mrf.mxu0 }
  0xe9   :  { %v344_v55 = vpop.f32.mrf.mxu1 }
  0xea   :  { %v345_v57 = vadd.f32 %v344_v55, %v210_v54  ;;  %v1996_v17 = vpop.f32.mrf.mxu0 }
  0xeb   :  { %v2020_v58 = vpop.f32.mrf.mxu1 }
  0xec   :  { %v366_v59 = vadd.f32 %v2020_v58, %v1996_v17  ;;  %v223_v60 = vpop.f32.mrf.mxu0 }
  0xed   :  { %v357_v3 = vpop.f32.mrf.mxu1 }
  0xee   :  { %v358_v27 = vadd.f32 %v357_v3, %v223_v60  ;;  %v1997_v37 = vpop.f32.mrf.mxu0 }
  0xef   :  { %v2021_v39 = vpop.f32.mrf.mxu1 }
  0xf0   :  { %v226_v61 = vpop.f32.mrf.mxu0 }
  0xf1   :  { %v360_v63 = vpop.f32.mrf.mxu1 }
  0xf2   :  { %v361_v1 = vadd.f32 %v360_v63, %v226_v61 }
 0x102   :  { %v2040_v2 = vpop.f32.mrf.mxu0 }
 0x103   :  { %v541_v4 = vadd.f32 %v2040_v2, %v350_v44  ;;  %v2064_v5 = vpop.f32.mrf.mxu1 }
 0x104   :  { %v509_v52 = vpop.f32.mrf.mxu0 }
 0x105   :  { %v742_v29 = vadd.f32 %v2064_v5, %v541_v4  ;;  %v539_v36 = vadd.f32 %v509_v52, %v342_v16  ;;  %v710_v50 = vpop.f32.mrf.mxu1 }
 0x106   :  { %v2041_v6 = vpop.f32.mrf.mxu0 }
 0x107   :  { %v740_v13 = vadd.f32 %v710_v50, %v539_v36  ;;  %v542_v7 = vadd.f32 %v2041_v6, %v353_v53  ;;  %v2065_v8 = vpop.f32.mrf.mxu1 }
 0x108   :  { %v512_v9 = vpop.f32.mrf.mxu0 }
 0x109   :  { %v743_v10 = vadd.f32 %v2065_v8, %v542_v7  ;;  %v540_v11 = vadd.f32 %v512_v9, %v345_v57  ;;  %v713_v15 = vpop.f32.mrf.mxu1 }
 0x10a   :  { %v2044_v43 = vpop.f32.mrf.mxu0 }
 0x10b   :  { %v741_v12 = vadd.f32 %v713_v15, %v540_v11  ;;  %v545_v62 = vadd.f32 %v2044_v43, %v366_v59  ;;  %v2068_v14 = vpop.f32.mrf.mxu1 }
 0x10c   :  { %v525_v18 = vpop.f32.mrf.mxu0 }
 0x10d   :  { %v543_v19 = vadd.f32 %v525_v18, %v358_v27  ;;  %v746_v0 = vadd.f32 %v2068_v14, %v545_v62  ;;  %v726_v20 = vpop.f32.mrf.mxu1 }
 0x10e   :  { %v2045_v21 = vpop.f32.mrf.mxu0 }
 0x10f   :  { %v744_v24 = vadd.f32 %v726_v20, %v543_v19  ;;  %v2069_v25 = vpop.f32.mrf.mxu1 }
 0x110   :  { %v528_v26 = vpop.f32.mrf.mxu0 }
 0x111   :  { %v729_v45 = vpop.f32.mrf.mxu1  ;;  %v544_v37 = vadd.f32 %v528_v26, %v361_v1 }
 0x113   :  { %v745_v5 = vadd.f32 %v729_v45, %v544_v37 }
 0x122   :  { %v2088_v23 = vpop.f32.mrf.mxu0 }
 0x123   :  { %v2112_v30 = vpop.f32.mrf.mxu1  ;;  %v915_v27 = vadd.f32 %v2088_v23, %v742_v29 }
 0x124   :  { %v883_v28 = vpop.f32.mrf.mxu0 }
 0x125   :  { %v1034_v31 = vpop.f32.mrf.mxu1  ;;  %v913_v61 = vadd.f32 %v883_v28, %v740_v13  ;;  %v1066_v2 = vadd.f32 %v2112_v30, %v915_v27 }
 0x126   :  { %v2089_v32 = vpop.f32.mrf.mxu0 }
 0x127   :  { %v2113_v33 = vpop.f32.mrf.mxu1  ;;  %v916_v4 = vadd.f32 %v2089_v32, %v743_v10  ;;  %v1064_v36 = vadd.f32 %v1034_v31, %v913_v61 }
 0x128   :  { %v886_v34 = vpop.f32.mrf.mxu0 }
 0x129   :  { %v1037_v35 = vpop.f32.mrf.mxu1  ;;  %v914_v50 = vadd.f32 %v886_v34, %v741_v12  ;;  %v1067_v11 = vadd.f32 %v2113_v33, %v916_v4  ;;  %v1834_v12 = vld [vmem:[%s2793_s5] ss:$0 sm:$0xff] }
 0x12a   :  { %v2092_v56 = vpop.f32.mrf.mxu0 }
 0x12b   :  { %v2116_v22 = vpop.f32.mrf.mxu1  ;;  %v919_v39 = vadd.f32 %v2092_v56, %v746_v0  ;;  %v1065_v14 = vadd.f32 %v1037_v35, %v914_v50 }
 0x12c   :  { %v899_v48 = vpop.f32.mrf.mxu0 }
 0x12d   :  { %v1050_v38 = vpop.f32.mrf.mxu1  ;;  %v917_v63 = vadd.f32 %v899_v48, %v744_v24  ;;  %v1070_v52 = vadd.f32 %v2116_v22, %v919_v39 }
 0x12e   :  { %v2093_v40 = vpop.f32.mrf.mxu0 }
 0x12f   :  { %v2117_v41 = vpop.f32.mrf.mxu1  ;;  %v1068_v7 = vadd.f32 %v1050_v38, %v917_v63 }
 0x130   :  { %v902_v42 = vpop.f32.mrf.mxu0 }
 0x131   :  { %v1053_v44 = vpop.f32.mrf.mxu1  ;;  %v918_v8 = vadd.f32 %v902_v42, %v745_v5 }
 0x133   :  { %v1069_v13 = vadd.f32 %v1053_v44, %v918_v8 }
 0x142   :  { %v2136_v46 = vpop.f32.mrf.mxu0 }
 0x143   :  { %v2160_v47 = vpop.f32.mrf.mxu1  ;;  %v1239_v6 = vadd.f32 %v2136_v46, %v1066_v2 }
 0x144   :  { %v1207_v16 = vpop.f32.mrf.mxu0 }
 0x145   :  { %v1362_v49 = vpop.f32.mrf.mxu1  ;;  %v1237_v15 = vadd.f32 %v1207_v16, %v1064_v36  ;;  %v1394_v29 = vadd.f32 %v2160_v47, %v1239_v6 }
 0x146   :  { %v2137_v51 = vpop.f32.mrf.mxu0 }
 0x147   :  { %v2161_v53 = vpop.f32.mrf.mxu1  ;;  %v1240_v1 = vadd.f32 %v2137_v51, %v1067_v11  ;;  %v1392_v10 = vadd.f32 %v1362_v49, %v1237_v15 }
 0x148   :  { %v1210_v54 = vpop.f32.mrf.mxu0 }
 0x149   :  { %v1365_v55 = vpop.f32.mrf.mxu1  ;;  %v1238_v20 = vadd.f32 %v1210_v54, %v1065_v14  ;;  %v1395_v30 = vadd.f32 %v2161_v53, %v1240_v1 }
 0x14a   :  { %v2140_v57 = vpop.f32.mrf.mxu0 }
 0x14b   :  { %v2164_v17 = vpop.f32.mrf.mxu1  ;;  %v1243_v9 = vadd.f32 %v2140_v57, %v1070_v52  ;;  %v1393_v35 = vadd.f32 %v1365_v55, %v1238_v20 }
 0x14c   :  { %v1223_v58 = vpop.f32.mrf.mxu0 }
 0x14d   :  { %v1378_v59 = vpop.f32.mrf.mxu1  ;;  %v1241_v43 = vadd.f32 %v1223_v58, %v1068_v7  ;;  %v1398_v19 = vadd.f32 %v2164_v17, %v1243_v9 }
 0x14e   :  { %v2141_v60 = vpop.f32.mrf.mxu0 }
 0x14f   :  { %v2165_v3 = vpop.f32.mrf.mxu1  ;;  %v1396_v25 = vadd.f32 %v1378_v59, %v1241_v43 }
 0x150   :  { %v1226_v62 = vpop.f32.mrf.mxu0 }
 0x151   :  { %v1381_v18 = vpop.f32.mrf.mxu1  ;;  %v1242_v26 = vadd.f32 %v1226_v62, %v1069_v13 }
 0x153   :  { %v1397_v38 = vadd.f32 %v1381_v18, %v1242_v26 }
 0x162   :  { %v2184_v0 = vpop.f32.mrf.mxu0 }
 0x163   :  { %v1545_v21 = vadd.f32 %v2184_v0, %v1394_v29  ;;  %v2188_v24 = vpop.f32.mrf.mxu1 }
 0x164   :  { %v1549_v45 = vadd.f32 %v2188_v24, %v1398_v19  ;;  %v1513_v23 = vpop.f32.mrf.mxu0 }
 0x165   :  { %v1543_v28 = vadd.f32 %v1513_v23, %v1392_v10  ;;  %v1529_v31 = vpop.f32.mrf.mxu1  ;;  %v1559_v56 = vadd.f32 %v1834_v12, %v1545_v21 }
 0x166   :  { %v1563_v32 = vadd.f32 %v1834_v12, %v1549_v45  ;;  %v1547_v33 = vadd.f32 %v1529_v31, %v1396_v25  ;;  %v2185_v34 = vpop.f32.mrf.mxu0 }
 0x167   :  { %v1546_v22 = vadd.f32 %v2185_v34, %v1395_v30  ;;  %v2189_v48 = vpop.f32.mrf.mxu1  ;;  %v1557_v42 = vadd.f32 %v1834_v12, %v1543_v28  ;;  %v1566_v53 = vmax.f32 %v1559_v56, 0.0 }
 0x168   :  { %v1570_v40 = vmax.f32 %v1563_v32, 0.0  ;;  %v1516_v41 = vpop.f32.mrf.mxu0  ;;  %v1561_v49 = vadd.f32 %v1834_v12, %v1547_v33 }
 0x169   :  { %v1560_v44 = vadd.f32 %v1834_v12, %v1546_v22  ;;  %v1544_v46 = vadd.f32 %v1516_v41, %v1393_v35  ;;  %v1532_v47 = vpop.f32.mrf.mxu1  ;;  %v1564_v17 = vmax.f32 %v1557_v42, 0.0 }
 0x16a   :  { %v1848_v16 = vpack.c.bf16 %v1570_v40, %v1570_v40  ;;  %v1548_v51 = vadd.f32 %v1532_v47, %v1397_v38  ;;  %v1568_v60 = vmax.f32 %v1561_v49, 0.0 }
 0x16b   :  { %v1567_v54 = vmax.f32 %v1560_v44, 0.0  ;;  %v1558_v57 = vadd.f32 %v1834_v12, %v1544_v46 }
 0x16c   :  { %1606 = vst [vmem:[%s2794_s6 + $0x18] sm:$0x1] %v1848_v16  ;;  %v1562_v55 = vadd.f32 %v1834_v12, %v1548_v51 }
 0x16d   :  { %v1857_v58 = vpack.c.bf16 %v1567_v54, %v1566_v53  ;;  %v1565_v59 = vmax.f32 %v1558_v57, 0.0 }
 0x16e   :  { %v1569_v3 = vmax.f32 %v1562_v55, 0.0 }
 0x16f   :  { %1864 = vst [vmem:[%s2794_s6 + $0x8] sm:$0xff] %v1857_v58   ;;  %v1852_v27 = vpack.c.bf16 %v1565_v59, %v1564_v17 }
 0x170   :  { %v1862_v37 = vpack.c.bf16 %v1569_v3, %v1568_v60 }
 0x171   :  { %1853 = vst [vmem:[%s2794_s6] sm:$0xff] %v1852_v27  }
 0x172   :  { %1865 = vst [vmem:[%s2794_s6 + $0x10] sm:$0xff] %v1862_v37  }

// kernel: _lambda_.6
= control target key start
LH: loop header
LB: loop body
LE: loop exit
PB: predicated region body
PF: predicated region fallthrough
CT: control target
= control target key end

     0   :  { %v4224_v0 = vmov 0.0   ;;  %vm4225_vm0 = vmmov 0   ;;  %vm152_vm1 = vsmask.f32 7424  ;;  %vm1428_vm2 = vcmask 1046528   ;;  %s5487_s4 = inlined_call_operand.vmem [shape: bf16[9,128,128], index: 4, kind: input, shape index: {}]   ;;  %s5488_s2 = inlined_call_operand.vmem [shape: bf16[172,128], index: 2, kind: input, shape index: {}]   ;;  %s5489_s3 = inlined_call_operand.vmem [shape: bf16[172,128], index: 3, kind: input, shape index: {}]   ;;  %s5490_s1 = inlined_call_operand.vmem [shape: bf16[172,128], index: 1, kind: input, shape index: {}]   ;;  %s5491_s0 = inlined_call_operand.vmem [shape: bf16[172,128], index: 0, kind: input, shape index: {}]   ;;  %s5492_s5 = inlined_call_operand.vmem [shape: f32[1,128], index: 5, kind: input, shape index: {}]   ;;  %s5493_s6 = inlined_call_operand.vmem [shape: bf16[162,128], index: 6, kind: output, shape index: {}]  }
   0x1   :  { %3525 = vmatprep.subr.bf16.mxu0 %v4224_v0  ;;  %4065 = vmatprep.subr.bf16.mxu1 %v4224_v0  ;;  %v4083_v1 = vld [vmem:[%s5487_s4 + $0x78] sm:$0xff]   ;;  %v4084_v2 = vld [vmem:[%s5487_s4 + $0x70] sm:$0xff]   ;;  %v4085_v3 = vld [vmem:[%s5487_s4 + $0x68] sm:$0xff]  }
   0x2   :  { %3541 = vmatprep.mubr.msk.bf16.mxu0 %vm4225_vm0, %v4224_v0  ;;  %3565 = vmatprep.mubr.msk.bf16.mxu1 %vm4225_vm0, %v4224_v0  ;;  %v4086_v4 = vld [vmem:[%s5487_s4 + $0x60] sm:$0xff]   ;;  %v4087_v5 = vld [vmem:[%s5487_s4 + $0x58] sm:$0xff]   ;;  %v4093_v7 = vld [vmem:[%s5488_s2 + $0x30] sm:$0xff]  }
   0x3   :  { %3526 = vmatpush3.bf16.msra.mxu0 %v4083_v1  ;;  %4073 = vmatpush3.bf16.msra.mxu1 %v4083_v1  ;;  %v4091_v6 = vld [vmem:[%s5488_s2] sm:$0xff]   ;;  %v4092_v8 = vld [vmem:[%s5488_s2 + $0x8] sm:$0xff]   ;;  %v4088_v9 = vld [vmem:[%s5487_s4 + $0x50] sm:$0xff]   ;;  %v201_v12 = vshll.u32 %v4093_v7, 16  ;;  %v205_v17 = vshrl.u32 %v4093_v7, 16 }
   0x4   :  { %3527 = vmatprep.subr.bf16.mxu0 %v4224_v0  ;;  %4066 = vmatprep.subr.bf16.mxu1 %v4224_v0  ;;  %v156_v10 = vshll.u32 %v4091_v6, 16  ;;  %v4094_v11 = vld [vmem:[%s5488_s2 + $0x38] sm:$0xff]   ;;  %v4089_v13 = vld [vmem:[%s5487_s4 + $0x48] sm:$0xff]   ;;  %v154_v14 = vshrl.u32 %v4091_v6, 16  ;;  %v161_v15 = vshll.u32 %v4092_v8, 16  ;;  %v4098_v20 = vld [vmem:[%s5488_s2 + $0x10] sm:$0xff]  }
   0x5   :  { %v4310_v18 = vrot.slane %v201_v12, 1  ;;  %v209_v19 = vshll.u32 %v4094_v11, 16  ;;  %v4090_v21 = vld [vmem:[%s5487_s4 + $0x40] sm:$0xff]   ;;  %v165_v27 = vshrl.u32 %v4092_v8, 16  ;;  %v4095_v28 = vld [vmem:[%s5487_s4 + $0xb8] sm:$0xff]   ;;  %v169_v29 = vshll.u32 %v4098_v20, 16 }
   0x6   :  { %v158_v16 = vrot.slane %v156_v10, 1  ;;  %v163_v23 = vrot.slane %v161_v15, 1  ;;  %v4099_v26 = vld [vmem:[%s5488_s2 + $0x40] sm:$0xff]   ;;  %v213_v32 = vshrl.u32 %v4094_v11, 16  ;;  %v4096_v34 = vld [vmem:[%s5487_s4 + $0x38] sm:$0xff]   ;;  %v4097_v36 = vld [vmem:[%s5487_s4 + $0xb0] sm:$0xff]  }
   0x7   :  { %3528 = vmatpush3.bf16.msra.mxu0 %v4084_v2  ;;  %4074 = vmatpush3.bf16.msra.mxu1 %v4084_v2  ;;  %v207_v24 = vor.u32 %v205_v17, %v4310_v18  ;;  %v211_v25 = vrot.slane %v209_v19, 1  ;;  %v217_v33 = vshll.u32 %v4099_v26, 16  ;;  %v4102_v35 = vld [vmem:[%s5488_s2 + $0x18] sm:$0xff]   ;;  %v171_v37 = vrot.slane %v169_v29, 1  ;;  %v4103_v41 = vld [vmem:[%s5488_s2 + $0x48] sm:$0xff]   ;;  %v4100_v42 = vld [vmem:[%s5487_s4 + $0x30] sm:$0xff]  }
   0x8   :  { %3529 = vmatprep.subr.bf16.mxu0 %v4224_v0  ;;  %4067 = vmatprep.subr.bf16.mxu1 %v4224_v0  ;;  %v159_v22 = vor.u32 %v158_v16, %v154_v14  ;;  %v167_v38 = vor.u32 %v165_v27, %v163_v23  ;;  %v177_v43 = vshll.u32 %v4102_v35, 16  ;;  %v4101_v44 = vld [vmem:[%s5487_s4 + $0xa8] sm:$0xff]   ;;  %v173_v45 = vshrl.u32 %v4098_v20, 16  ;;  %v4105_v52 = vld [vmem:[%s5487_s4 + $0xa0] sm:$0xff]   ;;  %v4110_v2 = vld [vmem:[%s5487_s4 + $0x98] sm:$0xff]  }
   0x9   :  { %v212_v31 = vsel %vm152_vm1, %v207_v24, %v211_v25  ;;  %v215_v39 = vor.u32 %v213_v32, %v211_v25  ;;  %v219_v40 = vrot.slane %v217_v33, 1  ;;  %v221_v48 = vshrl.u32 %v4099_v26, 16  ;;  %v4104_v51 = vld [vmem:[%s5487_s4 + $0x28] sm:$0xff]   ;;  %v4369_v53 = vld [vmem:[%s5488_s2 + $0x50] ss:$0 sps:$4 sm:$0x33]  }
   0xa   :  { %v164_v30 = vsel %vm152_vm1, %v159_v22, %v163_v23  ;;  %v172_v46 = vsel %vm152_vm1, %v167_v38, %v171_v37  ;;  %v225_v49 = vshll.u32 %v4103_v41, 16  ;;  %v179_v50 = vrot.slane %v177_v43, 1  ;;  %v4107_v57 = vld [vmem:[%s5488_s2 + $0x20] sm:$0xff]   ;;  %v4111_v10 = vld [vmem:[%s5487_s4 + $0x10] sm:$0xff]   ;;  %v4114_v15 = vld [vmem:[%s5487_s4 + $0x8] sm:$0xff]  }
   0xb   :  { %3530 = vmatpush3.bf16.msra.mxu0 %v4085_v3  ;;  %4075 = vmatpush3.bf16.msra.mxu1 %v4085_v3  ;;  %v220_v47 = vsel %vm152_vm1, %v215_v39, %v219_v40  ;;  %v175_v54 = vor.u32 %v173_v45, %v171_v37  ;;  %v223_v55 = vor.u32 %v221_v48, %v219_v40  ;;  %v4106_v58 = vld [vmem:[%s5487_s4 + $0x20] sm:$0xff]   ;;  %v181_v59 = vshrl.u32 %v4102_v35, 16  ;;  %v4109_v3 = vld [vmem:[%s5487_s4 + $0x18] sm:$0xff]   ;;  %v4116_v16 = vld [vmem:[%s5487_s4 + $0x88] sm:$0xff]  }
   0xc   :  { %3531 = vmatprep.subr.bf16.mxu0 %v4224_v0  ;;  %4068 = vmatprep.subr.bf16.mxu1 %v4224_v0  ;;  %v227_v56 = vrot.slane %v225_v49, 1  ;;  %v229_v60 = vshrl.u32 %v4103_v41, 16  ;;  %v185_v63 = vshll.u32 %v4107_v57, 16  ;;  %v233_v1 = vshll.u32 %v4369_v53, 16  ;;  %v4115_v22 = vld [vmem:[%s5487_s4] sm:$0xff]   ;;  %v4123_v37 = vld [vmem:[%s5487_s4 + $0xf0] sm:$0xff]  }
   0xd   :  { %v180_v61 = vsel %vm152_vm1, %v175_v54, %v179_v50  ;;  %v189_v11 = vshrl.u32 %v4107_v57, 16  ;;  %v237_v19 = vshrl.u32 %v4369_v53, 16  ;;  %v4117_v26 = vld [vmem:[%s5489_s3] sm:$0xff]   ;;  %v4121_v39 = vld [vmem:[%s5487_s4 + $0x138] sm:$0xff]   ;;  %v4124_v45 = vld [vmem:[%s5487_s4 + $0x130] sm:$0xff]  }
   0xe   :  { %v228_v62 = vsel %vm152_vm1, %v223_v55, %v227_v56  ;;  %v187_v6 = vrot.slane %v185_v63, 1  ;;  %v231_v7 = vor.u32 %v229_v60, %v227_v56  ;;  %v235_v8 = vrot.slane %v233_v1, 1  ;;  %v4128_v55 = vld [vmem:[%s5489_s3 + $0x20] sm:$0xff]   ;;  %v4136_v57 = vld [vmem:[%s5487_s4 + $0xd0] sm:$0xff]   ;;  %v4140_v63 = vld [vmem:[%s5487_s4 + $0xc8] sm:$0xff]  }
   0xf   :  { %3532 = vmatpush3.bf16.msra.mxu0 %v4086_v4  ;;  %4076 = vmatpush3.bf16.msra.mxu1 %v4086_v4  ;;  %v4113_v4 = vld [vmem:[%s5488_s2 + $0x28] sm:$0xff]   ;;  %v675_v29 = vshll.u32 %v4117_v26, 16  ;;  %v673_v32 = vshrl.u32 %v4117_v26, 16  ;;  %v4131_v56 = vld [vmem:[%s5487_s4 + $0x120] sm:$0xff]   ;;  %v704_v60 = vshll.u32 %v4128_v55, 16 }
  0x10   :  { %3533 = vmatprep.subr.bf16.mxu0 %v4224_v0  ;;  %4069 = vmatprep.subr.bf16.mxu1 %v4224_v0  ;;  %v193_v12 = vshll.u32 %v4113_v4, 16  ;;  %v236_v14 = vsel %vm152_vm1, %v231_v7, %v235_v8  ;;  %v191_v20 = vor.u32 %v189_v11, %v187_v6  ;;  %v239_v23 = vor.u32 %v237_v19, %v235_v8 }
  0x11   :  { %v197_v25 = vshrl.u32 %v4113_v4, 16  ;;  %v677_v33 = vrot.slane %v675_v29, 1  ;;  %v708_v8 = vshrl.u32 %v4128_v55, 16 }
  0x12   :  { %v195_v17 = vrot.slane %v193_v12, 1 }
  0x13   :  { %3534 = vmatpush3.bf16.msra.mxu0 %v4087_v5  ;;  %4077 = vmatpush3.bf16.msra.mxu1 %v4087_v5  ;;  %v183_v5 = vor.u32 %v181_v59, %v179_v50 }
  0x14   :  { %3535 = vmatprep.subr.bf16.mxu0 %v4224_v0  ;;  %4070 = vmatprep.subr.bf16.mxu1 %v4224_v0  ;;  %v196_v24 = vsel %vm152_vm1, %v191_v20, %v195_v17  ;;  %v199_v27 = vor.u32 %v197_v25, %v195_v17  ;;  %v4135_v17 = vld [vmem:[%s5489_s3 + $0x38] sm:$0xff]   ;;  %v960_v20 = vld [vmem:[%s5490_s1 + $0x8] sm:$0xf] }
  0x17   :  { %3536 = vmatpush3.bf16.msra.mxu0 %v4088_v9  ;;  %4078 = vmatpush3.bf16.msra.mxu1 %v4088_v9  ;;  %v4112_v9 = vld [vmem:[%s5487_s4 + $0x90] sm:$0xff]  }
  0x18   :  { %3537 = vmatprep.subr.bf16.mxu0 %v4224_v0  ;;  %4071 = vmatprep.subr.bf16.mxu1 %v4224_v0 }
  0x1b   :  { %3538 = vmatpush3.bf16.msra.mxu0 %v4089_v13  ;;  %4079 = vmatpush3.bf16.msra.mxu1 %v4089_v13  ;;  %v188_v13 = vsel %vm152_vm1, %v183_v5, %v187_v6  ;;  %v4132_v5 = vld [vmem:[%s5489_s3 + $0x30] sm:$0xff]   ;;  %v4144_v6 = vld [vmem:[%s5487_s4 + $0xc0] sm:$0xff]  }
  0x1c   :  { %3539 = vmatprep.subr.bf16.mxu0 %v4224_v0  ;;  %4072 = vmatprep.subr.bf16.mxu1 %v4224_v0  ;;  %v720_v11 = vshll.u32 %v4132_v5, 16  ;;  %v724_v19 = vshrl.u32 %v4132_v5, 16 }
  0x1f   :  { %3540 = vmatpush3.bf16.msra.mxu0 %v4090_v21  ;;  %4080 = vmatpush3.bf16.msra.mxu1 %v4090_v21  ;;  %v4118_v21 = vld [vmem:[%s5487_s4 + $0x80] sm:$0xff]  }
  0x20   :  { %3645 = vmatprep.subr.bf16.mxu0 %v4224_v0  ;;  %3585 = vmatprep.subr.bf16.mxu1 %v4224_v0 }
  0x22   :  { %3542 = vmatmul.mubr.bf16.vlgmr.msra.gmra.mxu0 %v164_v30  ;;  %3566 = vmatmul.mubr.bf16.vlgmr.msra.gmra.mxu1 %v212_v31  ;;  %v204_v30 = vsel %vm152_vm1, %v199_v27, %v4310_v18  ;;  %v4122_v18 = vld [vmem:[%s5489_s3 + $0x10] sm:$0xff]  }
  0x23   :  { %3646 = vmatpush3.bf16.msra.mxu0 %v4095_v28  ;;  %3545 = vmatprep.mubr.msk.bf16.mxu0 %vm4225_vm0, %v4224_v0  ;;  %v4120_v28 = vld [vmem:[%s5489_s3 + $0x8] sm:$0xff]   ;;  %v688_v41 = vshll.u32 %v4122_v18, 16  ;;  %v692_v49 = vshrl.u32 %v4122_v18, 16 }
  0x24   :  { %3647 = vmatprep.subr.bf16.mxu0 %v4224_v0  ;;  %3569 = vmatprep.mubr.msk.bf16.mxu1 %vm4225_vm0, %v4224_v0  ;;  %v680_v31 = vshll.u32 %v4120_v28, 16  ;;  %v684_v40 = vshrl.u32 %v4120_v28, 16 }
  0x25   :  { %3586 = vmatpush3.bf16.msra.mxu1 %v4096_v34  ;;  %v4119_v34 = vld [vmem:[%s5487_s4 + $0xf8] sm:$0xff]  }
  0x26   :  { %3587 = vmatprep.subr.bf16.mxu1 %v4224_v0  ;;  %v682_v35 = vrot.slane %v680_v31, 1 }
  0x27   :  { %3648 = vmatpush3.bf16.msra.mxu0 %v4097_v36  ;;  %v678_v36 = vor.u32 %v677_v33, %v673_v32  ;;  %v4137_v32 = vld [vmem:[%s5489_s3 + $0x40] sm:$0xff]   ;;  %v732_v33 = vshrl.u32 %v4135_v17, 16 }
  0x28   :  { %3649 = vmatprep.subr.bf16.mxu0 %v4224_v0  ;;  %v686_v43 = vor.u32 %v684_v40, %v682_v35  ;;  %v4139_v40 = vld [vmem:[%s5489_s3 + $0x48] sm:$0xff]  }
  0x29   :  { %3588 = vmatpush3.bf16.msra.mxu1 %v4100_v42  ;;  %v683_v38 = vsel %vm152_vm1, %v678_v36, %v682_v35  ;;  %v4126_v42 = vld [vmem:[%s5487_s4 + $0xe8] sm:$0xff]   ;;  %v736_v36 = vshll.u32 %v4137_v32, 16 }
  0x2a   :  { %3546 = vmatmul.mubr.bf16.gmra.mxu0 %v172_v46  ;;  %3570 = vmatmul.mubr.bf16.gmra.mxu1 %v220_v47  ;;  %v4125_v46 = vld [vmem:[%s5489_s3 + $0x18] sm:$0xff]   ;;  %v4130_v47 = vld [vmem:[%s5487_s4 + $0xe0] sm:$0xff]  }
  0x2b   :  { %3650 = vmatpush3.bf16.msra.mxu0 %v4101_v44  ;;  %3549 = vmatprep.mubr.msk.bf16.mxu0 %vm4225_vm0, %v4224_v0  ;;  %v690_v44 = vrot.slane %v688_v41, 1  ;;  %v696_v50 = vshll.u32 %v4125_v46, 16  ;;  %v740_v41 = vshrl.u32 %v4137_v32, 16 }
  0x2c   :  { %3573 = vmatprep.mubr.msk.bf16.mxu1 %vm4225_vm0, %v4224_v0  ;;  %3589 = vmatprep.subr.bf16.mxu1 %v4224_v0 }
  0x2d   :  { %3590 = vmatpush3.bf16.msra.mxu1 %v4104_v51  ;;  %3651 = vmatprep.subr.bf16.mxu0 %v4224_v0  ;;  %v691_v48 = vsel %vm152_vm1, %v686_v43, %v690_v44  ;;  %v4127_v51 = vld [vmem:[%s5487_s4 + $0x128] sm:$0xff]   ;;  %v694_v53 = vor.u32 %v692_v49, %v690_v44  ;;  %v698_v54 = vrot.slane %v696_v50, 1  ;;  %v744_v44 = vshll.u32 %v4139_v40, 16  ;;  %v4143_v49 = vld [vmem:[%s5489_s3 + $0x50] ss:$0 sps:$4 sm:$0x33]  }
  0x2e   :  { %3591 = vmatprep.subr.bf16.mxu1 %v4224_v0  ;;  %v959_v50 = vld [vmem:[%s5490_s1 + $0x4] sm:$0xf] }
  0x2f   :  { %3652 = vmatpush3.bf16.msra.mxu0 %v4105_v52  ;;  %v4133_v52 = vld [vmem:[%s5487_s4 + $0xd8] sm:$0xff]   ;;  %v699_v59 = vsel %vm152_vm1, %v694_v53, %v698_v54 }
  0x30   :  { %3653 = vmatprep.subr.bf16.mxu0 %v4224_v0 }
  0x31   :  { %3592 = vmatpush3.bf16.msra.mxu1 %v4106_v58  ;;  %v700_v58 = vshrl.u32 %v4125_v46, 16 }
  0x32   :  { %3550 = vmatmul.mubr.bf16.gmra.mxu0 %v180_v61  ;;  %3574 = vmatmul.mubr.bf16.gmra.mxu1 %v228_v62  ;;  %v4129_v61 = vld [vmem:[%s5489_s3 + $0x28] sm:$0xff]   ;;  %v4134_v62 = vld [vmem:[%s5487_s4 + $0x118] sm:$0xff]  }
  0x33   :  { %3553 = vmatprep.mubr.msk.bf16.mxu0 %vm4225_vm0, %v4224_v0  ;;  %3577 = vmatprep.mubr.msk.bf16.mxu1 %vm4225_vm0, %v4224_v0  ;;  %v702_v1 = vor.u32 %v700_v58, %v698_v54  ;;  %v712_v4 = vshll.u32 %v4129_v61, 16  ;;  %v752_v54 = vshll.u32 %v4143_v49, 16 }
  0x34   :  { %3593 = vmatprep.subr.bf16.mxu1 %v4224_v0  ;;  %3654 = vmatpush3.bf16.msra.mxu0 %v4110_v2  ;;  %v706_v2 = vrot.slane %v704_v60, 1 }
  0x35   :  { %3594 = vmatpush3.bf16.msra.mxu1 %v4109_v3  ;;  %3655 = vmatprep.subr.bf16.mxu0 %v4224_v0  ;;  %v4138_v3 = vld [vmem:[%s5487_s4 + $0x110] sm:$0xff]  }
  0x36   :  { %3595 = vmatprep.subr.bf16.mxu1 %v4224_v0  ;;  %v707_v7 = vsel %vm152_vm1, %v702_v1, %v706_v2  ;;  %v710_v12 = vor.u32 %v708_v8, %v706_v2 }
  0x38   :  { %3656 = vmatpush3.bf16.msra.mxu0 %v4112_v9  ;;  %v4141_v9 = vld [vmem:[%s5487_s4 + $0x108] sm:$0xff]  }
  0x39   :  { %3596 = vmatpush3.bf16.msra.mxu1 %v4111_v10  ;;  %3657 = vmatprep.subr.bf16.mxu0 %v4224_v0  ;;  %v714_v10 = vrot.slane %v712_v4, 1 }
  0x3a   :  { %3554 = vmatmul.mubr.bf16.gmra.mxu0 %v188_v13  ;;  %3578 = vmatmul.mubr.bf16.gmra.mxu1 %v236_v14  ;;  %v4145_v13 = vld [vmem:[%s5487_s4 + $0x100] sm:$0xff]   ;;  %v716_v14 = vshrl.u32 %v4129_v61, 16 }
  0x3b   :  { %3557 = vmatprep.mubr.msk.bf16.mxu0 %vm4225_vm0, %v4224_v0  ;;  %3581 = vmatprep.mubr.msk.bf16.mxu1 %vm4225_vm0, %v4224_v0 }
  0x3c   :  { %3597 = vmatprep.subr.bf16.mxu1 %v4224_v0  ;;  %3658 = vmatpush3.bf16.msra.mxu0 %v4116_v16  ;;  %v715_v16 = vsel %vm152_vm1, %v710_v12, %v714_v10  ;;  %v4148_v12 = vld [vmem:[%s5487_s4 + $0x178] sm:$0xff]  }
  0x3d   :  { %3598 = vmatpush3.bf16.msra.mxu1 %v4114_v15  ;;  %3659 = vmatprep.subr.bf16.mxu0 %v4224_v0  ;;  %v722_v15 = vrot.slane %v720_v11, 1  ;;  %v4151_v11 = vld [vmem:[%s5491_s0 + $0xc] sm:$0xff]  }
  0x3e   :  { %3599 = vmatprep.subr.bf16.mxu1 %v4224_v0 }
  0x40   :  { %3660 = vmatpush3.bf16.msra.mxu0 %v4118_v21  ;;  %v718_v21 = vor.u32 %v716_v14, %v714_v10  ;;  %v4150_v10 = vld [vmem:[%s5491_s0 + $0x4] sm:$0xfe]  }
  0x41   :  { %3600 = vmatpush3.bf16.msra.mxu1 %v4115_v22  ;;  %3765 = vmatprep.subr.bf16.mxu0 %v4224_v0  ;;  %v1650_v22 = vld [vmem:[%s5490_s1 + $0x4] sm:$0xe] }
  0x42   :  { %3558 = vmatmul.mubr.bf16.gmra.mxu0 %v196_v24  ;;  %3582 = vmatmul.mubr.bf16.gmra.mxu1 %v239_v23  ;;  %v728_v23 = vshll.u32 %v4135_v17, 16  ;;  %v4568_v24 = vld [vmem:[%s5490_s1 + $0xc] sm:$0xff]   ;;  %v3148_v25 = vcombine.low %v1650_v22, %v960_v20 }
  0x43   :  { %3561 = vmatprep.mubr.msk.bf16.mxu0 %vm4225_vm0, %v4224_v0  ;;  %3601 = vmatprep.mubr.msk.bf16.mxu1 %vm4225_vm0, %v4224_v0  ;;  %v1058_v2 = vshll.u32 %v4568_v24, 16  ;;  %v1062_v8 = vshrl.u32 %v4568_v24, 16 }
  0x44   :  { %3705 = vmatprep.subr.bf16.mxu1 %v4224_v0  ;;  %v1671_v27 = vrot.slane %v3148_v25, 1  ;;  %v730_v31 = vrot.slane %v728_v23, 1  ;;  %v4159_v25 = vld [vmem:[%s5487_s4 + $0x168] sm:$0xff]  }
  0x4a   :  { %3562 = vmatmul.mubr.bf16.gmra.mxu0 %v204_v30  ;;  %3602 = vmatmul.mubr.bf16.vlgmr.msra.gmra.mxu1 %v4117_v26  ;;  %v723_v26 = vsel %vm152_vm1, %v718_v21, %v722_v15  ;;  %v726_v30 = vor.u32 %v724_v19, %v722_v15  ;;  %v1429_v15 = vrot.slane %v4150_v10, 1  ;;  %v4152_v21 = vld [vmem:[%s5487_s4 + $0x1b8] sm:$0xff]  }
  0x4b   :  { %3605 = vmatprep.mubr.msk.bf16.mxu1 %vm4225_vm0, %v4224_v0  ;;  %3661 = vmatprep.mubr.msk.bf16.mxu0 %vm4225_vm0, %v4224_v0 }
  0x4c   :  { %3706 = vmatpush3.bf16.msra.mxu1 %v4119_v34  ;;  %v4585_v34 = vld [vmem:[%s5490_s1 + $0x14] sm:$0xff]   ;;  %v731_v35 = vsel %vm152_vm1, %v726_v30, %v730_v31 }
  0x4d   :  { %3707 = vmatprep.subr.bf16.mxu1 %v4224_v0  ;;  %v1070_v22 = vshrl.u32 %v4585_v34, 16  ;;  %v4156_v30 = vld [vmem:[%s5487_s4 + $0x1b0] sm:$0xff]  }
  0x50   :  { %3708 = vmatpush3.bf16.msra.mxu1 %v4123_v37 }
  0x51   :  { %3709 = vmatprep.subr.bf16.mxu1 %v4224_v0 }
  0x52   :  { %3606 = vmatmul.mubr.bf16.gmra.mxu1 %v4120_v28  ;;  %3662 = vmatmul.mubr.bf16.vlgmr.msra.gmra.mxu0 %v683_v38  ;;  %v1672_v28 = vrot.slane %v4568_v24, 1  ;;  %v734_v38 = vor.u32 %v732_v33, %v730_v31  ;;  %v4154_v24 = vld [vmem:[%s5491_s0 + $0x14] sm:$0xff]   ;;  %v4165_v31 = vld [vmem:[%s5487_s4 + $0x160] sm:$0xff]  }
  0x53   :  { %3766 = vmatpush3.bf16.msra.mxu0 %v4121_v39  ;;  %3609 = vmatprep.mubr.msk.bf16.mxu1 %vm4225_vm0, %v4224_v0  ;;  %v738_v39 = vrot.slane %v736_v36, 1  ;;  %v4158_v36 = vld [vmem:[%s5491_s0 + $0x1c] sm:$0xff]  }
  0x54   :  { %3665 = vmatprep.mubr.msk.bf16.mxu0 %vm4225_vm0, %v4224_v0  ;;  %3767 = vmatprep.subr.bf16.mxu0 %v4224_v0  ;;  %v4573_v29 = vsel %vm1428_vm2, %v1671_v27, %v1672_v28 }
  0x55   :  { %3710 = vmatpush3.bf16.msra.mxu1 %v4126_v42  ;;  %v4602_v42 = vld [vmem:[%s5490_s1 + $0x1c] sm:$0xff]   ;;  %v739_v43 = vsel %vm152_vm1, %v734_v38, %v738_v39 }
  0x56   :  { %3711 = vmatprep.subr.bf16.mxu1 %v4224_v0  ;;  %v1074_v23 = vshll.u32 %v4602_v42, 16  ;;  %v4169_v38 = vld [vmem:[%s5487_s4 + $0x158] sm:$0xff]  }
  0x57   :  { %3768 = vmatpush3.bf16.msra.mxu0 %v4124_v45  ;;  %v1676_v45 = vrot.slane %v4602_v42, 1 }
  0x58   :  { %3769 = vmatprep.subr.bf16.mxu0 %v4224_v0  ;;  %v1076_v27 = vrot.slane %v1074_v23, 1 }
  0x59   :  { %3712 = vmatpush3.bf16.msra.mxu1 %v4130_v47  ;;  %v742_v47 = vor.u32 %v740_v41, %v738_v39  ;;  %v1434_v41 = vrot.slane %v4158_v36, 1 }
  0x5a   :  { %3610 = vmatmul.mubr.bf16.gmra.mxu1 %v4122_v18  ;;  %3666 = vmatmul.mubr.bf16.gmra.mxu0 %v691_v48  ;;  %v1674_v18 = vrot.slane %v4585_v34, 1  ;;  %v746_v48 = vrot.slane %v744_v44, 1  ;;  %v4173_v44 = vld [vmem:[%s5487_s4 + $0x150] sm:$0xff]  }
  0x5b   :  { %3613 = vmatprep.mubr.msk.bf16.mxu1 %vm4225_vm0, %v4224_v0  ;;  %3669 = vmatprep.mubr.msk.bf16.mxu0 %vm4225_vm0, %v4224_v0 }
  0x5c   :  { %3770 = vmatpush3.bf16.msra.mxu0 %v4127_v51  ;;  %3713 = vmatprep.subr.bf16.mxu1 %v4224_v0  ;;  %v4590_v37 = vsel %vm1428_vm2, %v1672_v28, %v1674_v18  ;;  %v4622_v51 = vld [vmem:[%s5490_s1 + $0x24] sm:$0xff]   ;;  %v747_v53 = vsel %vm152_vm1, %v742_v47, %v746_v48  ;;  %v1432_v28 = vrot.slane %v4154_v24, 1  ;;  %v4172_v24 = vld [vmem:[%s5491_s0 + $0x3c] sm:$0xff]  }
  0x5d   :  { %3771 = vmatprep.subr.bf16.mxu0 %v4224_v0  ;;  %3714 = vmatpush3.bf16.msra.mxu1 %v4133_v52  ;;  %v748_v52 = vshrl.u32 %v4139_v40, 16 }
  0x5e   :  { %3715 = vmatprep.subr.bf16.mxu1 %v4224_v0  ;;  %v1435_v47 = vsel %vm1428_vm2, %v1432_v28, %v1434_v41 }
  0x5f   :  { %v750_v58 = vor.u32 %v748_v52, %v746_v48  ;;  %v1086_v48 = vshrl.u32 %v4622_v51, 16  ;;  %v4170_v52 = vld [vmem:[%s5487_s4 + $0x198] sm:$0xff]  }
  0x60   :  { %3772 = vmatpush3.bf16.msra.mxu0 %v4131_v56  ;;  %v1678_v56 = vrot.slane %v4622_v51, 1 }
  0x61   :  { %3773 = vmatprep.subr.bf16.mxu0 %v4224_v0  ;;  %3716 = vmatpush3.bf16.msra.mxu1 %v4136_v57 }
  0x62   :  { %3614 = vmatmul.mubr.bf16.gmra.mxu1 %v4125_v46  ;;  %3670 = vmatmul.mubr.bf16.gmra.mxu0 %v699_v59  ;;  %v4607_v46 = vsel %vm1428_vm2, %v1674_v18, %v1676_v45  ;;  %v4629_v57 = vsel %vm1428_vm2, %v1676_v45, %v1678_v56  ;;  %v754_v59 = vrot.slane %v752_v54, 1  ;;  %v4160_v18 = vld [vmem:[%s5487_s4 + $0x1a8] sm:$0xff]  }
  0x63   :  { %3617 = vmatprep.mubr.msk.bf16.mxu1 %vm4225_vm0, %v4224_v0  ;;  %3673 = vmatprep.mubr.msk.bf16.mxu0 %vm4225_vm0, %v4224_v0 }
  0x64   :  { %3774 = vmatpush3.bf16.msra.mxu0 %v4134_v62  ;;  %3717 = vmatprep.subr.bf16.mxu1 %v4224_v0  ;;  %v755_v62 = vsel %vm152_vm1, %v750_v58, %v754_v59 }
  0x65   :  { %3775 = vmatprep.subr.bf16.mxu0 %v4224_v0  ;;  %3718 = vmatpush3.bf16.msra.mxu1 %v4140_v63 }
  0x66   :  { %3719 = vmatprep.subr.bf16.mxu1 %v4224_v0 }
  0x68   :  { %3776 = vmatpush3.bf16.msra.mxu0 %v4138_v3  ;;  %v756_v3 = vshrl.u32 %v4143_v49, 16 }
  0x69   :  { %3777 = vmatprep.subr.bf16.mxu0 %v4224_v0  ;;  %3720 = vmatpush3.bf16.msra.mxu1 %v4144_v6 }
  0x6a   :  { %3618 = vmatmul.mubr.bf16.gmra.mxu1 %v4128_v55  ;;  %3674 = vmatmul.mubr.bf16.gmra.mxu0 %v707_v7  ;;  %v3078_v55 = vcombine.low %v959_v50, %v960_v20  ;;  %v758_v6 = vor.u32 %v756_v3, %v754_v59  ;;  %v4162_v50 = vld [vmem:[%s5491_s0 + $0x24] sm:$0xff]   ;;  %v4743_v59 = vld [vmem:[%s5490_s1 + $0x34] sm:$0xff]   ;;  %v4164_v3 = vld [vmem:[%s5491_s0 + $0x2c] sm:$0xff]  }
  0x6b   :  { %3621 = vmatprep.mubr.msk.bf16.mxu1 %vm4225_vm0, %v4224_v0  ;;  %3677 = vmatprep.mubr.msk.bf16.mxu0 %vm4225_vm0, %v4224_v0  ;;  %v1436_v58 = vrot.slane %v4162_v50, 1 }
  0x6c   :  { %3778 = vmatpush3.bf16.msra.mxu0 %v4141_v9  ;;  %3825 = vmatprep.subr.bf16.mxu1 %v4224_v0  ;;  %v1053_v60 = vshll.u32 %v3078_v55, 16  ;;  %v1051_v63 = vshrl.u32 %v3078_v55, 16  ;;  %v1066_v9 = vshll.u32 %v4585_v34, 16  ;;  %v1078_v34 = vshrl.u32 %v4602_v42, 16  ;;  %v4711_v42 = vld [vmem:[%s5490_s1 + $0x2c] sm:$0xff]  }
  0x6d   :  { %3779 = vmatprep.subr.bf16.mxu0 %v4224_v0  ;;  %v1090_v49 = vshll.u32 %v4711_v42, 16 }
  0x6e   :  { %v1055_v1 = vrot.slane %v1053_v60, 1  ;;  %v1068_v14 = vrot.slane %v1066_v9, 1  ;;  %v1080_v39 = vor.u32 %v1078_v34, %v1076_v27  ;;  %v4176_v60 = vld [vmem:[%s5487_s4 + $0x190] sm:$0xff]   ;;  %v4183_v9 = vld [vmem:[%s5487_s4 + $0x180] sm:$0xff]  }
  0x6f   :  { %v1092_v55 = vrot.slane %v1090_v49, 1  ;;  %v4175_v34 = vld [vmem:[%s5491_s0 + $0x44] sm:$0xff]  }
  0x70   :  { %3780 = vmatpush3.bf16.msra.mxu0 %v4145_v13  ;;  %v1056_v4 = vor.u32 %v1055_v1, %v1051_v63  ;;  %v1437_v63 = vsel %vm1428_vm2, %v1434_v41, %v1436_v58  ;;  %v1094_v1 = vshrl.u32 %v4711_v42, 16 }
  0x71   :  { %3885 = vmatprep.subr.bf16.mxu0 %v4224_v0 }
  0x72   :  { %3622 = vmatmul.mubr.bf16.gmra.mxu1 %v4129_v61  ;;  %3678 = vmatmul.mubr.bf16.gmra.mxu0 %v715_v16  ;;  %v4142_v61 = vld [vmem:[%s5489_s3 + $0x50] ss:$0 sps:$4 sm:$0x11]   ;;  %v1430_v16 = vrot.slane %v4151_v11, 1 }
  0x73   :  { %3625 = vmatprep.mubr.msk.bf16.mxu1 %vm4225_vm0, %v4224_v0  ;;  %3681 = vmatprep.mubr.msk.bf16.mxu0 %vm4225_vm0, %v4224_v0 }
  0x74   :  { %v1431_v20 = vsel %vm1428_vm2, %v1429_v15, %v1430_v16  ;;  %v1433_v33 = vsel %vm1428_vm2, %v1430_v16, %v1432_v28  ;;  %v4810_v28 = vld [vmem:[%s5490_s1 + $0x4c] sm:$0xff]  }
  0x75   :  { %v1126_v41 = vshrl.u32 %v4810_v28, 16 }
  0x7a   :  { %3626 = vmatmul.mubr.bf16.gmra.mxu1 %v4132_v5  ;;  %3682 = vmatmul.mubr.bf16.gmra.mxu0 %v723_v26  ;;  %v1060_v5 = vrot.slane %v1058_v2, 1  ;;  %v1072_v26 = vor.u32 %v1070_v22, %v1068_v14  ;;  %v1098_v2 = vshll.u32 %v4743_v59, 16 }
  0x7b   :  { %3629 = vmatprep.mubr.msk.bf16.mxu1 %vm4225_vm0, %v4224_v0  ;;  %3685 = vmatprep.mubr.msk.bf16.mxu0 %vm4225_vm0, %v4224_v0 }
  0x7c   :  { %v1061_v7 = vsel %vm152_vm1, %v1056_v4, %v1060_v5  ;;  %v1064_v13 = vor.u32 %v1062_v8, %v1060_v5  ;;  %v4180_v4 = vld [vmem:[%s5487_s4 + $0x188] sm:$0xff]   ;;  %v1096_v5 = vor.u32 %v1094_v1, %v1092_v55  ;;  %v4772_v8 = vld [vmem:[%s5490_s1 + $0x3c] sm:$0xff]  }
  0x7d   :  { %v1110_v22 = vshrl.u32 %v4772_v8, 16 }
  0x7e   :  { %v1069_v19 = vsel %vm152_vm1, %v1064_v13, %v1068_v14  ;;  %v1106_v13 = vshll.u32 %v4772_v8, 16  ;;  %v4168_v14 = vld [vmem:[%s5491_s0 + $0x34] sm:$0xff]  }
  0x80   :  { %v1108_v16 = vrot.slane %v1106_v13, 1 }
  0x82   :  { %3630 = vmatmul.mubr.bf16.gmra.mxu1 %v4135_v17  ;;  %3686 = vmatmul.mubr.bf16.gmra.mxu0 %v731_v35  ;;  %v4155_v17 = vld [vmem:[%s5487_s4 + $0x170] sm:$0xff]   ;;  %v1082_v35 = vshll.u32 %v4622_v51, 16  ;;  %v4208_v51 = vld [vmem:[%s5487_s4 + $0x208] sm:$0xff]  }
  0x83   :  { %3633 = vmatprep.mubr.msk.bf16.mxu1 %vm4225_vm0, %v4224_v0  ;;  %3689 = vmatprep.mubr.msk.bf16.mxu0 %vm4225_vm0, %v4224_v0 }
  0x8a   :  { %3634 = vmatmul.mubr.bf16.gmra.mxu1 %v4137_v32  ;;  %3690 = vmatmul.mubr.bf16.gmra.mxu0 %v739_v43  ;;  %v1077_v32 = vsel %vm152_vm1, %v1072_v26, %v1076_v27  ;;  %v4166_v43 = vld [vmem:[%s5487_s4 + $0x1a0] sm:$0xff]   ;;  %v1442_v27 = vrot.slane %v4172_v24, 1 }
  0x8b   :  { %3637 = vmatprep.mubr.msk.bf16.mxu1 %vm4225_vm0, %v4224_v0  ;;  %3693 = vmatprep.mubr.msk.bf16.mxu0 %vm4225_vm0, %v4224_v0 }
  0x92   :  { %3638 = vmatmul.mubr.bf16.gmra.mxu1 %v4139_v40  ;;  %3694 = vmatmul.mubr.bf16.gmra.mxu0 %v747_v53  ;;  %v1084_v40 = vrot.slane %v1082_v35, 1  ;;  %v4179_v53 = vld [vmem:[%s5487_s4 + $0x148] sm:$0xff]  }
  0x93   :  { %3641 = vmatprep.mubr.msk.bf16.mxu1 %vm4225_vm0, %v4224_v0  ;;  %3697 = vmatprep.mubr.msk.bf16.mxu0 %vm4225_vm0, %v4224_v0 }
  0x94   :  { %v1085_v45 = vsel %vm152_vm1, %v1080_v39, %v1084_v40  ;;  %v1088_v54 = vor.u32 %v1086_v48, %v1084_v40 }
  0x9a   :  { %3642 = vmatmul.mubr.bf16.gmra.mxu1 %v4142_v61  ;;  %3698 = vmatmul.mubr.bf16.gmra.mxu0 %v755_v62  ;;  %v4182_v61 = vld [vmem:[%s5487_s4 + $0x140] sm:$0xff]   ;;  %v1093_v62 = vsel %vm152_vm1, %v1088_v54, %v1092_v55 }
  0x9b   :  { %3701 = vmatprep.mubr.msk.bf16.mxu0 %vm4225_vm0, %v4224_v0  ;;  %3721 = vmatprep.mubr.msk.bf16.mxu1 %vm4225_vm0, %v4224_v0 }
  0xa2   :  { %3702 = vmatmul.mubr.bf16.gmra.mxu0 %v758_v6  ;;  %3722 = vmatmul.mubr.bf16.vlgmr.msra.gmra.mxu1 %v1061_v7  ;;  %v1100_v6 = vrot.slane %v1098_v2, 1  ;;  %v1438_v7 = vrot.slane %v4164_v3, 1 }
  0xa3   :  { %3725 = vmatprep.mubr.msk.bf16.mxu1 %vm4225_vm0, %v4224_v0  ;;  %3781 = vmatprep.mubr.msk.bf16.mxu0 %vm4225_vm0, %v4224_v0 }
  0xa4   :  { %3826 = vmatpush3.bf16.msra.mxu1 %v4148_v12  ;;  %v1101_v10 = vsel %vm152_vm1, %v1096_v5, %v1100_v6  ;;  %v1439_v11 = vsel %vm1428_vm2, %v1436_v58, %v1438_v7  ;;  %v1102_v12 = vshrl.u32 %v4743_v59, 16 }
  0xa5   :  { %3827 = vmatprep.subr.bf16.mxu1 %v4224_v0 }
  0xa6   :  { %v1104_v15 = vor.u32 %v1102_v12, %v1100_v6 }
  0xa8   :  { %3828 = vmatpush3.bf16.msra.mxu1 %v4155_v17  ;;  %v1440_v17 = vrot.slane %v4168_v14, 1 }
  0xa9   :  { %3829 = vmatprep.subr.bf16.mxu1 %v4224_v0 }
  0xaa   :  { %3726 = vmatmul.mubr.bf16.gmra.mxu1 %v1069_v19  ;;  %3782 = vmatmul.mubr.bf16.vlgmr.msra.gmra.mxu0 %v1431_v20  ;;  %v4794_v19 = vld [vmem:[%s5490_s1 + $0x44] sm:$0xff]   ;;  %v1109_v20 = vsel %vm152_vm1, %v1104_v15, %v1108_v16 }
  0xab   :  { %3886 = vmatpush3.bf16.msra.mxu0 %v4152_v21  ;;  %3729 = vmatprep.mubr.msk.bf16.mxu1 %vm4225_vm0, %v4224_v0  ;;  %v1441_v21 = vsel %vm1428_vm2, %v1438_v7, %v1440_v17  ;;  %v1114_v23 = vshll.u32 %v4794_v19, 16  ;;  %v1892_v7 = vld [vmem:[%s5489_s3 + $0x4] sm:$0xf] }
  0xac   :  { %3785 = vmatprep.mubr.msk.bf16.mxu0 %vm4225_vm0, %v4224_v0  ;;  %3887 = vmatprep.subr.bf16.mxu0 %v4224_v0 }
  0xad   :  { %3830 = vmatpush3.bf16.msra.mxu1 %v4159_v25  ;;  %v1112_v25 = vor.u32 %v1110_v22, %v1108_v16  ;;  %v1116_v26 = vrot.slane %v1114_v23, 1 }
  0xae   :  { %3831 = vmatprep.subr.bf16.mxu1 %v4224_v0 }
  0xaf   :  { %3888 = vmatpush3.bf16.msra.mxu0 %v4156_v30  ;;  %v1117_v30 = vsel %vm152_vm1, %v1112_v25, %v1116_v26 }
  0xb0   :  { %3889 = vmatprep.subr.bf16.mxu0 %v4224_v0 }
  0xb1   :  { %3832 = vmatpush3.bf16.msra.mxu1 %v4165_v31  ;;  %v1443_v31 = vsel %vm1428_vm2, %v1440_v17, %v1442_v27 }
  0xb2   :  { %3730 = vmatmul.mubr.bf16.gmra.mxu1 %v1077_v32  ;;  %3786 = vmatmul.mubr.bf16.gmra.mxu0 %v1433_v33  ;;  %v1118_v32 = vshrl.u32 %v4794_v19, 16  ;;  %v1122_v33 = vshll.u32 %v4810_v28, 16 }
  0xb3   :  { %3733 = vmatprep.mubr.msk.bf16.mxu1 %vm4225_vm0, %v4224_v0  ;;  %3789 = vmatprep.mubr.msk.bf16.mxu0 %vm4225_vm0, %v4224_v0 }
  0xb4   :  { %3890 = vmatpush3.bf16.msra.mxu0 %v4160_v18  ;;  %3833 = vmatprep.subr.bf16.mxu1 %v4224_v0  ;;  %v1120_v35 = vor.u32 %v1118_v32, %v1116_v26  ;;  %v1124_v36 = vrot.slane %v1122_v33, 1  ;;  %v1444_v18 = vrot.slane %v4175_v34, 1  ;;  %v4185_v34 = vld [vmem:[%s5487_s4 + $0x1f8] sm:$0xff]  }
  0xb5   :  { %3891 = vmatprep.subr.bf16.mxu0 %v4224_v0  ;;  %3834 = vmatpush3.bf16.msra.mxu1 %v4169_v38  ;;  %v4826_v38 = vld [vmem:[%s5490_s1 + $0x54] ss:$0 sps:$4 sm:$0x33]  }
  0xb6   :  { %3835 = vmatprep.subr.bf16.mxu1 %v4224_v0  ;;  %v1125_v39 = vsel %vm152_vm1, %v1120_v35, %v1124_v36  ;;  %v1445_v40 = vsel %vm1428_vm2, %v1442_v27, %v1444_v18  ;;  %v1128_v48 = vor.u32 %v1126_v41, %v1124_v36  ;;  %v1134_v3 = vshrl.u32 %v4826_v38, 16 }
  0xb8   :  { %3892 = vmatpush3.bf16.msra.mxu0 %v4166_v43  ;;  %v1130_v43 = vshll.u32 %v4826_v38, 16 }
  0xb9   :  { %3893 = vmatprep.subr.bf16.mxu0 %v4224_v0  ;;  %3836 = vmatpush3.bf16.msra.mxu1 %v4173_v44  ;;  %v4178_v44 = vld [vmem:[%s5491_s0 + $0x4c] sm:$0xff]  }
  0xba   :  { %3734 = vmatmul.mubr.bf16.gmra.mxu1 %v1085_v45  ;;  %3790 = vmatmul.mubr.bf16.gmra.mxu0 %v1435_v47  ;;  %v1132_v49 = vrot.slane %v1130_v43, 1  ;;  %v1446_v50 = vrot.slane %v4178_v44, 1 }
  0xbb   :  { %3737 = vmatprep.mubr.msk.bf16.mxu1 %vm4225_vm0, %v4224_v0  ;;  %3793 = vmatprep.mubr.msk.bf16.mxu0 %vm4225_vm0, %v4224_v0 }
  0xbc   :  { %3894 = vmatpush3.bf16.msra.mxu0 %v4170_v52  ;;  %3837 = vmatprep.subr.bf16.mxu1 %v4224_v0  ;;  %v1133_v58 = vsel %vm152_vm1, %v1128_v48, %v1132_v49  ;;  %v1136_v12 = vor.u32 %v1134_v3, %v1132_v49 }
  0xbd   :  { %3895 = vmatprep.subr.bf16.mxu0 %v4224_v0  ;;  %3838 = vmatpush3.bf16.msra.mxu1 %v4179_v53 }
  0xbe   :  { %3839 = vmatprep.subr.bf16.mxu1 %v4224_v0 }
  0xc0   :  { %3896 = vmatpush3.bf16.msra.mxu0 %v4176_v60  ;;  %v1447_v60 = vsel %vm1428_vm2, %v1444_v18, %v1446_v50 }
  0xc1   :  { %3897 = vmatprep.subr.bf16.mxu0 %v4224_v0  ;;  %3840 = vmatpush3.bf16.msra.mxu1 %v4182_v61  ;;  %v4181_v61 = vld [vmem:[%s5491_s0 + $0x54] ss:$0 sps:$4 sm:$0x33]  }
  0xc2   :  { %3738 = vmatmul.mubr.bf16.gmra.mxu1 %v1093_v62  ;;  %3794 = vmatmul.mubr.bf16.gmra.mxu0 %v1437_v63 }
  0xc3   :  { %3741 = vmatprep.mubr.msk.bf16.mxu1 %vm4225_vm0, %v4224_v0  ;;  %3797 = vmatprep.mubr.msk.bf16.mxu0 %vm4225_vm0, %v4224_v0 }
  0xc4   :  { %3898 = vmatpush3.bf16.msra.mxu0 %v4180_v4  ;;  %3945 = vmatprep.subr.bf16.mxu1 %v4224_v0  ;;  %v1448_v4 = vrot.slane %v4181_v61, 1  ;;  %v4193_v61 = vld [vmem:[%s5487_s4 + $0x1e8] sm:$0xff]  }
  0xc5   :  { %3899 = vmatprep.subr.bf16.mxu0 %v4224_v0 }
  0xc6   :  { %v1449_v13 = vsel %vm1428_vm2, %v1446_v50, %v1448_v4  ;;  %v4188_v50 = vld [vmem:[%s5487_s4 + $0x238] sm:$0xff]  }
  0xc8   :  { %3900 = vmatpush3.bf16.msra.mxu0 %v4183_v9  ;;  %v4867_v9 = vld [vmem:[%s5489_s3 + $0x8] sm:$0xf] }
  0xc9   :  { %4005 = vmatprep.subr.bf16.mxu0 %v4224_v0  ;;  %v3173_v14 = vcombine.low %v1892_v7, %v4867_v9 }
  0xca   :  { %3742 = vmatmul.mubr.bf16.gmra.mxu1 %v1101_v10  ;;  %3798 = vmatmul.mubr.bf16.gmra.mxu0 %v1439_v11 }
  0xcb   :  { %3745 = vmatprep.mubr.msk.bf16.mxu1 %vm4225_vm0, %v4224_v0  ;;  %3801 = vmatprep.mubr.msk.bf16.mxu0 %vm4225_vm0, %v4224_v0  ;;  %v1986_v22 = vshll.u32 %v3173_v14, 16  ;;  %v1984_v27 = vshrl.u32 %v3173_v14, 16 }
  0xd2   :  { %3746 = vmatmul.mubr.bf16.gmra.mxu1 %v1109_v20  ;;  %3802 = vmatmul.mubr.bf16.gmra.mxu0 %v1441_v21  ;;  %v4886_v21 = vld [vmem:[%s5489_s3 + $0xc] sm:$0xff]  }
  0xd3   :  { %3749 = vmatprep.mubr.msk.bf16.mxu1 %vm4225_vm0, %v4224_v0  ;;  %3805 = vmatprep.mubr.msk.bf16.mxu0 %vm4225_vm0, %v4224_v0 }
  0xda   :  { %3750 = vmatmul.mubr.bf16.gmra.mxu1 %v1117_v30  ;;  %3806 = vmatmul.mubr.bf16.gmra.mxu0 %v1443_v31  ;;  %v1988_v30 = vrot.slane %v1986_v22, 1  ;;  %v1991_v31 = vshll.u32 %v4886_v21, 16 }
  0xdb   :  { %3753 = vmatprep.mubr.msk.bf16.mxu1 %vm4225_vm0, %v4224_v0  ;;  %3809 = vmatprep.mubr.msk.bf16.mxu0 %vm4225_vm0, %v4224_v0 }
  0xdc   :  { %v1989_v18 = vor.u32 %v1988_v30, %v1984_v27  ;;  %v4194_v27 = vld [vmem:[%s5487_s4 + $0x228] sm:$0xff]   ;;  %v4200_v30 = vld [vmem:[%s5487_s4 + $0x1d8] sm:$0xff]  }
  0xe2   :  { %v4835_v45 = vpop.f32.mrf.mxu0  ;;  %v4837_v47 = vpop.f32.mrf.mxu1  ;;  %3754 = vmatmul.mubr.bf16.gmra.mxu1 %v1125_v39  ;;  %3810 = vmatmul.mubr.bf16.gmra.mxu0 %v1445_v40  ;;  %v1993_v39 = vrot.slane %v1991_v31, 1  ;;  %v4908_v40 = vld [vmem:[%s5489_s3 + $0x14] sm:$0xff]  }
  0xe3   :  { %3757 = vmatprep.mubr.msk.bf16.mxu1 %vm4225_vm0, %v4224_v0  ;;  %3813 = vmatprep.mubr.msk.bf16.mxu0 %vm4225_vm0, %v4224_v0 }
  0xe4   :  { %v3543_v52 = vpop.f32.mrf.mxu0  ;;  %v3567_v53 = vpop.f32.mrf.mxu1  ;;  %v1994_v49 = vsel %vm152_vm1, %v1989_v18, %v1993_v39 }
  0xe5   :  { %v1995_v52 = vshrl.u32 %v4886_v21, 16  ;;  %v1999_v53 = vshll.u32 %v4908_v40, 16 }
  0xe6   :  { %v4843_v54 = vpop.f32.mrf.mxu0  ;;  %v4845_v55 = vpop.f32.mrf.mxu1 }
  0xe7   :  { %v1997_v3 = vor.u32 %v1995_v52, %v1993_v39 }
  0xe8   :  { %v3544_v62 = vpop.f32.mrf.mxu0  ;;  %v3568_v63 = vpop.f32.mrf.mxu1 }
  0xea   :  { %v4852_v1 = vpop.f32.mrf.mxu0  ;;  %v4854_v2 = vpop.f32.mrf.mxu1  ;;  %3758 = vmatmul.mubr.bf16.gmra.mxu1 %v1133_v58  ;;  %3814 = vmatmul.mubr.bf16.gmra.mxu0 %v1447_v60 }
  0xeb   :  { %3761 = vmatprep.mubr.msk.bf16.mxu1 %vm4225_vm0, %v4224_v0  ;;  %3817 = vmatprep.mubr.msk.bf16.mxu0 %vm4225_vm0, %v4224_v0 }
  0xec   :  { %v3547_v5 = vpop.f32.mrf.mxu0  ;;  %v3571_v6 = vpop.f32.mrf.mxu1 }
  0xed   :  { %v4191_v5 = vld [vmem:[%s5487_s4 + $0x230] sm:$0xff]   ;;  %v4941_v6 = vld [vmem:[%s5489_s3 + $0x1c] sm:$0xff]  }
  0xee   :  { %v4869_v10 = vpop.f32.mrf.mxu0  ;;  %v4871_v11 = vpop.f32.mrf.mxu1  ;;  %v2007_v22 = vshll.u32 %v4941_v6, 16 }
  0xf0   :  { %v3548_v15 = vpop.f32.mrf.mxu0  ;;  %v3572_v16 = vpop.f32.mrf.mxu1  ;;  %v2009_v39 = vrot.slane %v2007_v22, 1 }
  0xf1   :  { %v2003_v16 = vshrl.u32 %v4908_v40, 16 }
  0xf2   :  { %v4875_v17 = vpop.f32.mrf.mxu0  ;;  %v4877_v20 = vpop.f32.mrf.mxu1  ;;  %3762 = vmatmul.mubr.bf16.gmra.mxu1 %v1136_v12  ;;  %3818 = vmatmul.mubr.bf16.gmra.mxu0 %v1449_v13 }
  0xf3   :  { %3821 = vmatprep.mubr.msk.bf16.mxu0 %vm4225_vm0, %v4224_v0  ;;  %3841 = vmatprep.mubr.msk.bf16.mxu1 %vm4225_vm0, %v4224_v0 }
  0xf4   :  { %v3551_v23 = vpop.f32.mrf.mxu0  ;;  %v3575_v24 = vpop.f32.mrf.mxu1 }
  0xf6   :  { %v4888_v25 = vpop.f32.mrf.mxu0  ;;  %v4890_v26 = vpop.f32.mrf.mxu1 }
  0xf8   :  { %v3552_v32 = vpop.f32.mrf.mxu0  ;;  %v3576_v33 = vpop.f32.mrf.mxu1 }
  0xf9   :  { %v4968_v33 = vld [vmem:[%s5489_s3 + $0x24] sm:$0xff]  }
  0xfa   :  { %v4896_v35 = vpop.f32.mrf.mxu0  ;;  %v4898_v36 = vpop.f32.mrf.mxu1  ;;  %3822 = vmatmul.mubr.bf16.gmra.mxu0 %v1448_v4  ;;  %3842 = vmatmul.mubr.bf16.vlgmr.msra.gmra.mxu1 %v4573_v29  ;;  %v4190_v29 = vld [vmem:[%s5487_s4 + $0x1f0] sm:$0xff]   ;;  %v2001_v4 = vrot.slane %v1999_v53, 1  ;;  %v2015_v52 = vshll.u32 %v4968_v33, 16 }
  0xfb   :  { %3845 = vmatprep.mubr.msk.bf16.mxu1 %vm4225_vm0, %v4224_v0  ;;  %3901 = vmatprep.mubr.msk.bf16.mxu0 %vm4225_vm0, %v4224_v0 }
  0xfc   :  { %v3555_v41 = vpop.f32.mrf.mxu0  ;;  %v3579_v43 = vpop.f32.mrf.mxu1  ;;  %3946 = vmatpush3.bf16.msra.mxu1 %v4185_v34  ;;  %v2002_v15 = vsel %vm152_vm1, %v1997_v3, %v2001_v4  ;;  %v2005_v18 = vor.u32 %v2003_v16, %v2001_v4  ;;  %v4201_v3 = vld [vmem:[%s5487_s4 + $0x218] sm:$0xff]   ;;  %v4207_v4 = vld [vmem:[%s5487_s4 + $0x1c8] sm:$0xff]  }
  0xfd   :  { %3947 = vmatprep.subr.bf16.mxu1 %v4224_v0  ;;  %v5009_v16 = vld [vmem:[%s5489_s3 + $0x2c] sm:$0xff]  }
  0xfe   :  { %v4914_v44 = vpop.f32.mrf.mxu0  ;;  %v4916_v48 = vpop.f32.mrf.mxu1 }
 0x100   :  { %v3556_v58 = vpop.f32.mrf.mxu0  ;;  %v3580_v60 = vpop.f32.mrf.mxu1  ;;  %3948 = vmatpush3.bf16.msra.mxu1 %v4190_v29 }
 0x101   :  { %3949 = vmatprep.subr.bf16.mxu1 %v4224_v0  ;;  %v2010_v58 = vsel %vm152_vm1, %v2005_v18, %v2009_v39  ;;  %v2019_v18 = vshrl.u32 %v4968_v33, 16 }
 0x102   :  { %v4928_v62 = vpop.f32.mrf.mxu0  ;;  %v4930_v63 = vpop.f32.mrf.mxu1  ;;  %3846 = vmatmul.mubr.bf16.gmra.mxu1 %v4590_v37  ;;  %3902 = vmatmul.mubr.bf16.vlgmr.msra.gmra.mxu0 %v1994_v49  ;;  %v4197_v37 = vld [vmem:[%s5487_s4 + $0x1e0] sm:$0xff]  }
 0x103   :  { %4006 = vmatpush3.bf16.msra.mxu0 %v4188_v50  ;;  %3849 = vmatprep.mubr.msk.bf16.mxu1 %vm4225_vm0, %v4224_v0  ;;  %v2011_v50 = vshrl.u32 %v4941_v6, 16 }
 0x104   :  { %v3559_v7 = vpop.f32.mrf.mxu0  ;;  %v3583_v12 = vpop.f32.mrf.mxu1  ;;  %3905 = vmatprep.mubr.msk.bf16.mxu0 %vm4225_vm0, %v4224_v0  ;;  %4007 = vmatprep.subr.bf16.mxu0 %v4224_v0 }
 0x105   :  { %3950 = vmatpush3.bf16.msra.mxu1 %v4193_v61  ;;  %v2013_v12 = vor.u32 %v2011_v50, %v2009_v39  ;;  %v2023_v39 = vshll.u32 %v5009_v16, 16 }
 0x106   :  { %v4949_v13 = vpop.f32.mrf.mxu0  ;;  %v416_v14 = vpop.f32.mrf.mxu1  ;;  %3951 = vmatprep.subr.bf16.mxu1 %v4224_v0 }
 0x107   :  { %4008 = vmatpush3.bf16.msra.mxu0 %v4191_v5 }
 0x108   :  { %v3560_v23 = vpop.f32.mrf.mxu0  ;;  %v3584_v24 = vpop.f32.mrf.mxu1  ;;  %4009 = vmatprep.subr.bf16.mxu0 %v4224_v0 }
 0x109   :  { %3952 = vmatpush3.bf16.msra.mxu1 %v4197_v37  ;;  %v2017_v37 = vrot.slane %v2015_v52, 1 }
 0x10a   :  { %v4962_v31 = vpop.f32.mrf.mxu0  ;;  %v565_v32 = vpop.f32.mrf.mxu1  ;;  %3850 = vmatmul.mubr.bf16.gmra.mxu1 %v4607_v46  ;;  %3906 = vmatmul.mubr.bf16.gmra.mxu0 %v2002_v15  ;;  %v4198_v46 = vld [vmem:[%s5487_s4 + $0x220] sm:$0xff]  }
 0x10b   :  { %v566_v34 = vadd.f32 %v565_v32, %v4835_v45  ;;  %3853 = vmatprep.mubr.msk.bf16.mxu1 %vm4225_vm0, %v4224_v0  ;;  %3909 = vmatprep.mubr.msk.bf16.mxu0 %vm4225_vm0, %v4224_v0  ;;  %v4203_v45 = vld [vmem:[%s5487_s4 + $0x1d0] sm:$0xff]   ;;  %v2021_v52 = vor.u32 %v2019_v18, %v2017_v37 }
 0x10c   :  { %v3563_v41 = vpop.f32.mrf.mxu0  ;;  %v3603_v43 = vpop.f32.mrf.mxu1  ;;  %4010 = vmatpush3.bf16.msra.mxu0 %v4194_v27  ;;  %3953 = vmatprep.subr.bf16.mxu1 %v4224_v0 }
 0x10d   :  { %4011 = vmatprep.subr.bf16.mxu0 %v4224_v0  ;;  %3954 = vmatpush3.bf16.msra.mxu1 %v4200_v30  ;;  %v2018_v30 = vsel %vm152_vm1, %v2013_v12, %v2017_v37 }
 0x10e   :  { %v4983_v29 = vpop.f32.mrf.mxu0  ;;  %v568_v49 = vpop.f32.mrf.mxu1  ;;  %3955 = vmatprep.subr.bf16.mxu1 %v4224_v0 }
 0x10f   :  { %v569_v53 = vadd.f32 %v568_v49, %v4843_v54  ;;  %v1680_v54 = vrot.slane %v4711_v42, 1  ;;  %v4205_v42 = vld [vmem:[%s5487_s4 + $0x210] sm:$0xff]  }
 0x110   :  { %v3564_v60 = vpop.f32.mrf.mxu0  ;;  %v3604_v61 = vpop.f32.mrf.mxu1  ;;  %4012 = vmatpush3.bf16.msra.mxu0 %v4198_v46 }
 0x111   :  { %4013 = vmatprep.subr.bf16.mxu0 %v4224_v0  ;;  %3956 = vmatpush3.bf16.msra.mxu1 %v4203_v45  ;;  %v1681_v27 = vsel %vm1428_vm2, %v1678_v56, %v1680_v54  ;;  %v5037_v45 = vld [vmem:[%s5489_s3 + $0x34] sm:$0xff]  }
 0x112   :  { %v573_v5 = vpop.f32.mrf.mxu1  ;;  %v852_v7 = vpop.f32.mrf.mxu0  ;;  %3854 = vmatmul.mubr.bf16.gmra.mxu1 %v4629_v57  ;;  %3910 = vmatmul.mubr.bf16.gmra.mxu0 %v2010_v58 }
 0x113   :  { %v574_v14 = vadd.f32 %v573_v5, %v4852_v1  ;;  %v5000_v15 = vadd.f32 %v852_v7, %v566_v34  ;;  %3857 = vmatprep.mubr.msk.bf16.mxu1 %vm4225_vm0, %v4224_v0  ;;  %3913 = vmatprep.mubr.msk.bf16.mxu0 %vm4225_vm0, %v4224_v0  ;;  %v4210_v1 = vld [vmem:[%s5487_s4 + $0x1c0] sm:$0xff]  }
 0x114   :  { %v3607_v57 = vpop.f32.mrf.mxu1  ;;  %v3663_v22 = vpop.f32.mrf.mxu0  ;;  %4014 = vmatpush3.bf16.msra.mxu0 %v4201_v3  ;;  %3957 = vmatprep.subr.bf16.mxu1 %v4224_v0  ;;  %v2027_v3 = vshrl.u32 %v5009_v16, 16 }
 0x115   :  { %4015 = vmatprep.subr.bf16.mxu0 %v4224_v0  ;;  %3958 = vmatpush3.bf16.msra.mxu1 %v4207_v4  ;;  %v2031_v4 = vshll.u32 %v5037_v45, 16 }
 0x116   :  { %v576_v23 = vpop.f32.mrf.mxu1  ;;  %v855_v24 = vpop.f32.mrf.mxu0  ;;  %3959 = vmatprep.subr.bf16.mxu1 %v4224_v0 }
 0x117   :  { %v577_v32 = vadd.f32 %v576_v23, %v4869_v10  ;;  %v5025_v34 = vadd.f32 %v855_v24, %v569_v53  ;;  %v1682_v10 = vrot.slane %v4743_v59, 1  ;;  %v2025_v53 = vrot.slane %v2023_v39, 1  ;;  %v4211_v59 = vld [vmem:[%s5487_s4 + $0x200] sm:$0xff]  }
 0x118   :  { %v3608_v41 = vpop.f32.mrf.mxu1  ;;  %v3664_v43 = vpop.f32.mrf.mxu0  ;;  %4016 = vmatpush3.bf16.msra.mxu0 %v4205_v42  ;;  %v2033_v24 = vrot.slane %v2031_v4, 1 }
 0x119   :  { %4017 = vmatprep.subr.bf16.mxu0 %v4224_v0  ;;  %3960 = vmatpush3.bf16.msra.mxu1 %v4210_v1  ;;  %v1683_v12 = vsel %vm1428_vm2, %v1680_v54, %v1682_v10  ;;  %v2026_v37 = vsel %vm152_vm1, %v2021_v52, %v2025_v53  ;;  %v1684_v1 = vrot.slane %v4772_v8, 1  ;;  %v2029_v23 = vor.u32 %v2027_v3, %v2025_v53  ;;  %v5068_v54 = vld [vmem:[%s5489_s3 + $0x3c] sm:$0xff]  }
 0x11a   :  { %v581_v56 = vpop.f32.mrf.mxu1  ;;  %v860_v46 = vpop.f32.mrf.mxu0  ;;  %3858 = vmatmul.mubr.bf16.gmra.mxu1 %v1681_v27  ;;  %3914 = vmatmul.mubr.bf16.gmra.mxu0 %v2018_v30 }
 0x11b   :  { %v582_v49 = vadd.f32 %v581_v56, %v4875_v17  ;;  %v5040_v50 = vadd.f32 %v860_v46, %v574_v14  ;;  %3861 = vmatprep.mubr.msk.bf16.mxu1 %vm4225_vm0, %v4224_v0  ;;  %3917 = vmatprep.mubr.msk.bf16.mxu0 %vm4225_vm0, %v4224_v0  ;;  %v1685_v39 = vsel %vm1428_vm2, %v1682_v10, %v1684_v1  ;;  %v2039_v56 = vshll.u32 %v5068_v54, 16  ;;  %v5081_v10 = vld [vmem:[%s5489_s3 + $0x44] sm:$0xff]  }
 0x11c   :  { %v3611_v58 = vpop.f32.mrf.mxu1  ;;  %v3667_v60 = vpop.f32.mrf.mxu0  ;;  %4018 = vmatpush3.bf16.msra.mxu0 %v4208_v51  ;;  %v2035_v51 = vshrl.u32 %v5037_v45, 16 }
 0x11d   :  { %4019 = vmatprep.subr.bf16.mxu0 %v4224_v0  ;;  %v1686_v58 = vrot.slane %v4794_v19, 1 }
 0x11e   :  { %v584_v17 = vpop.f32.mrf.mxu1  ;;  %v863_v61 = vpop.f32.mrf.mxu0 }
 0x11f   :  { %v585_v5 = vadd.f32 %v584_v17, %v4888_v25  ;;  %v5053_v7 = vadd.f32 %v863_v61, %v577_v32  ;;  %v2041_v17 = vrot.slane %v2039_v56, 1 }
 0x120   :  { %v3612_v14 = vpop.f32.mrf.mxu1  ;;  %v3668_v57 = vpop.f32.mrf.mxu0  ;;  %4020 = vmatpush3.bf16.msra.mxu0 %v4211_v59  ;;  %v2037_v59 = vor.u32 %v2035_v51, %v2033_v24 }
 0x121   :  { %v1687_v14 = vsel %vm1428_vm2, %v1684_v1, %v1686_v58 }
 0x122   :  { %v589_v22 = vpop.f32.mrf.mxu1  ;;  %v868_v42 = vpop.f32.mrf.mxu0  ;;  %3862 = vmatmul.mubr.bf16.gmra.mxu1 %v1683_v12  ;;  %3918 = vmatmul.mubr.bf16.gmra.mxu0 %v2026_v37  ;;  %v2047_v12 = vshll.u32 %v5081_v10, 16  ;;  %v2042_v57 = vsel %vm152_vm1, %v2037_v59, %v2041_v17 }
 0x123   :  { %v590_v27 = vadd.f32 %v589_v22, %v4896_v35  ;;  %v5059_v25 = vadd.f32 %v868_v42, %v582_v49  ;;  %3865 = vmatprep.mubr.msk.bf16.mxu1 %vm4225_vm0, %v4224_v0  ;;  %3921 = vmatprep.mubr.msk.bf16.mxu0 %vm4225_vm0, %v4224_v0  ;;  %v2034_v35 = vsel %vm152_vm1, %v2029_v23, %v2033_v24 }
 0x124   :  { %v3615_v30 = vpop.f32.mrf.mxu1  ;;  %v3671_v32 = vpop.f32.mrf.mxu0 }
 0x125   :  { %v2049_v32 = vrot.slane %v2047_v12, 1 }
 0x126   :  { %v592_v8 = vpop.f32.mrf.mxu1  ;;  %v871_v18 = vpop.f32.mrf.mxu0 }
 0x127   :  { %v593_v41 = vadd.f32 %v592_v8, %v4914_v44  ;;  %v5073_v43 = vadd.f32 %v871_v18, %v585_v5  ;;  %v2043_v5 = vshrl.u32 %v5068_v54, 16 }
 0x128   :  { %v3616_v46 = vpop.f32.mrf.mxu1  ;;  %v3672_v49 = vpop.f32.mrf.mxu0 }
 0x129   :  { %v2045_v30 = vor.u32 %v2043_v5, %v2041_v17  ;;  %v2051_v46 = vshrl.u32 %v5081_v10, 16  ;;  %v1690_v17 = vrot.slane %v4826_v38, 1 }
 0x12a   :  { %v597_v52 = vpop.f32.mrf.mxu1  ;;  %v876_v53 = vpop.f32.mrf.mxu0  ;;  %3866 = vmatmul.mubr.bf16.gmra.mxu1 %v1685_v39  ;;  %3922 = vmatmul.mubr.bf16.gmra.mxu0 %v2034_v35 }
 0x12b   :  { %v598_v44 = vadd.f32 %v597_v52, %v4928_v62  ;;  %v5084_v60 = vadd.f32 %v876_v53, %v590_v27  ;;  %3869 = vmatprep.mubr.msk.bf16.mxu1 %vm4225_vm0, %v4224_v0  ;;  %3925 = vmatprep.mubr.msk.bf16.mxu0 %vm4225_vm0, %v4224_v0  ;;  %v1688_v27 = vrot.slane %v4810_v28, 1 }
 0x12c   :  { %v3619_v61 = vpop.f32.mrf.mxu1  ;;  %v3675_v3 = vpop.f32.mrf.mxu0 }
 0x12d   :  { %v5127_v3 = vld [vmem:[%s5489_s3 + $0x54] ss:$0 sps:$4 sm:$0x33]   ;;  %v1691_v38 = vsel %vm1428_vm2, %v1688_v27, %v1690_v17 }
 0x12e   :  { %v600_v19 = vpop.f32.mrf.mxu1  ;;  %v879_v4 = vpop.f32.mrf.mxu0 }
 0x12f   :  { %v601_v62 = vadd.f32 %v600_v19, %v4949_v13  ;;  %v5093_v37 = vadd.f32 %v879_v4, %v593_v41  ;;  %v5108_v13 = vld [vmem:[%s5489_s3 + $0x4c] sm:$0xff]   ;;  %v1689_v41 = vsel %vm1428_vm2, %v1686_v58, %v1688_v27 }
 0x130   :  { %v3620_v22 = vpop.f32.mrf.mxu1  ;;  %v3676_v42 = vpop.f32.mrf.mxu0  ;;  %v2055_v49 = vshll.u32 %v5108_v13, 16 }
 0x131   :  { %v2063_v22 = vshll.u32 %v5127_v3, 16 }
 0x132   :  { %v605_v23 = vpop.f32.mrf.mxu1  ;;  %v884_v24 = vpop.f32.mrf.mxu0  ;;  %3870 = vmatmul.mubr.bf16.gmra.mxu1 %v1687_v14  ;;  %3926 = vmatmul.mubr.bf16.gmra.mxu0 %v2042_v57  ;;  %v2057_v58 = vrot.slane %v2055_v49, 1  ;;  %v2059_v57 = vshrl.u32 %v5108_v13, 16  ;;  %v4213_v49 = vld [vmem:[%s5488_s2 + $0xc] sm:$0xff]  }
 0x133   :  { %v606_v8 = vadd.f32 %v605_v23, %v4962_v31  ;;  %v5099_v18 = vadd.f32 %v884_v24, %v598_v44  ;;  %3873 = vmatprep.mubr.msk.bf16.mxu1 %vm4225_vm0, %v4224_v0  ;;  %3929 = vmatprep.mubr.msk.bf16.mxu0 %vm4225_vm0, %v4224_v0  ;;  %v2050_v31 = vsel %vm152_vm1, %v2045_v30, %v2049_v32 }
 0x134   :  { %v3623_v1 = vpop.f32.mrf.mxu1  ;;  %v3679_v39 = vpop.f32.mrf.mxu0  ;;  %v2061_v27 = vor.u32 %v2059_v57, %v2057_v58 }
 0x135   :  { %v2065_v1 = vrot.slane %v2063_v22, 1 }
 0x136   :  { %v608_v28 = vpop.f32.mrf.mxu1  ;;  %v887_v35 = vpop.f32.mrf.mxu0 }
 0x137   :  { %v609_v51 = vadd.f32 %v608_v28, %v4983_v29  ;;  %v5113_v56 = vadd.f32 %v887_v35, %v601_v62  ;;  %v2053_v29 = vor.u32 %v2051_v46, %v2049_v32  ;;  %v4212_v46 = vld [vmem:[%s5488_s2 + $0x4] sm:$0xfe]  }
 0x138   :  { %v3624_v52 = vpop.f32.mrf.mxu1  ;;  %v3680_v53 = vpop.f32.mrf.mxu0 }
 0x139   :  { %v2058_v14 = vsel %vm152_vm1, %v2053_v29, %v2057_v58  ;;  %v2067_v29 = vshrl.u32 %v5127_v3, 16 }
 0x13a   :  { %v613_v44 = vpop.f32.mrf.mxu1  ;;  %v892_v59 = vpop.f32.mrf.mxu0  ;;  %3874 = vmatmul.mubr.bf16.gmra.mxu1 %v1689_v41  ;;  %3930 = vmatmul.mubr.bf16.gmra.mxu0 %v2050_v31 }
 0x13b   :  { %v5118_v61 = vadd.f32 %v892_v59, %v606_v8  ;;  %3877 = vmatprep.mubr.msk.bf16.mxu1 %vm4225_vm0, %v4224_v0  ;;  %3933 = vmatprep.mubr.msk.bf16.mxu0 %vm4225_vm0, %v4224_v0  ;;  %v614_v24 = vadd.f32 %v613_v44, %v4837_v47  ;;  %v2069_v57 = vor.u32 %v2067_v29, %v2065_v1 }
 0x13c   :  { %v3627_v19 = vpop.f32.mrf.mxu1  ;;  %v3683_v4 = vpop.f32.mrf.mxu0 }
 0x13d   :  { %v2361_v19 = vrot.slane %v4212_v46, 1  ;;  %v2362_v4 = vrot.slane %v4213_v49, 1 }
 0x13e   :  { %v616_v5 = vpop.f32.mrf.mxu1  ;;  %v895_v12 = vpop.f32.mrf.mxu0 }
 0x13f   :  { %v5130_v62 = vadd.f32 %v895_v12, %v609_v51  ;;  %v617_v35 = vadd.f32 %v616_v5, %v4845_v55  ;;  %v2066_v51 = vsel %vm152_vm1, %v2061_v27, %v2065_v1 }
 0x140   :  { %v3628_v42 = vpop.f32.mrf.mxu1  ;;  %v3684_v23 = vpop.f32.mrf.mxu0 }
 0x141   :  { %v2363_v42 = vsel %vm1428_vm2, %v2361_v19, %v2362_v4  ;;  %v4214_v23 = vld [vmem:[%s5488_s2 + $0x14] sm:$0xff]  }
 0x142   :  { %v621_v30 = vpop.f32.mrf.mxu1  ;;  %v900_v32 = vpop.f32.mrf.mxu0  ;;  %3878 = vmatmul.mubr.bf16.gmra.mxu1 %v1691_v38  ;;  %3934 = vmatmul.mubr.bf16.gmra.mxu0 %v2058_v14  ;;  %v2364_v1 = vrot.slane %v4214_v23, 1  ;;  %v4217_v23 = vld [vmem:[%s5488_s2 + $0x24] sm:$0xff]  }
 0x143   :  { %v5136_v8 = vadd.f32 %v900_v32, %v614_v24  ;;  %3881 = vmatprep.mubr.msk.bf16.mxu1 %vm4225_vm0, %v4224_v0  ;;  %3937 = vmatprep.mubr.msk.bf16.mxu0 %vm4225_vm0, %v4224_v0  ;;  %v622_v44 = vadd.f32 %v621_v30, %v4854_v2  ;;  %v2582_v2 = vld [vmem:[%s5489_s3 + $0x4] sm:$0xe] }
 0x144   :  { %v3631_v39 = vpop.f32.mrf.mxu1  ;;  %v3687_v28 = vpop.f32.mrf.mxu0  ;;  %v3243_v24 = vcombine.low %v2582_v2, %v4867_v9  ;;  %v2604_v9 = vrot.slane %v4886_v21, 1 }
 0x146   :  { %v624_v41 = vpop.f32.mrf.mxu1  ;;  %v903_v47 = vpop.f32.mrf.mxu0 }
 0x147   :  { %v5143_v31 = vadd.f32 %v903_v47, %v617_v35  ;;  %v2603_v35 = vrot.slane %v3243_v24, 1 }
 0x148   :  { %v3632_v52 = vpop.f32.mrf.mxu1  ;;  %v3688_v53 = vpop.f32.mrf.mxu0 }
 0x149   :  { %v2365_v52 = vsel %vm1428_vm2, %v2362_v4, %v2364_v1  ;;  %v2605_v53 = vsel %vm1428_vm2, %v2603_v35, %v2604_v9 }
 0x14a   :  { %v629_v59 = vpop.f32.mrf.mxu1  ;;  %v908_v55 = vpop.f32.mrf.mxu0  ;;  %3882 = vmatmul.mubr.bf16.gmra.mxu1 %v1690_v17  ;;  %3938 = vmatmul.mubr.bf16.gmra.mxu0 %v2066_v51  ;;  %v625_v17 = vadd.f32 %v624_v41, %v4871_v11 }
 0x14b   :  { %v5154_v58 = vadd.f32 %v908_v55, %v622_v44  ;;  %3941 = vmatprep.mubr.msk.bf16.mxu0 %vm4225_vm0, %v4224_v0  ;;  %3961 = vmatprep.mubr.msk.bf16.mxu1 %vm4225_vm0, %v4224_v0  ;;  %v630_v27 = vadd.f32 %v629_v59, %v4877_v20  ;;  %v4216_v44 = vld [vmem:[%s5488_s2 + $0x1c] sm:$0xff]  }
 0x14c   :  { %v3635_v5 = vpop.f32.mrf.mxu1  ;;  %v3691_v12 = vpop.f32.mrf.mxu0  ;;  %v2366_v4 = vrot.slane %v4216_v44, 1 }
 0x14d   :  { %v2606_v5 = vrot.slane %v4908_v40, 1 }
 0x14e   :  { %v632_v38 = vpop.f32.mrf.mxu1  ;;  %v911_v14 = vpop.f32.mrf.mxu0 }
 0x14f   :  { %v5164_v22 = vadd.f32 %v911_v14, %v625_v17  ;;  %v633_v20 = vadd.f32 %v632_v38, %v4890_v26 }
 0x150   :  { %v3636_v30 = vpop.f32.mrf.mxu1  ;;  %v3692_v32 = vpop.f32.mrf.mxu0 }
 0x152   :  { %v637_v39 = vpop.f32.mrf.mxu1  ;;  %v916_v28 = vpop.f32.mrf.mxu0  ;;  %3942 = vmatmul.mubr.bf16.gmra.mxu0 %v2069_v57  ;;  %3962 = vmatmul.mubr.bf16.vlgmr.msra.gmra.mxu1 %v2363_v42  ;;  %v2367_v57 = vsel %vm1428_vm2, %v2364_v1, %v2366_v4  ;;  %v2607_v42 = vsel %vm1428_vm2, %v2604_v9, %v2606_v5  ;;  %v2608_v1 = vrot.slane %v4941_v6, 1 }
 0x153   :  { %v5172_v11 = vadd.f32 %v916_v28, %v630_v27  ;;  %3965 = vmatprep.mubr.msk.bf16.mxu1 %vm4225_vm0, %v4224_v0  ;;  %4021 = vmatprep.mubr.msk.bf16.mxu0 %vm4225_vm0, %v4224_v0  ;;  %v638_v21 = vadd.f32 %v637_v39, %v4898_v36  ;;  %v2368_v28 = vrot.slane %v4217_v23, 1 }
 0x154   :  { %v3639_v41 = vpop.f32.mrf.mxu1  ;;  %v3695_v47 = vpop.f32.mrf.mxu0 }
 0x156   :  { %v640_v51 = vpop.f32.mrf.mxu1  ;;  %v919_v46 = vpop.f32.mrf.mxu0 }
 0x157   :  { %v5180_v49 = vadd.f32 %v919_v46, %v633_v20  ;;  %v641_v17 = vadd.f32 %v640_v51, %v4916_v48  ;;  %v2369_v20 = vsel %vm1428_vm2, %v2366_v4, %v2368_v28  ;;  %v2609_v51 = vsel %vm1428_vm2, %v2606_v5, %v2608_v1 }
 0x158   :  { %v3640_v59 = vpop.f32.mrf.mxu1  ;;  %v3696_v55 = vpop.f32.mrf.mxu0 }
 0x159   :  { %v2610_v55 = vrot.slane %v4968_v33, 1 }
 0x15a   :  { %v645_v29 = vpop.f32.mrf.mxu1  ;;  %v924_v19 = vpop.f32.mrf.mxu0  ;;  %3966 = vmatmul.mubr.bf16.gmra.mxu1 %v2365_v52  ;;  %4022 = vmatmul.mubr.bf16.vlgmr.msra.gmra.mxu0 %v2605_v53 }
 0x15b   :  { %v5188_v26 = vadd.f32 %v924_v19, %v638_v21  ;;  %3969 = vmatprep.mubr.msk.bf16.mxu1 %vm4225_vm0, %v4224_v0  ;;  %4025 = vmatprep.mubr.msk.bf16.mxu0 %vm4225_vm0, %v4224_v0  ;;  %v646_v40 = vadd.f32 %v645_v29, %v4930_v63 }
 0x15c   :  { %v3643_v12 = vpop.f32.mrf.mxu1  ;;  %v3699_v2 = vpop.f32.mrf.mxu0 }
 0x15d   :  { %v2611_v2 = vsel %vm1428_vm2, %v2608_v1, %v2610_v55 }
 0x15e   :  { %v648_v36 = vpop.f32.mrf.mxu1  ;;  %v927_v38 = vpop.f32.mrf.mxu0 }
 0x15f   :  { %v5196_v14 = vadd.f32 %v927_v38, %v641_v17  ;;  %v4219_v17 = vld [vmem:[%s5488_s2 + $0x34] sm:$0xff]  }
 0x160   :  { %v3644_v24 = vpop.f32.mrf.mxu1  ;;  %v3700_v30 = vpop.f32.mrf.mxu0 }
 0x161   :  { %v2612_v24 = vrot.slane %v5009_v16, 1 }
 0x162   :  { %v932_v32 = vpop.f32.mrf.mxu0  ;;  %v1230_v27 = vpop.f32.mrf.mxu1  ;;  %3970 = vmatmul.mubr.bf16.gmra.mxu1 %v2367_v57  ;;  %4026 = vmatmul.mubr.bf16.gmra.mxu0 %v2607_v42 }
 0x163   :  { %v5204_v48 = vadd.f32 %v932_v32, %v646_v40  ;;  %v1316_v39 = vadd.f32 %v1230_v27, %v5000_v15  ;;  %3973 = vmatprep.mubr.msk.bf16.mxu1 %vm4225_vm0, %v4224_v0  ;;  %4029 = vmatprep.mubr.msk.bf16.mxu0 %vm4225_vm0, %v4224_v0  ;;  %v4218_v15 = vld [vmem:[%s5488_s2 + $0x2c] sm:$0xff]   ;;  %v2613_v1 = vsel %vm1428_vm2, %v2610_v55, %v2612_v24  ;;  %v4221_v55 = vld [vmem:[%s5488_s2 + $0x44] sm:$0xff]  }
 0x164   :  { %v3703_v35 = vpop.f32.mrf.mxu0  ;;  %v3723_v9 = vpop.f32.mrf.mxu1 }
 0x165   :  { %v4220_v35 = vld [vmem:[%s5488_s2 + $0x3c] sm:$0xff]  }
 0x166   :  { %v935_v63 = vpop.f32.mrf.mxu0  ;;  %v1233_v41 = vpop.f32.mrf.mxu1 }
 0x167   :  { %v1317_v47 = vadd.f32 %v1233_v41, %v5025_v34  ;;  %v2370_v34 = vrot.slane %v4218_v15, 1 }
 0x168   :  { %v3704_v46 = vpop.f32.mrf.mxu0  ;;  %v3724_v52 = vpop.f32.mrf.mxu1 }
 0x16a   :  { %v1238_v53 = vpop.f32.mrf.mxu1  ;;  %v1543_v44 = vpop.f32.mrf.mxu0  ;;  %3974 = vmatmul.mubr.bf16.gmra.mxu1 %v2369_v20  ;;  %4030 = vmatmul.mubr.bf16.gmra.mxu0 %v2609_v51  ;;  %v2614_v51 = vrot.slane %v5037_v45, 1 }
 0x16b   :  { %v1318_v6 = vadd.f32 %v1238_v53, %v5040_v50  ;;  %v5219_v59 = vadd.f32 %v1543_v44, %v1316_v39  ;;  %3977 = vmatprep.mubr.msk.bf16.mxu1 %vm4225_vm0, %v4224_v0  ;;  %4033 = vmatprep.mubr.msk.bf16.mxu0 %vm4225_vm0, %v4224_v0  ;;  %v2371_v50 = vsel %vm1428_vm2, %v2368_v28, %v2370_v34 }
 0x16c   :  { %v3727_v21 = vpop.f32.mrf.mxu1  ;;  %v3783_v29 = vpop.f32.mrf.mxu0 }
 0x16e   :  { %v1241_v19 = vpop.f32.mrf.mxu1  ;;  %v1546_v4 = vpop.f32.mrf.mxu0 }
 0x16f   :  { %v1319_v5 = vadd.f32 %v1241_v19, %v5053_v7  ;;  %v5227_v12 = vadd.f32 %v1546_v4, %v1317_v47  ;;  %v2372_v7 = vrot.slane %v4219_v17, 1 }
 0x170   :  { %v3728_v36 = vpop.f32.mrf.mxu1  ;;  %v3784_v38 = vpop.f32.mrf.mxu0 }
 0x172   :  { %v1246_v57 = vpop.f32.mrf.mxu1  ;;  %v1551_v33 = vpop.f32.mrf.mxu0  ;;  %3978 = vmatmul.mubr.bf16.gmra.mxu1 %v2371_v50  ;;  %4034 = vmatmul.mubr.bf16.gmra.mxu0 %v2611_v2  ;;  %v2616_v50 = vrot.slane %v5068_v54, 1 }
 0x173   :  { %v1320_v42 = vadd.f32 %v1246_v57, %v5059_v25  ;;  %v5235_v23 = vadd.f32 %v1551_v33, %v1318_v6  ;;  %3981 = vmatprep.mubr.msk.bf16.mxu1 %vm4225_vm0, %v4224_v0  ;;  %4037 = vmatprep.mubr.msk.bf16.mxu0 %vm4225_vm0, %v4224_v0  ;;  %v2373_v25 = vsel %vm1428_vm2, %v2370_v34, %v2372_v7 }
 0x174   :  { %v3731_v30 = vpop.f32.mrf.mxu1  ;;  %v3787_v40 = vpop.f32.mrf.mxu0  ;;  %v2615_v34 = vsel %vm1428_vm2, %v2612_v24, %v2614_v51 }
 0x176   :  { %v1249_v32 = vpop.f32.mrf.mxu1  ;;  %v1554_v27 = vpop.f32.mrf.mxu0 }
 0x177   :  { %v1321_v39 = vadd.f32 %v1249_v32, %v5073_v43  ;;  %v5243_v28 = vadd.f32 %v1554_v27, %v1319_v5  ;;  %v2374_v43 = vrot.slane %v4220_v35, 1 }
 0x178   :  { %v3732_v9 = vpop.f32.mrf.mxu1  ;;  %v3788_v63 = vpop.f32.mrf.mxu0 }
 0x17a   :  { %v1254_v41 = vpop.f32.mrf.mxu1  ;;  %v1559_v16 = vpop.f32.mrf.mxu0  ;;  %3982 = vmatmul.mubr.bf16.gmra.mxu1 %v2373_v25  ;;  %4038 = vmatmul.mubr.bf16.gmra.mxu0 %v2613_v1 }
 0x17b   :  { %v1322_v47 = vadd.f32 %v1254_v41, %v5084_v60  ;;  %v5251_v20 = vadd.f32 %v1559_v16, %v1320_v42  ;;  %3985 = vmatprep.mubr.msk.bf16.mxu1 %vm4225_vm0, %v4224_v0  ;;  %4041 = vmatprep.mubr.msk.bf16.mxu0 %vm4225_vm0, %v4224_v0  ;;  %v2375_v60 = vsel %vm1428_vm2, %v2372_v7, %v2374_v43  ;;  %v4222_v7 = vld [vmem:[%s5488_s2 + $0x4c] sm:$0xff]  }
 0x17c   :  { %v3735_v15 = vpop.f32.mrf.mxu1  ;;  %v3791_v46 = vpop.f32.mrf.mxu0  ;;  %v2617_v42 = vsel %vm1428_vm2, %v2614_v51, %v2616_v50 }
 0x17e   :  { %v1257_v52 = vpop.f32.mrf.mxu1  ;;  %v1562_v53 = vpop.f32.mrf.mxu0 }
 0x17f   :  { %v1323_v44 = vadd.f32 %v1257_v52, %v5093_v37  ;;  %v5259_v6 = vadd.f32 %v1562_v53, %v1321_v39  ;;  %v2376_v37 = vrot.slane %v4221_v55, 1  ;;  %v2618_v39 = vrot.slane %v5081_v10, 1 }
 0x180   :  { %v3736_v21 = vpop.f32.mrf.mxu1  ;;  %v3792_v29 = vpop.f32.mrf.mxu0  ;;  %v2620_v53 = vrot.slane %v5108_v13, 1 }
 0x181   :  { %v2619_v16 = vsel %vm1428_vm2, %v2616_v50, %v2618_v39 }
 0x182   :  { %v1262_v19 = vpop.f32.mrf.mxu1  ;;  %v1567_v45 = vpop.f32.mrf.mxu0  ;;  %3986 = vmatmul.mubr.bf16.gmra.mxu1 %v2375_v60  ;;  %4042 = vmatmul.mubr.bf16.gmra.mxu0 %v2615_v34 }
 0x183   :  { %v1324_v4 = vadd.f32 %v1262_v19, %v5099_v18  ;;  %v5267_v5 = vadd.f32 %v1567_v45, %v1322_v47  ;;  %3989 = vmatprep.mubr.msk.bf16.mxu1 %vm4225_vm0, %v4224_v0  ;;  %4045 = vmatprep.mubr.msk.bf16.mxu0 %vm4225_vm0, %v4224_v0  ;;  %v2377_v18 = vsel %vm1428_vm2, %v2374_v43, %v2376_v37  ;;  %v4223_v47 = vld [vmem:[%s5488_s2 + $0x54] ss:$0 sps:$4 sm:$0x33]  }
 0x184   :  { %v3739_v2 = vpop.f32.mrf.mxu1  ;;  %v3795_v17 = vpop.f32.mrf.mxu0  ;;  %v2621_v19 = vsel %vm1428_vm2, %v2618_v39, %v2620_v53 }
 0x186   :  { %v1265_v36 = vpop.f32.mrf.mxu1  ;;  %v1570_v38 = vpop.f32.mrf.mxu0 }
 0x187   :  { %v1325_v57 = vadd.f32 %v1265_v36, %v5113_v56  ;;  %v5275_v33 = vadd.f32 %v1570_v38, %v1323_v44  ;;  %v2378_v56 = vrot.slane %v4222_v7, 1 }
 0x188   :  { %v3740_v24 = vpop.f32.mrf.mxu1  ;;  %v3796_v30 = vpop.f32.mrf.mxu0 }
 0x18a   :  { %v1270_v40 = vpop.f32.mrf.mxu1  ;;  %v1575_v54 = vpop.f32.mrf.mxu0  ;;  %3990 = vmatmul.mubr.bf16.gmra.mxu1 %v2377_v18  ;;  %4046 = vmatmul.mubr.bf16.gmra.mxu0 %v2617_v42 }
 0x18b   :  { %v1326_v32 = vadd.f32 %v1270_v40, %v5118_v61  ;;  %v5283_v27 = vadd.f32 %v1575_v54, %v1324_v4  ;;  %3993 = vmatprep.mubr.msk.bf16.mxu1 %vm4225_vm0, %v4224_v0  ;;  %4049 = vmatprep.mubr.msk.bf16.mxu0 %vm4225_vm0, %v4224_v0  ;;  %v2379_v61 = vsel %vm1428_vm2, %v2376_v37, %v2378_v56 }
 0x18c   :  { %v3743_v25 = vpop.f32.mrf.mxu1  ;;  %v3799_v1 = vpop.f32.mrf.mxu0 }
 0x18e   :  { %v1273_v35 = vpop.f32.mrf.mxu1  ;;  %v1578_v9 = vpop.f32.mrf.mxu0 }
 0x18f   :  { %v1327_v63 = vadd.f32 %v1273_v35, %v5130_v62  ;;  %v5291_v41 = vadd.f32 %v1578_v9, %v1325_v57  ;;  %v2380_v62 = vrot.slane %v4223_v47, 1 }
 0x190   :  { %v3744_v43 = vpop.f32.mrf.mxu1  ;;  %v3800_v51 = vpop.f32.mrf.mxu0 }
 0x192   :  { %v1278_v15 = vpop.f32.mrf.mxu1  ;;  %v1583_v10 = vpop.f32.mrf.mxu0  ;;  %3994 = vmatmul.mubr.bf16.gmra.mxu1 %v2379_v61  ;;  %4050 = vmatmul.mubr.bf16.gmra.mxu0 %v2619_v16 }
 0x193   :  { %v1328_v46 = vadd.f32 %v1278_v15, %v5136_v8  ;;  %v5299_v52 = vadd.f32 %v1583_v10, %v1326_v32  ;;  %3997 = vmatprep.mubr.msk.bf16.mxu1 %vm4225_vm0, %v4224_v0  ;;  %4053 = vmatprep.mubr.msk.bf16.mxu0 %vm4225_vm0, %v4224_v0  ;;  %v2381_v8 = vsel %vm1428_vm2, %v2378_v56, %v2380_v62 }
 0x194   :  { %v3747_v44 = vpop.f32.mrf.mxu1  ;;  %v3803_v60 = vpop.f32.mrf.mxu0 }
 0x196   :  { %v1281_v34 = vpop.f32.mrf.mxu1  ;;  %v1586_v55 = vpop.f32.mrf.mxu0 }
 0x197   :  { %v1329_v21 = vadd.f32 %v1281_v34, %v5143_v31  ;;  %v5307_v29 = vadd.f32 %v1586_v55, %v1327_v63  ;;  %v2622_v31 = vrot.slane %v5127_v3, 1 }
 0x198   :  { %v3748_v45 = vpop.f32.mrf.mxu1  ;;  %v3804_v4 = vpop.f32.mrf.mxu0 }
 0x19a   :  { %v1286_v37 = vpop.f32.mrf.mxu1  ;;  %v1591_v50 = vpop.f32.mrf.mxu0  ;;  %3998 = vmatmul.mubr.bf16.gmra.mxu1 %v2381_v8  ;;  %4054 = vmatmul.mubr.bf16.gmra.mxu0 %v2621_v19 }
 0x19b   :  { %v1330_v13 = vadd.f32 %v1286_v37, %v5154_v58  ;;  %v5312_v2 = vadd.f32 %v1591_v50, %v1328_v46  ;;  %4001 = vmatprep.mubr.msk.bf16.mxu1 %vm4225_vm0, %v4224_v0  ;;  %4057 = vmatprep.mubr.msk.bf16.mxu0 %vm4225_vm0, %v4224_v0  ;;  %v2623_v58 = vsel %vm1428_vm2, %v2620_v53, %v2622_v31 }
 0x19c   :  { %v3751_v17 = vpop.f32.mrf.mxu1  ;;  %v3807_v36 = vpop.f32.mrf.mxu0 }
 0x19e   :  { %v1289_v38 = vpop.f32.mrf.mxu1  ;;  %v1594_v57 = vpop.f32.mrf.mxu0 }
 0x19f   :  { %v1331_v18 = vadd.f32 %v1289_v38, %v5164_v22  ;;  %v5320_v42 = vadd.f32 %v1594_v57, %v1329_v21 }
 0x1a0   :  { %v3752_v7 = vpop.f32.mrf.mxu1  ;;  %v3808_v24 = vpop.f32.mrf.mxu0 }
 0x1a2   :  { %v1294_v30 = vpop.f32.mrf.mxu1  ;;  %v1599_v40 = vpop.f32.mrf.mxu0  ;;  %4002 = vmatmul.mubr.bf16.gmra.mxu1 %v2380_v62  ;;  %4058 = vmatmul.mubr.bf16.gmra.mxu0 %v2623_v58 }
 0x1a3   :  { %v1332_v54 = vadd.f32 %v1294_v30, %v5172_v11  ;;  %v5324_v32 = vadd.f32 %v1599_v40, %v1330_v13  ;;  %4061 = vmatprep.mubr.msk.bf16.mxu0 %vm4225_vm0, %v4224_v0 }
 0x1a4   :  { %v3755_v3 = vpop.f32.mrf.mxu1  ;;  %v3811_v56 = vpop.f32.mrf.mxu0 }
 0x1a6   :  { %v1297_v22 = vpop.f32.mrf.mxu1  ;;  %v1602_v39 = vpop.f32.mrf.mxu0 }
 0x1a7   :  { %v1333_v25 = vadd.f32 %v1297_v22, %v5180_v49  ;;  %v5329_v1 = vadd.f32 %v1602_v39, %v1331_v18 }
 0x1a8   :  { %v3756_v35 = vpop.f32.mrf.mxu1  ;;  %v3812_v9 = vpop.f32.mrf.mxu0 }
 0x1aa   :  { %v1302_v63 = vpop.f32.mrf.mxu1  ;;  %v1607_v61 = vpop.f32.mrf.mxu0  ;;  %4062 = vmatmul.mubr.bf16.gmra.mxu0 %v2622_v31 }
 0x1ab   :  { %v1334_v11 = vadd.f32 %v1302_v63, %v5188_v26  ;;  %v5332_v16 = vadd.f32 %v1607_v61, %v1332_v54 }
 0x1ac   :  { %v3759_v47 = vpop.f32.mrf.mxu1  ;;  %v3815_v43 = vpop.f32.mrf.mxu0 }
 0x1ae   :  { %v1305_v0 = vpop.f32.mrf.mxu1  ;;  %v1610_v51 = vpop.f32.mrf.mxu0 }
 0x1af   :  { %v1335_v15 = vadd.f32 %v1305_v0, %v5196_v14  ;;  %v5335_v10 = vadd.f32 %v1610_v51, %v1333_v25 }
 0x1b0   :  { %v3760_v49 = vpop.f32.mrf.mxu1  ;;  %v3816_v46 = vpop.f32.mrf.mxu0 }
 0x1b2   :  { %v1310_v62 = vpop.f32.mrf.mxu1  ;;  %v1615_v53 = vpop.f32.mrf.mxu0 }
 0x1b3   :  { %v1336_v44 = vadd.f32 %v1310_v62, %v5204_v48  ;;  %v5338_v60 = vadd.f32 %v1615_v53, %v1334_v11 }
 0x1b4   :  { %v3763_v34 = vpop.f32.mrf.mxu1  ;;  %v3819_v26 = vpop.f32.mrf.mxu0 }
 0x1b6   :  { %v1313_v55 = vpop.f32.mrf.mxu1  ;;  %v1618_v21 = vpop.f32.mrf.mxu0 }
 0x1b7   :  { %v5340_v8 = vadd.f32 %v1618_v21, %v1335_v15 }
 0x1b8   :  { %v3764_v19 = vpop.f32.mrf.mxu1  ;;  %v3820_v45 = vpop.f32.mrf.mxu0 }
 0x1ba   :  { %v1623_v4 = vpop.f32.mrf.mxu0  ;;  %v1785_v14 = vpop.f32.mrf.mxu1 }
 0x1bb   :  { %v5342_v37 = vadd.f32 %v1623_v4, %v1336_v44  ;;  %v1871_v50 = vadd.f32 %v1785_v14, %v5219_v59 }
 0x1bc   :  { %v3823_v13 = vpop.f32.mrf.mxu0  ;;  %v3843_v31 = vpop.f32.mrf.mxu1 }
 0x1be   :  { %v1626_v17 = vpop.f32.mrf.mxu0  ;;  %v1788_v48 = vpop.f32.mrf.mxu1 }
 0x1bf   :  { %v1872_v36 = vadd.f32 %v1788_v48, %v5227_v12 }
 0x1c0   :  { %v3824_v38 = vpop.f32.mrf.mxu0  ;;  %v3844_v57 = vpop.f32.mrf.mxu1 }
 0x1c2   :  { %v1793_v18 = vpop.f32.mrf.mxu1  ;;  %v2163_v58 = vpop.f32.mrf.mxu0 }
 0x1c3   :  { %v1873_v7 = vadd.f32 %v1793_v18, %v5235_v23  ;;  %v5347_v24 = vadd.f32 %v2163_v58, %v1871_v50 }
 0x1c4   :  { %v3847_v30 = vpop.f32.mrf.mxu1  ;;  %v3903_v40 = vpop.f32.mrf.mxu0 }
 0x1c6   :  { %v1796_v54 = vpop.f32.mrf.mxu1  ;;  %v2166_v3 = vpop.f32.mrf.mxu0 }
 0x1c7   :  { %v1874_v59 = vadd.f32 %v1796_v54, %v5243_v28  ;;  %v5350_v56 = vadd.f32 %v2166_v3, %v1872_v36 }
 0x1c8   :  { %v3848_v22 = vpop.f32.mrf.mxu1  ;;  %v3904_v39 = vpop.f32.mrf.mxu0 }
 0x1ca   :  { %v1801_v25 = vpop.f32.mrf.mxu1  ;;  %v2171_v12 = vpop.f32.mrf.mxu0 }
 0x1cb   :  { %v1875_v35 = vadd.f32 %v1801_v25, %v5251_v20  ;;  %v5353_v9 = vadd.f32 %v2171_v12, %v1873_v7 }
 0x1cc   :  { %v3851_v63 = vpop.f32.mrf.mxu1  ;;  %v3907_v23 = vpop.f32.mrf.mxu0 }
 0x1ce   :  { %v1804_v61 = vpop.f32.mrf.mxu1  ;;  %v2174_v11 = vpop.f32.mrf.mxu0 }
 0x1cf   :  { %v1876_v47 = vadd.f32 %v1804_v61, %v5259_v6  ;;  %v5356_v43 = vadd.f32 %v2174_v11, %v1874_v59 }
 0x1d0   :  { %v3852_v0 = vpop.f32.mrf.mxu1  ;;  %v3908_v28 = vpop.f32.mrf.mxu0 }
 0x1d2   :  { %v1809_v51 = vpop.f32.mrf.mxu1  ;;  %v2179_v15 = vpop.f32.mrf.mxu0 }
 0x1d3   :  { %v1877_v49 = vadd.f32 %v1809_v51, %v5267_v5  ;;  %v5359_v46 = vadd.f32 %v2179_v15, %v1875_v35 }
 0x1d4   :  { %v3855_v62 = vpop.f32.mrf.mxu1  ;;  %v3911_v20 = vpop.f32.mrf.mxu0 }
 0x1d6   :  { %v1812_v53 = vpop.f32.mrf.mxu1  ;;  %v2182_v44 = vpop.f32.mrf.mxu0 }
 0x1d7   :  { %v1878_v34 = vadd.f32 %v1812_v53, %v5275_v33  ;;  %v5362_v26 = vadd.f32 %v2182_v44, %v1876_v47 }
 0x1d8   :  { %v3856_v55 = vpop.f32.mrf.mxu1  ;;  %v3912_v6 = vpop.f32.mrf.mxu0 }
 0x1da   :  { %v1817_v21 = vpop.f32.mrf.mxu1  ;;  %v2187_v19 = vpop.f32.mrf.mxu0 }
 0x1db   :  { %v1879_v45 = vadd.f32 %v1817_v21, %v5283_v27  ;;  %v5365_v4 = vadd.f32 %v2187_v19, %v1877_v49 }
 0x1dc   :  { %v3859_v14 = vpop.f32.mrf.mxu1  ;;  %v3915_v5 = vpop.f32.mrf.mxu0 }
 0x1de   :  { %v1820_v50 = vpop.f32.mrf.mxu1  ;;  %v2190_v13 = vpop.f32.mrf.mxu0 }
 0x1df   :  { %v1880_v31 = vadd.f32 %v1820_v50, %v5291_v41  ;;  %v5368_v17 = vadd.f32 %v2190_v13, %v1878_v34 }
 0x1e0   :  { %v3860_v48 = vpop.f32.mrf.mxu1  ;;  %v3916_v33 = vpop.f32.mrf.mxu0 }
 0x1e2   :  { %v1825_v36 = vpop.f32.mrf.mxu1  ;;  %v2195_v38 = vpop.f32.mrf.mxu0 }
 0x1e3   :  { %v1881_v57 = vadd.f32 %v1825_v36, %v5299_v52  ;;  %v5371_v18 = vadd.f32 %v2195_v38, %v1879_v45 }
 0x1e4   :  { %v3863_v58 = vpop.f32.mrf.mxu1  ;;  %v3919_v27 = vpop.f32.mrf.mxu0 }
 0x1e6   :  { %v1828_v7 = vpop.f32.mrf.mxu1  ;;  %v2198_v30 = vpop.f32.mrf.mxu0 }
 0x1e7   :  { %v1882_v40 = vadd.f32 %v1828_v7, %v5307_v29  ;;  %v5374_v54 = vadd.f32 %v2198_v30, %v1880_v31 }
 0x1e8   :  { %v3864_v3 = vpop.f32.mrf.mxu1  ;;  %v3920_v41 = vpop.f32.mrf.mxu0 }
 0x1ea   :  { %v1833_v59 = vpop.f32.mrf.mxu1  ;;  %v2203_v22 = vpop.f32.mrf.mxu0 }
 0x1eb   :  { %v1883_v39 = vadd.f32 %v1833_v59, %v5312_v2  ;;  %v5377_v25 = vadd.f32 %v2203_v22, %v1881_v57 }
 0x1ec   :  { %v3867_v12 = vpop.f32.mrf.mxu1  ;;  %v3923_v52 = vpop.f32.mrf.mxu0 }
 0x1ee   :  { %v1836_v35 = vpop.f32.mrf.mxu1  ;;  %v2206_v63 = vpop.f32.mrf.mxu0 }
 0x1ef   :  { %v1884_v23 = vadd.f32 %v1836_v35, %v5320_v42  ;;  %v5380_v61 = vadd.f32 %v2206_v63, %v1882_v40 }
 0x1f0   :  { %v3868_v11 = vpop.f32.mrf.mxu1  ;;  %v3924_v29 = vpop.f32.mrf.mxu0 }
 0x1f2   :  { %v1841_v47 = vpop.f32.mrf.mxu1  ;;  %v2211_v0 = vpop.f32.mrf.mxu0 }
 0x1f3   :  { %v1885_v28 = vadd.f32 %v1841_v47, %v5324_v32  ;;  %v5383_v51 = vadd.f32 %v2211_v0, %v1883_v39 }
 0x1f4   :  { %v3871_v15 = vpop.f32.mrf.mxu1  ;;  %v3927_v2 = vpop.f32.mrf.mxu0 }
 0x1f6   :  { %v1844_v49 = vpop.f32.mrf.mxu1  ;;  %v2214_v62 = vpop.f32.mrf.mxu0 }
 0x1f7   :  { %v1886_v20 = vadd.f32 %v1844_v49, %v5329_v1  ;;  %v5386_v53 = vadd.f32 %v2214_v62, %v1884_v23 }
 0x1f8   :  { %v3872_v44 = vpop.f32.mrf.mxu1  ;;  %v3928_v42 = vpop.f32.mrf.mxu0 }
 0x1f9   :  { %v5411_v44 = vld [vmem:[%s5492_s5] ss:$0 sm:$0xff] }
 0x1fa   :  { %v1849_v34 = vpop.f32.mrf.mxu1  ;;  %v2219_v55 = vpop.f32.mrf.mxu0 }
 0x1fb   :  { %v1887_v6 = vadd.f32 %v1849_v34, %v5332_v16  ;;  %v5389_v21 = vadd.f32 %v2219_v55, %v1885_v28 }
 0x1fc   :  { %v3875_v19 = vpop.f32.mrf.mxu1  ;;  %v3931_v32 = vpop.f32.mrf.mxu0 }
 0x1fe   :  { %v1852_v45 = vpop.f32.mrf.mxu1  ;;  %v2222_v14 = vpop.f32.mrf.mxu0 }
 0x1ff   :  { %v1888_v5 = vadd.f32 %v1852_v45, %v5335_v10  ;;  %v5392_v50 = vadd.f32 %v2222_v14, %v1886_v20 }
 0x200   :  { %v3876_v13 = vpop.f32.mrf.mxu1  ;;  %v3932_v1 = vpop.f32.mrf.mxu0 }
 0x202   :  { %v1857_v31 = vpop.f32.mrf.mxu1  ;;  %v2227_v48 = vpop.f32.mrf.mxu0 }
 0x203   :  { %v1889_v33 = vadd.f32 %v1857_v31, %v5338_v60  ;;  %v5395_v36 = vadd.f32 %v2227_v48, %v1887_v6 }
 0x204   :  { %v3879_v38 = vpop.f32.mrf.mxu1  ;;  %v3935_v16 = vpop.f32.mrf.mxu0 }
 0x206   :  { %v1860_v57 = vpop.f32.mrf.mxu1  ;;  %v2230_v58 = vpop.f32.mrf.mxu0 }
 0x207   :  { %v1890_v27 = vadd.f32 %v1860_v57, %v5340_v8  ;;  %v5398_v7 = vadd.f32 %v2230_v58, %v1888_v5 }
 0x208   :  { %v3880_v30 = vpop.f32.mrf.mxu1  ;;  %v3936_v10 = vpop.f32.mrf.mxu0 }
 0x20a   :  { %v1865_v40 = vpop.f32.mrf.mxu1  ;;  %v2235_v3 = vpop.f32.mrf.mxu0 }
 0x20b   :  { %v1891_v41 = vadd.f32 %v1865_v40, %v5342_v37  ;;  %v5401_v59 = vadd.f32 %v2235_v3, %v1889_v33 }
 0x20c   :  { %v3883_v22 = vpop.f32.mrf.mxu1  ;;  %v3939_v60 = vpop.f32.mrf.mxu0 }
 0x20e   :  { %v1868_v39 = vpop.f32.mrf.mxu1  ;;  %v2238_v12 = vpop.f32.mrf.mxu0 }
 0x20f   :  { %v5403_v52 = vadd.f32 %v2238_v12, %v1890_v27 }
 0x210   :  { %v3884_v35 = vpop.f32.mrf.mxu1  ;;  %v3940_v63 = vpop.f32.mrf.mxu0 }
 0x212   :  { %v2243_v23 = vpop.f32.mrf.mxu0  ;;  %v2475_v8 = vpop.f32.mrf.mxu1 }
 0x213   :  { %v5405_v11 = vadd.f32 %v2243_v23, %v1891_v41  ;;  %v2561_v2 = vadd.f32 %v2475_v8, %v5347_v24 }
 0x214   :  { %v3943_v29 = vpop.f32.mrf.mxu0  ;;  %v3963_v47 = vpop.f32.mrf.mxu1 }
 0x216   :  { %v2246_v0 = vpop.f32.mrf.mxu0  ;;  %v2478_v28 = vpop.f32.mrf.mxu1 }
 0x217   :  { %v2562_v55 = vadd.f32 %v2478_v28, %v5350_v56 }
 0x218   :  { %v3944_v15 = vpop.f32.mrf.mxu0  ;;  %v3964_v37 = vpop.f32.mrf.mxu1 }
 0x21a   :  { %v2483_v49 = vpop.f32.mrf.mxu1  ;;  %v2717_v62 = vpop.f32.mrf.mxu0 }
 0x21b   :  { %v2803_v20 = vadd.f32 %v2717_v62, %v2561_v2  ;;  %v2563_v24 = vadd.f32 %v2483_v49, %v5353_v9 }
 0x21c   :  { %v3967_v42 = vpop.f32.mrf.mxu1  ;;  %v4023_v34 = vpop.f32.mrf.mxu0 }
 0x21d   :  { %v2831_v32 = vadd.f32 %v5411_v44, %v2803_v20 }
 0x21e   :  { %v2486_v6 = vpop.f32.mrf.mxu1  ;;  %v2720_v19 = vpop.f32.mrf.mxu0 }
 0x21f   :  { %v2804_v45 = vadd.f32 %v2720_v19, %v2562_v55  ;;  %v2852_v48 = vmax.f32 %v2831_v32, 0.0  ;;  %v2564_v56 = vadd.f32 %v2486_v6, %v5356_v43 }
 0x220   :  { %v3968_v14 = vpop.f32.mrf.mxu1  ;;  %v4024_v5 = vpop.f32.mrf.mxu0 }
 0x221   :  { %v2832_v13 = vadd.f32 %v5411_v44, %v2804_v45 }
 0x222   :  { %v2491_v1 = vpop.f32.mrf.mxu1  ;;  %v2725_v31 = vpop.f32.mrf.mxu0 }
 0x223   :  { %v2853_v33 = vmax.f32 %v2832_v13, 0.0  ;;  %v2805_v38 = vadd.f32 %v2725_v31, %v2563_v24  ;;  %v2565_v41 = vadd.f32 %v2491_v1, %v5359_v46 }
 0x224   :  { %v3971_v16 = vpop.f32.mrf.mxu1  ;;  %v4027_v57 = vpop.f32.mrf.mxu0 }
 0x225   :  { %v3298_v58 = vpack.c.bf16 %v2853_v33, %v2852_v48  ;;  %v2833_v9 = vadd.f32 %v5411_v44, %v2805_v38 }
 0x226   :  { %v2494_v27 = vpop.f32.mrf.mxu1  ;;  %v2728_v30 = vpop.f32.mrf.mxu0 }
 0x227   :  { %3299 = vst [vmem:[%s5493_s6] sm:$0xff] %v3298_v58   ;;  %v2806_v10 = vadd.f32 %v2728_v30, %v2564_v56  ;;  %v2854_v12 = vmax.f32 %v2833_v9, 0.0  ;;  %v2566_v8 = vadd.f32 %v2494_v27, %v5362_v26 }
 0x228   :  { %v3972_v40 = vpop.f32.mrf.mxu1  ;;  %v4028_v3 = vpop.f32.mrf.mxu0 }
 0x229   :  { %v2834_v22 = vadd.f32 %v5411_v44, %v2806_v10 }
 0x22a   :  { %v2499_v60 = vpop.f32.mrf.mxu1  ;;  %v2733_v39 = vpop.f32.mrf.mxu0 }
 0x22b   :  { %v2855_v43 = vmax.f32 %v2834_v22, 0.0  ;;  %v2807_v35 = vadd.f32 %v2733_v39, %v2565_v41  ;;  %v2567_v2 = vadd.f32 %v2499_v60, %v5365_v4 }
 0x22c   :  { %v3975_v63 = vpop.f32.mrf.mxu1  ;;  %v4031_v23 = vpop.f32.mrf.mxu0 }
 0x22d   :  { %v3303_v29 = vpack.c.bf16 %v2855_v43, %v2854_v12  ;;  %v2835_v46 = vadd.f32 %v5411_v44, %v2807_v35 }
 0x22e   :  { %v2502_v47 = vpop.f32.mrf.mxu1  ;;  %v2736_v0 = vpop.f32.mrf.mxu0 }
 0x22f   :  { %3345 = vst [vmem:[%s5493_s6 + $0x8] sm:$0xff] %v3303_v29   ;;  %v2808_v28 = vadd.f32 %v2736_v0, %v2566_v8  ;;  %v2856_v42 = vmax.f32 %v2835_v46, 0.0  ;;  %v2568_v19 = vadd.f32 %v2502_v47, %v5368_v17 }
 0x230   :  { %v3976_v15 = vpop.f32.mrf.mxu1  ;;  %v4032_v37 = vpop.f32.mrf.mxu0 }
 0x231   :  { %v2836_v49 = vadd.f32 %v5411_v44, %v2808_v28 }
 0x232   :  { %v2507_v62 = vpop.f32.mrf.mxu1  ;;  %v2741_v20 = vpop.f32.mrf.mxu0 }
 0x233   :  { %v2857_v26 = vmax.f32 %v2836_v49, 0.0  ;;  %v2809_v34 = vadd.f32 %v2741_v20, %v2567_v2  ;;  %v2569_v1 = vadd.f32 %v2507_v62, %v5371_v18 }
 0x234   :  { %v3979_v55 = vpop.f32.mrf.mxu1  ;;  %v4035_v6 = vpop.f32.mrf.mxu0 }
 0x235   :  { %v3308_v32 = vpack.c.bf16 %v2857_v26, %v2856_v42  ;;  %v2837_v4 = vadd.f32 %v5411_v44, %v2809_v34 }
 0x236   :  { %v2510_v45 = vpop.f32.mrf.mxu1  ;;  %v2744_v14 = vpop.f32.mrf.mxu0 }
 0x237   :  { %3346 = vst [vmem:[%s5493_s6 + $0x10] sm:$0xff] %v3308_v32   ;;  %v2810_v5 = vadd.f32 %v2744_v14, %v2568_v19  ;;  %v2858_v38 = vmax.f32 %v2837_v4, 0.0  ;;  %v2570_v58 = vadd.f32 %v2510_v45, %v5374_v54 }
 0x238   :  { %v3980_v24 = vpop.f32.mrf.mxu1  ;;  %v4036_v13 = vpop.f32.mrf.mxu0 }
 0x239   :  { %v2838_v31 = vadd.f32 %v5411_v44, %v2810_v5 }
 0x23a   :  { %v2515_v48 = vpop.f32.mrf.mxu1  ;;  %v2749_v33 = vpop.f32.mrf.mxu0 }
 0x23b   :  { %v2859_v17 = vmax.f32 %v2838_v31, 0.0  ;;  %v2811_v16 = vadd.f32 %v2749_v33, %v2569_v1  ;;  %v2571_v41 = vadd.f32 %v2515_v48, %v5377_v25 }
 0x23c   :  { %v3983_v57 = vpop.f32.mrf.mxu1  ;;  %v4039_v56 = vpop.f32.mrf.mxu0 }
 0x23d   :  { %v3313_v27 = vpack.c.bf16 %v2859_v17, %v2858_v38  ;;  %v2839_v18 = vadd.f32 %v5411_v44, %v2811_v16 }
 0x23e   :  { %v2518_v30 = vpop.f32.mrf.mxu1  ;;  %v2752_v9 = vpop.f32.mrf.mxu0 }
 0x23f   :  { %3347 = vst [vmem:[%s5493_s6 + $0x18] sm:$0xff] %v3313_v27   ;;  %v2812_v10 = vadd.f32 %v2752_v9, %v2570_v58  ;;  %v2860_v12 = vmax.f32 %v2839_v18, 0.0  ;;  %v2572_v23 = vadd.f32 %v2518_v30, %v5380_v61 }
 0x240   :  { %v3984_v40 = vpop.f32.mrf.mxu1  ;;  %v4040_v3 = vpop.f32.mrf.mxu0 }
 0x241   :  { %v2840_v22 = vadd.f32 %v5411_v44, %v2812_v10 }
 0x242   :  { %v2523_v60 = vpop.f32.mrf.mxu1  ;;  %v2757_v39 = vpop.f32.mrf.mxu0 }
 0x243   :  { %v2861_v54 = vmax.f32 %v2840_v22, 0.0  ;;  %v2813_v43 = vadd.f32 %v2757_v39, %v2571_v41  ;;  %v2573_v15 = vadd.f32 %v2523_v60, %v5383_v51 }
 0x244   :  { %v3987_v35 = vpop.f32.mrf.mxu1  ;;  %v4043_v63 = vpop.f32.mrf.mxu0 }
 0x245   :  { %v3318_v8 = vpack.c.bf16 %v2861_v54, %v2860_v12  ;;  %v2841_v25 = vadd.f32 %v5411_v44, %v2813_v43 }
 0x246   :  { %v2526_v29 = vpop.f32.mrf.mxu1  ;;  %v2760_v47 = vpop.f32.mrf.mxu0 }
 0x247   :  { %3348 = vst [vmem:[%s5493_s6 + $0x20] sm:$0xff] %v3318_v8   ;;  %v2814_v0 = vadd.f32 %v2760_v47, %v2572_v23  ;;  %v2862_v62 = vmax.f32 %v2841_v25, 0.0  ;;  %v2574_v34 = vadd.f32 %v2526_v29, %v5386_v53 }
 0x248   :  { %v3988_v46 = vpop.f32.mrf.mxu1  ;;  %v4044_v28 = vpop.f32.mrf.mxu0 }
 0x249   :  { %v2842_v37 = vadd.f32 %v5411_v44, %v2814_v0 }
 0x24a   :  { %v2531_v2 = vpop.f32.mrf.mxu1  ;;  %v2765_v49 = vpop.f32.mrf.mxu0 }
 0x24b   :  { %v2863_v61 = vmax.f32 %v2842_v37, 0.0  ;;  %v2815_v20 = vadd.f32 %v2765_v49, %v2573_v15  ;;  %v2575_v4 = vadd.f32 %v2531_v2, %v5389_v21 }
 0x24c   :  { %v3991_v42 = vpop.f32.mrf.mxu1  ;;  %v4047_v26 = vpop.f32.mrf.mxu0 }
 0x24d   :  { %v3323_v55 = vpack.c.bf16 %v2863_v61, %v2862_v62  ;;  %v2843_v51 = vadd.f32 %v5411_v44, %v2815_v20 }
 0x24e   :  { %v2534_v6 = vpop.f32.mrf.mxu1  ;;  %v2768_v19 = vpop.f32.mrf.mxu0 }
 0x24f   :  { %3349 = vst [vmem:[%s5493_s6 + $0x28] sm:$0xff] %v3323_v55   ;;  %v2816_v32 = vadd.f32 %v2768_v19, %v2574_v34  ;;  %v2864_v1 = vmax.f32 %v2843_v51, 0.0  ;;  %v2576_v38 = vadd.f32 %v2534_v6, %v5392_v50 }
 0x250   :  { %v3992_v45 = vpop.f32.mrf.mxu1  ;;  %v4048_v14 = vpop.f32.mrf.mxu0 }
 0x251   :  { %v2844_v5 = vadd.f32 %v5411_v44, %v2816_v32 }
 0x252   :  { %v2539_v24 = vpop.f32.mrf.mxu1  ;;  %v2773_v13 = vpop.f32.mrf.mxu0 }
 0x253   :  { %v2865_v53 = vmax.f32 %v2844_v5, 0.0  ;;  %v2817_v31 = vadd.f32 %v2773_v13, %v2575_v4  ;;  %v2577_v30 = vadd.f32 %v2539_v24, %v5395_v36 }
 0x254   :  { %v3995_v48 = vpop.f32.mrf.mxu1  ;;  %v4051_v33 = vpop.f32.mrf.mxu0 }
 0x255   :  { %v3328_v17 = vpack.c.bf16 %v2865_v53, %v2864_v1  ;;  %v2845_v21 = vadd.f32 %v5411_v44, %v2817_v31 }
 0x256   :  { %v2542_v16 = vpop.f32.mrf.mxu1  ;;  %v2776_v57 = vpop.f32.mrf.mxu0 }
 0x257   :  { %3350 = vst [vmem:[%s5493_s6 + $0x30] sm:$0xff] %v3328_v17   ;;  %v2818_v56 = vadd.f32 %v2776_v57, %v2576_v38  ;;  %v2866_v40 = vmax.f32 %v2845_v21, 0.0  ;;  %v2578_v60 = vadd.f32 %v2542_v16, %v5398_v7 }
 0x258   :  { %v3996_v58 = vpop.f32.mrf.mxu1  ;;  %v4052_v27 = vpop.f32.mrf.mxu0 }
 0x259   :  { %v2846_v9 = vadd.f32 %v5411_v44, %v2818_v56 }
 0x25a   :  { %v2547_v18 = vpop.f32.mrf.mxu1  ;;  %v2781_v10 = vpop.f32.mrf.mxu0 }
 0x25b   :  { %v2867_v50 = vmax.f32 %v2846_v9, 0.0  ;;  %v2819_v3 = vadd.f32 %v2781_v10, %v2577_v30  ;;  %v2579_v23 = vadd.f32 %v2547_v18, %v5401_v59 }
 0x25c   :  { %v3999_v41 = vpop.f32.mrf.mxu1  ;;  %v4055_v22 = vpop.f32.mrf.mxu0 }
 0x25d   :  { %v3333_v39 = vpack.c.bf16 %v2867_v50, %v2866_v40  ;;  %v2847_v36 = vadd.f32 %v5411_v44, %v2819_v3 }
 0x25e   :  { %v2550_v12 = vpop.f32.mrf.mxu1  ;;  %v2784_v54 = vpop.f32.mrf.mxu0 }
 0x25f   :  { %3351 = vst [vmem:[%s5493_s6 + $0x38] sm:$0xff] %v3333_v39   ;;  %v2820_v43 = vadd.f32 %v2784_v54, %v2578_v60  ;;  %v2868_v25 = vmax.f32 %v2847_v36, 0.0  ;;  %v2580_v15 = vadd.f32 %v2550_v12, %v5403_v52 }
 0x260   :  { %v4000_v35 = vpop.f32.mrf.mxu1  ;;  %v4056_v63 = vpop.f32.mrf.mxu0 }
 0x261   :  { %v2848_v8 = vadd.f32 %v5411_v44, %v2820_v43 }
 0x262   :  { %v2555_v29 = vpop.f32.mrf.mxu1  ;;  %v2789_v47 = vpop.f32.mrf.mxu0 }
 0x263   :  { %v2869_v7 = vmax.f32 %v2848_v8, 0.0  ;;  %v2821_v0 = vadd.f32 %v2789_v47, %v2579_v23  ;;  %v2581_v42 = vadd.f32 %v2555_v29, %v5405_v11 }
 0x264   :  { %v4059_v46 = vpop.f32.mrf.mxu0  ;;  %v4003_v28 = vpop.f32.mrf.mxu1 }
 0x265   :  { %v3338_v37 = vpack.c.bf16 %v2869_v7, %v2868_v25  ;;  %v2849_v59 = vadd.f32 %v5411_v44, %v2821_v0 }
 0x266   :  { %v2792_v2 = vpop.f32.mrf.mxu0  ;;  %v2558_v49 = vpop.f32.mrf.mxu1 }
 0x267   :  { %3352 = vst [vmem:[%s5493_s6 + $0x40] sm:$0xff] %v3338_v37   ;;  %v2822_v62 = vadd.f32 %v2792_v2, %v2580_v15  ;;  %v2870_v55 = vmax.f32 %v2849_v59, 0.0 }
 0x268   :  { %v4060_v61 = vpop.f32.mrf.mxu0  ;;  %v4004_v20 = vpop.f32.mrf.mxu1 }
 0x269   :  { %v2850_v26 = vadd.f32 %v5411_v44, %v2822_v62 }
 0x26a   :  { %v2797_v34 = vpop.f32.mrf.mxu0 }
 0x26b   :  { %v2871_v6 = vmax.f32 %v2850_v26, 0.0  ;;  %v2823_v52 = vadd.f32 %v2797_v34, %v2581_v42 }
 0x26c   :  { %v4063_v19 = vpop.f32.mrf.mxu0 }
 0x26d   :  { %v3343_v51 = vpack.c.bf16 %v2871_v6, %v2870_v55  ;;  %v2851_v32 = vadd.f32 %v5411_v44, %v2823_v52 }
 0x26e   :  { %v2800_v45 = vpop.f32.mrf.mxu0 }
 0x26f   :  { %3353 = vst [vmem:[%s5493_s6 + $0x48] sm:$0xff] %v3343_v51   ;;  %v2872_v14 = vmax.f32 %v2851_v32, 0.0 }
 0x270   :  { %v4064_v4 = vpop.f32.mrf.mxu0 }
 0x271   :  { %v3294_v5 = vpack.c.bf16 %v2872_v14, %v2872_v14 }
 0x273   :  { %2978 = vst [vmem:[%s5493_s6 + $0x50] sm:$0x1] %v3294_v5 }

// kernel: _lambda_.10
= control target key start
LH: loop header
LB: loop body
LE: loop exit
PB: predicated region body
PF: predicated region fallthrough
CT: control target
= control target key end

     0   :  { %v2761_v1 = vmov 0   ;;  %vm390_vm0 = vsmask.f32 7424  ;;  %vm862_vm1 = vsmask.f32 5376  ;;  %vm680_vm2 = vcmask 1046528   ;;  %s3323_s1 = inlined_call_operand.vmem [shape: bf16[1,128,128], index: 1, kind: input, shape index: {}]   ;;  %s3324_s0 = inlined_call_operand.vmem [shape: bf16[62,128], index: 0, kind: input, shape index: {}]   ;;  %s3325_s3 = inlined_call_operand.vmem [shape: f32[62,1], index: 3, kind: input, shape index: {}]   ;;  %s3326_s4 = inlined_call_operand.vmem [shape: bf16[9,128,128], index: 4, kind: input, shape index: {}]   ;;  %s3327_s2 = inlined_call_operand.vmem [shape: f32[1,128], index: 2, kind: input, shape index: {}]   ;;  %s3328_s6 = inlined_call_operand.vmem [shape: bf16[62,128], index: 6, kind: input, shape index: {}]   ;;  %s3329_s7 = inlined_call_operand.vmem [shape: bf16[62,128], index: 7, kind: output, shape index: {0}]   ;;  %s3330_s5 = inlined_call_operand.vmem [shape: f32[1,128], index: 5, kind: input, shape index: {}]   ;;  %s3331_s8 = inlined_call_operand.vmem [shape: bf16[62,128], index: 8, kind: output, shape index: {1}]  }
   0x1   :  { %v2654_v0 = vld [vmem:[%s3323_s1 + $0x38] sm:$0xff]   ;;  %2653 = vset.pattern.permute.xlu1 %v2761_v1  ;;  %325 = vst [vmem:[#allocation2 + $0x1c] sm:$0x8] %v2761_v1  ;;  %326 = vst [vmem:[#allocation2 + $0x20] sm:$0xf] %v2761_v1  ;;  %2652 = vset.pattern.permute.xlu0 %v2761_v1  ;;  %v2655_v2 = vld [vmem:[%s3323_s1 + $0x30] sm:$0xff]  }
   0x2   :  { %327 = vst [vmem:[#allocation2 + $0x24] sm:$0x1] %v2761_v1  ;;  %2411 = vmatprep.subr.bf16.mxu0 %v2654_v0  ;;  %v2656_v3 = vld [vmem:[%s3323_s1 + $0x28] sm:$0xff]   ;;  %v2657_v4 = vld [vmem:[%s3323_s1 + $0x20] sm:$0xff]   ;;  %v2658_v6 = vld [vmem:[%s3323_s1 + $0x18] sm:$0xff]   ;;  %vm1053_vm4 = vcmask 1044480  }
   0x3   :  { %2412 = vmatpush3.bf16.msra.mxu0 %v2654_v0  ;;  %v2662_v5 = vld [vmem:[%s3324_s0] sm:$0xff]   ;;  %v223_v7 = vld [vmem:[%s3325_s3 + $0x10] sm:$0xff]  ;;  %v224_v9 = vld [vmem:[%s3325_s3 + $0x18] sm:$0xff]  ;;  %vm1209_vm3 = vsmask.f32 4352  ;;  %vm1759_vm6 = vcmask 1045504  }
   0x4   :  { %2413 = vmatprep.subr.bf16.mxu0 %v2655_v2  ;;  %2427 = vmatprep.mubr.bf16.mxu0 %v2662_v5  ;;  %v221_v8 = vld [vmem:[%s3325_s3] sm:$0xff]  ;;  %v222_v10 = vld [vmem:[%s3325_s3 + $0x8] sm:$0xff]  ;;  %v2659_v11 = vld [vmem:[%s3323_s1 + $0x10] sm:$0xff]   ;;  %vm1572_vm5 = vsmask.f32 6400 }
   0x5   :  { %241 = vperm.xlu1 %2653, %v223_v7   ;;  %231 = vperm.xlu0 %2652, %v221_v8   ;;  %v226_v12 = vld [vmem:[%s3325_s3 + $0x28] sm:$0xff]  ;;  %v225_v13 = vld [vmem:[%s3325_s3 + $0x20] sm:$0xff]  ;;  %v228_v15 = vld [vmem:[%s3325_s3 + $0x38] sm:$0x3f] }
   0x6   :  { %v2660_v14 = vld [vmem:[%s3323_s1 + $0x8] sm:$0xff]   ;;  %v227_v16 = vld [vmem:[%s3325_s3 + $0x30] sm:$0xff]  ;;  %v2661_v17 = vld [vmem:[%s3323_s1] sm:$0xff]  }
   0x7   :  { %2414 = vmatpush3.bf16.msra.mxu0 %v2655_v2  ;;  %v2666_v18 = vld [vmem:[%s3326_s4 + $0x38] sm:$0xff]   ;;  %v2663_v19 = vld [vmem:[%s3324_s0 + $0x8] sm:$0xff]   ;;  %v2664_v20 = vld [vmem:[%s3324_s0 + $0x10] sm:$0xff]  }
   0x8   :  { %2415 = vmatprep.subr.bf16.mxu0 %v2656_v3  ;;  %v2667_v21 = vld [vmem:[%s3326_s4 + $0x30] sm:$0xff]   ;;  %v2665_v22 = vld [vmem:[%s3324_s0 + $0x18] sm:$0x7f]   ;;  %v2668_v23 = vld [vmem:[%s3326_s4 + $0x28] sm:$0xff]  }
   0x9   :  { %246 = vperm.xlu1 %2653, %v224_v9   ;;  %236 = vperm.xlu0 %2652, %v222_v10   ;;  %v2669_v24 = vld [vmem:[%s3326_s4 + $0x78] sm:$0xff]   ;;  %v2670_v25 = vld [vmem:[%s3326_s4 + $0x20] sm:$0xff]   ;;  %v2671_v26 = vld [vmem:[%s3326_s4 + $0x70] sm:$0xff]  }
   0xa   :  { %2435 = vmatprep.subr.bf16.mxu1 %v2669_v24  ;;  %v2672_v27 = vld [vmem:[%s3326_s4 + $0x18] sm:$0xff]   ;;  %v2673_v28 = vld [vmem:[%s3326_s4 + $0x68] sm:$0xff]   ;;  %v2674_v29 = vld [vmem:[%s3326_s4 + $0x10] sm:$0xff]  }
   0xb   :  { %2416 = vmatpush3.bf16.msra.mxu0 %v2656_v3  ;;  %2436 = vmatpush3.bf16.msra.mxu1 %v2669_v24  ;;  %v2675_v30 = vld [vmem:[%s3326_s4 + $0x60] sm:$0xff]   ;;  %v2676_v31 = vld [vmem:[%s3326_s4 + $0x8] sm:$0xff]   ;;  %v2677_v32 = vld [vmem:[%s3326_s4 + $0x58] sm:$0xff]  }
   0xc   :  { %2417 = vmatprep.subr.bf16.mxu0 %v2657_v4  ;;  %2437 = vmatprep.subr.bf16.mxu1 %v2671_v26  ;;  %v2678_v33 = vld [vmem:[%s3326_s4] sm:$0xff]   ;;  %v2679_v34 = vld [vmem:[%s3326_s4 + $0x50] sm:$0xff]   ;;  %v2912_v35 = vld [vmem:[%s3326_s4 + $0xf8] sm:$0xff]  }
   0xd   :  { %256 = vperm.xlu1 %2653, %v226_v12   ;;  %251 = vperm.xlu0 %2652, %v225_v13   ;;  %v2684_v36 = vld [vmem:[%s3326_s4 + $0x48] sm:$0xff]   ;;  %v2686_v37 = vld [vmem:[%s3326_s4 + $0x40] sm:$0xff]   ;;  %v2924_v38 = vld [vmem:[%s3326_s4 + $0xb8] sm:$0xff]  }
   0xe   :  { %v1957_v41 = vld [vmem:[%s3327_s2] ss:$0 sm:$0xff]  ;;  %v2283_v42 = vld [vmem:[%s3328_s6 + $0x8] sm:$0xff]   ;;  %v203_v54 = vld [vmem:[%s3328_s6 + $0x18] sm:$0xf] }
   0xf   :  { %2418 = vmatpush3.bf16.msra.mxu0 %v2657_v4  ;;  %2438 = vmatpush3.bf16.msra.mxu1 %v2671_v26  ;;  %v2227_v43 = vld [vmem:[%s3328_s6] sm:$0xff]   ;;  %v2232_v47 = vunpack.c.l.bf16 %v2283_v42  ;;  %v2233_v51 = vunpack.c.h.bf16 %v2283_v42  ;;  %v211_v63 = vunpack.c.l.bf16 %v203_v54  ;;  %v2284_v0 = vld [vmem:[%s3328_s6 + $0x10] sm:$0xff]   ;;  %v204_v1 = vld [vmem:[%s3328_s6 + $0x1c] sm:$0x7] }
  0x10   :  { %2419 = vmatprep.subr.bf16.mxu0 %v2658_v6  ;;  %2439 = vmatprep.subr.bf16.mxu1 %v2673_v28  ;;  %v2228_v49 = vunpack.c.l.bf16 %v2227_v43  ;;  %v2229_v57 = vunpack.c.h.bf16 %v2227_v43  ;;  %v2236_v10 = vunpack.c.l.bf16 %v2284_v0 }
  0x11   :  { %266 = vperm.xlu1 %2653, %v228_v15   ;;  %261 = vperm.xlu0 %2652, %v227_v16  }
  0x13   :  { %2420 = vmatpush3.bf16.msra.mxu0 %v2658_v6  ;;  %2440 = vmatpush3.bf16.msra.mxu1 %v2673_v28 }
  0x14   :  { %2421 = vmatprep.subr.bf16.mxu0 %v2659_v11  ;;  %2441 = vmatprep.subr.bf16.mxu1 %v2675_v30 }
  0x17   :  { %2422 = vmatpush3.bf16.msra.mxu0 %v2659_v11  ;;  %2442 = vmatpush3.bf16.msra.mxu1 %v2675_v30  ;;  %v212_v11 = vunpack.c.l.bf16 %v204_v1 }
  0x18   :  { %2423 = vmatprep.subr.bf16.mxu0 %v2660_v14  ;;  %2443 = vmatprep.subr.bf16.mxu1 %v2677_v32 }
  0x1b   :  { %2424 = vmatpush3.bf16.msra.mxu0 %v2660_v14  ;;  %2444 = vmatpush3.bf16.msra.mxu1 %v2677_v32 }
  0x1c   :  { %2425 = vmatprep.subr.bf16.mxu0 %v2661_v17  ;;  %2445 = vmatprep.subr.bf16.mxu1 %v2679_v34 }
  0x1f   :  { %2426 = vmatpush3.bf16.msra.mxu0 %v2661_v17  ;;  %2446 = vmatpush3.bf16.msra.mxu1 %v2679_v34 }
  0x20   :  { %2459 = vmatprep.subr.bf16.mxu0 %v2666_v18  ;;  %2447 = vmatprep.subr.bf16.mxu1 %v2684_v36 }
  0x22   :  { %2428 = vmatmul.mubr.bf16.vlgmr.msra.gmra.mxu0 %v2663_v19 }
  0x23   :  { %2431 = vmatprep.mubr.bf16.mxu0 %v2664_v20  ;;  %2460 = vmatpush3.bf16.msra.mxu0 %v2666_v18 }
  0x24   :  { %2461 = vmatprep.subr.bf16.mxu0 %v2667_v21  ;;  %2448 = vmatpush3.bf16.msra.mxu1 %v2684_v36 }
  0x25   :  { %2449 = vmatprep.subr.bf16.mxu1 %v2686_v37 }
  0x27   :  { %2462 = vmatpush3.bf16.msra.mxu0 %v2667_v21  ;;  %v2237_v21 = vunpack.c.h.bf16 %v2284_v0 }
  0x28   :  { %2463 = vmatprep.subr.bf16.mxu0 %v2668_v23  ;;  %2450 = vmatpush3.bf16.msra.mxu1 %v2686_v37 }
  0x29   :  { %2483 = vmatprep.subr.bf16.mxu1 %v2924_v38 }
  0x2a   :  { %2432 = vmatmul.mubr.bf16.gmra.mxu0 %v2665_v22 }
  0x2b   :  { %2464 = vmatpush3.bf16.msra.mxu0 %v2668_v23 }
  0x2c   :  { %2465 = vmatprep.subr.bf16.mxu0 %v2670_v25 }
  0x2f   :  { %2466 = vmatpush3.bf16.msra.mxu0 %v2670_v25 }
  0x30   :  { %2467 = vmatprep.subr.bf16.mxu0 %v2672_v27 }
  0x33   :  { %2468 = vmatpush3.bf16.msra.mxu0 %v2672_v27 }
  0x34   :  { %2469 = vmatprep.subr.bf16.mxu0 %v2674_v29 }
  0x37   :  { %2470 = vmatpush3.bf16.msra.mxu0 %v2674_v29 }
  0x38   :  { %2471 = vmatprep.subr.bf16.mxu0 %v2676_v31 }
  0x3b   :  { %2472 = vmatpush3.bf16.msra.mxu0 %v2676_v31 }
  0x3c   :  { %2473 = vmatprep.subr.bf16.mxu0 %v2678_v33 }
  0x3f   :  { %2474 = vmatpush3.bf16.msra.mxu0 %v2678_v33 }
  0x40   :  { %2507 = vmatprep.subr.bf16.mxu0 %v2912_v35 }
  0x80   :  { %v232_v39 = vpop.permute.xlu0 %231  ;;  %v242_v40 = vpop.permute.xlu1 %241 }
  0x84   :  { %v237_v45 = vpop.permute.xlu0 %236  ;;  %v247_v52 = vpop.permute.xlu1 %246 }
  0x88   :  { %v252_v59 = vpop.permute.xlu0 %251  ;;  %v257_v8 = vpop.permute.xlu1 %256 }
  0x8c   :  { %v262_v16 = vpop.permute.xlu0 %261  ;;  %v267_v27 = vpop.permute.xlu1 %266 }
  0xe2   :  { %v2429_v44 = vpop.f32.mrf.mxu0 }
  0xe3   :  { %v175_v46 = vadd.f32 %v2429_v44, %v1957_v41 }
  0xe4   :  { %v166_v48 = vpop.f32.mrf.mxu0 }
  0xe5   :  { %v167_v50 = vadd.f32 %v1957_v41, %v166_v48  ;;  %v215_v55 = vadd.f32 %v2232_v47, %v175_v46 }
  0xe6   :  { %v2430_v53 = vpop.f32.mrf.mxu0 }
  0xe7   :  { %v178_v56 = vadd.f32 %v2430_v53, %v1957_v41  ;;  %v213_v58 = vadd.f32 %v2228_v49, %v167_v50  ;;  %v271_v3 = vmul.f32 %v242_v40, %v215_v55 }
  0xe8   :  { %v169_v60 = vpop.f32.mrf.mxu0 }
  0xe9   :  { %v216_v61 = vadd.f32 %v2233_v51, %v178_v56  ;;  %v170_v62 = vadd.f32 %v1957_v41, %v169_v60  ;;  %v269_v7 = vmul.f32 %v232_v39, %v213_v58 }
  0xea   :  { %v2433_v2 = vpop.f32.mrf.mxu0 }
  0xeb   :  { %v272_v4 = vmul.f32 %v247_v52, %v216_v61  ;;  %v214_v5 = vadd.f32 %v2229_v57, %v170_v62  ;;  %v191_v6 = vadd.f32 %v2433_v2, %v1957_v41 }
  0xec   :  { %v182_v9 = vpop.f32.mrf.mxu0 }
  0xed   :  { %v2246_v12 = vpack.c.bf16 %v272_v4, %v271_v3  ;;  %v270_v13 = vmul.f32 %v237_v45, %v214_v5  ;;  %v219_v14 = vadd.f32 %v211_v63, %v191_v6  ;;  %v183_v15 = vadd.f32 %v1957_v41, %v182_v9  ;;  %v2685_v45 = vld [vmem:[%s3326_s4 + $0xf0] sm:$0xff]   ;;  %v2688_v63 = vld [vmem:[%s3326_s4 + $0xe8] sm:$0xff]  }
  0xee   :  { %v2434_v17 = vpop.f32.mrf.mxu0 }
  0xef   :  { %2285 = vst [vmem:[%s3329_s7 + $0x8] sm:$0xff] %v2246_v12   ;;  %2287 = vst [vmem:[#allocation2 + $0x8] sm:$0xff] %v2246_v12   ;;  %v2241_v18 = vpack.c.bf16 %v270_v13, %v269_v7  ;;  %v275_v19 = vmul.f32 %v262_v16, %v219_v14  ;;  %v194_v20 = vadd.f32 %v2434_v17, %v1957_v41  ;;  %v2695_v7 = vld [vmem:[%s3326_s4 + $0xe0] sm:$0xff]  }
  0xf0   :  { %v185_v22 = vpop.f32.mrf.mxu0  ;;  %v217_v24 = vadd.f32 %v2236_v10, %v183_v15 }
  0xf1   :  { %2242 = vst [vmem:[%s3329_s7] sm:$0xff] %v2241_v18   ;;  %2257 = vst [vmem:[#allocation2] sm:$0xff] %v2241_v18   ;;  %v2216_v23 = vpack.c.bf16 %v275_v19, %v275_v19  ;;  %v220_v25 = vadd.f32 %v212_v11, %v194_v20  ;;  %v186_v26 = vadd.f32 %v1957_v41, %v185_v22  ;;  %v2696_v18 = vld [vmem:[%s3326_s4 + $0xb0] sm:$0xff]   ;;  %v2697_v19 = vld [vmem:[%s3326_s4 + $0xd8] sm:$0xff]  }
  0xf2   :  { %v273_v30 = vmul.f32 %v252_v59, %v217_v24  ;;  %v2698_v24 = vld [vmem:[%s3326_s4 + $0xa8] sm:$0xff]  }
  0xf3   :  { %315 = vst [vmem:[%s3329_s7 + $0x18] sm:$0xf] %v2216_v23  ;;  %323 = vst [vmem:[#allocation2 + $0x18] sm:$0xf] %v2216_v23  ;;  %v276_v28 = vmul.f32 %v267_v27, %v220_v25  ;;  %v218_v29 = vadd.f32 %v2237_v21, %v186_v26  ;;  %v2699_v25 = vld [vmem:[%s3326_s4 + $0xd0] sm:$0xff]  }
  0xf5   :  { %v2217_v31 = vpack.c.bf16 %v276_v28, %v276_v28  ;;  %v274_v32 = vmul.f32 %v257_v8, %v218_v29 }
  0xf6   :  { %v2957_v34 = vld [vmem:[#allocation2 + $0x8] sm:$0xff]  }
  0xf7   :  { %316 = vst [vmem:[%s3329_s7 + $0x1c] sm:$0x7] %v2217_v31  ;;  %324 = vst [vmem:[#allocation2 + $0x1c] sm:$0x7] %v2217_v31  ;;  %v2251_v33 = vpack.c.bf16 %v274_v32, %v273_v30  ;;  %v2959_v36 = vld [vmem:[#allocation2 + $0x8] sm:$0xf] }
  0xf8   :  { %v2961_v37 = vld [vmem:[#allocation2 + $0xc] sm:$0xf]  ;;  %v328_v39 = vld [vmem:[#allocation2] sm:$0xf]  ;;  %v2963_v40 = vld [vmem:[#allocation2 + $0x4] sm:$0xf] }
  0xf9   :  { %v2967_v41 = vcombine.low %v2959_v36, %v2961_v37  ;;  %2286 = vst [vmem:[%s3329_s7 + $0x10] sm:$0xff] %v2251_v33   ;;  %2288 = vst [vmem:[#allocation2 + $0x10] sm:$0xff] %v2251_v33   ;;  %v1994_v42 = vcombine.low %v328_v39, %v2963_v40  ;;  %v813_v43 = vld [vmem:[#allocation2] sm:$0xc]  ;;  %v2973_v44 = vld [vmem:[#allocation2 + $0x4] sm:$0xf] }
  0xfa   :  { %v2056_v46 = vcombine.low %v813_v43, %v2973_v44  ;;  %v399_v50 = vshll.u32 %v2957_v34, 16  ;;  %v334_v55 = vld [vmem:[#allocation2 + $0x18] sm:$0xf]  ;;  %v403_v4 = vshrl.u32 %v2957_v34, 16  ;;  %v659_v10 = vld [vmem:[#allocation2] sm:$0xe] }
  0xfb   :  { %v872_v47 = vshrl.u32 %v2967_v41, 16  ;;  %v875_v48 = vshll.u32 %v2967_v41, 16  ;;  %2475 = vmatprep.mubr.bf16.mxu0 %v1994_v42  ;;  %v394_v49 = vshll.u32 %v1994_v42, 16  ;;  %v392_v53 = vshrl.u32 %v1994_v42, 16  ;;  %v2700_v31 = vld [vmem:[%s3326_s4 + $0xa0] sm:$0xff]   ;;  %v2701_v39 = vld [vmem:[%s3326_s4 + $0xc8] sm:$0xff]  }
  0xfc   :  { %2476 = vmatmul.mubr.bf16.vlgmr.msra.gmra.mxu0 %v2957_v34  ;;  %v864_v51 = vshrl.u32 %v2056_v46, 16  ;;  %v867_v52 = vshll.u32 %v2056_v46, 16  ;;  %v401_v62 = vrot.slane %v399_v50, 1  ;;  %v2031_v20 = vcombine.low %v659_v10, %v2963_v40  ;;  %v819_v32 = vld [vmem:[#allocation2 + $0x18] sm:$0xf] }
  0xfd   :  { %2508 = vmatpush3.bf16.msra.mxu0 %v2912_v35  ;;  %v396_v54 = vrot.slane %v394_v49, 1  ;;  %v874_v59 = vrot.slane %v872_v47, 2  ;;  %v877_v60 = vrot.slane %v875_v48, 3  ;;  %v682_v30 = vrot.slane %v2957_v34, 1  ;;  %v1364_v33 = vld [vmem:[#allocation2 + $0x4] sm:$0xe] }
  0xfe   :  { %2509 = vmatprep.subr.bf16.mxu0 %v2685_v45  ;;  %v352_v56 = vld [vmem:[#allocation2 + $0x1c] sm:$0xf]  ;;  %v866_v57 = vrot.slane %v864_v51, 2  ;;  %v869_v58 = vrot.slane %v867_v52, 3  ;;  %v405_v12 = vor.u32 %v403_v4, %v401_v62  ;;  %v681_v27 = vrot.slane %v2031_v20, 1  ;;  %v2718_v34 = vld [vmem:[%s3326_s4 + $0x150] sm:$0xff]  }
  0xff   :  { %v397_v61 = vor.u32 %v396_v54, %v392_v53  ;;  %v335_v35 = vld [vmem:[#allocation2 + $0x1c] sm:$0x7]  ;;  %v2991_v0 = vcombine.low %v334_v55, %v352_v56  ;;  %v2998_v6 = vor.u32 %v877_v60, %v874_v59  ;;  %v1365_v42 = vld [vmem:[#allocation2 + $0x20] sm:$0xf]  ;;  %v2135_v49 = vcombine.low %v1364_v33, %v2959_v36 }
 0x100   :  { %v2993_v1 = vld [vmem:[#allocation2 + $0x10] sm:$0xff]   ;;  %v870_v2 = vor.u32 %v869_v58, %v866_v57  ;;  %v2006_v5 = vcombine.low %v334_v55, %v335_v35  ;;  %v820_v28 = vld [vmem:[#allocation2 + $0x1c] sm:$0xf]  ;;  %v683_v43 = vsel %vm680_vm2, %v681_v27, %v682_v30  ;;  %v1032_v50 = vld [vmem:[#allocation2] sm:$0x8] }
 0x101   :  { %2510 = vmatpush3.bf16.msra.mxu0 %v2685_v45  ;;  %v402_v3 = vsel %vm390_vm0, %v397_v61, %v401_v62  ;;  %2479 = vmatprep.mubr.bf16.mxu0 %v2993_v1  ;;  %v407_v8 = vshll.u32 %v2993_v1, 16  ;;  %v415_v9 = vshll.u32 %v2991_v0, 16  ;;  %v411_v14 = vshrl.u32 %v2993_v1, 16  ;;  %v817_v22 = vld [vmem:[#allocation2 + $0x10] sm:$0xf]  ;;  %v2702_v51 = vld [vmem:[%s3326_s4 + $0x98] sm:$0xff]  }
 0x102   :  { %2451 = vmatprep.mubr.bf16.mxu1 %v402_v3  ;;  %2511 = vmatprep.subr.bf16.mxu0 %v2688_v63  ;;  %v879_v11 = vsel %vm862_vm1, %v870_v2, %v2998_v6  ;;  %v818_v23 = vld [vmem:[#allocation2 + $0x14] sm:$0xf]  ;;  %v419_v26 = vshrl.u32 %v2991_v0, 16  ;;  %v3034_v40 = vcombine.low %v819_v32, %v820_v28  ;;  %v2138_v52 = vcombine.low %v820_v28, %v1365_v42  ;;  %v2703_v53 = vld [vmem:[%s3326_s4 + $0xc0] sm:$0xff]   ;;  %v2706_v2 = vld [vmem:[%s3326_s4 + $0x178] sm:$0xff]  }
 0x103   :  { %v409_v13 = vrot.slane %v407_v8, 1  ;;  %v417_v17 = vrot.slane %v415_v9, 1  ;;  %v3050_v56 = vld [vmem:[#allocation2 + $0x20] ss:$0 sps:$4 sm:$0x33]   ;;  %v2136_v36 = vcombine.low %v2961_v37, %v817_v22  ;;  %v2137_v59 = vcombine.low %v818_v23, %v819_v32  ;;  %v2717_v42 = vld [vmem:[%s3326_s4 + $0x128] sm:$0xff]  }
 0x104   :  { %2480 = vmatmul.mubr.bf16.gmra.mxu0 %v2006_v5  ;;  %v890_v54 = vshrl.u32 %v3034_v40, 16  ;;  %v893_v55 = vshll.u32 %v3034_v40, 16  ;;  %v3058_v60 = vcombine.low %v1032_v50, %v2973_v44  ;;  %v1391_v61 = vrot.slane %v2135_v49, 1  ;;  %v2719_v49 = vld [vmem:[%s3326_s4 + $0x120] sm:$0xff]   ;;  %v2720_v50 = vld [vmem:[%s3326_s4 + $0x148] sm:$0xff]  }
 0x105   :  { %2512 = vmatpush3.bf16.msra.mxu0 %v2688_v63  ;;  %2523 = vmatprep.mubr.bf16.mxu0 %v879_v11  ;;  %v410_v15 = vsel %vm390_vm0, %v405_v12, %v409_v13  ;;  %v413_v16 = vor.u32 %v411_v14, %v409_v13  ;;  %v421_v29 = vor.u32 %v419_v26, %v417_v17  ;;  %v1392_v62 = vrot.slane %v2136_v36, 1  ;;  %v2704_v63 = vld [vmem:[%s3326_s4 + $0x90] sm:$0xff]   ;;  %v2708_v14 = vld [vmem:[%s3326_s4 + $0x88] sm:$0xff]   ;;  %v2728_v36 = vld [vmem:[#allocation2 + $0x20] ss:$0 sps:$4 sm:$0x77]  }
 0x106   :  { %2513 = vmatprep.subr.bf16.mxu0 %v2695_v7  ;;  %2452 = vmatmul.mubr.bf16.vlgmr.msra.gmra.mxu1 %v410_v15  ;;  %v1394_v37 = vrot.slane %v2137_v59, 1  ;;  %v3063_v35 = vrot.slane %v2138_v52, 1  ;;  %v892_v44 = vrot.slane %v890_v54, 2  ;;  %v895_v3 = vrot.slane %v893_v55, 3  ;;  %v2709_v15 = vld [vmem:[%s3326_s4 + $0x170] sm:$0xff]   ;;  %v2721_v52 = vld [vmem:[%s3326_s4 + $0x118] sm:$0xff]  }
 0x107   :  { %2484 = vmatpush3.bf16.msra.mxu1 %v2924_v38  ;;  %v418_v21 = vsel %vm390_vm0, %v413_v16, %v417_v17  ;;  %v3025_v38 = vcombine.low %v817_v22, %v818_v23  ;;  %v899_v4 = vshrl.u32 %v3050_v56, 16  ;;  %v3074_v5 = vsel %vm680_vm2, %v1391_v61, %v1392_v62  ;;  %v2710_v22 = vld [vmem:[%s3326_s4 + $0x80] sm:$0xff]   ;;  %v2723_v61 = vld [vmem:[%s3326_s4 + $0x110] sm:$0xff]  }
 0x108   :  { %2455 = vmatprep.mubr.bf16.mxu1 %v418_v21  ;;  %2485 = vmatprep.subr.bf16.mxu1 %v2696_v18  ;;  %v902_v8 = vshll.u32 %v3050_v56, 16  ;;  %v3078_v9 = vsel %vm680_vm2, %v1392_v62, %v1394_v37  ;;  %v3082_v10 = vsel %vm680_vm2, %v1394_v37, %v3063_v35  ;;  %v1211_v11 = vshrl.u32 %v3058_v60, 16  ;;  %v1523_v59 = vld [vmem:[#allocation2 + $0x4] sm:$0xe]  ;;  %v3160_v62 = vld [vmem:[#allocation2 + $0x8] sm:$0xf] }
 0x109   :  { %2514 = vmatpush3.bf16.msra.mxu0 %v2695_v7  ;;  %v881_v45 = vshrl.u32 %v3025_v38, 16  ;;  %v884_v46 = vshll.u32 %v3025_v38, 16  ;;  %v1214_v12 = vshll.u32 %v3058_v60, 16  ;;  %v896_v13 = vor.u32 %v895_v3, %v892_v44 }
 0x10a   :  { %2515 = vmatprep.subr.bf16.mxu0 %v2697_v19  ;;  %v901_v17 = vrot.slane %v899_v4, 2  ;;  %v1213_v20 = vrot.slane %v1211_v11, 3  ;;  %v1218_v23 = vrot.slane %v872_v47, 3  ;;  %v684_v28 = vrot.slane %v2993_v1, 1  ;;  %v2714_v47 = vld [vmem:[%s3326_s4 + $0x160] sm:$0xff]   ;;  %v2715_v1 = vld [vmem:[%s3326_s4 + $0x130] sm:$0xff]  }
 0x10b   :  { %2486 = vmatpush3.bf16.msra.mxu1 %v2696_v18  ;;  %v883_v57 = vrot.slane %v881_v45, 2  ;;  %v886_v58 = vrot.slane %v884_v46, 3  ;;  %v904_v18 = vrot.slane %v902_v8, 3  ;;  %v1216_v21 = vrot.slane %v1214_v12, 4 }
 0x10c   :  { %2487 = vmatprep.subr.bf16.mxu1 %v2698_v24  ;;  %v685_v33 = vsel %vm680_vm2, %v682_v30, %v684_v28  ;;  %v1054_v30 = vrot.slane %v3058_v60, 3  ;;  %v3155_v60 = vld [vmem:[#allocation2 + $0xc] sm:$0xff]   ;;  %v2163_v37 = vcombine.low %v1523_v59, %v3160_v62  ;;  %v1231_v44 = vshrl.u32 %v2728_v36, 16 }
 0x10d   :  { %2516 = vmatpush3.bf16.msra.mxu0 %v2697_v19  ;;  %v887_v7 = vor.u32 %v886_v58, %v883_v57  ;;  %v1217_v26 = vor.u32 %v1216_v21, %v1213_v20  ;;  %v1222_v57 = vrot.slane %v881_v45, 3  ;;  %v1223_v58 = vrot.slane %v884_v46, 4  ;;  %v2724_v45 = vld [vmem:[%s3326_s4 + $0x1f8] sm:$0xff]   ;;  %v2729_v20 = vld [vmem:[%s3326_s4 + $0x1e8] sm:$0xff]  }
 0x10e   :  { %2517 = vmatprep.subr.bf16.mxu0 %v2699_v25  ;;  %2456 = vmatmul.mubr.bf16.gmra.mxu1 %v421_v29  ;;  %v2713_v29 = vld [vmem:[%s3326_s4 + $0x138] sm:$0xff]   ;;  %v1226_v46 = vrot.slane %v890_v54, 3  ;;  %v1234_v3 = vshll.u32 %v2728_v36, 16  ;;  %v1582_v4 = vshrl.u32 %v3155_v60, 16  ;;  %v2725_v54 = vld [vmem:[%s3326_s4 + $0x108] sm:$0xff]   ;;  %v1574_v11 = vshrl.u32 %v2163_v37, 16 }
 0x10f   :  { %2488 = vmatpush3.bf16.msra.mxu1 %v2698_v24  ;;  %2499 = vmatprep.mubr.bf16.mxu1 %v683_v43  ;;  %v888_v16 = vsel %vm862_vm1, %v2998_v6, %v887_v7  ;;  %v897_v19 = vsel %vm862_vm1, %v887_v7, %v896_v13  ;;  %v2712_v6 = vld [vmem:[%s3326_s4 + $0x168] sm:$0xff]   ;;  %v1219_v24 = vrot.slane %v875_v48, 4  ;;  %v1055_v43 = vrot.slane %v2967_v41, 3 }
 0x110   :  { %2489 = vmatprep.subr.bf16.mxu1 %v2700_v31  ;;  %v1585_v7 = vshll.u32 %v3155_v60, 16  ;;  %v1577_v12 = vshll.u32 %v2163_v37, 16  ;;  %v1576_v21 = vrot.slane %v1574_v11, 1  ;;  %v1061_v41 = vrot.slane %v3050_v56, 3  ;;  %v2741_v56 = vld [vmem:[%s3326_s4 + $0x1c8] sm:$0xff]  }
 0x111   :  { %2518 = vmatpush3.bf16.msra.mxu0 %v2699_v25  ;;  %v905_v25 = vor.u32 %v904_v18, %v901_v17  ;;  %v3105_v27 = vor.u32 %v1219_v24, %v1218_v23  ;;  %v1584_v17 = vrot.slane %v1582_v4, 1  ;;  %v2747_v59 = vld [vmem:[%s3326_s4 + $0x188] sm:$0xff]   ;;  %v1761_v11 = vrot.slane %v3155_v60, 2  ;;  %v2758_v60 = vld [vmem:[%s3326_s4 + $0x210] sm:$0xff]  }
 0x112   :  { %2519 = vmatprep.subr.bf16.mxu0 %v2701_v39  ;;  %v1587_v18 = vrot.slane %v1585_v7, 2  ;;  %v2753_v7 = vld [vmem:[%s3326_s4 + $0x230] sm:$0xff]  }
 0x113   :  { %2490 = vmatpush3.bf16.msra.mxu1 %v2700_v31  ;;  %v906_v48 = vsel %vm862_vm1, %v896_v13, %v905_v25  ;;  %v686_v31 = vrot.slane %v2991_v0, 1  ;;  %v1221_v32 = vsel %vm1209_vm3, %v1217_v26, %v3105_v27  ;;  %v2716_v0 = vld [vmem:[%s3326_s4 + $0x158] sm:$0xff]   ;;  %v1057_v25 = vrot.slane %v3025_v38, 3 }
 0x114   :  { %2491 = vmatprep.subr.bf16.mxu1 %v2702_v51  ;;  %v3187_v23 = vor.u32 %v1587_v18, %v1584_v17  ;;  %v2732_v26 = vld [vmem:[%s3326_s4 + $0x1b8] sm:$0xff]   ;;  %v1059_v38 = vrot.slane %v3034_v40, 3  ;;  %v2736_v40 = vld [vmem:[%s3326_s4 + $0x1a8] sm:$0xff]  }
 0x115   :  { %2520 = vmatpush3.bf16.msra.mxu0 %v2701_v39  ;;  %v687_v39 = vsel %vm680_vm2, %v684_v28, %v686_v31 }
 0x116   :  { %2521 = vmatprep.subr.bf16.mxu0 %v2703_v53 }
 0x117   :  { %2492 = vmatpush3.bf16.msra.mxu1 %v2702_v51  ;;  %v1056_v51 = vsel %vm1053_vm4, %v1054_v30, %v1055_v43 }
 0x118   :  { %2493 = vmatprep.subr.bf16.mxu1 %v2704_v63 }
 0x119   :  { %2522 = vmatpush3.bf16.msra.mxu0 %v2703_v53  ;;  %v2722_v53 = vld [vmem:[%s3326_s4 + $0x140] sm:$0xff]  }
 0x11a   :  { %2555 = vmatprep.subr.bf16.mxu0 %v2706_v2 }
 0x11b   :  { %2494 = vmatpush3.bf16.msra.mxu1 %v2704_v63  ;;  %v1227_v63 = vrot.slane %v893_v55, 4  ;;  %v2726_v55 = vld [vmem:[%s3326_s4 + $0x1f0] sm:$0xff]  }
 0x11c   :  { %2524 = vmatmul.mubr.bf16.vlgmr.msra.gmra.mxu0 %v888_v16  ;;  %2495 = vmatprep.subr.bf16.mxu1 %v2708_v14 }
 0x11d   :  { %2527 = vmatprep.mubr.bf16.mxu0 %v897_v19  ;;  %2556 = vmatpush3.bf16.msra.mxu0 %v2706_v2  ;;  %v1224_v2 = vor.u32 %v1223_v58, %v1222_v57  ;;  %v1228_v8 = vor.u32 %v1227_v63, %v1226_v46  ;;  %v2727_v19 = vld [vmem:[%s3326_s4 + $0x100] sm:$0xff]  }
 0x11e   :  { %2557 = vmatprep.subr.bf16.mxu0 %v2709_v15 }
 0x11f   :  { %2496 = vmatpush3.bf16.msra.mxu1 %v2708_v14  ;;  %v1225_v13 = vsel %vm1209_vm3, %v3105_v27, %v1224_v2  ;;  %v1233_v14 = vrot.slane %v1231_v44, 3  ;;  %v1229_v16 = vsel %vm1209_vm3, %v1224_v2, %v1228_v8  ;;  %v2733_v27 = vld [vmem:[%s3326_s4 + $0x1e0] sm:$0xff]  }
 0x120   :  { %2497 = vmatprep.subr.bf16.mxu1 %v2710_v22  ;;  %v2748_v2 = vld [vmem:[%s3326_s4 + $0x180] sm:$0xff]  }
 0x121   :  { %2558 = vmatpush3.bf16.msra.mxu0 %v2709_v15  ;;  %v1236_v15 = vrot.slane %v1234_v3, 4  ;;  %v2751_v3 = vld [vmem:[%s3326_s4 + $0x238] sm:$0xff]  }
 0x122   :  { %2559 = vmatprep.subr.bf16.mxu0 %v2712_v6 }
 0x123   :  { %2498 = vmatpush3.bf16.msra.mxu1 %v2710_v22  ;;  %v1579_v22 = vrot.slane %v1577_v12, 2 }
 0x124   :  { %2528 = vmatmul.mubr.bf16.gmra.mxu0 %v906_v48  ;;  %2531 = vmatprep.subr.bf16.mxu1 %v2713_v29  ;;  %v1058_v48 = vsel %vm1053_vm4, %v1055_v43, %v1057_v25  ;;  %v2742_v43 = vld [vmem:[%s3326_s4 + $0x198] sm:$0xff]  }
 0x125   :  { %2560 = vmatpush3.bf16.msra.mxu0 %v2712_v6  ;;  %2571 = vmatprep.mubr.bf16.mxu0 %v1221_v32  ;;  %v1237_v6 = vor.u32 %v1236_v15, %v1233_v14  ;;  %v1580_v24 = vor.u32 %v1579_v22, %v1576_v21  ;;  %v1060_v32 = vsel %vm1053_vm4, %v1057_v25, %v1059_v38 }
 0x126   :  { %2561 = vmatprep.subr.bf16.mxu0 %v2714_v47  ;;  %2500 = vmatmul.mubr.bf16.vlgmr.msra.gmra.mxu1 %v685_v33  ;;  %v3217_v33 = vld [vmem:[#allocation2 + $0x14] sm:$0xff]  }
 0x127   :  { %2503 = vmatprep.mubr.bf16.mxu1 %v687_v39  ;;  %2532 = vmatpush3.bf16.msra.mxu1 %v2713_v29  ;;  %v1238_v28 = vsel %vm1209_vm3, %v1228_v8, %v1237_v6  ;;  %v1589_v29 = vsel %vm1572_vm5, %v1580_v24, %v3187_v23  ;;  %v1062_v39 = vsel %vm1053_vm4, %v1059_v38, %v1061_v41  ;;  %v1594_v30 = vshll.u32 %v3217_v33, 16  ;;  %v1738_v8 = vld [vmem:[#allocation2 + $0x4] sm:$0xc] }
 0x128   :  { %2533 = vmatprep.subr.bf16.mxu1 %v2715_v1  ;;  %v1763_v14 = vrot.slane %v3217_v33, 2 }
 0x129   :  { %2562 = vmatpush3.bf16.msra.mxu0 %v2714_v47  ;;  %v2734_v47 = vld [vmem:[%s3326_s4 + $0x1b0] sm:$0xff]  }
 0x12a   :  { %2563 = vmatprep.subr.bf16.mxu0 %v2716_v0 }
 0x12b   :  { %2534 = vmatpush3.bf16.msra.mxu1 %v2715_v1  ;;  %v2737_v1 = vld [vmem:[%s3326_s4 + $0x1d0] sm:$0xff]  }
 0x12c   :  { %2535 = vmatprep.subr.bf16.mxu1 %v2717_v42 }
 0x12d   :  { %2564 = vmatpush3.bf16.msra.mxu0 %v2716_v0  ;;  %v2740_v0 = vld [vmem:[%s3326_s4 + $0x1a0] sm:$0xff]  }
 0x12e   :  { %2565 = vmatprep.subr.bf16.mxu0 %v2718_v34  ;;  %2504 = vmatmul.mubr.bf16.gmra.mxu1 %v686_v31  ;;  %v2735_v31 = vld [vmem:[%s3326_s4 + $0x1d8] sm:$0xff]  }
 0x12f   :  { %2536 = vmatpush3.bf16.msra.mxu1 %v2717_v42  ;;  %2547 = vmatprep.mubr.bf16.mxu1 %v1056_v51  ;;  %v3226_v42 = vld [vmem:[#allocation2 + $0x1c] sm:$0xff]  }
 0x130   :  { %2537 = vmatprep.subr.bf16.mxu1 %v2719_v49  ;;  %v1603_v51 = vshll.u32 %v3226_v42, 16  ;;  %v1765_v15 = vrot.slane %v3226_v42, 2 }
 0x131   :  { %2566 = vmatpush3.bf16.msra.mxu0 %v2718_v34  ;;  %v1591_v34 = vshrl.u32 %v3217_v33, 16 }
 0x132   :  { %2567 = vmatprep.subr.bf16.mxu0 %v2720_v50  ;;  %v1605_v57 = vrot.slane %v1603_v51, 2  ;;  %v1766_v17 = vsel %vm1759_vm6, %v1763_v14, %v1765_v15 }
 0x133   :  { %2538 = vmatpush3.bf16.msra.mxu1 %v2719_v49  ;;  %v2743_v49 = vld [vmem:[%s3326_s4 + $0x1c0] sm:$0xff]  }
 0x134   :  { %2539 = vmatprep.subr.bf16.mxu1 %v2721_v52 }
 0x135   :  { %2568 = vmatpush3.bf16.msra.mxu0 %v2720_v50  ;;  %v1600_v50 = vshrl.u32 %v3226_v42, 16 }
 0x136   :  { %2569 = vmatprep.subr.bf16.mxu0 %v2722_v53 }
 0x137   :  { %2540 = vmatpush3.bf16.msra.mxu1 %v2721_v52  ;;  %v1593_v52 = vrot.slane %v1591_v34, 1  ;;  %v1602_v36 = vrot.slane %v1600_v50, 1 }
 0x138   :  { %2541 = vmatprep.subr.bf16.mxu1 %v2723_v61 }
 0x139   :  { %2570 = vmatpush3.bf16.msra.mxu0 %v2722_v53  ;;  %v1596_v53 = vrot.slane %v1594_v30, 2 }
 0x13a   :  { %2603 = vmatprep.subr.bf16.mxu0 %v2724_v45 }
 0x13b   :  { %2542 = vmatpush3.bf16.msra.mxu1 %v2723_v61  ;;  %v1597_v58 = vor.u32 %v1596_v53, %v1593_v52  ;;  %v2749_v61 = vld [vmem:[#allocation2 + $0x24] ss:$0 sps:$4 sm:$0x11]  }
 0x13c   :  { %2572 = vmatmul.mubr.bf16.vlgmr.msra.gmra.mxu0 %v1225_v13  ;;  %2543 = vmatprep.subr.bf16.mxu1 %v2725_v54  ;;  %v1609_v63 = vshll.u32 %v2749_v61, 16  ;;  %v2756_v13 = vld [vmem:[%s3326_s4 + $0x220] sm:$0xff]   ;;  %v1767_v18 = vrot.slane %v2749_v61, 2 }
 0x13d   :  { %2575 = vmatprep.mubr.bf16.mxu0 %v1229_v16  ;;  %2604 = vmatpush3.bf16.msra.mxu0 %v2724_v45  ;;  %v1606_v45 = vor.u32 %v1605_v57, %v1602_v36  ;;  %v1598_v46 = vsel %vm1572_vm5, %v3187_v23, %v1597_v58  ;;  %v1764_v16 = vsel %vm1759_vm6, %v1761_v11, %v1763_v14 }
 0x13e   :  { %2605 = vmatprep.subr.bf16.mxu0 %v2726_v55  ;;  %v1611_v44 = vrot.slane %v1609_v63, 2 }
 0x13f   :  { %2544 = vmatpush3.bf16.msra.mxu1 %v2725_v54  ;;  %v1607_v37 = vsel %vm1572_vm5, %v1597_v58, %v1606_v45  ;;  %v2754_v54 = vld [vmem:[%s3326_s4 + $0x228] sm:$0xff]  }
 0x140   :  { %2545 = vmatprep.subr.bf16.mxu1 %v2727_v19  ;;  %v1612_v4 = vsel %vm1572_vm5, %v1606_v45, %v1611_v44 }
 0x141   :  { %2606 = vmatpush3.bf16.msra.mxu0 %v2726_v55  ;;  %v2192_v55 = vcombine.low %v1738_v8, %v3160_v62  ;;  %v2760_v62 = vld [vmem:[%s3326_s4 + $0x200] sm:$0xff]  }
 0x142   :  { %2607 = vmatprep.subr.bf16.mxu0 %v2729_v20 }
 0x143   :  { %2546 = vmatpush3.bf16.msra.mxu1 %v2727_v19  ;;  %v1760_v12 = vrot.slane %v2192_v55, 2  ;;  %v1768_v19 = vsel %vm1759_vm6, %v1765_v15, %v1767_v18 }
 0x144   :  { %2576 = vmatmul.mubr.bf16.gmra.mxu0 %v1238_v28  ;;  %2579 = vmatprep.subr.bf16.mxu1 %v2732_v26 }
 0x145   :  { %2608 = vmatpush3.bf16.msra.mxu0 %v2729_v20  ;;  %2619 = vmatprep.mubr.bf16.mxu0 %v1589_v29 }
 0x146   :  { %2609 = vmatprep.subr.bf16.mxu0 %v2733_v27  ;;  %2548 = vmatmul.mubr.bf16.vlgmr.msra.gmra.mxu1 %v1058_v48 }
 0x147   :  { %2551 = vmatprep.mubr.bf16.mxu1 %v1060_v32  ;;  %2580 = vmatpush3.bf16.msra.mxu1 %v2732_v26 }
 0x148   :  { %2581 = vmatprep.subr.bf16.mxu1 %v2734_v47 }
 0x149   :  { %2610 = vmatpush3.bf16.msra.mxu0 %v2733_v27 }
 0x14a   :  { %2611 = vmatprep.subr.bf16.mxu0 %v2735_v31 }
 0x14b   :  { %2582 = vmatpush3.bf16.msra.mxu1 %v2734_v47 }
 0x14c   :  { %2583 = vmatprep.subr.bf16.mxu1 %v2736_v40 }
 0x14d   :  { %2612 = vmatpush3.bf16.msra.mxu0 %v2735_v31 }
 0x14e   :  { %2613 = vmatprep.subr.bf16.mxu0 %v2737_v1  ;;  %2552 = vmatmul.mubr.bf16.gmra.mxu1 %v1062_v39 }
 0x14f   :  { %2584 = vmatpush3.bf16.msra.mxu1 %v2736_v40  ;;  %2595 = vmatprep.mubr.bf16.mxu1 %v3074_v5  ;;  %v2744_v5 = vld [vmem:[%s3326_s4 + $0x190] sm:$0xff]  }
 0x150   :  { %2585 = vmatprep.subr.bf16.mxu1 %v2740_v0 }
 0x151   :  { %2614 = vmatpush3.bf16.msra.mxu0 %v2737_v1 }
 0x152   :  { %2615 = vmatprep.subr.bf16.mxu0 %v2741_v56 }
 0x153   :  { %2586 = vmatpush3.bf16.msra.mxu1 %v2740_v0 }
 0x154   :  { %2587 = vmatprep.subr.bf16.mxu1 %v2742_v43 }
 0x155   :  { %2616 = vmatpush3.bf16.msra.mxu0 %v2741_v56 }
 0x156   :  { %2617 = vmatprep.subr.bf16.mxu0 %v2743_v49 }
 0x157   :  { %2588 = vmatpush3.bf16.msra.mxu1 %v2742_v43 }
 0x158   :  { %2589 = vmatprep.subr.bf16.mxu1 %v2744_v5 }
 0x159   :  { %2618 = vmatpush3.bf16.msra.mxu0 %v2743_v49 }
 0x15b   :  { %2590 = vmatpush3.bf16.msra.mxu1 %v2744_v5 }
 0x15c   :  { %2620 = vmatmul.mubr.bf16.vlgmr.msra.gmra.mxu0 %v1598_v46  ;;  %2591 = vmatprep.subr.bf16.mxu1 %v2747_v59 }
 0x15d   :  { %2623 = vmatprep.mubr.bf16.mxu0 %v1607_v37 }
 0x15f   :  { %2592 = vmatpush3.bf16.msra.mxu1 %v2747_v59 }
 0x160   :  { %2593 = vmatprep.subr.bf16.mxu1 %v2748_v2 }
 0x163   :  { %2594 = vmatpush3.bf16.msra.mxu1 %v2748_v2 }
 0x164   :  { %2624 = vmatmul.mubr.bf16.gmra.mxu0 %v1612_v4  ;;  %2627 = vmatprep.subr.bf16.mxu1 %v2751_v3 }
 0x166   :  { %2596 = vmatmul.mubr.bf16.vlgmr.msra.gmra.mxu1 %v3078_v9  ;;  %v1762_v9 = vsel %vm1759_vm6, %v1760_v12, %v1761_v11 }
 0x167   :  { %2599 = vmatprep.mubr.bf16.mxu1 %v3082_v10  ;;  %2628 = vmatpush3.bf16.msra.mxu1 %v2751_v3  ;;  %v2757_v10 = vld [vmem:[%s3326_s4 + $0x218] sm:$0xff]  }
 0x168   :  { %2629 = vmatprep.subr.bf16.mxu1 %v2753_v7 }
 0x16b   :  { %2630 = vmatpush3.bf16.msra.mxu1 %v2753_v7 }
 0x16c   :  { %2631 = vmatprep.subr.bf16.mxu1 %v2754_v54 }
 0x16e   :  { %2600 = vmatmul.mubr.bf16.gmra.mxu1 %v3063_v35  ;;  %v2759_v35 = vld [vmem:[%s3326_s4 + $0x208] sm:$0xff]  }
 0x16f   :  { %2632 = vmatpush3.bf16.msra.mxu1 %v2754_v54  ;;  %2643 = vmatprep.mubr.bf16.mxu1 %v1762_v9 }
 0x170   :  { %2633 = vmatprep.subr.bf16.mxu1 %v2756_v13 }
 0x173   :  { %2634 = vmatpush3.bf16.msra.mxu1 %v2756_v13 }
 0x174   :  { %2635 = vmatprep.subr.bf16.mxu1 %v2757_v10 }
 0x177   :  { %2636 = vmatpush3.bf16.msra.mxu1 %v2757_v10 }
 0x178   :  { %2637 = vmatprep.subr.bf16.mxu1 %v2758_v60 }
 0x17b   :  { %2638 = vmatpush3.bf16.msra.mxu1 %v2758_v60 }
 0x17c   :  { %2639 = vmatprep.subr.bf16.mxu1 %v2759_v35 }
 0x17f   :  { %2640 = vmatpush3.bf16.msra.mxu1 %v2759_v35 }
 0x180   :  { %2641 = vmatprep.subr.bf16.mxu1 %v2760_v62 }
 0x183   :  { %2642 = vmatpush3.bf16.msra.mxu1 %v2760_v62 }
 0x186   :  { %2644 = vmatmul.mubr.bf16.vlgmr.msra.gmra.mxu1 %v1764_v16 }
 0x187   :  { %2647 = vmatprep.mubr.bf16.mxu1 %v1766_v17 }
 0x18e   :  { %2648 = vmatmul.mubr.bf16.gmra.mxu1 %v1768_v19 }
 0x1bc   :  { %v2477_v23 = vpop.f32.mrf.mxu0 }
 0x1be   :  { %v628_v25 = vpop.f32.mrf.mxu0 }
 0x1c0   :  { %v2478_v27 = vpop.f32.mrf.mxu0 }
 0x1c2   :  { %v631_v29 = vpop.f32.mrf.mxu0 }
 0x1c4   :  { %v2481_v47 = vpop.f32.mrf.mxu0 }
 0x1c6   :  { %v2453_v20 = vpop.f32.mrf.mxu1  ;;  %v644_v31 = vpop.f32.mrf.mxu0 }
 0x1c7   :  { %v637_v13 = vadd.f32 %v2477_v23, %v2453_v20 }
 0x1c8   :  { %v508_v21 = vpop.f32.mrf.mxu1  ;;  %v2482_v40 = vpop.f32.mrf.mxu0 }
 0x1c9   :  { %v629_v10 = vadd.f32 %v628_v25, %v508_v21 }
 0x1ca   :  { %v2454_v22 = vpop.f32.mrf.mxu1  ;;  %v647_v1 = vpop.f32.mrf.mxu0 }
 0x1cb   :  { %v640_v60 = vadd.f32 %v2478_v27, %v2454_v22 }
 0x1cc   :  { %v511_v6 = vpop.f32.mrf.mxu1 }
 0x1cd   :  { %v632_v14 = vadd.f32 %v631_v29, %v511_v6 }
 0x1ce   :  { %v2457_v24 = vpop.f32.mrf.mxu1 }
 0x1cf   :  { %v653_v17 = vadd.f32 %v2481_v47, %v2457_v24 }
 0x1d0   :  { %v3287_v26 = vpop.f32.mrf.mxu1 }
 0x1d1   :  { %3332 = vst [vmem:[#allocation3_spill] sm:$0xff] %v3287_v26 }
 0x1d2   :  { %v3289_v28 = vpop.f32.mrf.mxu1 }
 0x1d3   :  { %3333 = vst [vmem:[#allocation4_spill] sm:$0xff] %v3289_v28 }
 0x1d4   :  { %v3291_v38 = vpop.f32.mrf.mxu1 }
 0x1d5   :  { %3334 = vst [vmem:[#allocation5_spill] sm:$0xff] %v3291_v38 }
 0x1d8   :  { %v3338_v20 = vld [vmem:[#allocation3_spill] sm:$0xff] }
 0x1d9   :  { %v645_v23 = vadd.f32 %v644_v31, %v3338_v20 }
 0x1da   :  { %v3339_v25 = vld [vmem:[#allocation4_spill] sm:$0xff] }
 0x1db   :  { %v656_v22 = vadd.f32 %v2482_v40, %v3339_v25 }
 0x1dc   :  { %v2525_v0 = vpop.f32.mrf.mxu0  ;;  %v3340_v6 = vld [vmem:[#allocation5_spill] sm:$0xff] }
 0x1dd   :  { %v648_v29 = vadd.f32 %v647_v1, %v3340_v6 }
 0x1de   :  { %v993_v56 = vpop.f32.mrf.mxu0 }
 0x1e0   :  { %v2526_v34 = vpop.f32.mrf.mxu0 }
 0x1e2   :  { %v996_v43 = vpop.f32.mrf.mxu0 }
 0x1e4   :  { %v2529_v50 = vpop.f32.mrf.mxu0 }
 0x1e6   :  { %v2501_v48 = vpop.f32.mrf.mxu1  ;;  %v1009_v52 = vpop.f32.mrf.mxu0 }
 0x1e7   :  { %v807_v35 = vadd.f32 %v2501_v48, %v637_v13 }
 0x1e8   :  { %v774_v32 = vpop.f32.mrf.mxu1  ;;  %v2530_v5 = vpop.f32.mrf.mxu0 }
 0x1e9   :  { %v805_v15 = vadd.f32 %v774_v32, %v629_v10 }
 0x1ea   :  { %v2502_v41 = vpop.f32.mrf.mxu1  ;;  %v1012_v57 = vpop.f32.mrf.mxu0 }
 0x1eb   :  { %v808_v16 = vadd.f32 %v2502_v41, %v640_v60  ;;  %v1024_v26 = vadd.f32 %v993_v56, %v805_v15 }
 0x1ec   :  { %v777_v33 = vpop.f32.mrf.mxu1 }
 0x1ed   :  { %v806_v19 = vadd.f32 %v777_v33, %v632_v14 }
 0x1ee   :  { %v2505_v39 = vpop.f32.mrf.mxu1 }
 0x1ef   :  { %v811_v38 = vadd.f32 %v2505_v39, %v653_v17  ;;  %v1025_v13 = vadd.f32 %v996_v43, %v806_v19 }
 0x1f0   :  { %v790_v42 = vpop.f32.mrf.mxu1 }
 0x1f1   :  { %v809_v32 = vadd.f32 %v790_v42, %v645_v23  ;;  %v1030_v24 = vadd.f32 %v2529_v50, %v811_v38 }
 0x1f2   :  { %v2506_v30 = vpop.f32.mrf.mxu1 }
 0x1f3   :  { %v812_v41 = vadd.f32 %v2506_v30, %v656_v22  ;;  %v1028_v10 = vadd.f32 %v1009_v52, %v809_v32 }
 0x1f4   :  { %v793_v49 = vpop.f32.mrf.mxu1 }
 0x1f5   :  { %v810_v39 = vadd.f32 %v793_v49, %v648_v29  ;;  %v1031_v40 = vadd.f32 %v2530_v5, %v812_v41 }
 0x1f7   :  { %v1029_v1 = vadd.f32 %v1012_v57, %v810_v39 }
 0x1fc   :  { %v2573_v59 = vpop.f32.mrf.mxu0 }
 0x1fe   :  { %v1325_v45 = vpop.f32.mrf.mxu0 }
 0x200   :  { %v2574_v63 = vpop.f32.mrf.mxu0 }
 0x202   :  { %v1328_v2 = vpop.f32.mrf.mxu0 }
 0x204   :  { %v2577_v3 = vpop.f32.mrf.mxu0 }
 0x206   :  { %v2549_v51 = vpop.f32.mrf.mxu1  ;;  %v3293_v7 = vpop.f32.mrf.mxu0 }
 0x207   :  { %3335 = vst [vmem:[#allocation6_spill] sm:$0xff] %v3293_v7  ;;  %v1026_v7 = vadd.f32 %v2525_v0, %v807_v35 }
 0x208   :  { %v1149_v53 = vpop.f32.mrf.mxu1  ;;  %v3295_v54 = vpop.f32.mrf.mxu0 }
 0x209   :  { %3336 = vst [vmem:[#allocation7_spill] sm:$0xff] %v3295_v54  ;;  %v1182_v54 = vadd.f32 %v2549_v51, %v1026_v7  ;;  %v1180_v27 = vadd.f32 %v1149_v53, %v1024_v26 }
 0x20a   :  { %v2550_v36 = vpop.f32.mrf.mxu1  ;;  %v3297_v11 = vpop.f32.mrf.mxu0 }
 0x20b   :  { %3337 = vst [vmem:[#allocation8_spill] sm:$0xff] %v3297_v11  ;;  %v1027_v11 = vadd.f32 %v2526_v34, %v808_v16  ;;  %v1358_v0 = vadd.f32 %v2573_v59, %v1182_v54  ;;  %v1356_v7 = vadd.f32 %v1325_v45, %v1180_v27 }
 0x20c   :  { %v1152_v58 = vpop.f32.mrf.mxu1 }
 0x20d   :  { %v1183_v48 = vadd.f32 %v2550_v36, %v1027_v11  ;;  %v1181_v33 = vadd.f32 %v1152_v58, %v1025_v13 }
 0x20e   :  { %v2553_v61 = vpop.f32.mrf.mxu1  ;;  %v3341_v11 = vld [vmem:[#allocation6_spill] sm:$0xff] }
 0x20f   :  { %v1186_v51 = vadd.f32 %v2553_v61, %v1030_v24  ;;  %v1359_v31 = vadd.f32 %v2574_v63, %v1183_v48  ;;  %v1357_v43 = vadd.f32 %v1328_v2, %v1181_v33 }
 0x210   :  { %v1165_v46 = vpop.f32.mrf.mxu1  ;;  %v3342_v2 = vld [vmem:[#allocation7_spill] sm:$0xff] }
 0x211   :  { %v1184_v36 = vadd.f32 %v1165_v46, %v1028_v10  ;;  %v1362_v38 = vadd.f32 %v2577_v3, %v1186_v51  ;;  %v2201_v46 = vld [vmem:[%s3330_s5] ss:$0 sm:$0xff] }
 0x212   :  { %v2554_v37 = vpop.f32.mrf.mxu1 }
 0x213   :  { %v1187_v30 = vadd.f32 %v2554_v37, %v1031_v40  ;;  %v1360_v5 = vadd.f32 %v3341_v11, %v1184_v36 }
 0x214   :  { %v1168_v44 = vpop.f32.mrf.mxu1 }
 0x215   :  { %v1185_v49 = vadd.f32 %v1168_v44, %v1029_v1  ;;  %v1363_v3 = vadd.f32 %v3342_v2, %v1187_v30  ;;  %v3343_v44 = vld [vmem:[#allocation8_spill] sm:$0xff] }
 0x21c   :  { %v2621_v9 = vpop.f32.mrf.mxu0 }
 0x21e   :  { %v1699_v18 = vpop.f32.mrf.mxu0 }
 0x220   :  { %v2622_v21 = vpop.f32.mrf.mxu0 }
 0x222   :  { %v1702_v56 = vpop.f32.mrf.mxu0 }
 0x224   :  { %v2625_v42 = vpop.f32.mrf.mxu0 }
 0x226   :  { %v2597_v4 = vpop.f32.mrf.mxu1  ;;  %v1715_v52 = vpop.f32.mrf.mxu0 }
 0x227   :  { %v1517_v34 = vadd.f32 %v2597_v4, %v1358_v0 }
 0x228   :  { %v1484_v8 = vpop.f32.mrf.mxu1 }
 0x229   :  { %v1515_v26 = vadd.f32 %v1484_v8, %v1356_v7  ;;  %v1732_v59 = vadd.f32 %v2621_v9, %v1517_v34  ;;  %v1361_v9 = vadd.f32 %v3343_v44, %v1185_v49 }
 0x22a   :  { %v2598_v55 = vpop.f32.mrf.mxu1 }
 0x22b   :  { %v1518_v53 = vadd.f32 %v2598_v55, %v1359_v31  ;;  %v1730_v45 = vadd.f32 %v1699_v18, %v1515_v26  ;;  %v2626_v18 = vpop.f32.mrf.mxu0 }
 0x22c   :  { %v1487_v12 = vpop.f32.mrf.mxu1 }
 0x22d   :  { %v1516_v58 = vadd.f32 %v1487_v12, %v1357_v43  ;;  %v1733_v63 = vadd.f32 %v2622_v21, %v1518_v53  ;;  %v1718_v29 = vpop.f32.mrf.mxu0 }
 0x22e   :  { %v2601_v62 = vpop.f32.mrf.mxu1 }
 0x22f   :  { %v1521_v61 = vadd.f32 %v2601_v62, %v1362_v38  ;;  %v1731_v55 = vadd.f32 %v1702_v56, %v1516_v58 }
 0x230   :  { %v1500_v28 = vpop.f32.mrf.mxu1 }
 0x231   :  { %v1519_v12 = vadd.f32 %v1500_v28, %v1360_v5  ;;  %v1736_v62 = vadd.f32 %v2625_v42, %v1521_v61 }
 0x232   :  { %v2602_v47 = vpop.f32.mrf.mxu1 }
 0x233   :  { %v1522_v14 = vadd.f32 %v2602_v47, %v1363_v3  ;;  %v1734_v13 = vadd.f32 %v1715_v52, %v1519_v12 }
 0x234   :  { %v1503_v60 = vpop.f32.mrf.mxu1 }
 0x235   :  { %v1520_v19 = vadd.f32 %v1503_v60, %v1361_v9  ;;  %v1737_v6 = vadd.f32 %v2626_v18, %v1522_v14 }
 0x237   :  { %v1735_v33 = vadd.f32 %v1718_v29, %v1520_v19 }
 0x246   :  { %v2645_v50 = vpop.f32.mrf.mxu1 }
 0x247   :  { %v1888_v4 = vadd.f32 %v2645_v50, %v1732_v59 }
 0x248   :  { %v1855_v54 = vpop.f32.mrf.mxu1 }
 0x249   :  { %v1886_v8 = vadd.f32 %v1855_v54, %v1730_v45  ;;  %v1903_v15 = vadd.f32 %v2201_v46, %v1888_v4 }
 0x24a   :  { %v2646_v57 = vpop.f32.mrf.mxu1 }
 0x24b   :  { %v1889_v37 = vadd.f32 %v2646_v57, %v1733_v63  ;;  %v1901_v23 = vadd.f32 %v2201_v46, %v1886_v8 }
 0x24c   :  { %v1858_v35 = vpop.f32.mrf.mxu1 }
 0x24d   :  { %v1904_v16 = vadd.f32 %v2201_v46, %v1889_v37  ;;  %v1887_v17 = vadd.f32 %v1858_v35, %v1731_v55 }
 0x24e   :  { %v2649_v20 = vpop.f32.mrf.mxu1 }
 0x24f   :  { %v2276_v21 = vpack.c.bf16 %v1904_v16, %v1903_v15  ;;  %v1902_v25 = vadd.f32 %v2201_v46, %v1887_v17  ;;  %v1892_v22 = vadd.f32 %v2649_v20, %v1736_v62 }
 0x250   :  { %v1871_v27 = vpop.f32.mrf.mxu1 }
 0x251   :  { %2289 = vst [vmem:[%s3331_s8 + $0x8] sm:$0xff] %v2276_v21   ;;  %v2271_v28 = vpack.c.bf16 %v1902_v25, %v1901_v23  ;;  %v1907_v48 = vadd.f32 %v2201_v46, %v1892_v22  ;;  %v1890_v47 = vadd.f32 %v1871_v27, %v1734_v13 }
 0x252   :  { %v2650_v32 = vpop.f32.mrf.mxu1 }
 0x253   :  { %2272 = vst [vmem:[%s3331_s8] sm:$0xff] %v2271_v28   ;;  %v2224_v24 = vpack.c.bf16 %v1907_v48, %v1907_v48  ;;  %v1893_v41 = vadd.f32 %v2650_v32, %v1737_v6  ;;  %v1905_v56 = vadd.f32 %v2201_v46, %v1890_v47 }
 0x254   :  { %v1874_v0 = vpop.f32.mrf.mxu1 }
 0x255   :  { %1947 = vst [vmem:[%s3331_s8 + $0x18] sm:$0xf] %v2224_v24  ;;  %v1908_v39 = vadd.f32 %v2201_v46, %v1893_v41  ;;  %v1891_v51 = vadd.f32 %v1874_v0, %v1735_v33 }
 0x257   :  { %v2225_v34 = vpack.c.bf16 %v1908_v39, %v1908_v39  ;;  %v1906_v7 = vadd.f32 %v2201_v46, %v1891_v51 }
 0x259   :  { %1948 = vst [vmem:[%s3331_s8 + $0x1c] sm:$0x7] %v2225_v34  ;;  %v2281_v31 = vpack.c.bf16 %v1906_v7, %v1905_v56 }
 0x25b   :  { %2290 = vst [vmem:[%s3331_s8 + $0x10] sm:$0xff] %v2281_v31  }

// kernel: _lambda_.11
= control target key start
LH: loop header
LB: loop body
LE: loop exit
PB: predicated region body
PF: predicated region fallthrough
CT: control target
= control target key end

     0   :  { %v5141_v2 = vmov 0   ;;  %s6470_s0 = inlined_call_operand.vmem [shape: bf16[182,128], index: 0, kind: input, shape index: {}]   ;;  %s6471_s1 = inlined_call_operand.vmem [shape: bf16[1,128,128], index: 1, kind: input, shape index: {}]   ;;  %s6472_s2 = inlined_call_operand.vmem [shape: f32[1,128], index: 2, kind: input, shape index: {}]   ;;  %s6473_s3 = inlined_call_operand.vmem [shape: f32[182,1], index: 3, kind: input, shape index: {}]   ;;  %s6474_s4 = inlined_call_operand.vmem [shape: bf16[9,128,128], index: 4, kind: input, shape index: {}]   ;;  %s6475_s5 = inlined_call_operand.vmem [shape: f32[1,128], index: 5, kind: input, shape index: {}]   ;;  %s6476_s6 = inlined_call_operand.vmem [shape: bf16[182,128], index: 6, kind: input, shape index: {}]   ;;  %s6477_s7 = inlined_call_operand.hbm [shape: bf16[182,128], index: 7, kind: output, shape index: {0}]   ;;  %s6478_s8 = inlined_call_operand.vmem [shape: bf16[182,128], index: 8, kind: output, shape index: {1}]  }
   0x1   :  { %v4963_v0 = vld [vmem:[%s6471_s1 + $0x38] sm:$0xff]   ;;  %v4964_v1 = vld [vmem:[%s6471_s1 + $0x30] sm:$0xff]   ;;  %4961 = vset.pattern.permute.xlu0 %v5141_v2  ;;  %691 = vst [vmem:[#allocation2 + $0x58] sm:$0x8] %v5141_v2  ;;  %692 = vst [vmem:[#allocation2 + $0x5c] sm:$0xf] %v5141_v2  ;;  %4962 = vset.pattern.permute.xlu1 %v5141_v2 }
   0x2   :  { %693 = vst [vmem:[#allocation2 + $0x60] sm:$0xf] %v5141_v2  ;;  %694 = vst [vmem:[#allocation2 + $0x64] sm:$0x1] %v5141_v2  ;;  %4557 = vmatprep.subr.bf16.mxu0 %v4963_v0  ;;  %v4965_v3 = vld [vmem:[%s6471_s1 + $0x28] sm:$0xff]   ;;  %v4966_v4 = vld [vmem:[%s6471_s1 + $0x20] sm:$0xff]  }
   0x3   :  { %4558 = vmatpush3.bf16.msra.mxu0 %v4963_v0  ;;  %v4971_v5 = vld [vmem:[%s6470_s0] sm:$0xff]   ;;  %v4967_v6 = vld [vmem:[%s6471_s1 + $0x18] sm:$0xff]   ;;  %v4968_v7 = vld [vmem:[%s6471_s1 + $0x10] sm:$0xff]  }
   0x4   :  { %4559 = vmatprep.subr.bf16.mxu0 %v4964_v1  ;;  %4573 = vmatprep.mubr.bf16.mxu0 %v4971_v5  ;;  %v391_v8 = vld [vmem:[%s6473_s3] sm:$0xff]  ;;  %v393_v9 = vld [vmem:[%s6473_s3 + $0x10] sm:$0xff]  ;;  %v4969_v10 = vld [vmem:[%s6471_s1 + $0x8] sm:$0xff]  }
   0x5   :  { %416 = vperm.xlu0 %4961, %v391_v8   ;;  %426 = vperm.xlu1 %4962, %v393_v9   ;;  %v392_v11 = vld [vmem:[%s6473_s3 + $0x8] sm:$0xff]  ;;  %v394_v12 = vld [vmem:[%s6473_s3 + $0x18] sm:$0xff]  ;;  %v4970_v13 = vld [vmem:[%s6471_s1] sm:$0xff]  }
   0x6   :  { %v395_v14 = vld [vmem:[%s6473_s3 + $0x20] sm:$0xff]  ;;  %v396_v15 = vld [vmem:[%s6473_s3 + $0x28] sm:$0xff]  ;;  %v397_v16 = vld [vmem:[%s6473_s3 + $0x30] sm:$0xff] }
   0x7   :  { %4560 = vmatpush3.bf16.msra.mxu0 %v4964_v1  ;;  %v398_v17 = vld [vmem:[%s6473_s3 + $0x38] sm:$0xff]  ;;  %v4972_v18 = vld [vmem:[%s6470_s0 + $0x8] sm:$0xff]   ;;  %v4973_v19 = vld [vmem:[%s6470_s0 + $0x10] sm:$0xff]  }
   0x8   :  { %4561 = vmatprep.subr.bf16.mxu0 %v4965_v3  ;;  %v399_v20 = vld [vmem:[%s6473_s3 + $0x40] sm:$0xff]  ;;  %v400_v21 = vld [vmem:[%s6473_s3 + $0x48] sm:$0xff]  ;;  %v401_v22 = vld [vmem:[%s6473_s3 + $0x50] sm:$0xff] }
   0x9   :  { %421 = vperm.xlu0 %4961, %v392_v11   ;;  %431 = vperm.xlu1 %4962, %v394_v12   ;;  %v402_v23 = vld [vmem:[%s6473_s3 + $0x58] sm:$0xff]  ;;  %v4975_v25 = vld [vmem:[%s6470_s0 + $0x20] sm:$0xff]   ;;  %v404_v27 = vld [vmem:[%s6473_s3 + $0x68] sm:$0xff] }
   0xa   :  { %v4974_v24 = vld [vmem:[%s6470_s0 + $0x18] sm:$0xff]   ;;  %v403_v26 = vld [vmem:[%s6473_s3 + $0x60] sm:$0xff]  ;;  %v405_v28 = vld [vmem:[%s6473_s3 + $0x70] sm:$0xff] }
   0xb   :  { %4562 = vmatpush3.bf16.msra.mxu0 %v4965_v3  ;;  %v4983_v29 = vld [vmem:[%s6474_s4 + $0x38] sm:$0xff]   ;;  %v4976_v31 = vld [vmem:[%s6470_s0 + $0x28] sm:$0xff]   ;;  %v4977_v32 = vld [vmem:[%s6470_s0 + $0x30] sm:$0xff]  }
   0xc   :  { %4563 = vmatprep.subr.bf16.mxu0 %v4966_v4  ;;  %v406_v30 = vld [vmem:[%s6473_s3 + $0x78] sm:$0xff]  ;;  %v407_v33 = vld [vmem:[%s6473_s3 + $0x80] sm:$0xff]  ;;  %v4984_v34 = vld [vmem:[%s6474_s4 + $0x30] sm:$0xff]  }
   0xd   :  { %436 = vperm.xlu0 %4961, %v395_v14   ;;  %441 = vperm.xlu1 %4962, %v396_v15   ;;  %v408_v35 = vld [vmem:[%s6473_s3 + $0x88] sm:$0xff]  ;;  %v409_v36 = vld [vmem:[%s6473_s3 + $0x90] sm:$0xff]  ;;  %v410_v37 = vld [vmem:[%s6473_s3 + $0x98] sm:$0xff] }
   0xe   :  { %v4978_v38 = vld [vmem:[%s6470_s0 + $0x38] sm:$0xff]   ;;  %v4979_v39 = vld [vmem:[%s6470_s0 + $0x40] sm:$0xff]   ;;  %v412_v41 = vld [vmem:[%s6473_s3 + $0xa8] sm:$0xff] }
   0xf   :  { %4564 = vmatpush3.bf16.msra.mxu0 %v4966_v4  ;;  %v411_v40 = vld [vmem:[%s6473_s3 + $0xa0] sm:$0xff]  ;;  %v413_v42 = vld [vmem:[%s6473_s3 + $0xb0] sm:$0x3f]  ;;  %v4980_v43 = vld [vmem:[%s6470_s0 + $0x48] sm:$0xff]  }
  0x10   :  { %4565 = vmatprep.subr.bf16.mxu0 %v4967_v6  ;;  %v4981_v44 = vld [vmem:[%s6470_s0 + $0x50] sm:$0xff]   ;;  %v4982_v45 = vld [vmem:[%s6470_s0 + $0x58] ss:$0 sps:$4 sm:$0x77]  }
  0x11   :  { %446 = vperm.xlu0 %4961, %v397_v16   ;;  %451 = vperm.xlu1 %4962, %v398_v17  }
  0x13   :  { %4566 = vmatpush3.bf16.msra.mxu0 %v4967_v6 }
  0x14   :  { %4567 = vmatprep.subr.bf16.mxu0 %v4968_v7 }
  0x15   :  { %456 = vperm.xlu0 %4961, %v399_v20   ;;  %461 = vperm.xlu1 %4962, %v400_v21  }
  0x17   :  { %4568 = vmatpush3.bf16.msra.mxu0 %v4968_v7 }
  0x18   :  { %4569 = vmatprep.subr.bf16.mxu0 %v4969_v10 }
  0x19   :  { %466 = vperm.xlu0 %4961, %v401_v22   ;;  %471 = vperm.xlu1 %4962, %v402_v23  }
  0x1b   :  { %4570 = vmatpush3.bf16.msra.mxu0 %v4969_v10 }
  0x1c   :  { %4571 = vmatprep.subr.bf16.mxu0 %v4970_v13 }
  0x1d   :  { %476 = vperm.xlu0 %4961, %v403_v26   ;;  %481 = vperm.xlu1 %4962, %v404_v27  }
  0x1f   :  { %4572 = vmatpush3.bf16.msra.mxu0 %v4970_v13 }
  0x20   :  { %4637 = vmatprep.subr.bf16.mxu0 %v4983_v29 }
  0x21   :  { %486 = vperm.xlu0 %4961, %v405_v28   ;;  %491 = vperm.xlu1 %4962, %v406_v30  }
  0x22   :  { %4574 = vmatmul.mubr.bf16.vlgmr.msra.gmra.mxu0 %v4972_v18 }
  0x23   :  { %4577 = vmatprep.mubr.bf16.mxu0 %v4973_v19  ;;  %4638 = vmatpush3.bf16.msra.mxu0 %v4983_v29 }
  0x24   :  { %4639 = vmatprep.subr.bf16.mxu0 %v4984_v34 }
  0x25   :  { %496 = vperm.xlu0 %4961, %v407_v33   ;;  %501 = vperm.xlu1 %4962, %v408_v35  }
  0x27   :  { %4640 = vmatpush3.bf16.msra.mxu0 %v4984_v34 }
  0x29   :  { %506 = vperm.xlu0 %4961, %v409_v36   ;;  %511 = vperm.xlu1 %4962, %v410_v37  }
  0x2a   :  { %4578 = vmatmul.mubr.bf16.gmra.mxu0 %v4974_v24 }
  0x2b   :  { %4581 = vmatprep.mubr.bf16.mxu0 %v4975_v25 }
  0x2d   :  { %516 = vperm.xlu0 %4961, %v411_v40   ;;  %521 = vperm.xlu1 %4962, %v412_v41  }
  0x31   :  { %526 = vperm.xlu0 %4961, %v413_v42  }
  0x32   :  { %4582 = vmatmul.mubr.bf16.gmra.mxu0 %v4976_v31 }
  0x33   :  { %4585 = vmatprep.mubr.bf16.mxu0 %v4977_v32 }
  0x3a   :  { %4586 = vmatmul.mubr.bf16.gmra.mxu0 %v4978_v38 }
  0x3b   :  { %4589 = vmatprep.mubr.bf16.mxu0 %v4979_v39 }
  0x42   :  { %4590 = vmatmul.mubr.bf16.gmra.mxu0 %v4980_v43 }
  0x43   :  { %4593 = vmatprep.mubr.bf16.mxu0 %v4981_v44 }
  0x4a   :  { %4594 = vmatmul.mubr.bf16.gmra.mxu0 %v4982_v45 }
  0x4b   :  { %14 = vsyncpa [#allocation4], 0  ;;  %v4985_v46 = vld [vmem:[%s6474_s4 + $0x28] sm:$0xff]   ;;  %v4986_v47 = vld [vmem:[%s6474_s4 + $0x78] sm:$0xff]   ;;  %vm810_vm0 = vsmask.f32 7424 }
  0x4c   :  { %4641 = vmatprep.subr.bf16.mxu0 %v4985_v46  ;;  %v4987_v48 = vld [vmem:[%s6474_s4 + $0x20] sm:$0xff]   ;;  %4597 = vmatprep.subr.bf16.mxu1 %v4986_v47  ;;  %v4988_v49 = vld [vmem:[%s6474_s4 + $0x70] sm:$0xff]   ;;  %v4989_v50 = vld [vmem:[%s6474_s4 + $0x18] sm:$0xff]   ;;  %vm1306_vm1 = vcmask 1046528   ;;  %vm2301_vm2 = vsmask.f32 6400 }
  0x4d   :  { %4642 = vmatpush3.bf16.msra.mxu0 %v4985_v46  ;;  %4598 = vmatpush3.bf16.msra.mxu1 %v4986_v47  ;;  %v4990_v51 = vld [vmem:[%s6474_s4 + $0x68] sm:$0xff]   ;;  %v4991_v52 = vld [vmem:[%s6474_s4 + $0x10] sm:$0xff]   ;;  %v4992_v53 = vld [vmem:[%s6474_s4 + $0x60] sm:$0xff]   ;;  %vm3329_vm3 = vcmask 1045504  }
  0x4e   :  { %4643 = vmatprep.subr.bf16.mxu0 %v4987_v48  ;;  %4599 = vmatprep.subr.bf16.mxu1 %v4988_v49  ;;  %v4993_v54 = vld [vmem:[%s6474_s4 + $0x8] sm:$0xff]   ;;  %v4994_v55 = vld [vmem:[%s6474_s4 + $0x58] sm:$0xff]   ;;  %v4995_v56 = vld [vmem:[%s6474_s4] sm:$0xff]  }
  0x4f   :  { %v4996_v57 = vld [vmem:[%s6474_s4 + $0x50] sm:$0xff]   ;;  %v5000_v58 = vld [vmem:[%s6474_s4 + $0x48] sm:$0xff]   ;;  %v5001_v59 = vld [vmem:[%s6474_s4 + $0x40] sm:$0xff]  }
  0x50   :  { %v5370_v60 = vld [vmem:[%s6474_s4 + $0xf8] sm:$0xff]   ;;  %v5386_v5 = vld [vmem:[%s6472_s2] ss:$0 sm:$0xff]  ;;  %v4317_v6 = vld [vmem:[%s6476_s6 + $0x8] sm:$0xff]  }
  0x51   :  { %4644 = vmatpush3.bf16.msra.mxu0 %v4987_v48  ;;  %4600 = vmatpush3.bf16.msra.mxu1 %v4988_v49  ;;  %v5376_v61 = vld [vmem:[%s6474_s4 + $0xb8] sm:$0xff]   ;;  %v4109_v8 = vld [vmem:[%s6476_s6] sm:$0xff]   ;;  %v4114_v10 = vunpack.c.l.bf16 %v4317_v6  ;;  %v4115_v15 = vunpack.c.h.bf16 %v4317_v6  ;;  %v4318_v26 = vld [vmem:[%s6476_s6 + $0x10] sm:$0xff]  }
  0x52   :  { %4645 = vmatprep.subr.bf16.mxu0 %v4989_v50  ;;  %4601 = vmatprep.subr.bf16.mxu1 %v4990_v51  ;;  %v4110_v14 = vunpack.c.l.bf16 %v4109_v8  ;;  %v4111_v20 = vunpack.c.h.bf16 %v4109_v8  ;;  %v4319_v21 = vld [vmem:[%s6476_s6 + $0x18] sm:$0xff]   ;;  %v4118_v36 = vunpack.c.l.bf16 %v4318_v26  ;;  %v4119_v46 = vunpack.c.h.bf16 %v4318_v26  ;;  %v4321_v47 = vld [vmem:[%s6476_s6 + $0x28] sm:$0xff]  }
  0x53   :  { %v4122_v29 = vunpack.c.l.bf16 %v4319_v21  ;;  %v4123_v37 = vunpack.c.h.bf16 %v4319_v21 }
  0x55   :  { %4646 = vmatpush3.bf16.msra.mxu0 %v4989_v50  ;;  %4602 = vmatpush3.bf16.msra.mxu1 %v4990_v51 }
  0x56   :  { %4647 = vmatprep.subr.bf16.mxu0 %v4991_v52  ;;  %4603 = vmatprep.subr.bf16.mxu1 %v4992_v53 }
  0x59   :  { %4648 = vmatpush3.bf16.msra.mxu0 %v4991_v52  ;;  %4604 = vmatpush3.bf16.msra.mxu1 %v4992_v53  ;;  %v4320_v53 = vld [vmem:[%s6476_s6 + $0x20] sm:$0xff]  }
  0x5a   :  { %4649 = vmatprep.subr.bf16.mxu0 %v4993_v54  ;;  %4605 = vmatprep.subr.bf16.mxu1 %v4994_v55 }
  0x5d   :  { %4650 = vmatpush3.bf16.msra.mxu0 %v4993_v54  ;;  %4606 = vmatpush3.bf16.msra.mxu1 %v4994_v55 }
  0x5e   :  { %4651 = vmatprep.subr.bf16.mxu0 %v4995_v56  ;;  %4607 = vmatprep.subr.bf16.mxu1 %v4996_v57 }
  0x61   :  { %4652 = vmatpush3.bf16.msra.mxu0 %v4995_v56  ;;  %4608 = vmatpush3.bf16.msra.mxu1 %v4996_v57  ;;  %v4130_v56 = vunpack.c.l.bf16 %v4321_v47 }
  0x62   :  { %4609 = vmatprep.subr.bf16.mxu1 %v5000_v58  ;;  %4717 = vmatprep.subr.bf16.mxu0 %v5370_v60 }
  0x65   :  { %4610 = vmatpush3.bf16.msra.mxu1 %v5000_v58 }
  0x66   :  { %4611 = vmatprep.subr.bf16.mxu1 %v5001_v59 }
  0x69   :  { %4612 = vmatpush3.bf16.msra.mxu1 %v5001_v59 }
  0x6a   :  { %4677 = vmatprep.subr.bf16.mxu1 %v5376_v61 }
  0x80   :  { %v417_v62 = vpop.permute.xlu0 %416  ;;  %v427_v0 = vpop.permute.xlu1 %426 }
  0x84   :  { %v422_v63 = vpop.permute.xlu0 %421  ;;  %v432_v2 = vpop.permute.xlu1 %431 }
  0x88   :  { %v5379_v1 = vpop.permute.xlu0 %436  ;;  %v5381_v4 = vpop.permute.xlu1 %441 }
  0x8c   :  { %v447_v3 = vpop.permute.xlu0 %446  ;;  %v452_v16 = vpop.permute.xlu1 %451 }
  0x90   :  { %v5395_v11 = vpop.permute.xlu0 %456  ;;  %v5409_v34 = vpop.permute.xlu1 %461 }
  0x94   :  { %v5406_v27 = vpop.permute.xlu0 %466  ;;  %v472_v54 = vpop.permute.xlu1 %471 }
  0x98   :  { %v5416_v48 = vpop.permute.xlu0 %476 }
  0xe2   :  { %v4575_v7 = vpop.f32.mrf.mxu0 }
  0xe3   :  { %v237_v9 = vadd.f32 %v4575_v7, %v5386_v5 }
  0xe4   :  { %v228_v12 = vpop.f32.mrf.mxu0 }
  0xe5   :  { %v229_v13 = vadd.f32 %v5386_v5, %v228_v12  ;;  %v370_v18 = vadd.f32 %v4114_v10, %v237_v9  ;;  %v5426_v10 = vpop.permute.xlu0 %486 }
  0xe6   :  { %v4576_v17 = vpop.f32.mrf.mxu0 }
  0xe7   :  { %v240_v19 = vadd.f32 %v4576_v17, %v5386_v5  ;;  %v368_v23 = vadd.f32 %v4110_v14, %v229_v13  ;;  %v531_v30 = vmul.f32 %v427_v0, %v370_v18  ;;  %v4126_v0 = vunpack.c.l.bf16 %v4320_v53 }
  0xe8   :  { %v231_v22 = vpop.f32.mrf.mxu0 }
  0xe9   :  { %v371_v24 = vadd.f32 %v4115_v15, %v240_v19  ;;  %v232_v25 = vadd.f32 %v5386_v5, %v231_v22  ;;  %v529_v38 = vmul.f32 %v417_v62, %v368_v23 }
  0xea   :  { %v4579_v28 = vpop.f32.mrf.mxu0 }
  0xeb   :  { %v532_v31 = vmul.f32 %v432_v2, %v371_v24  ;;  %v369_v32 = vadd.f32 %v4111_v20, %v232_v25  ;;  %v253_v33 = vadd.f32 %v4579_v28, %v5386_v5  ;;  %v4131_v2 = vunpack.c.h.bf16 %v4321_v47 }
  0xec   :  { %v244_v35 = vpop.f32.mrf.mxu0 }
  0xed   :  { %v4160_v39 = vpack.c.bf16 %v532_v31, %v531_v30  ;;  %v530_v40 = vmul.f32 %v422_v63, %v369_v32  ;;  %v245_v41 = vadd.f32 %v5386_v5, %v244_v35  ;;  %v374_v44 = vadd.f32 %v4122_v29, %v253_v33  ;;  %v5009_v30 = vld [vmem:[%s6474_s4 + $0xf0] sm:$0xff]  }
  0xee   :  { %v4580_v42 = vpop.f32.mrf.mxu0 }
  0xef   :  { %4327 = vst [vmem:[#allocation3 + $0x8] sm:$0xff] %v4160_v39   ;;  %4337 = vst [vmem:[#allocation2 + $0x8] sm:$0xff] %v4160_v39   ;;  %v4155_v43 = vpack.c.bf16 %v530_v40, %v529_v38  ;;  %v256_v45 = vadd.f32 %v4580_v42, %v5386_v5  ;;  %v372_v50 = vadd.f32 %v4118_v36, %v245_v41  ;;  %v5455_v36 = vpop.permute.xlu0 %496 }
  0xf0   :  { %v247_v49 = vpop.f32.mrf.mxu0  ;;  %v535_v57 = vmul.f32 %v447_v3, %v374_v44  ;;  %v5431_v3 = vld [vmem:[%s6476_s6 + $0x38] sm:$0xff]  }
  0xf1   :  { %4156 = vst [vmem:[#allocation3] sm:$0xff] %v4155_v43   ;;  %4211 = vst [vmem:[#allocation2] sm:$0xff] %v4155_v43   ;;  %v375_v51 = vadd.f32 %v4123_v37, %v256_v45  ;;  %v248_v52 = vadd.f32 %v5386_v5, %v247_v49  ;;  %v533_v6 = vmul.f32 %v5379_v1, %v372_v50  ;;  %v4127_v1 = vunpack.c.h.bf16 %v4320_v53  ;;  %v5465_v43 = vld [vmem:[%s6476_s6 + $0x48] sm:$0xff]  }
  0xf2   :  { %v4583_v55 = vpop.f32.mrf.mxu0  ;;  %v4138_v26 = vunpack.c.l.bf16 %v5431_v3  ;;  %v4139_v29 = vunpack.c.h.bf16 %v5431_v3  ;;  %v5013_v45 = vld [vmem:[%s6474_s4 + $0xe8] sm:$0xff]  }
  0xf3   :  { %v536_v58 = vmul.f32 %v452_v16, %v375_v51  ;;  %v373_v59 = vadd.f32 %v4119_v46, %v248_v52  ;;  %v269_v62 = vadd.f32 %v4583_v55, %v5386_v5  ;;  %v5439_v16 = vpop.permute.xlu1 %481 }
  0xf4   :  { %v260_v63 = vpop.f32.mrf.mxu0 }
  0xf5   :  { %v4170_v7 = vpack.c.bf16 %v536_v58, %v535_v57  ;;  %v534_v8 = vmul.f32 %v5381_v4, %v373_v59  ;;  %v261_v9 = vadd.f32 %v5386_v5, %v260_v63  ;;  %v378_v14 = vadd.f32 %v4130_v56, %v269_v62  ;;  %v5437_v4 = vld [vmem:[%s6476_s6 + $0x30] sm:$0xff]  }
  0xf6   :  { %v4584_v12 = vpop.f32.mrf.mxu0  ;;  %v5443_v21 = vld [vmem:[#allocation2 + $0x8] sm:$0xff]   ;;  %v4134_v28 = vunpack.c.l.bf16 %v5437_v4  ;;  %v4135_v53 = vunpack.c.h.bf16 %v5437_v4 }
  0xf7   :  { %4329 = vst [vmem:[#allocation3 + $0x18] sm:$0xff] %v4170_v7   ;;  %4339 = vst [vmem:[#allocation2 + $0x18] sm:$0xff] %v4170_v7   ;;  %v4165_v13 = vpack.c.bf16 %v534_v8, %v533_v6  ;;  %v272_v15 = vadd.f32 %v4584_v12, %v5386_v5  ;;  %v376_v17 = vadd.f32 %v4126_v0, %v261_v9  ;;  %v819_v40 = vshll.u32 %v5443_v21, 16  ;;  %v5485_v0 = vpop.permute.xlu0 %506  ;;  %v5014_v12 = vld [vmem:[%s6474_s4 + $0xe0] sm:$0xff]  }
  0xf8   :  { %v263_v18 = vpop.f32.mrf.mxu0  ;;  %v695_v19 = vld [vmem:[#allocation2] sm:$0xf]  ;;  %v5441_v20 = vld [vmem:[#allocation2 + $0x4] sm:$0xf]  ;;  %v539_v31 = vmul.f32 %v5406_v27, %v378_v14  ;;  %v823_v7 = vshrl.u32 %v5443_v21, 16 }
  0xf9   :  { %4328 = vst [vmem:[#allocation3 + $0x10] sm:$0xff] %v4165_v13   ;;  %4338 = vst [vmem:[#allocation2 + $0x10] sm:$0xff] %v4165_v13   ;;  %v379_v22 = vadd.f32 %v4131_v2, %v272_v15  ;;  %v264_v23 = vadd.f32 %v5386_v5, %v263_v18  ;;  %v3790_v24 = vcombine.low %v695_v19, %v5441_v20  ;;  %v821_v56 = vrot.slane %v819_v40, 1 }
  0xfa   :  { %v4587_v25 = vpop.f32.mrf.mxu0  ;;  %v537_v37 = vmul.f32 %v5395_v11, %v376_v17  ;;  %v5470_v11 = vld [vmem:[%s6476_s6 + $0x40] sm:$0xff]   ;;  %v4147_v17 = vunpack.c.h.bf16 %v5465_v43 }
  0xfb   :  { %v540_v32 = vmul.f32 %v472_v54, %v379_v22  ;;  %v377_v33 = vadd.f32 %v4127_v1, %v264_v23  ;;  %v285_v35 = vadd.f32 %v4587_v25, %v5386_v5  ;;  %4653 = vmatprep.mubr.bf16.mxu0 %v3790_v24  ;;  %v814_v39 = vshll.u32 %v3790_v24, 16  ;;  %v344_v22 = vld [vmem:[%s6476_s6 + $0x58] sm:$0x7]  ;;  %v5008_v23 = vld [vmem:[%s6474_s4 + $0xb0] sm:$0xff]   ;;  %v5524_v40 = vpop.permute.xlu0 %516 }
  0xfc   :  { %v276_v38 = vpop.f32.mrf.mxu0  ;;  %4654 = vmatmul.mubr.bf16.vlgmr.msra.gmra.mxu0 %v5443_v21  ;;  %v812_v44 = vshrl.u32 %v3790_v24, 16  ;;  %v4142_v63 = vunpack.c.l.bf16 %v5470_v11  ;;  %v825_v18 = vor.u32 %v823_v7, %v821_v56 }
  0xfd   :  { %v4180_v41 = vpack.c.bf16 %v540_v32, %v539_v31  ;;  %v538_v42 = vmul.f32 %v5409_v34, %v377_v33  ;;  %v277_v27 = vadd.f32 %v5386_v5, %v276_v38  ;;  %4718 = vmatpush3.bf16.msra.mxu0 %v5370_v60  ;;  %v492_v34 = vpop.permute.xlu1 %491  ;;  %v816_v47 = vrot.slane %v814_v39, 1  ;;  %v5018_v39 = vld [vmem:[%s6474_s4 + $0xd8] sm:$0xff]  }
  0xfe   :  { %v4588_v46 = vpop.f32.mrf.mxu0  ;;  %v5476_v49 = vld [vmem:[#allocation2 + $0x18] sm:$0xff]   ;;  %4719 = vmatprep.subr.bf16.mxu0 %v5009_v30  ;;  %v382_v51 = vadd.f32 %v4138_v26, %v285_v35  ;;  %v4146_v60 = vunpack.c.l.bf16 %v5465_v43  ;;  %v4143_v38 = vunpack.c.h.bf16 %v5470_v11 }
  0xff   :  { %4331 = vst [vmem:[#allocation3 + $0x28] sm:$0xff] %v4180_v41   ;;  %4341 = vst [vmem:[#allocation2 + $0x28] sm:$0xff] %v4180_v41   ;;  %v4175_v50 = vpack.c.bf16 %v538_v42, %v537_v37  ;;  %v288_v52 = vadd.f32 %v4588_v46, %v5386_v5  ;;  %v817_v55 = vor.u32 %v816_v47, %v812_v44  ;;  %v835_v9 = vshll.u32 %v5476_v49, 16 }
 0x100   :  { %v279_v54 = vpop.f32.mrf.mxu0  ;;  %v5481_v57 = vld [vmem:[#allocation2 + $0x10] sm:$0xff]   ;;  %v380_v58 = vadd.f32 %v4134_v28, %v277_v27  ;;  %v543_v3 = vmul.f32 %v5426_v10, %v382_v51 }
 0x101   :  { %4330 = vst [vmem:[#allocation3 + $0x20] sm:$0xff] %v4175_v50   ;;  %4340 = vst [vmem:[#allocation2 + $0x20] sm:$0xff] %v4175_v50   ;;  %v383_v59 = vadd.f32 %v4139_v29, %v288_v52  ;;  %v280_v62 = vadd.f32 %v5386_v5, %v279_v54  ;;  %4720 = vmatpush3.bf16.msra.mxu0 %v5009_v30  ;;  %v822_v6 = vsel %vm810_vm0, %v817_v55, %v821_v56  ;;  %v5497_v1 = vpop.permute.xlu1 %501  ;;  %v5514_v29 = vld [vmem:[%s6476_s6 + $0x50] sm:$0xff]  }
 0x102   :  { %v4591_v2 = vpop.f32.mrf.mxu0  ;;  %4657 = vmatprep.mubr.bf16.mxu0 %v5481_v57  ;;  %v827_v8 = vshll.u32 %v5481_v57, 16  ;;  %4721 = vmatprep.subr.bf16.mxu0 %v5013_v45  ;;  %v831_v10 = vshrl.u32 %v5481_v57, 16  ;;  %v541_v24 = vmul.f32 %v5416_v48, %v380_v58  ;;  %v837_v33 = vrot.slane %v835_v9, 1  ;;  %v5020_v56 = vld [vmem:[%s6474_s4 + $0xd0] sm:$0xff]  }
 0x103   :  { %v544_v13 = vmul.f32 %v492_v34, %v383_v59  ;;  %v381_v14 = vadd.f32 %v4135_v53, %v280_v62  ;;  %v301_v15 = vadd.f32 %v4591_v2, %v5386_v5  ;;  %4613 = vmatprep.mubr.bf16.mxu1 %v822_v6  ;;  %v5011_v34 = vld [vmem:[%s6474_s4 + $0xa8] sm:$0xff]   ;;  %v839_v50 = vshrl.u32 %v5476_v49, 16 }
 0x104   :  { %v292_v4 = vpop.f32.mrf.mxu0  ;;  %4658 = vmatmul.mubr.bf16.gmra.mxu0 %v5476_v49  ;;  %v829_v19 = vrot.slane %v827_v8, 1 }
 0x105   :  { %v4190_v25 = vpack.c.bf16 %v544_v13, %v543_v3  ;;  %v542_v26 = vmul.f32 %v5439_v16, %v381_v14  ;;  %v293_v28 = vadd.f32 %v5386_v5, %v292_v4  ;;  %4722 = vmatpush3.bf16.msra.mxu0 %v5013_v45  ;;  %v386_v16 = vadd.f32 %v4146_v60, %v301_v15  ;;  %v512_v46 = vpop.permute.xlu1 %511 }
 0x106   :  { %v4592_v30 = vpop.f32.mrf.mxu0  ;;  %v830_v31 = vsel %vm810_vm0, %v825_v18, %v829_v19  ;;  %v833_v32 = vor.u32 %v831_v10, %v829_v19  ;;  %v5517_v35 = vld [vmem:[#allocation2 + $0x28] sm:$0xff]   ;;  %4723 = vmatprep.subr.bf16.mxu0 %v5014_v12  ;;  %v367_v45 = vunpack.c.l.bf16 %v344_v22  ;;  %v841_v62 = vor.u32 %v839_v50, %v837_v33 }
 0x107   :  { %4333 = vst [vmem:[#allocation3 + $0x38] sm:$0xff] %v4190_v25   ;;  %4343 = vst [vmem:[#allocation2 + $0x38] sm:$0xff] %v4190_v25   ;;  %v4185_v48 = vpack.c.bf16 %v542_v26, %v541_v24  ;;  %v304_v37 = vadd.f32 %v4592_v30, %v5386_v5  ;;  %4614 = vmatmul.mubr.bf16.vlgmr.msra.gmra.mxu1 %v830_v31  ;;  %v384_v41 = vadd.f32 %v4142_v63, %v293_v28  ;;  %v5019_v26 = vld [vmem:[%s6474_s4 + $0x98] sm:$0xff]   ;;  %v1541_v31 = vld [vmem:[#allocation2 + $0x4] sm:$0xf] }
 0x108   :  { %v295_v42 = vpop.f32.mrf.mxu0  ;;  %4678 = vmatpush3.bf16.msra.mxu1 %v5376_v61  ;;  %v838_v27 = vsel %vm810_vm0, %v833_v32, %v837_v33  ;;  %v5528_v43 = vld [vmem:[#allocation2 + $0x20] sm:$0xff]   ;;  %v4150_v61 = vunpack.c.l.bf16 %v5514_v29  ;;  %v851_v52 = vshll.u32 %v5517_v35, 16  ;;  %v547_v53 = vmul.f32 %v5485_v0, %v386_v16 }
 0x109   :  { %4332 = vst [vmem:[#allocation3 + $0x30] sm:$0xff] %v4185_v48   ;;  %4342 = vst [vmem:[#allocation2 + $0x30] sm:$0xff] %v4185_v48   ;;  %v387_v44 = vadd.f32 %v4147_v17, %v304_v37  ;;  %v296_v11 = vadd.f32 %v5386_v5, %v295_v42  ;;  %4617 = vmatprep.mubr.bf16.mxu1 %v838_v27  ;;  %4679 = vmatprep.subr.bf16.mxu1 %v5008_v23  ;;  %v843_v51 = vshll.u32 %v5528_v43, 16  ;;  %v5015_v0 = vld [vmem:[%s6474_s4 + $0xa0] sm:$0xff]   ;;  %v522_v33 = vpop.permute.xlu1 %521  ;;  %v5024_v42 = vld [vmem:[%s6474_s4 + $0x90] sm:$0xff]  }
 0x10a   :  { %v4595_v47 = vpop.f32.mrf.mxu0  ;;  %4661 = vmatprep.mubr.bf16.mxu0 %v5528_v43  ;;  %4724 = vmatpush3.bf16.msra.mxu0 %v5014_v12  ;;  %v545_v58 = vmul.f32 %v5455_v36, %v384_v41  ;;  %v847_v2 = vshrl.u32 %v5528_v43, 16  ;;  %v527_v36 = vpop.permute.xlu0 %526  ;;  %v853_v14 = vrot.slane %v851_v52, 1  ;;  %v4151_v18 = vunpack.c.h.bf16 %v5514_v29 }
 0x10b   :  { %v548_v54 = vmul.f32 %v512_v46, %v387_v44  ;;  %v385_v60 = vadd.f32 %v4143_v38, %v296_v11  ;;  %v317_v55 = vadd.f32 %v4595_v47, %v5386_v5  ;;  %4725 = vmatprep.subr.bf16.mxu0 %v5018_v39  ;;  %v845_v63 = vrot.slane %v843_v51, 1  ;;  %v5575_v38 = vld [vmem:[#allocation2 + $0x8] sm:$0xf]  ;;  %v5585_v47 = vld [vmem:[#allocation2 + $0xc] sm:$0xff]  }
 0x10c   :  { %v308_v59 = vpop.f32.mrf.mxu0  ;;  %4662 = vmatmul.mubr.bf16.gmra.mxu0 %v5517_v35  ;;  %4680 = vmatpush3.bf16.msra.mxu1 %v5008_v23  ;;  %v855_v28 = vshrl.u32 %v5517_v35, 16  ;;  %v3860_v27 = vcombine.low %v1541_v31, %v5575_v38 }
 0x10d   :  { %v4200_v6 = vpack.c.bf16 %v548_v54, %v547_v53  ;;  %v546_v7 = vmul.f32 %v5497_v1, %v385_v60  ;;  %v390_v8 = vadd.f32 %v367_v45, %v317_v55  ;;  %v309_v9 = vadd.f32 %v5386_v5, %v308_v59  ;;  %4681 = vmatprep.subr.bf16.mxu1 %v5011_v34  ;;  %v5023_v1 = vld [vmem:[%s6474_s4 + $0xc8] sm:$0xff]  }
 0x10e   :  { %v4596_v12 = vpop.f32.mrf.mxu0  ;;  %v846_v3 = vsel %vm810_vm0, %v841_v62, %v845_v63  ;;  %v849_v13 = vor.u32 %v847_v2, %v845_v63  ;;  %v5553_v15 = vld [vmem:[#allocation2 + $0x38] sm:$0xff]   ;;  %4726 = vmatpush3.bf16.msra.mxu0 %v5018_v39  ;;  %v857_v48 = vor.u32 %v855_v28, %v853_v14  ;;  %v1642_v52 = vshll.u32 %v3860_v27, 16  ;;  %v5029_v53 = vld [vmem:[%s6474_s4 + $0x88] sm:$0xff]  }
 0x10f   :  { %4335 = vst [vmem:[#allocation3 + $0x48] sm:$0xff] %v4200_v6   ;;  %4345 = vst [vmem:[#allocation2 + $0x48] sm:$0xff] %v4200_v6   ;;  %v4195_v4 = vpack.c.bf16 %v546_v7, %v545_v58  ;;  %v551_v17 = vmul.f32 %v527_v36, %v390_v8  ;;  %4618 = vmatmul.mubr.bf16.gmra.mxu1 %v846_v3  ;;  %4727 = vmatprep.subr.bf16.mxu0 %v5020_v56  ;;  %v867_v30 = vshll.u32 %v5553_v15, 16  ;;  %v5606_v2 = vld [vmem:[#allocation2 + $0x14] sm:$0xff]   ;;  %v5614_v12 = vld [vmem:[#allocation2 + $0x1c] sm:$0xff]  }
 0x110   :  { %v311_v19 = vpop.f32.mrf.mxu0  ;;  %v854_v22 = vsel %vm810_vm0, %v849_v13, %v853_v14  ;;  %v5560_v10 = vld [vmem:[#allocation2 + $0x30] sm:$0xff]   ;;  %4682 = vmatpush3.bf16.msra.mxu1 %v5011_v34  ;;  %v388_v24 = vadd.f32 %v4150_v61, %v309_v9  ;;  %v871_v54 = vshrl.u32 %v5553_v15, 16  ;;  %v1647_v55 = vshll.u32 %v5585_v47, 16 }
 0x111   :  { %4334 = vst [vmem:[#allocation3 + $0x40] sm:$0xff] %v4195_v4   ;;  %4344 = vst [vmem:[#allocation2 + $0x40] sm:$0xff] %v4195_v4   ;;  %v4084_v23 = vpack.c.bf16 %v551_v17, %v551_v17  ;;  %v312_v25 = vadd.f32 %v5386_v5, %v311_v19  ;;  %4621 = vmatprep.mubr.bf16.mxu1 %v854_v22  ;;  %4683 = vmatprep.subr.bf16.mxu1 %v5015_v0  ;;  %v859_v29 = vshll.u32 %v5560_v10, 16  ;;  %v5027_v5 = vld [vmem:[%s6474_s4 + $0xc0] sm:$0xff]   ;;  %v5622_v17 = vld [vmem:[%s6474_s4 + $0x138] sm:$0xff]  }
 0x112   :  { %4665 = vmatprep.mubr.bf16.mxu0 %v5560_v10  ;;  %4728 = vmatpush3.bf16.msra.mxu0 %v5020_v56  ;;  %v863_v37 = vshrl.u32 %v5560_v10, 16  ;;  %v549_v39 = vmul.f32 %v5524_v40, %v388_v24  ;;  %v869_v45 = vrot.slane %v867_v30, 1  ;;  %v5590_v40 = vld [vmem:[%s6474_s4 + $0x178] sm:$0xff]   ;;  %v1644_v63 = vrot.slane %v1642_v52, 1  ;;  %v1285_v24 = vld [vmem:[#allocation2] sm:$0xe] }
 0x113   :  { %667 = vst [vmem:[#allocation3 + $0x58] sm:$0x7] %v4084_v23  ;;  %690 = vst [vmem:[#allocation2 + $0x58] sm:$0x7] %v4084_v23  ;;  %v389_v32 = vadd.f32 %v4151_v18, %v312_v25  ;;  %4729 = vmatprep.subr.bf16.mxu0 %v5023_v1  ;;  %v861_v16 = vrot.slane %v859_v29, 1  ;;  %v1640_v9 = vshrl.u32 %v3860_v27, 16 }
 0x114   :  { %4666 = vmatmul.mubr.bf16.gmra.mxu0 %v5553_v15  ;;  %4684 = vmatpush3.bf16.msra.mxu1 %v5015_v0  ;;  %v873_v56 = vor.u32 %v871_v54, %v869_v45  ;;  %v5032_v0 = vld [vmem:[%s6474_s4 + $0x80] sm:$0xff]   ;;  %v1649_v36 = vrot.slane %v1647_v55, 1  ;;  %v1655_v22 = vshll.u32 %v5606_v2, 16  ;;  %v1663_v29 = vshll.u32 %v5614_v12, 16  ;;  %v5640_v27 = vld [vmem:[#allocation2 + $0x2c] sm:$0xff]  }
 0x115   :  { %v550_v41 = vmul.f32 %v522_v33, %v389_v32  ;;  %4685 = vmatprep.subr.bf16.mxu1 %v5019_v26  ;;  %v862_v44 = vsel %vm810_vm0, %v857_v48, %v861_v16  ;;  %v865_v11 = vor.u32 %v863_v37, %v861_v16  ;;  %v1645_v4 = vor.u32 %v1644_v63, %v1640_v9  ;;  %v5635_v48 = vld [vmem:[#allocation2 + $0x24] sm:$0xff]  }
 0x116   :  { %v5583_v34 = vld [vmem:[#allocation2 + $0x48] sm:$0xff]   ;;  %4730 = vmatpush3.bf16.msra.mxu0 %v5023_v1  ;;  %v1651_v30 = vshrl.u32 %v5585_v47, 16  ;;  %v1657_v33 = vrot.slane %v1655_v22, 1  ;;  %v3835_v16 = vcombine.low %v1285_v24, %v5441_v20  ;;  %v1679_v52 = vshll.u32 %v5640_v27, 16  ;;  %v5045_v9 = vld [vmem:[%s6474_s4 + $0x160] sm:$0xff]  }
 0x117   :  { %v4205_v46 = vpack.c.bf16 %v550_v41, %v549_v39  ;;  %4622 = vmatmul.mubr.bf16.gmra.mxu1 %v862_v44  ;;  %4731 = vmatprep.subr.bf16.mxu0 %v5027_v5  ;;  %v870_v61 = vsel %vm810_vm0, %v865_v11, %v869_v45  ;;  %v883_v51 = vshll.u32 %v5583_v34, 16  ;;  %v887_v18 = vshrl.u32 %v5583_v34, 16  ;;  %v5040_v45 = vld [vmem:[%s6474_s4 + $0x170] sm:$0xff]  }
 0x118   :  { %v5593_v50 = vld [vmem:[#allocation2 + $0x40] sm:$0xff]   ;;  %4686 = vmatpush3.bf16.msra.mxu1 %v5019_v26  ;;  %4625 = vmatprep.mubr.bf16.mxu1 %v870_v61  ;;  %v1650_v23 = vsel %vm810_vm0, %v1645_v4, %v1649_v36  ;;  %v1653_v37 = vor.u32 %v1651_v30, %v1649_v36  ;;  %v1659_v39 = vshrl.u32 %v5606_v2, 16  ;;  %v1671_v11 = vshll.u32 %v5635_v48, 16 }
 0x119   :  { %4336 = vst [vmem:[#allocation3 + $0x50] sm:$0xff] %v4205_v46   ;;  %4346 = vst [vmem:[#allocation2 + $0x50] sm:$0xff] %v4205_v46   ;;  %4687 = vmatprep.subr.bf16.mxu1 %v5024_v42  ;;  %4669 = vmatprep.mubr.bf16.mxu0 %v5593_v50  ;;  %v875_v60 = vshll.u32 %v5593_v50, 16  ;;  %v879_v59 = vshrl.u32 %v5593_v50, 16  ;;  %v885_v62 = vrot.slane %v883_v51, 1  ;;  %v1307_v61 = vrot.slane %v3835_v16, 1 }
 0x11a   :  { %4732 = vmatpush3.bf16.msra.mxu0 %v5027_v5  ;;  %v5612_v8 = vld [vmem:[#allocation2 + $0x58] ss:$0 sps:$4 sm:$0xff]   ;;  %v1661_v44 = vor.u32 %v1659_v39, %v1657_v33  ;;  %v1658_v46 = vsel %vm810_vm0, %v1653_v37, %v1657_v33  ;;  %v1308_v54 = vrot.slane %v5443_v21, 1  ;;  %v1673_v55 = vrot.slane %v1671_v11, 1  ;;  %v5676_v22 = vld [vmem:[#allocation2 + $0x44] sm:$0xff]  }
 0x11b   :  { %4797 = vmatprep.subr.bf16.mxu0 %v5590_v40  ;;  %v877_v58 = vrot.slane %v875_v60, 1  ;;  %v5022_v14 = vld [vmem:[#allocation2 + $0x58] ss:$0 sps:$4 sm:$0x77]   ;;  %v899_v19 = vshll.u32 %v5612_v8, 16  ;;  %v889_v25 = vor.u32 %v887_v18, %v885_v62  ;;  %v903_v20 = vshrl.u32 %v5612_v8, 16 }
 0x11c   :  { %4670 = vmatmul.mubr.bf16.gmra.mxu0 %v5583_v34  ;;  %4688 = vmatpush3.bf16.msra.mxu1 %v5024_v42  ;;  %v1665_v42 = vrot.slane %v1663_v29, 1  ;;  %v1667_v60 = vshrl.u32 %v5614_v12, 16  ;;  %v1675_v63 = vshrl.u32 %v5635_v48, 16  ;;  %v1681_v21 = vrot.slane %v1679_v52, 1  ;;  %v5041_v29 = vld [vmem:[%s6474_s4 + $0x128] sm:$0xff]  }
 0x11d   :  { %4689 = vmatprep.subr.bf16.mxu1 %v5029_v53  ;;  %v878_v6 = vsel %vm810_vm0, %v873_v56, %v877_v58  ;;  %v881_v7 = vor.u32 %v879_v59, %v877_v58  ;;  %v901_v5 = vrot.slane %v899_v19, 1  ;;  %v5653_v56 = vld [vmem:[#allocation2 + $0x34] sm:$0xff]   ;;  %v5043_v58 = vld [vmem:[%s6474_s4 + $0x168] sm:$0xff]   ;;  %v1309_v59 = vsel %vm1306_vm1, %v1307_v61, %v1308_v54  ;;  %v5714_v52 = vld [vmem:[#allocation2 + $0x10] sm:$0xf] }
 0x11e   :  { %v1666_v51 = vsel %vm810_vm0, %v1661_v44, %v1665_v42  ;;  %v1312_v4 = vrot.slane %v5476_v49, 1  ;;  %v1683_v18 = vshrl.u32 %v5640_v27, 16 }
 0x11f   :  { %4626 = vmatmul.mubr.bf16.gmra.mxu1 %v878_v6  ;;  %v886_v3 = vsel %vm810_vm0, %v881_v7, %v885_v62  ;;  %v1669_v62 = vor.u32 %v1667_v60, %v1665_v42  ;;  %v1310_v6 = vrot.slane %v5481_v57, 1  ;;  %v1687_v7 = vshll.u32 %v5653_v56, 16  ;;  %v5039_v57 = vld [vmem:[%s6474_s4 + $0x130] sm:$0xff]   ;;  %v5717_v60 = vld [vmem:[#allocation2 + $0x5c] ss:$0 sps:$4 sm:$0xff]  }
 0x120   :  { %v5617_v13 = vld [vmem:[#allocation2 + $0x50] sm:$0xff]   ;;  %4690 = vmatpush3.bf16.msra.mxu1 %v5029_v53  ;;  %4629 = vmatprep.mubr.bf16.mxu1 %v886_v3  ;;  %v905_v53 = vor.u32 %v903_v20, %v901_v5  ;;  %v1685_v24 = vor.u32 %v1683_v18, %v1681_v21 }
 0x121   :  { %4691 = vmatprep.subr.bf16.mxu1 %v5032_v0  ;;  %4673 = vmatprep.mubr.bf16.mxu0 %v5617_v13  ;;  %v891_v1 = vshll.u32 %v5617_v13, 16  ;;  %v895_v28 = vshrl.u32 %v5617_v13, 16  ;;  %v1674_v36 = vsel %vm810_vm0, %v1669_v62, %v1673_v55  ;;  %v1689_v19 = vrot.slane %v1687_v7, 1  ;;  %v5697_v37 = vld [vmem:[#allocation2 + $0x54] sm:$0xff]  }
 0x122   :  { %v1313_v49 = vsel %vm1306_vm1, %v1310_v6, %v1312_v4  ;;  %v1719_v61 = vshll.u32 %v5697_v37, 16  ;;  %v5053_v7 = vld [vmem:[%s6474_s4 + $0x110] sm:$0xff]  }
 0x123   :  { %v893_v26 = vrot.slane %v891_v1, 1  ;;  %v1311_v1 = vsel %vm1306_vm1, %v1308_v54, %v1310_v6  ;;  %v1318_v54 = vrot.slane %v5560_v10, 1 }
 0x124   :  { %4674 = vmatmul.mubr.bf16.gmra.mxu0 %v5022_v14  ;;  %4692 = vmatpush3.bf16.msra.mxu1 %v5032_v0  ;;  %v5660_v0 = vld [vmem:[#allocation2 + $0x3c] sm:$0xff]  }
 0x125   :  { %4733 = vmatprep.mubr.bf16.mxu0 %v1650_v23  ;;  %4757 = vmatprep.subr.bf16.mxu1 %v5622_v17  ;;  %v894_v31 = vsel %vm810_vm0, %v889_v25, %v893_v26  ;;  %v897_v32 = vor.u32 %v895_v28, %v893_v26  ;;  %v1695_v14 = vshll.u32 %v5660_v0, 16  ;;  %v5048_v23 = vld [vmem:[%s6474_s4 + $0x158] sm:$0xff]   ;;  %v1691_v25 = vshrl.u32 %v5653_v56, 16  ;;  %v5684_v28 = vld [vmem:[#allocation2 + $0x4c] sm:$0xff]  }
 0x126   :  { %v1711_v16 = vshll.u32 %v5684_v28, 16  ;;  %v1699_v39 = vshrl.u32 %v5660_v0, 16  ;;  %v1715_v6 = vshrl.u32 %v5684_v28, 16 }
 0x127   :  { %4630 = vmatmul.mubr.bf16.gmra.mxu1 %v894_v31  ;;  %v902_v41 = vsel %vm810_vm0, %v897_v32, %v901_v5  ;;  %v1697_v26 = vrot.slane %v1695_v14, 1  ;;  %v1693_v30 = vor.u32 %v1691_v25, %v1689_v19  ;;  %v1314_v31 = vrot.slane %v5528_v43, 1  ;;  %v5051_v5 = vld [vmem:[%s6474_s4 + $0x150] sm:$0xff]  }
 0x128   :  { %4633 = vmatprep.mubr.bf16.mxu1 %v902_v41  ;;  %v1703_v32 = vshll.u32 %v5676_v22, 16  ;;  %v1316_v43 = vrot.slane %v5517_v35, 1  ;;  %v5046_v41 = vld [vmem:[%s6474_s4 + $0x120] sm:$0xff]   ;;  %v5052_v35 = vld [vmem:[%s6474_s4 + $0x148] sm:$0xff]   ;;  %v1713_v20 = vrot.slane %v1711_v16, 1  ;;  %v1322_v25 = vrot.slane %v5593_v50, 1 }
 0x129   :  { %v1698_v33 = vsel %vm810_vm0, %v1693_v30, %v1697_v26  ;;  %v1315_v42 = vsel %vm1306_vm1, %v1312_v4, %v1314_v31  ;;  %v5736_v14 = vld [vmem:[#allocation2 + $0x14] sm:$0xf]  ;;  %v5754_v30 = vld [vmem:[#allocation2 + $0x1c] sm:$0xf] }
 0x12a   :  { %v1705_v44 = vrot.slane %v1703_v32, 1  ;;  %v1317_v11 = vsel %vm1306_vm1, %v1314_v31, %v1316_v43  ;;  %v1717_v18 = vor.u32 %v1715_v6, %v1713_v20  ;;  %v5783_v6 = vld [vmem:[%s6474_s4 + $0x1b8] sm:$0xff]  }
 0x12c   :  { %4734 = vmatmul.mubr.bf16.vlgmr.msra.gmra.mxu0 %v1658_v46  ;;  %v1707_v46 = vshrl.u32 %v5676_v22, 16 }
 0x12d   :  { %4737 = vmatprep.mubr.bf16.mxu0 %v1666_v51  ;;  %4798 = vmatpush3.bf16.msra.mxu0 %v5590_v40  ;;  %v1677_v40 = vor.u32 %v1675_v63, %v1673_v55  ;;  %v5050_v51 = vld [vmem:[%s6474_s4 + $0x118] sm:$0xff]   ;;  %v1721_v63 = vrot.slane %v1719_v61, 1 }
 0x12e   :  { %4799 = vmatprep.subr.bf16.mxu0 %v5040_v45 }
 0x12f   :  { %4634 = vmatmul.mubr.bf16.gmra.mxu1 %v905_v53  ;;  %v1682_v3 = vsel %vm810_vm0, %v1677_v40, %v1681_v21  ;;  %v1709_v53 = vor.u32 %v1707_v46, %v1705_v44  ;;  %v1727_v21 = vshll.u32 %v5717_v60, 16  ;;  %v1320_v40 = vrot.slane %v5553_v15, 1  ;;  %v5739_v15 = vld [vmem:[#allocation2 + $0x20] sm:$0xf] }
 0x130   :  { %4693 = vmatprep.mubr.bf16.mxu1 %v1309_v59  ;;  %v5056_v59 = vld [vmem:[%s6474_s4 + $0x140] sm:$0xff]  }
 0x131   :  { %4800 = vmatpush3.bf16.msra.mxu0 %v5040_v45  ;;  %v1701_v45 = vor.u32 %v1699_v39, %v1697_v26  ;;  %v1714_v62 = vsel %vm810_vm0, %v1709_v53, %v1713_v20  ;;  %v1321_v4 = vsel %vm1306_vm1, %v1318_v54, %v1320_v40  ;;  %v5057_v26 = vld [vmem:[%s6474_s4 + $0x108] sm:$0xff]   ;;  %v5762_v39 = vld [vmem:[#allocation2 + $0x24] sm:$0xf]  ;;  %v5771_v53 = vld [vmem:[#allocation2 + $0x30] sm:$0xf] }
 0x132   :  { %4801 = vmatprep.subr.bf16.mxu0 %v5043_v58 }
 0x133   :  { %v1706_v55 = vsel %vm810_vm0, %v1701_v45, %v1705_v44  ;;  %v5060_v45 = vld [vmem:[%s6474_s4 + $0x100] sm:$0xff]  }
 0x134   :  { %4738 = vmatmul.mubr.bf16.gmra.mxu0 %v1674_v36  ;;  %v1723_v36 = vshrl.u32 %v5697_v37, 16 }
 0x135   :  { %4741 = vmatprep.mubr.bf16.mxu0 %v1682_v3  ;;  %4802 = vmatpush3.bf16.msra.mxu0 %v5043_v58  ;;  %v5720_v58 = vld [vmem:[#allocation2 + $0xc] sm:$0xf]  ;;  %v5054_v3 = vld [vmem:[#allocation2 + $0x4] sm:$0xfe]  }
 0x136   :  { %4803 = vmatprep.subr.bf16.mxu0 %v5045_v9  ;;  %v3922_v10 = vcombine.low %v5720_v58, %v5714_v52  ;;  %v2303_v31 = vshrl.u32 %v5054_v3, 16  ;;  %v2306_v32 = vshll.u32 %v5054_v3, 16 }
 0x137   :  { %4694 = vmatmul.mubr.bf16.vlgmr.msra.gmra.mxu1 %v1311_v1  ;;  %v1725_v1 = vor.u32 %v1723_v36, %v1721_v63 }
 0x138   :  { %4758 = vmatpush3.bf16.msra.mxu1 %v5622_v17  ;;  %4697 = vmatprep.mubr.bf16.mxu1 %v1313_v49  ;;  %v1690_v17 = vsel %vm810_vm0, %v1685_v24, %v1689_v19  ;;  %v1729_v19 = vrot.slane %v1727_v21, 1  ;;  %v2314_v49 = vshll.u32 %v3922_v10, 16  ;;  %v5746_v24 = vld [vmem:[#allocation2 + $0x18] sm:$0xf]  ;;  %v2305_v46 = vrot.slane %v2303_v31, 1 }
 0x139   :  { %4759 = vmatprep.subr.bf16.mxu1 %v5039_v57  ;;  %4804 = vmatpush3.bf16.msra.mxu0 %v5045_v9  ;;  %v1319_v9 = vsel %vm1306_vm1, %v1316_v43, %v1318_v54  ;;  %v2308_v20 = vrot.slane %v2306_v32, 2  ;;  %v5797_v31 = vld [vmem:[#allocation2 + $0x38] sm:$0xf]  ;;  %v5799_v32 = vld [vmem:[#allocation2 + $0x20] sm:$0xff]  }
 0x13a   :  { %4805 = vmatprep.subr.bf16.mxu0 %v5048_v23  ;;  %v1730_v50 = vsel %vm810_vm0, %v1725_v1, %v1729_v19  ;;  %v2316_v43 = vrot.slane %v2314_v49, 2  ;;  %v5790_v49 = vld [vmem:[#allocation2 + $0x10] sm:$0xff]  }
 0x13c   :  { %4742 = vmatmul.mubr.bf16.gmra.mxu0 %v1690_v17  ;;  %4760 = vmatpush3.bf16.msra.mxu1 %v5039_v57  ;;  %v5744_v57 = vld [vmem:[%s6474_s4 + $0x1f8] sm:$0xff]   ;;  %v3924_v17 = vcombine.low %v5754_v30, %v5739_v15 }
 0x13d   :  { %4745 = vmatprep.mubr.bf16.mxu0 %v1698_v33  ;;  %4761 = vmatprep.subr.bf16.mxu1 %v5041_v29  ;;  %v1731_v33 = vshrl.u32 %v5717_v60, 16 }
 0x13e   :  { %4806 = vmatpush3.bf16.msra.mxu0 %v5048_v23  ;;  %v2311_v23 = vshrl.u32 %v3922_v10, 16  ;;  %v2329_v61 = vshrl.u32 %v3924_v17, 16 }
 0x13f   :  { %4698 = vmatmul.mubr.bf16.gmra.mxu1 %v1315_v42  ;;  %4807 = vmatprep.subr.bf16.mxu0 %v5051_v5  ;;  %v1324_v42 = vrot.slane %v5583_v34, 1 }
 0x140   :  { %4701 = vmatprep.mubr.bf16.mxu1 %v1317_v11  ;;  %4762 = vmatpush3.bf16.msra.mxu1 %v5041_v29  ;;  %v3923_v29 = vcombine.low %v5736_v14, %v5746_v24  ;;  %v2313_v16 = vrot.slane %v2311_v23, 1  ;;  %v2331_v36 = vrot.slane %v2329_v61, 1  ;;  %v6479_v61 = vrot.slane %v5790_v49, 2 }
 0x141   :  { %4763 = vmatprep.subr.bf16.mxu1 %v5046_v41  ;;  %v1325_v54 = vsel %vm1306_vm1, %v1322_v25, %v1324_v42 }
 0x142   :  { %4808 = vmatpush3.bf16.msra.mxu0 %v5051_v5  ;;  %v1722_v5 = vsel %vm810_vm0, %v1717_v18, %v1721_v63  ;;  %v2320_v44 = vshrl.u32 %v3923_v29, 16  ;;  %v2323_v11 = vshll.u32 %v3923_v29, 16  ;;  %v5776_v63 = vld [vmem:[#allocation2 + $0x2c] sm:$0xf]  ;;  %v6480_v29 = vrot.slane %v5585_v47, 1 }
 0x143   :  { %4809 = vmatprep.subr.bf16.mxu0 %v5052_v35 }
 0x144   :  { %4746 = vmatmul.mubr.bf16.gmra.mxu0 %v1706_v55  ;;  %4764 = vmatpush3.bf16.msra.mxu1 %v5046_v41  ;;  %v1323_v41 = vsel %vm1306_vm1, %v1320_v40, %v1322_v25  ;;  %v1733_v55 = vor.u32 %v1731_v33, %v1729_v19  ;;  %v2322_v21 = vrot.slane %v2320_v44, 1  ;;  %v2325_v10 = vrot.slane %v2323_v11, 2  ;;  %v5787_v19 = vld [vmem:[#allocation2 + $0x34] sm:$0xf]  ;;  %v5792_v25 = vld [vmem:[#allocation2 + $0x18] sm:$0xff]  }
 0x145   :  { %4749 = vmatprep.mubr.bf16.mxu0 %v1714_v62  ;;  %4765 = vmatprep.subr.bf16.mxu1 %v5050_v51  ;;  %v1945_v62 = vld [vmem:[#allocation2 + $0x4] sm:$0xe]  ;;  %v3926_v40 = vcombine.low %v5776_v63, %v5771_v53  ;;  %v5806_v33 = vcombine.low %v5787_v19, %v5797_v31  ;;  %v5811_v11 = vld [vmem:[#allocation2 + $0x30] sm:$0xff]  }
 0x146   :  { %4810 = vmatpush3.bf16.msra.mxu0 %v5052_v35  ;;  %v5769_v35 = vld [vmem:[#allocation2 + $0x28] sm:$0xf] }
 0x147   :  { %4702 = vmatmul.mubr.bf16.gmra.mxu1 %v1319_v9  ;;  %4811 = vmatprep.subr.bf16.mxu0 %v5056_v59  ;;  %v3925_v34 = vcombine.low %v5762_v39, %v5769_v35  ;;  %v1326_v9 = vrot.slane %v5617_v13, 1  ;;  %v1328_v13 = vrot.slane %v5612_v8, 1  ;;  %v5808_v8 = vld [vmem:[#allocation2 + $0x28] sm:$0xff]  }
 0x148   :  { %4705 = vmatprep.mubr.bf16.mxu1 %v1321_v4  ;;  %4766 = vmatpush3.bf16.msra.mxu1 %v5050_v51  ;;  %v2332_v51 = vshll.u32 %v3924_v17, 16  ;;  %v3896_v4 = vcombine.low %v1945_v62, %v5575_v38  ;;  %v2347_v38 = vshrl.u32 %v3926_v40, 16  ;;  %v5827_v62 = vld [vmem:[#allocation2 + $0x48] sm:$0xff]  }
 0x149   :  { %4767 = vmatprep.subr.bf16.mxu1 %v5053_v7  ;;  %v2338_v18 = vshrl.u32 %v3925_v34, 16  ;;  %v2341_v1 = vshll.u32 %v3925_v34, 16  ;;  %v1327_v17 = vsel %vm1306_vm1, %v1324_v42, %v1326_v9  ;;  %v5815_v42 = vld [vmem:[#allocation2 + $0x40] sm:$0xf] }
 0x14a   :  { %4812 = vmatpush3.bf16.msra.mxu0 %v5056_v59  ;;  %v2317_v59 = vor.u32 %v2316_v43, %v2313_v16  ;;  %v2334_v3 = vrot.slane %v2332_v51, 2  ;;  %v1329_v16 = vsel %vm1306_vm1, %v1326_v9, %v1328_v13  ;;  %v1966_v43 = vrot.slane %v3896_v4, 1 }
 0x14b   :  { %4877 = vmatprep.subr.bf16.mxu0 %v5744_v57  ;;  %v2343_v44 = vrot.slane %v2341_v1, 2  ;;  %v3333_v51 = vrot.slane %v5792_v25, 2  ;;  %v3337_v4 = vrot.slane %v5808_v8, 2  ;;  %v2356_v1 = vshrl.u32 %v5806_v33, 16 }
 0x14c   :  { %4750 = vmatmul.mubr.bf16.gmra.mxu0 %v1722_v5  ;;  %4768 = vmatpush3.bf16.msra.mxu1 %v5053_v7  ;;  %v2309_v7 = vor.u32 %v2308_v20, %v2305_v46  ;;  %v5802_v5 = vor.u32 %v2334_v3, %v2331_v36  ;;  %v5817_v46 = vld [vmem:[#allocation2 + $0x38] sm:$0xff]   ;;  %v5819_v20 = vld [vmem:[#allocation2 + $0x40] sm:$0xff]   ;;  %v1968_v34 = vsel %vm1306_vm1, %v1966_v43, %v6480_v29  ;;  %v3345_v43 = vrot.slane %v5827_v62, 2 }
 0x14d   :  { %4753 = vmatprep.mubr.bf16.mxu0 %v1730_v50  ;;  %4769 = vmatprep.subr.bf16.mxu1 %v5057_v26  ;;  %v2350_v50 = vshll.u32 %v3926_v40, 16  ;;  %v3335_v40 = vrot.slane %v5799_v32, 2  ;;  %v5836_v36 = vld [vmem:[#allocation2 + $0x3c] sm:$0xf]  ;;  %v5844_v3 = vsel %vm3329_vm3, %v6479_v61, %v3333_v51 }
 0x14e   :  { %v2318_v23 = vsel %vm2301_vm2, %v2309_v7, %v2317_v59 }
 0x14f   :  { %4706 = vmatmul.mubr.bf16.gmra.mxu1 %v1323_v41  ;;  %v2340_v41 = vrot.slane %v2338_v18, 1  ;;  %v2352_v9 = vrot.slane %v2350_v50, 2  ;;  %v3341_v50 = vrot.slane %v5817_v46, 2 }
 0x150   :  { %4709 = vmatprep.mubr.bf16.mxu1 %v1325_v54  ;;  %4770 = vmatpush3.bf16.msra.mxu1 %v5057_v26  ;;  %v2326_v26 = vor.u32 %v2325_v10, %v2322_v21  ;;  %v5829_v21 = vld [vmem:[#allocation2 + $0x50] sm:$0xff]   ;;  %v5831_v10 = vld [vmem:[#allocation2 + $0x58] sm:$0xff]  }
 0x151   :  { %4771 = vmatprep.subr.bf16.mxu1 %v5060_v45  ;;  %v2344_v18 = vor.u32 %v2343_v44, %v2340_v41  ;;  %v3347_v41 = vrot.slane %v5829_v21, 2  ;;  %v3349_v44 = vrot.slane %v5831_v10, 2 }
 0x152   :  { %v2327_v54 = vsel %vm2301_vm2, %v2317_v59, %v2326_v26  ;;  %v2336_v7 = vsel %vm2301_vm2, %v2326_v26, %v5802_v5  ;;  %v5069_v59 = vld [vmem:[%s6474_s4 + $0x1f0] sm:$0xff]   ;;  %v5851_v26 = vsel %vm3329_vm3, %v3333_v51, %v3335_v40 }
 0x153   :  { %v5884_v51 = vsel %vm3329_vm3, %v3347_v41, %v3349_v44 }
 0x154   :  { %4754 = vmatmul.mubr.bf16.gmra.mxu0 %v1733_v55  ;;  %4772 = vmatpush3.bf16.msra.mxu1 %v5060_v45  ;;  %v5813_v45 = vld [vmem:[#allocation2 + $0x60] sm:$0x1f]   ;;  %v2349_v55 = vrot.slane %v2347_v38, 1  ;;  %v5854_v38 = vsel %vm3329_vm3, %v3335_v40, %v3337_v4  ;;  %v5072_v40 = vld [vmem:[%s6474_s4 + $0x1e8] sm:$0xff]   ;;  %6487 = vst [vmem:[#allocation12_spill] sm:$0xff] %v5884_v51 }
 0x155   :  { %4813 = vmatprep.mubr.bf16.mxu0 %v2318_v23  ;;  %4837 = vmatprep.subr.bf16.mxu1 %v5783_v6  ;;  %v3928_v23 = vcombine.low %v5836_v36, %v5815_v42  ;;  %6481 = vst [vmem:[#allocation6_spill] sm:$0xff] %v5854_v38  ;;  %v6488_v38 = vrot.slane %v5813_v45, 2 }
 0x157   :  { %4710 = vmatmul.mubr.bf16.gmra.mxu1 %v1327_v17  ;;  %v3339_v17 = vrot.slane %v5811_v11, 2 }
 0x158   :  { %4713 = vmatprep.mubr.bf16.mxu1 %v1329_v16  ;;  %v3343_v16 = vrot.slane %v5819_v20, 2 }
 0x159   :  { %v5869_v61 = vsel %vm3329_vm3, %v3337_v4, %v3339_v17  ;;  %v5889_v4 = vsel %vm3329_vm3, %v3349_v44, %v6488_v38  ;;  %v5074_v38 = vld [vmem:[%s6474_s4 + $0x1e0] sm:$0xff]  }
 0x15a   :  { %6482 = vst [vmem:[#allocation7_spill] sm:$0xff] %v5869_v61  ;;  %v5878_v29 = vsel %vm3329_vm3, %v3343_v16, %v3345_v43  ;;  %6489 = vst [vmem:[#allocation13_spill] sm:$0xff] %v5889_v4 }
 0x15b   :  { %6485 = vst [vmem:[#allocation10_spill] sm:$0xff] %v5878_v29 }
 0x15c   :  { %4814 = vmatmul.mubr.bf16.vlgmr.msra.gmra.mxu0 %v2327_v54  ;;  %v2359_v54 = vshll.u32 %v5806_v33, 16  ;;  %v5881_v33 = vsel %vm3329_vm3, %v3345_v43, %v3347_v41  ;;  %v1971_v43 = vrot.slane %v5614_v12, 1  ;;  %v5897_v41 = vld [vmem:[#allocation2 + $0x48] sm:$0xf] }
 0x15d   :  { %4817 = vmatprep.mubr.bf16.mxu0 %v2336_v7  ;;  %4878 = vmatpush3.bf16.msra.mxu0 %v5744_v57  ;;  %v5872_v57 = vsel %vm3329_vm3, %v3339_v17, %v3341_v50  ;;  %v5875_v7 = vsel %vm3329_vm3, %v3341_v50, %v3343_v16  ;;  %6486 = vst [vmem:[#allocation11_spill] sm:$0xff] %v5881_v33  ;;  %v2368_v50 = vshll.u32 %v3928_v23, 16  ;;  %v1969_v16 = vrot.slane %v5606_v2, 1 }
 0x15e   :  { %4879 = vmatprep.subr.bf16.mxu0 %v5069_v59  ;;  %6483 = vst [vmem:[#allocation8_spill] sm:$0xff] %v5872_v57  ;;  %6484 = vst [vmem:[#allocation9_spill] sm:$0xff] %v5875_v7  ;;  %v2353_v17 = vor.u32 %v2352_v9, %v2349_v55  ;;  %v2365_v57 = vshrl.u32 %v3928_v23, 16  ;;  %v5891_v7 = vld [vmem:[#allocation2 + $0x44] sm:$0xf]  ;;  %v2358_v55 = vrot.slane %v2356_v1, 1 }
 0x15f   :  { %4714 = vmatmul.mubr.bf16.gmra.mxu1 %v1328_v13  ;;  %v5893_v13 = vld [vmem:[#allocation2 + $0x50] sm:$0xf]  ;;  %v2361_v9 = vrot.slane %v2359_v54, 2  ;;  %v5906_v23 = vld [vmem:[#allocation2 + $0x4c] sm:$0xf]  ;;  %v2370_v44 = vrot.slane %v2368_v50, 2 }
 0x160   :  { %4773 = vmatprep.mubr.bf16.mxu1 %v1968_v34  ;;  %v2345_v34 = vsel %vm2301_vm2, %v5802_v5, %v2344_v18  ;;  %v2354_v2 = vsel %vm2301_vm2, %v2344_v18, %v2353_v17  ;;  %v2367_v12 = vrot.slane %v2365_v57, 1  ;;  %v3930_v4 = vcombine.low %v5906_v23, %v5893_v13  ;;  %v5068_v5 = vld [vmem:[%s6474_s4 + $0x1b0] sm:$0xff]   ;;  %v5077_v18 = vld [vmem:[%s6474_s4 + $0x1d8] sm:$0xff]  }
 0x161   :  { %4880 = vmatpush3.bf16.msra.mxu0 %v5069_v59  ;;  %v3929_v59 = vcombine.low %v5891_v7, %v5897_v41  ;;  %v6490_v1 = vrot.slane %v5585_v47, 1  ;;  %v1972_v57 = vsel %vm1306_vm1, %v1969_v16, %v1971_v43  ;;  %v2362_v50 = vor.u32 %v2361_v9, %v2358_v55  ;;  %v5922_v47 = vld [vmem:[#allocation2 + $0x54] sm:$0xf]  ;;  %v5929_v9 = vld [vmem:[#allocation2 + $0x58] sm:$0xf] }
 0x162   :  { %4881 = vmatprep.subr.bf16.mxu0 %v5072_v40  ;;  %v2371_v51 = vor.u32 %v2370_v44, %v2367_v12  ;;  %v2386_v33 = vshll.u32 %v3930_v4, 16  ;;  %v1975_v55 = vrot.slane %v5640_v27, 1  ;;  %v3931_v12 = vcombine.low %v5922_v47, %v5929_v9  ;;  %v5934_v44 = vld [vmem:[#allocation2 + $0x5c] sm:$0xf] }
 0x163   :  { %v1970_v54 = vsel %vm1306_vm1, %v6490_v1, %v1969_v16  ;;  %v5070_v1 = vld [vmem:[%s6474_s4 + $0x1a8] sm:$0xff]   ;;  %v1973_v16 = vrot.slane %v5635_v48, 1 }
 0x164   :  { %4818 = vmatmul.mubr.bf16.gmra.mxu0 %v2345_v34  ;;  %v2374_v34 = vshrl.u32 %v3929_v59, 16  ;;  %v2372_v48 = vsel %vm2301_vm2, %v2362_v50, %v2371_v51  ;;  %v2392_v61 = vshrl.u32 %v3931_v12, 16 }
 0x165   :  { %4821 = vmatprep.mubr.bf16.mxu0 %v2354_v2  ;;  %4882 = vmatpush3.bf16.msra.mxu0 %v5072_v40  ;;  %v2377_v2 = vshll.u32 %v3929_v59, 16  ;;  %v2383_v40 = vshrl.u32 %v3930_v4, 16 }
 0x166   :  { %4883 = vmatprep.subr.bf16.mxu0 %v5074_v38  ;;  %v2376_v59 = vrot.slane %v2374_v34, 1  ;;  %v1974_v34 = vsel %vm1306_vm1, %v1971_v43, %v1973_v16  ;;  %v5079_v43 = vld [vmem:[%s6474_s4 + $0x198] sm:$0xff]  }
 0x167   :  { %4774 = vmatmul.mubr.bf16.vlgmr.msra.gmra.mxu1 %v1970_v54  ;;  %v2223_v54 = vld [vmem:[#allocation2 + $0x60] sm:$0x1]  ;;  %v2379_v4 = vrot.slane %v2377_v2, 2  ;;  %v2385_v27 = vrot.slane %v2383_v40, 1  ;;  %v1976_v2 = vsel %vm1306_vm1, %v1973_v16, %v1975_v55  ;;  %v2889_v16 = vld [vmem:[#allocation2 + $0x8] sm:$0xe] }
 0x168   :  { %4838 = vmatpush3.bf16.msra.mxu1 %v5783_v6  ;;  %4777 = vmatprep.mubr.bf16.mxu1 %v1972_v57  ;;  %v2363_v6 = vsel %vm2301_vm2, %v2353_v17, %v2362_v50  ;;  %v2388_v57 = vrot.slane %v2386_v33, 2  ;;  %v3932_v29 = vcombine.low %v5934_v44, %v2223_v54  ;;  %v5075_v17 = vld [vmem:[%s6474_s4 + $0x1a0] sm:$0xff]   ;;  %v2395_v50 = vshll.u32 %v3931_v12, 16  ;;  %v5081_v33 = vld [vmem:[%s6474_s4 + $0x1c8] sm:$0xff]  }
 0x169   :  { %4839 = vmatprep.subr.bf16.mxu1 %v5068_v5  ;;  %4884 = vmatpush3.bf16.msra.mxu0 %v5074_v38  ;;  %v5080_v38 = vld [vmem:[%s6474_s4 + $0x1d0] sm:$0xff]   ;;  %v2394_v12 = vrot.slane %v2392_v61, 1 }
 0x16a   :  { %4885 = vmatprep.subr.bf16.mxu0 %v5077_v18  ;;  %v2401_v40 = vshrl.u32 %v3932_v29, 16  ;;  %v2404_v54 = vshll.u32 %v3932_v29, 16  ;;  %v5085_v29 = vld [vmem:[%s6474_s4 + $0x1c0] sm:$0xff]  }
 0x16c   :  { %4822 = vmatmul.mubr.bf16.gmra.mxu0 %v2363_v6  ;;  %4840 = vmatpush3.bf16.msra.mxu1 %v5068_v5  ;;  %v2380_v6 = vor.u32 %v2379_v4, %v2376_v59  ;;  %v2389_v5 = vor.u32 %v2388_v57, %v2385_v27  ;;  %v1979_v4 = vrot.slane %v5660_v0, 1  ;;  %v5082_v0 = vld [vmem:[%s6474_s4 + $0x190] sm:$0xff]  }
 0x16d   :  { %4825 = vmatprep.mubr.bf16.mxu0 %v2372_v48  ;;  %4841 = vmatprep.subr.bf16.mxu1 %v5070_v1  ;;  %v2397_v48 = vrot.slane %v2395_v50, 2  ;;  %v1981_v50 = vrot.slane %v5676_v22, 1 }
 0x16e   :  { %4886 = vmatpush3.bf16.msra.mxu0 %v5077_v18  ;;  %v1977_v18 = vrot.slane %v5653_v56, 1  ;;  %v2381_v59 = vsel %vm2301_vm2, %v2371_v51, %v2380_v6  ;;  %v2390_v27 = vsel %vm2301_vm2, %v2380_v6, %v2389_v5  ;;  %v2403_v56 = vrot.slane %v2401_v40, 1 }
 0x16f   :  { %4778 = vmatmul.mubr.bf16.gmra.mxu1 %v1974_v34  ;;  %4887 = vmatprep.subr.bf16.mxu0 %v5080_v38  ;;  %v2398_v34 = vor.u32 %v2397_v48, %v2394_v12  ;;  %v3002_v6 = vshll.u32 %v5790_v49, 16  ;;  %v5089_v12 = vld [vmem:[%s6474_s4 + $0x180] sm:$0xff]   ;;  %v1982_v22 = vsel %vm1306_vm1, %v1979_v4, %v1981_v50 }
 0x170   :  { %4781 = vmatprep.mubr.bf16.mxu1 %v1976_v2  ;;  %4842 = vmatpush3.bf16.msra.mxu1 %v5070_v1  ;;  %v5955_v1 = vld [vmem:[#allocation2 + $0xc] sm:$0xf]  ;;  %v1978_v61 = vsel %vm1306_vm1, %v1975_v55, %v1977_v18  ;;  %v1980_v57 = vsel %vm1306_vm1, %v1977_v18, %v1979_v4  ;;  %v2999_v2 = vshrl.u32 %v5790_v49, 16  ;;  %v1983_v18 = vrot.slane %v5684_v28, 1  ;;  %v5094_v4 = vld [vmem:[%s6474_s4 + $0x238] sm:$0xff]  }
 0x171   :  { %4843 = vmatprep.subr.bf16.mxu1 %v5075_v17  ;;  %v3993_v51 = vcombine.low %v2889_v16, %v5955_v1  ;;  %v5086_v55 = vld [vmem:[%s6474_s4 + $0x188] sm:$0xff]  }
 0x172   :  { %4888 = vmatpush3.bf16.msra.mxu0 %v5080_v38  ;;  %v2406_v38 = vrot.slane %v2404_v54, 2  ;;  %v2399_v54 = vsel %vm2301_vm2, %v2389_v5, %v2398_v34  ;;  %v3001_v16 = vrot.slane %v2999_v2, 1  ;;  %v1984_v5 = vsel %vm1306_vm1, %v1981_v50, %v1983_v18  ;;  %v2620_v50 = vld [vmem:[#allocation2 + $0x8] sm:$0xe] }
 0x173   :  { %4889 = vmatprep.subr.bf16.mxu0 %v5081_v33  ;;  %v2994_v40 = vshll.u32 %v3993_v51, 16 }
 0x174   :  { %4826 = vmatmul.mubr.bf16.gmra.mxu0 %v2381_v59  ;;  %4844 = vmatpush3.bf16.msra.mxu1 %v5075_v17  ;;  %v2407_v17 = vor.u32 %v2406_v38, %v2403_v56  ;;  %v3004_v59 = vrot.slane %v3002_v6, 2  ;;  %v3020_v56 = vshll.u32 %v5799_v32, 16  ;;  %v3008_v38 = vshrl.u32 %v5792_v25, 16 }
 0x175   :  { %4829 = vmatprep.mubr.bf16.mxu0 %v2390_v27  ;;  %4845 = vmatprep.subr.bf16.mxu1 %v5079_v43  ;;  %v3017_v27 = vshrl.u32 %v5799_v32, 16 }
 0x176   :  { %4890 = vmatpush3.bf16.msra.mxu0 %v5081_v33  ;;  %v2991_v33 = vshrl.u32 %v3993_v51, 16  ;;  %v3005_v28 = vor.u32 %v3004_v59, %v3001_v16  ;;  %v1985_v51 = vrot.slane %v5697_v37, 1  ;;  %v3022_v6 = vrot.slane %v3020_v56, 2 }
 0x177   :  { %4782 = vmatmul.mubr.bf16.gmra.mxu1 %v1978_v61  ;;  %4891 = vmatprep.subr.bf16.mxu0 %v5085_v29  ;;  %v3019_v2 = vrot.slane %v3017_v27, 1  ;;  %v3010_v32 = vrot.slane %v3008_v38, 1  ;;  %v3958_v37 = vcombine.low %v5714_v52, %v5736_v14  ;;  %v3026_v16 = vshrl.u32 %v5808_v8, 16 }
 0x178   :  { %4785 = vmatprep.mubr.bf16.mxu1 %v1980_v57  ;;  %4846 = vmatpush3.bf16.msra.mxu1 %v5079_v43  ;;  %v2408_v43 = vsel %vm2301_vm2, %v2398_v34, %v2407_v17  ;;  %v2993_v48 = vrot.slane %v2991_v33, 1  ;;  %v1987_v57 = vrot.slane %v5717_v60, 1  ;;  %v3053_v27 = vshrl.u32 %v5819_v20, 16 }
 0x179   :  { %4847 = vmatprep.subr.bf16.mxu1 %v5082_v0  ;;  %v3023_v60 = vor.u32 %v3022_v6, %v3019_v2  ;;  %v3056_v56 = vshll.u32 %v5819_v20, 16  ;;  %v5099_v20 = vld [vmem:[%s6474_s4 + $0x230] sm:$0xff]  }
 0x17a   :  { %4892 = vmatpush3.bf16.msra.mxu0 %v5085_v29  ;;  %v2996_v29 = vrot.slane %v2994_v40, 2  ;;  %v1988_v33 = vsel %vm1306_vm1, %v1985_v51, %v1987_v57  ;;  %v3038_v40 = vshll.u32 %v5811_v11, 16 }
 0x17b   :  { %v3058_v2 = vrot.slane %v3056_v56, 2 }
 0x17c   :  { %4830 = vmatmul.mubr.bf16.gmra.mxu0 %v2399_v54  ;;  %4848 = vmatpush3.bf16.msra.mxu1 %v5082_v0  ;;  %v3011_v0 = vshll.u32 %v5792_v25, 16  ;;  %v2997_v61 = vor.u32 %v2996_v29, %v2993_v48  ;;  %v1986_v25 = vsel %vm1306_vm1, %v1983_v18, %v1985_v51  ;;  %v3029_v18 = vshll.u32 %v5808_v8, 16 }
 0x17d   :  { %4833 = vmatprep.mubr.bf16.mxu0 %v2408_v43  ;;  %4849 = vmatprep.subr.bf16.mxu1 %v5086_v55  ;;  %v3957_v43 = vcombine.low %v2620_v50, %v5720_v58  ;;  %v3040_v14 = vrot.slane %v3038_v40, 2  ;;  %v3028_v29 = vrot.slane %v3026_v16, 1  ;;  %v3960_v58 = vcombine.low %v5739_v15, %v5762_v39  ;;  %v5107_v16 = vld [vmem:[%s6474_s4 + $0x220] sm:$0xff]  }
 0x17e   :  { %v3006_v34 = vsel %vm2301_vm2, %v2997_v61, %v3005_v28  ;;  %v3047_v61 = vshll.u32 %v5817_v46, 16  ;;  %v3071_v50 = vshrl.u32 %v5829_v21, 16 }
 0x17f   :  { %4786 = vmatmul.mubr.bf16.gmra.mxu1 %v1982_v22  ;;  %v2655_v48 = vrot.slane %v3957_v43, 1 }
 0x180   :  { %4789 = vmatprep.mubr.bf16.mxu1 %v1984_v5  ;;  %4850 = vmatpush3.bf16.msra.mxu1 %v5086_v55  ;;  %v3013_v55 = vrot.slane %v3011_v0, 2  ;;  %v3031_v5 = vrot.slane %v3029_v18, 2  ;;  %v3044_v0 = vshrl.u32 %v5817_v46, 16  ;;  %v3073_v40 = vrot.slane %v3071_v50, 1 }
 0x181   :  { %4851 = vmatprep.subr.bf16.mxu1 %v5089_v12 }
 0x182   :  { %v3014_v54 = vor.u32 %v3013_v55, %v3010_v32  ;;  %v3032_v38 = vor.u32 %v3031_v5, %v3028_v29  ;;  %v3962_v32 = vcombine.low %v5771_v53, %v5787_v19  ;;  %v3065_v53 = vshll.u32 %v5827_v62, 16 }
 0x183   :  { %v3083_v29 = vshll.u32 %v5831_v10, 16 }
 0x184   :  { %4834 = vmatmul.mubr.bf16.gmra.mxu0 %v2407_v17  ;;  %4852 = vmatpush3.bf16.msra.mxu1 %v5089_v12  ;;  %v3035_v17 = vshrl.u32 %v5811_v11, 16  ;;  %v3015_v59 = vsel %vm2301_vm2, %v3005_v28, %v3014_v54  ;;  %v2656_v12 = vrot.slane %v3958_v37, 1  ;;  %v3024_v22 = vsel %vm2301_vm2, %v3014_v54, %v3023_v60 }
 0x185   :  { %4893 = vmatprep.mubr.bf16.mxu0 %v3006_v34  ;;  %4917 = vmatprep.subr.bf16.mxu1 %v5094_v4  ;;  %v3959_v28 = vcombine.low %v5746_v24, %v5754_v30  ;;  %v3033_v51 = vsel %vm2301_vm2, %v3023_v60, %v3032_v38  ;;  %v3055_v34 = vrot.slane %v3053_v27, 1  ;;  %v3046_v24 = vrot.slane %v3044_v0, 1  ;;  %v5102_v60 = vld [vmem:[%s6474_s4 + $0x228] sm:$0xff]  }
 0x186   :  { %v3037_v52 = vrot.slane %v3035_v17, 1  ;;  %v2657_v11 = vsel %vm1306_vm1, %v2655_v48, %v2656_v12  ;;  %v3049_v30 = vrot.slane %v3047_v61, 2  ;;  %v3062_v17 = vshrl.u32 %v5827_v62, 16 }
 0x187   :  { %4790 = vmatmul.mubr.bf16.gmra.mxu1 %v1986_v25  ;;  %v2658_v39 = vrot.slane %v3959_v28, 1  ;;  %v3059_v55 = vor.u32 %v3058_v2, %v3055_v34  ;;  %v3961_v25 = vcombine.low %v5769_v35, %v5776_v63  ;;  %v3067_v43 = vrot.slane %v3065_v53, 2 }
 0x188   :  { %4793 = vmatprep.mubr.bf16.mxu1 %v1988_v33  ;;  %v3041_v8 = vor.u32 %v3040_v14, %v3037_v52  ;;  %v3074_v33 = vshll.u32 %v5829_v21, 16  ;;  %v3050_v37 = vor.u32 %v3049_v30, %v3046_v24  ;;  %v3064_v54 = vrot.slane %v3062_v17, 1  ;;  %v5115_v30 = vld [vmem:[#allocation2 + $0x60] ss:$0 sps:$4 sm:$0xff]  }
 0x189   :  { %v2659_v6 = vsel %vm1306_vm1, %v2656_v12, %v2658_v39  ;;  %v2662_v63 = vrot.slane %v3961_v25, 1  ;;  %v3089_v12 = vshrl.u32 %v5813_v45, 16  ;;  %v3963_v14 = vcombine.low %v5797_v31, %v5836_v36 }
 0x18a   :  { %v3042_v15 = vsel %vm2301_vm2, %v3032_v38, %v3041_v8  ;;  %v3051_v19 = vsel %vm2301_vm2, %v3041_v8, %v3050_v37  ;;  %v3060_v35 = vsel %vm2301_vm2, %v3050_v37, %v3059_v55  ;;  %v3076_v21 = vrot.slane %v3074_v33, 2 }
 0x18b   :  { %v3080_v48 = vshrl.u32 %v5831_v10, 16  ;;  %v3068_v5 = vor.u32 %v3067_v43, %v3064_v54  ;;  %v2666_v27 = vrot.slane %v3963_v14, 1  ;;  %v3085_v36 = vrot.slane %v3083_v29, 2  ;;  %v5113_v10 = vld [vmem:[%s6474_s4 + $0x210] sm:$0xff]  }
 0x18c   :  { %4894 = vmatmul.mubr.bf16.vlgmr.msra.gmra.mxu0 %v3015_v59  ;;  %v3964_v59 = vcombine.low %v5815_v42, %v5891_v7  ;;  %v3077_v52 = vor.u32 %v3076_v21, %v3073_v40  ;;  %v5110_v42 = vld [vmem:[%s6474_s4 + $0x218] sm:$0xff]   ;;  %v3966_v0 = vcombine.low %v5893_v13, %v5922_v47  ;;  %v5117_v13 = vld [vmem:[%s6474_s4 + $0x200] sm:$0xff]   ;;  %v3967_v47 = vcombine.low %v5929_v9, %v5934_v44 }
 0x18d   :  { %4897 = vmatprep.mubr.bf16.mxu0 %v3024_v22  ;;  %v3092_v22 = vshll.u32 %v5813_v45, 16  ;;  %v3069_v7 = vsel %vm2301_vm2, %v3059_v55, %v3068_v5  ;;  %v3082_v31 = vrot.slane %v3080_v48, 1  ;;  %v6491_v44 = vrot.slane %v5790_v49, 2 }
 0x18e   :  { %v3078_v28 = vsel %vm2301_vm2, %v3068_v5, %v3077_v52  ;;  %v2672_v34 = vrot.slane %v3966_v0, 1 }
 0x18f   :  { %4794 = vmatmul.mubr.bf16.gmra.mxu1 %v1987_v57  ;;  %v2660_v57 = vrot.slane %v3960_v58, 1  ;;  %v3091_v58 = vrot.slane %v3089_v12, 1  ;;  %v3094_v8 = vrot.slane %v3092_v22, 2  ;;  %v3086_v61 = vor.u32 %v3085_v36, %v3082_v31  ;;  %v6492_v12 = vld [vmem:[#allocation6_spill] sm:$0xff]  ;;  %v6495_v36 = vld [vmem:[#allocation9_spill] sm:$0xff] }
 0x190   :  { %4853 = vmatprep.mubr.bf16.mxu1 %v2657_v11  ;;  %v2668_v11 = vrot.slane %v3964_v59, 1 }
 0x191   :  { %v2661_v46 = vsel %vm1306_vm1, %v2658_v39, %v2660_v57  ;;  %v2663_v62 = vsel %vm1306_vm1, %v2660_v57, %v2662_v63  ;;  %v3965_v57 = vcombine.low %v5897_v41, %v5906_v23  ;;  %v3087_v39 = vsel %vm2301_vm2, %v3077_v52, %v3086_v61  ;;  %v6493_v52 = vld [vmem:[#allocation7_spill] sm:$0xff] }
 0x192   :  { %v2669_v38 = vsel %vm1306_vm1, %v2666_v27, %v2668_v11 }
 0x193   :  { %v2670_v24 = vrot.slane %v3965_v57, 1 }
 0x194   :  { %4898 = vmatmul.mubr.bf16.gmra.mxu0 %v3033_v51  ;;  %v3095_v51 = vor.u32 %v3094_v8, %v3091_v58 }
 0x195   :  { %4901 = vmatprep.mubr.bf16.mxu0 %v3042_v15  ;;  %v5116_v15 = vld [vmem:[%s6474_s4 + $0x208] sm:$0xff]   ;;  %v2671_v41 = vsel %vm1306_vm1, %v2668_v11, %v2670_v24  ;;  %v2673_v23 = vsel %vm1306_vm1, %v2670_v24, %v2672_v34  ;;  %s5142_s4 = smov [#allocation3]  }
 0x196   :  { %v3096_v2 = vsel %vm2301_vm2, %v3086_v61, %v3095_v51  ;;  %s3715_s9 = sshll.u32 %s5142_s4, 4  ;;  %s3716_s9 = int_to_ptr.vmem [resolvable:$true] %s3715_s9 }
 0x197   :  { %4854 = vmatmul.mubr.bf16.vlgmr.msra.gmra.mxu1 %v2659_v6  ;;  %v2676_v6 = vrot.slane %v5115_v30, 1  ;;  %s5119_s10 = scalar_lea.vmem %s3716_s9, 1472  ;;  %p5124_p1 = scmp.lt.s32.totalorder %s3716_s9, %s3716_s9 }
 0x198   :  { %4918 = vmatpush3.bf16.msra.mxu1 %v5094_v4  ;;  %4857 = vmatprep.mubr.bf16.mxu1 %v2661_v46  ;;  %v2664_v4 = vrot.slane %v3962_v32, 1  ;;  %v3308_v32 = vld [vmem:[#allocation2 + $0x8] sm:$0xc]  ;;  %p5120_p0 = scmp.ne.s32.totalorder %s3716_s9, %s5119_s10  ;;  %p5125_p2 = scmp.lt.s32.totalorder %s5119_s10, %s5119_s10 }
 0x199   :  { %4919 = vmatprep.subr.bf16.mxu1 %v5099_v20  ;;  %v4029_v25 = vcombine.low %v3308_v32, %v5955_v1 }
 0x19a   :  { %v2665_v18 = vsel %vm1306_vm1, %v2662_v63, %v2664_v4  ;;  %v2667_v56 = vsel %vm1306_vm1, %v2664_v4, %v2666_v27  ;;  %p5126_p3 = por %p5125_p2, %p5124_p1 }
 0x19b   :  { %v3330_v33 = vrot.slane %v4029_v25, 2 }
 0x19c   :  { %4902 = vmatmul.mubr.bf16.gmra.mxu0 %v3051_v19  ;;  %4920 = vmatpush3.bf16.msra.mxu1 %v5099_v20  ;;  %v2674_v20 = vrot.slane %v3967_v47, 1  ;;  %p5127_p4 = pnand %p5126_p3, %p5120_p0 }
 0x19d   :  { %4905 = vmatprep.mubr.bf16.mxu0 %v3060_v35  ;;  %4921 = vmatprep.subr.bf16.mxu1 %v5102_v60  ;;  %v3332_v37 = vsel %vm3329_vm3, %v3330_v33, %v6491_v44  ;;  %v6498_v33 = vld [vmem:[#allocation12_spill] sm:$0xff] }
 0x19e   :  { %v2675_v46 = vsel %vm1306_vm1, %v2672_v34, %v2674_v20  ;;  %v2677_v55 = vsel %vm1306_vm1, %v2674_v20, %v2676_v6 }
 0x19f   :  { %4858 = vmatmul.mubr.bf16.gmra.mxu1 %v2663_v62 }
 0x1a0   :  { %4861 = vmatprep.mubr.bf16.mxu1 %v2665_v18  ;;  %4922 = vmatpush3.bf16.msra.mxu1 %v5102_v60 }
 0x1a1   :  { %4923 = vmatprep.subr.bf16.mxu1 %v5107_v16 }
 0x1a4   :  { %4906 = vmatmul.mubr.bf16.gmra.mxu0 %v3069_v7  ;;  %4924 = vmatpush3.bf16.msra.mxu1 %v5107_v16 }
 0x1a5   :  { %4909 = vmatprep.mubr.bf16.mxu0 %v3078_v28  ;;  %4925 = vmatprep.subr.bf16.mxu1 %v5110_v42  ;;  %v6494_v28 = vld [vmem:[#allocation8_spill] sm:$0xff] }
 0x1a7   :  { %4862 = vmatmul.mubr.bf16.gmra.mxu1 %v2667_v56 }
 0x1a8   :  { %4865 = vmatprep.mubr.bf16.mxu1 %v2669_v38  ;;  %4926 = vmatpush3.bf16.msra.mxu1 %v5110_v42 }
 0x1a9   :  { %4927 = vmatprep.subr.bf16.mxu1 %v5113_v10 }
 0x1ac   :  { %4910 = vmatmul.mubr.bf16.gmra.mxu0 %v3087_v39  ;;  %4928 = vmatpush3.bf16.msra.mxu1 %v5113_v10 }
 0x1ad   :  { %4913 = vmatprep.mubr.bf16.mxu0 %v3096_v2  ;;  %4929 = vmatprep.subr.bf16.mxu1 %v5116_v15  ;;  %v6496_v2 = vld [vmem:[#allocation10_spill] sm:$0xff] }
 0x1af   :  { %4866 = vmatmul.mubr.bf16.gmra.mxu1 %v2671_v41  ;;  %v6497_v41 = vld [vmem:[#allocation11_spill] sm:$0xff] }
 0x1b0   :  { %4869 = vmatprep.mubr.bf16.mxu1 %v2673_v23  ;;  %4930 = vmatpush3.bf16.msra.mxu1 %v5116_v15 }
 0x1b1   :  { %4931 = vmatprep.subr.bf16.mxu1 %v5117_v13 }
 0x1b4   :  { %4914 = vmatmul.mubr.bf16.gmra.mxu0 %v3095_v51  ;;  %4932 = vmatpush3.bf16.msra.mxu1 %v5117_v13 }
 0x1b7   :  { %4870 = vmatmul.mubr.bf16.gmra.mxu1 %v2675_v46 }
 0x1b8   :  { %4873 = vmatprep.mubr.bf16.mxu1 %v2677_v55 }
 0x1bc   :  { %v4655_v50 = vpop.f32.mrf.mxu0 }
 0x1be   :  { %v1191_v9 = vpop.f32.mrf.mxu0 }
 0x1bf   :  { %4874 = vmatmul.mubr.bf16.gmra.mxu1 %v2676_v6 }
 0x1c0   :  { %v4656_v60 = vpop.f32.mrf.mxu0  ;;  %4933 = vmatprep.mubr.bf16.mxu1 %v3332_v37  ;;  %v6499_v37 = vld [vmem:[#allocation13_spill] sm:$0xff] }
 0x1c2   :  { %v1194_v17 = vpop.f32.mrf.mxu0 }
 0x1c4   :  { %v4659_v53 = vpop.f32.mrf.mxu0 }
 0x1c6   :  { %v1207_v19 = vpop.f32.mrf.mxu0 }
 0x1c7   :  { %v4615_v4 = vpop.f32.mrf.mxu1  ;;  %4934 = vmatmul.mubr.bf16.vlgmr.msra.gmra.mxu1 %v5844_v3 }
 0x1c8   :  { %v6077_v35 = vadd.f32 %v4655_v50, %v4615_v4  ;;  %v4660_v63 = vpop.f32.mrf.mxu0  ;;  %4937 = vmatprep.mubr.bf16.mxu1 %v5851_v26 }
 0x1c9   :  { %v1000_v1 = vpop.f32.mrf.mxu1 }
 0x1ca   :  { %v6080_v40 = vadd.f32 %v1191_v9, %v1000_v1  ;;  %v1210_v21 = vpop.f32.mrf.mxu0 }
 0x1cb   :  { %v4616_v49 = vpop.f32.mrf.mxu1 }
 0x1cc   :  { %v6082_v54 = vadd.f32 %v4656_v60, %v4616_v49  ;;  %v4663_v43 = vpop.f32.mrf.mxu0 }
 0x1cd   :  { %v1003_v16 = vpop.f32.mrf.mxu1 }
 0x1ce   :  { %v6084_v62 = vadd.f32 %v1194_v17, %v1003_v16  ;;  %v1223_v18 = vpop.f32.mrf.mxu0  ;;  %v6500_v16 = vrot.slane %v5813_v45, 2 }
 0x1cf   :  { %v4619_v59 = vpop.f32.mrf.mxu1  ;;  %4938 = vmatmul.mubr.bf16.gmra.mxu1 %v6492_v12 }
 0x1d0   :  { %v6087_v3 = vadd.f32 %v4659_v53, %v4619_v59  ;;  %v4664_v22 = vpop.f32.mrf.mxu0  ;;  %4941 = vmatprep.mubr.bf16.mxu1 %v6493_v52 }
 0x1d1   :  { %v1016_v26 = vpop.f32.mrf.mxu1 }
 0x1d2   :  { %v6090_v14 = vadd.f32 %v1207_v19, %v1016_v26  ;;  %v1226_v48 = vpop.f32.mrf.mxu0 }
 0x1d3   :  { %v4620_v29 = vpop.f32.mrf.mxu1 }
 0x1d4   :  { %v6092_v5 = vadd.f32 %v4660_v63, %v4620_v29  ;;  %v4667_v42 = vpop.f32.mrf.mxu0 }
 0x1d5   :  { %v1019_v7 = vpop.f32.mrf.mxu1 }
 0x1d6   :  { %v6094_v11 = vadd.f32 %v1210_v21, %v1019_v7  ;;  %v1239_v58 = vpop.f32.mrf.mxu0 }
 0x1d7   :  { %v4623_v8 = vpop.f32.mrf.mxu1  ;;  %4942 = vmatmul.mubr.bf16.gmra.mxu1 %v6494_v28 }
 0x1d8   :  { %v6097_v27 = vadd.f32 %v4663_v43, %v4623_v8  ;;  %v4668_v31 = vpop.f32.mrf.mxu0  ;;  %4945 = vmatprep.mubr.bf16.mxu1 %v6495_v36 }
 0x1d9   :  { %v1032_v10 = vpop.f32.mrf.mxu1 }
 0x1da   :  { %v6100_v56 = vadd.f32 %v1223_v18, %v1032_v10  ;;  %v1242_v38 = vpop.f32.mrf.mxu0 }
 0x1db   :  { %v4624_v0 = vpop.f32.mrf.mxu1 }
 0x1dc   :  { %v6102_v61 = vadd.f32 %v4664_v22, %v4624_v0  ;;  %v4671_v51 = vpop.f32.mrf.mxu0 }
 0x1dd   :  { %v1035_v57 = vpop.f32.mrf.mxu1 }
 0x1de   :  { %v6104_v15 = vadd.f32 %v1226_v48, %v1035_v57  ;;  %v1255_v39 = vpop.f32.mrf.mxu0 }
 0x1df   :  { %v4627_v34 = vpop.f32.mrf.mxu1  ;;  %4946 = vmatmul.mubr.bf16.gmra.mxu1 %v6496_v2 }
 0x1e0   :  { %v6107_v24 = vadd.f32 %v4667_v42, %v4627_v34  ;;  %v4672_v13 = vpop.f32.mrf.mxu0  ;;  %4949 = vmatprep.mubr.bf16.mxu1 %v6497_v41 }
 0x1e1   :  { %v1048_v23 = vpop.f32.mrf.mxu1 }
 0x1e2   :  { %v6110_v47 = vadd.f32 %v1239_v58, %v1048_v23  ;;  %v1258_v30 = vpop.f32.mrf.mxu0 }
 0x1e3   :  { %v4628_v20 = vpop.f32.mrf.mxu1 }
 0x1e4   :  { %v6112_v6 = vadd.f32 %v4668_v31, %v4628_v20  ;;  %v4675_v46 = vpop.f32.mrf.mxu0 }
 0x1e5   :  { %v1051_v32 = vpop.f32.mrf.mxu1 }
 0x1e6   :  { %v6114_v55 = vadd.f32 %v1242_v38, %v1051_v32  ;;  %v1271_v25 = vpop.f32.mrf.mxu0 }
 0x1e7   :  { %v4631_v50 = vpop.f32.mrf.mxu1  ;;  %4950 = vmatmul.mubr.bf16.gmra.mxu1 %v6498_v33 }
 0x1e8   :  { %v6117_v9 = vadd.f32 %v4671_v51, %v4631_v50  ;;  %v4676_v44 = vpop.f32.mrf.mxu0  ;;  %4953 = vmatprep.mubr.bf16.mxu1 %v6499_v37 }
 0x1e9   :  { %v1064_v60 = vpop.f32.mrf.mxu1 }
 0x1ea   :  { %v6120_v17 = vadd.f32 %v1255_v39, %v1064_v60  ;;  %v1274_v53 = vpop.f32.mrf.mxu0 }
 0x1eb   :  { %v4632_v19 = vpop.f32.mrf.mxu1 }
 0x1ec   :  { %v6122_v4 = vadd.f32 %v4672_v13, %v4632_v19  ;;  %v4735_v63 = vpop.f32.mrf.mxu0 }
 0x1ed   :  { %v1067_v1 = vpop.f32.mrf.mxu1 }
 0x1ee   :  { %v6124_v21 = vadd.f32 %v1258_v30, %v1067_v1  ;;  %v1828_v49 = vpop.f32.mrf.mxu0 }
 0x1ef   :  { %v4635_v43 = vpop.f32.mrf.mxu1  ;;  %4954 = vmatmul.mubr.bf16.gmra.mxu1 %v6500_v16 }
 0x1f0   :  { %v6128_v18 = vadd.f32 %v4675_v46, %v4635_v43  ;;  %v4736_v59 = vpop.f32.mrf.mxu0 }
 0x1f1   :  { %v1080_v12 = vpop.f32.mrf.mxu1 }
 0x1f2   :  { %v6130_v22 = vadd.f32 %v1271_v25, %v1080_v12  ;;  %v1831_v52 = vpop.f32.mrf.mxu0 }
 0x1f3   :  { %v4636_v26 = vpop.f32.mrf.mxu1 }
 0x1f4   :  { %v4739_v48 = vpop.f32.mrf.mxu0 }
 0x1f5   :  { %v1083_v29 = vpop.f32.mrf.mxu1 }
 0x1f6   :  { %v6132_v42 = vadd.f32 %v1274_v53, %v1083_v29  ;;  %v1844_v7 = vpop.f32.mrf.mxu0 }
 0x1f7   :  { %v4695_v58 = vpop.f32.mrf.mxu1 }
 0x1f8   :  { %v1520_v8 = vadd.f32 %v4695_v58, %v6077_v35  ;;  %v4740_v28 = vpop.f32.mrf.mxu0 }
 0x1f9   :  { %v1424_v31 = vpop.f32.mrf.mxu1 }
 0x1fa   :  { %v1518_v45 = vadd.f32 %v1424_v31, %v6080_v40  ;;  %v1847_v36 = vpop.f32.mrf.mxu0  ;;  %v6136_v10 = vadd.f32 %v4735_v63, %v1520_v8 }
 0x1fb   :  { %v4696_v38 = vpop.f32.mrf.mxu1 }
 0x1fc   :  { %v1521_v0 = vadd.f32 %v4696_v38, %v6082_v54  ;;  %v4743_v51 = vpop.f32.mrf.mxu0  ;;  %v6139_v57 = vadd.f32 %v1828_v49, %v1518_v45 }
 0x1fd   :  { %v1427_v39 = vpop.f32.mrf.mxu1 }
 0x1fe   :  { %v1519_v34 = vadd.f32 %v1427_v39, %v6084_v62  ;;  %v1860_v2 = vpop.f32.mrf.mxu0  ;;  %v6142_v13 = vadd.f32 %v4736_v59, %v1521_v0 }
 0x1ff   :  { %v4699_v35 = vpop.f32.mrf.mxu1 }
 0x200   :  { %v1524_v41 = vadd.f32 %v4699_v35, %v6087_v3  ;;  %v4744_v23 = vpop.f32.mrf.mxu0  ;;  %v6145_v40 = vadd.f32 %v1831_v52, %v1519_v34 }
 0x201   :  { %v1440_v30 = vpop.f32.mrf.mxu1 }
 0x202   :  { %v1522_v20 = vadd.f32 %v1440_v30, %v6090_v14  ;;  %v1863_v46 = vpop.f32.mrf.mxu0  ;;  %v6148_v54 = vadd.f32 %v4739_v48, %v1524_v41 }
 0x203   :  { %v4700_v32 = vpop.f32.mrf.mxu1 }
 0x204   :  { %v1525_v25 = vadd.f32 %v4700_v32, %v6092_v5  ;;  %v4747_v50 = vpop.f32.mrf.mxu0  ;;  %v6151_v62 = vadd.f32 %v1844_v7, %v1522_v20 }
 0x205   :  { %v1443_v33 = vpop.f32.mrf.mxu1 }
 0x206   :  { %v1523_v44 = vadd.f32 %v1443_v33, %v6094_v11  ;;  %v1876_v37 = vpop.f32.mrf.mxu0  ;;  %v6154_v3 = vadd.f32 %v4740_v28, %v1525_v25 }
 0x207   :  { %v4703_v60 = vpop.f32.mrf.mxu1 }
 0x208   :  { %v1528_v53 = vadd.f32 %v4703_v60, %v6097_v27  ;;  %v4748_v19 = vpop.f32.mrf.mxu0  ;;  %v6157_v14 = vadd.f32 %v1847_v36, %v1523_v44 }
 0x209   :  { %v1456_v63 = vpop.f32.mrf.mxu1 }
 0x20a   :  { %v1526_v1 = vadd.f32 %v1456_v63, %v6100_v56  ;;  %v1879_v49 = vpop.f32.mrf.mxu0  ;;  %v6160_v5 = vadd.f32 %v4743_v51, %v1528_v53 }
 0x20b   :  { %v4704_v43 = vpop.f32.mrf.mxu1 }
 0x20c   :  { %v1529_v16 = vadd.f32 %v4704_v43, %v6102_v61  ;;  %v4751_v59 = vpop.f32.mrf.mxu0  ;;  %v6163_v11 = vadd.f32 %v1860_v2, %v1526_v1 }
 0x20d   :  { %v1459_v12 = vpop.f32.mrf.mxu1 }
 0x20e   :  { %v1527_v52 = vadd.f32 %v1459_v12, %v6104_v15  ;;  %v1892_v26 = vpop.f32.mrf.mxu0  ;;  %v6166_v27 = vadd.f32 %v4744_v23, %v1529_v16 }
 0x20f   :  { %v4707_v48 = vpop.f32.mrf.mxu1 }
 0x210   :  { %v1532_v29 = vadd.f32 %v4707_v48, %v6107_v24  ;;  %v4752_v7 = vpop.f32.mrf.mxu0  ;;  %v6169_v56 = vadd.f32 %v1863_v46, %v1527_v52 }
 0x211   :  { %v1472_v58 = vpop.f32.mrf.mxu1 }
 0x212   :  { %v1530_v8 = vadd.f32 %v1472_v58, %v6110_v47  ;;  %v1895_v28 = vpop.f32.mrf.mxu0  ;;  %v6172_v61 = vadd.f32 %v4747_v50, %v1532_v29 }
 0x213   :  { %v4708_v31 = vpop.f32.mrf.mxu1 }
 0x214   :  { %v1533_v45 = vadd.f32 %v4708_v31, %v6112_v6  ;;  %v4755_v36 = vpop.f32.mrf.mxu0  ;;  %v6175_v15 = vadd.f32 %v1876_v37, %v1530_v8 }
 0x215   :  { %v1475_v38 = vpop.f32.mrf.mxu1 }
 0x216   :  { %v1531_v0 = vadd.f32 %v1475_v38, %v6114_v55  ;;  %v1908_v51 = vpop.f32.mrf.mxu0  ;;  %v6178_v24 = vadd.f32 %v4748_v19, %v1533_v45 }
 0x217   :  { %v4711_v39 = vpop.f32.mrf.mxu1 }
 0x218   :  { %v1536_v34 = vadd.f32 %v4711_v39, %v6117_v9  ;;  %v4756_v2 = vpop.f32.mrf.mxu0  ;;  %v6181_v47 = vadd.f32 %v1879_v49, %v1531_v0 }
 0x219   :  { %v1488_v35 = vpop.f32.mrf.mxu1 }
 0x21a   :  { %v1534_v41 = vadd.f32 %v1488_v35, %v6120_v17  ;;  %v1911_v23 = vpop.f32.mrf.mxu0  ;;  %v6184_v6 = vadd.f32 %v4751_v59, %v1536_v34 }
 0x21b   :  { %v4712_v30 = vpop.f32.mrf.mxu1 }
 0x21c   :  { %v1537_v20 = vadd.f32 %v4712_v30, %v6122_v4  ;;  %v4815_v46 = vpop.f32.mrf.mxu0  ;;  %v6187_v55 = vadd.f32 %v1892_v26, %v1534_v41 }
 0x21d   :  { %v1491_v32 = vpop.f32.mrf.mxu1 }
 0x21e   :  { %v1535_v25 = vadd.f32 %v1491_v32, %v6124_v21  ;;  %v2503_v50 = vpop.f32.mrf.mxu0  ;;  %v6190_v9 = vadd.f32 %v4752_v7, %v1537_v20 }
 0x21f   :  { %v4715_v33 = vpop.f32.mrf.mxu1 }
 0x220   :  { %v1540_v44 = vadd.f32 %v4715_v33, %v6128_v18  ;;  %v4816_v37 = vpop.f32.mrf.mxu0  ;;  %v6193_v17 = vadd.f32 %v1895_v28, %v1535_v25 }
 0x221   :  { %v1504_v60 = vpop.f32.mrf.mxu1 }
 0x222   :  { %v1538_v53 = vadd.f32 %v1504_v60, %v6130_v22  ;;  %v2506_v19 = vpop.f32.mrf.mxu0  ;;  %v6196_v4 = vadd.f32 %v4755_v36, %v1540_v44 }
 0x223   :  { %v4716_v63 = vpop.f32.mrf.mxu1 }
 0x224   :  { %v4819_v1 = vpop.f32.mrf.mxu0  ;;  %v6198_v49 = vadd.f32 %v1908_v51, %v1538_v53 }
 0x225   :  { %v1507_v21 = vpop.f32.mrf.mxu1 }
 0x226   :  { %v1539_v43 = vadd.f32 %v1507_v21, %v6132_v42  ;;  %v2519_v16 = vpop.f32.mrf.mxu0 }
 0x227   :  { %v4775_v59 = vpop.f32.mrf.mxu1 }
 0x228   :  { %v2179_v18 = vadd.f32 %v4775_v59, %v6136_v10  ;;  %v4820_v12 = vpop.f32.mrf.mxu0  ;;  %v6202_v52 = vadd.f32 %v1911_v23, %v1539_v43 }
 0x229   :  { %v2083_v26 = vpop.f32.mrf.mxu1 }
 0x22a   :  { %v2177_v22 = vadd.f32 %v2083_v26, %v6139_v57  ;;  %v2522_v48 = vpop.f32.mrf.mxu0  ;;  %v6205_v29 = vadd.f32 %v4815_v46, %v2179_v18 }
 0x22b   :  { %v4776_v7 = vpop.f32.mrf.mxu1 }
 0x22c   :  { %v2180_v58 = vadd.f32 %v4776_v7, %v6142_v13  ;;  %v4823_v8 = vpop.f32.mrf.mxu0  ;;  %v6208_v28 = vadd.f32 %v2503_v50, %v2177_v22 }
 0x22d   :  { %v2086_v42 = vpop.f32.mrf.mxu1 }
 0x22e   :  { %v2178_v31 = vadd.f32 %v2086_v42, %v6145_v40  ;;  %v2535_v45 = vpop.f32.mrf.mxu0  ;;  %v6211_v10 = vadd.f32 %v4816_v37, %v2180_v58 }
 0x22f   :  { %v4779_v36 = vpop.f32.mrf.mxu1 }
 0x230   :  { %v2183_v38 = vadd.f32 %v4779_v36, %v6148_v54  ;;  %v4824_v0 = vpop.f32.mrf.mxu0  ;;  %v6214_v57 = vadd.f32 %v2506_v19, %v2178_v31 }
 0x231   :  { %v2099_v51 = vpop.f32.mrf.mxu1 }
 0x232   :  { %v2181_v39 = vadd.f32 %v2099_v51, %v6151_v62  ;;  %v2538_v34 = vpop.f32.mrf.mxu0  ;;  %v6217_v13 = vadd.f32 %v4819_v1, %v2183_v38 }
 0x233   :  { %v4780_v2 = vpop.f32.mrf.mxu1 }
 0x234   :  { %v2184_v35 = vadd.f32 %v4780_v2, %v6154_v3  ;;  %v4827_v41 = vpop.f32.mrf.mxu0  ;;  %v6220_v40 = vadd.f32 %v2519_v16, %v2181_v39 }
 0x235   :  { %v2102_v23 = vpop.f32.mrf.mxu1 }
 0x236   :  { %v2182_v30 = vadd.f32 %v2102_v23, %v6157_v14  ;;  %v2551_v20 = vpop.f32.mrf.mxu0  ;;  %v6223_v54 = vadd.f32 %v4820_v12, %v2184_v35 }
 0x237   :  { %v4783_v46 = vpop.f32.mrf.mxu1 }
 0x238   :  { %v2187_v32 = vadd.f32 %v4783_v46, %v6160_v5  ;;  %v4828_v25 = vpop.f32.mrf.mxu0  ;;  %v6226_v62 = vadd.f32 %v2522_v48, %v2182_v30 }
 0x239   :  { %v2115_v50 = vpop.f32.mrf.mxu1 }
 0x23a   :  { %v2185_v33 = vadd.f32 %v2115_v50, %v6163_v11  ;;  %v2554_v44 = vpop.f32.mrf.mxu0  ;;  %v6229_v3 = vadd.f32 %v4823_v8, %v2187_v32 }
 0x23b   :  { %v4784_v37 = vpop.f32.mrf.mxu1 }
 0x23c   :  { %v2188_v60 = vadd.f32 %v4784_v37, %v6166_v27  ;;  %v4831_v53 = vpop.f32.mrf.mxu0  ;;  %v6232_v14 = vadd.f32 %v2535_v45, %v2185_v33 }
 0x23d   :  { %v2118_v19 = vpop.f32.mrf.mxu1 }
 0x23e   :  { %v2186_v5 = vadd.f32 %v2118_v19, %v6169_v56  ;;  %v2567_v63 = vpop.f32.mrf.mxu0  ;;  %v6235_v1 = vadd.f32 %v4824_v0, %v2188_v60 }
 0x23f   :  { %v4787_v21 = vpop.f32.mrf.mxu1 }
 0x240   :  { %5130 = shalt.err (!%p5127_p4)
}
 0x241   :  { %s5143_s11 = smov 64   ;;  %s5144_s12 = smov 4   ;;  %v2191_v11 = vadd.f32 %v4787_v21, %v6172_v61  ;;  %v4832_v27 = vpop.f32.mrf.mxu0  ;;  %v6241_v56 = vadd.f32 %v2538_v34, %v2186_v5  ;;  %v2131_v43 = vpop.f32.mrf.mxu1 }
 0x242   :  { %3721 = dma.vmem_to_hbm [thread:$0]  %s3716_s9, 1472, %s6477_s7, [#allocation4], %s5143_s11, %s5143_s11, %s5144_s12   ;;  %v2189_v16 = vadd.f32 %v2131_v43, %v6175_v15 }
 0x243   :  { %v2570_v59 = vpop.f32.mrf.mxu0  ;;  %v6244_v18 = vadd.f32 %v4827_v41, %v2191_v11  ;;  %v4788_v12 = vpop.f32.mrf.mxu1 }
 0x244   :  { %v2192_v26 = vadd.f32 %v4788_v12, %v6178_v24  ;;  %v6247_v48 = vadd.f32 %v2551_v20, %v2189_v16 }
 0x245   :  { %v4835_v22 = vpop.f32.mrf.mxu0  ;;  %v2134_v7 = vpop.f32.mrf.mxu1 }
 0x246   :  { %v2190_v58 = vadd.f32 %v2134_v7, %v6181_v47  ;;  %v6250_v61 = vadd.f32 %v4828_v25, %v2192_v26 }
 0x247   :  { %v2583_v8 = vpop.f32.mrf.mxu0  ;;  %v4791_v42 = vpop.f32.mrf.mxu1 }
 0x248   :  { %v2195_v31 = vadd.f32 %v4791_v42, %v6184_v6  ;;  %v6253_v15 = vadd.f32 %v2554_v44, %v2190_v58 }
 0x249   :  { %v4836_v45 = vpop.f32.mrf.mxu0  ;;  %v2147_v36 = vpop.f32.mrf.mxu1 }
 0x24a   :  { %v2193_v38 = vadd.f32 %v2147_v36, %v6187_v55  ;;  %v6256_v24 = vadd.f32 %v4831_v53, %v2195_v31 }
 0x24b   :  { %v2586_v0 = vpop.f32.mrf.mxu0  ;;  %v4792_v51 = vpop.f32.mrf.mxu1 }
 0x24c   :  { %v2196_v39 = vadd.f32 %v4792_v51, %v6190_v9  ;;  %v6261_v47 = vadd.f32 %v2567_v63, %v2193_v38 }
 0x24d   :  { %v6259_v34 = vpop.f32.mrf.mxu0  ;;  %v2150_v2 = vpop.f32.mrf.mxu1 }
 0x24e   :  { %v2194_v35 = vadd.f32 %v2150_v2, %v6193_v17  ;;  %v6266_v41 = vadd.f32 %v4832_v27, %v2196_v39 }
 0x24f   :  { %v6264_v6 = vpop.f32.mrf.mxu0  ;;  %v4795_v23 = vpop.f32.mrf.mxu1 }
 0x250   :  { %6501 = vst [vmem:[#allocation6_spill] sm:$0xff] %v6266_v41  ;;  %v2199_v55 = vadd.f32 %v4795_v23, %v6196_v4  ;;  %v6271_v20 = vadd.f32 %v2570_v59, %v2194_v35 }
 0x251   :  { %v6269_v30 = vpop.f32.mrf.mxu0  ;;  %v2163_v46 = vpop.f32.mrf.mxu1 }
 0x252   :  { %6502 = vst [vmem:[#allocation7_spill] sm:$0xff] %v6271_v20  ;;  %v2197_v9 = vadd.f32 %v2163_v46, %v6198_v49  ;;  %v6276_v25 = vadd.f32 %v4835_v22, %v2199_v55 }
 0x253   :  { %v6274_v32 = vpop.f32.mrf.mxu0  ;;  %v4796_v50 = vpop.f32.mrf.mxu1 }
 0x254   :  { %6503 = vst [vmem:[#allocation8_spill] sm:$0xff] %v6276_v25  ;;  %v6280_v33 = vadd.f32 %v2583_v8, %v2197_v9 }
 0x255   :  { %v6278_v17 = vpop.f32.mrf.mxu0  ;;  %v2166_v44 = vpop.f32.mrf.mxu1 }
 0x256   :  { %6504 = vst [vmem:[#allocation9_spill] sm:$0xff] %v6280_v33  ;;  %v2198_v37 = vadd.f32 %v2166_v44, %v6202_v52 }
 0x257   :  { %v6283_v4 = vpop.f32.mrf.mxu0  ;;  %v4855_v60 = vpop.f32.mrf.mxu1 }
 0x258   :  { %v6287_v19 = vadd.f32 %v2586_v0, %v2198_v37 }
 0x259   :  { %v6285_v53 = vpop.f32.mrf.mxu0  ;;  %v2772_v49 = vpop.f32.mrf.mxu1 }
 0x25a   :  { %6505 = vst [vmem:[#allocation10_spill] sm:$0xff] %v6287_v19 }
 0x25b   :  { %v6289_v5 = vpop.f32.mrf.mxu0  ;;  %v4856_v63 = vpop.f32.mrf.mxu1 }
 0x25c   :  { %v2869_v20 = vadd.f32 %v4856_v63, %v6211_v10 }
 0x25d   :  { %v6291_v21 = vpop.f32.mrf.mxu0  ;;  %v2775_v11 = vpop.f32.mrf.mxu1 }
 0x25f   :  { %v6293_v27 = vpop.f32.mrf.mxu0  ;;  %v4859_v43 = vpop.f32.mrf.mxu1 }
 0x261   :  { %v6295_v16 = vpop.f32.mrf.mxu0  ;;  %v2788_v52 = vpop.f32.mrf.mxu1 }
 0x263   :  { %v6297_v59 = vpop.f32.mrf.mxu0  ;;  %v4860_v12 = vpop.f32.mrf.mxu1 }
 0x265   :  { %v6299_v26 = vpop.f32.mrf.mxu0  ;;  %v2791_v22 = vpop.f32.mrf.mxu1 }
 0x267   :  { %v6301_v7 = vpop.f32.mrf.mxu0  ;;  %v4863_v58 = vpop.f32.mrf.mxu1 }
 0x269   :  { %v6303_v8 = vpop.f32.mrf.mxu0  ;;  %v6305_v42 = vpop.f32.mrf.mxu1 }
 0x26b   :  { %v6307_v31 = vpop.f32.mrf.mxu0  ;;  %v6309_v45 = vpop.f32.mrf.mxu1 }
 0x26d   :  { %v6311_v36 = vpop.f32.mrf.mxu0  ;;  %v6313_v38 = vpop.f32.mrf.mxu1 }
 0x26e   :  { %6506 = vst [vmem:[#allocation11_spill] sm:$0xff] %v6311_v36  ;;  %v2867_v36 = vadd.f32 %v2775_v11, %v6214_v57  ;;  %v2871_v11 = vadd.f32 %v2791_v22, %v6226_v62 }
 0x26f   :  { %v6315_v0 = vpop.f32.mrf.mxu0  ;;  %v6317_v51 = vpop.f32.mrf.mxu1 }
 0x270   :  { %6507 = vst [vmem:[#allocation12_spill] sm:$0xff] %v6315_v0  ;;  %v3286_v57 = vadd.f32 %v6274_v32, %v2867_v36 }
 0x271   :  { %v6319_v39 = vpop.f32.mrf.mxu0  ;;  %v6321_v2 = vpop.f32.mrf.mxu1 }
 0x272   :  { %6508 = vst [vmem:[#allocation13_spill] sm:$0xff] %v6319_v39 }
 0x273   :  { %v6323_v35 = vpop.f32.mrf.mxu0  ;;  %v6325_v23 = vpop.f32.mrf.mxu1 }
 0x274   :  { %6509 = vst [vmem:[#allocation14_spill] sm:$0xff] %v6323_v35 }
 0x275   :  { %v6327_v55 = vpop.f32.mrf.mxu0  ;;  %v6329_v46 = vpop.f32.mrf.mxu1 }
 0x276   :  { %6510 = vst [vmem:[#allocation15_spill] sm:$0xff] %v6327_v55  ;;  %v2868_v55 = vadd.f32 %v4855_v60, %v6205_v29  ;;  %v6358_v29 = vld [vmem:[%s6475_s5] ss:$0 sm:$0xff] }
 0x277   :  { %v6331_v9 = vpop.f32.mrf.mxu0  ;;  %v6333_v50 = vpop.f32.mrf.mxu1 }
 0x278   :  { %6511 = vst [vmem:[#allocation16_spill] sm:$0xff] %v6331_v9  ;;  %v2866_v9 = vadd.f32 %v2772_v49, %v6208_v28 }
 0x279   :  { %v4916_v44 = vpop.f32.mrf.mxu0  ;;  %v6335_v37 = vpop.f32.mrf.mxu1 }
 0x27b   :  { %v6337_v19 = vpop.f32.mrf.mxu1 }
 0x27c   :  { %6512 = vst [vmem:[#allocation17_spill] sm:$0xff] %v6337_v19  ;;  %v3287_v19 = vadd.f32 %v6259_v34, %v2868_v55  ;;  %v2870_v34 = vadd.f32 %v2788_v52, %v6220_v40 }
 0x27d   :  { %v6339_v33 = vpop.f32.mrf.mxu1 }
 0x27e   :  { %6513 = vst [vmem:[#allocation18_spill] sm:$0xff] %v6339_v33 }
 0x27f   :  { %v6341_v39 = vpop.f32.mrf.mxu1 }
 0x280   :  { %6514 = vst [vmem:[#allocation19_spill] sm:$0xff] %v6341_v39  ;;  %v3285_v39 = vadd.f32 %v6264_v6, %v2866_v9 }
 0x281   :  { %v6343_v35 = vpop.f32.mrf.mxu1 }
 0x282   :  { %6515 = vst [vmem:[#allocation20_spill] sm:$0xff] %v6343_v35  ;;  %v3288_v35 = vadd.f32 %v6269_v30, %v2869_v20 }
 0x283   :  { %v4876_v25 = vpop.f32.mrf.mxu1 }
 0x284   :  { %v2872_v25 = vadd.f32 %v4859_v43, %v6217_v13 }
 0x285   :  { %v6346_v0 = vpop.f32.mrf.mxu1 }
 0x286   :  { %v3291_v20 = vadd.f32 %v6278_v17, %v2872_v25  ;;  %v2876_v17 = vadd.f32 %v4863_v58, %v6229_v3  ;;  %v2875_v25 = vadd.f32 %v6313_v38, %v6241_v56 }
 0x287   :  { %v4935_v44 = vpop.f32.mrf.mxu1 }
 0x288   :  { %v3543_v33 = vadd.f32 %v4935_v44, %v3287_v19  ;;  %v2873_v19 = vadd.f32 %v4860_v12, %v6223_v54  ;;  %v3295_v9 = vadd.f32 %v6291_v21, %v2876_v17 }
 0x289   :  { %v3447_v41 = vpop.f32.mrf.mxu1 }
 0x28a   :  { %v3541_v10 = vadd.f32 %v3447_v41, %v3285_v39  ;;  %v3573_v6 = vadd.f32 %v6358_v29, %v3543_v33  ;;  %v3289_v33 = vadd.f32 %v6283_v4, %v2870_v34  ;;  %v3292_v52 = vadd.f32 %v6285_v53, %v2873_v19 }
 0x28b   :  { %v4936_v28 = vpop.f32.mrf.mxu1  ;;  %v3290_v39 = vadd.f32 %v6289_v5, %v2871_v11  ;;  %v2877_v4 = vadd.f32 %v6309_v45, %v6235_v1  ;;  %v3294_v34 = vadd.f32 %v6297_v59, %v2875_v25  ;;  %v2884_v11 = vadd.f32 %v6333_v50, %v6256_v24 }
 0x28c   :  { %v3544_v60 = vadd.f32 %v4936_v28, %v3288_v35  ;;  %v3571_v41 = vadd.f32 %v6358_v29, %v3541_v10  ;;  %v2874_v35 = vadd.f32 %v6305_v42, %v6232_v14 }
 0x28d   :  { %v3450_v49 = vpop.f32.mrf.mxu1  ;;  %v3296_v21 = vadd.f32 %v6295_v16, %v2877_v4  ;;  %v6522_v4 = vld [vmem:[#allocation8_spill] sm:$0xff] }
 0x28e   :  { %v3574_v30 = vadd.f32 %v6358_v29, %v3544_v60  ;;  %v3542_v13 = vadd.f32 %v3450_v49, %v3286_v57  ;;  %v3293_v10 = vadd.f32 %v6293_v27, %v2874_v35  ;;  %v2880_v60 = vadd.f32 %v6317_v51, %v6244_v18 }
 0x28f   :  { %v4939_v63 = vpop.f32.mrf.mxu1  ;;  %v2878_v49 = vadd.f32 %v6321_v2, %v6247_v48  ;;  %v2881_v27 = vadd.f32 %v6325_v23, %v6250_v61 }
 0x290   :  { %v4270_v43 = vpack.c.bf16 %v3574_v30, %v3573_v6  ;;  %v3572_v32 = vadd.f32 %v6358_v29, %v3542_v13  ;;  %v3547_v54 = vadd.f32 %v4939_v63, %v3291_v20  ;;  %v3299_v6 = vadd.f32 %v6299_v26, %v2880_v60 }
 0x291   :  { %v3463_v36 = vpop.f32.mrf.mxu1  ;;  %v2879_v13 = vadd.f32 %v6329_v46, %v6253_v15  ;;  %v3297_v63 = vadd.f32 %v6301_v7, %v2878_v49  ;;  %v3300_v26 = vadd.f32 %v6303_v8, %v2881_v27  ;;  %v6517_v7 = vld [vmem:[#allocation17_spill] sm:$0xff] }
 0x292   :  { %4347 = vst [vmem:[%s6478_s8 + $0x8] sm:$0xff] %v4270_v43   ;;  %v4265_v40 = vpack.c.bf16 %v3572_v32, %v3571_v41  ;;  %v3545_v62 = vadd.f32 %v3463_v36, %v3289_v33  ;;  %v3577_v53 = vadd.f32 %v6358_v29, %v3547_v54  ;;  %v2882_v32 = vadd.f32 %v6335_v37, %v6261_v47  ;;  %v6518_v33 = vld [vmem:[#allocation11_spill] sm:$0xff]  ;;  %v6521_v37 = vld [vmem:[#allocation12_spill] sm:$0xff] }
 0x293   :  { %v4940_v12 = vpop.f32.mrf.mxu1  ;;  %v3298_v43 = vadd.f32 %v6307_v31, %v2879_v13  ;;  %v3274_v13 = vpop.f32.mrf.mxu0 }
 0x294   :  { %4266 = vst [vmem:[%s6478_s8] sm:$0xff] %v4265_v40   ;;  %v3548_v22 = vadd.f32 %v4940_v12, %v3292_v52  ;;  %v3575_v5 = vadd.f32 %v6358_v29, %v3545_v62  ;;  %v6516_v40 = vld [vmem:[#allocation6_spill] sm:$0xff]  ;;  %v3303_v52 = vadd.f32 %v6518_v33, %v2884_v11  ;;  %v6519_v12 = vld [vmem:[#allocation7_spill] sm:$0xff]  ;;  %v3301_v35 = vadd.f32 %v6521_v37, %v2882_v32 }
 0x295   :  { %v3466_v55 = vpop.f32.mrf.mxu1  ;;  %v2885_v54 = vadd.f32 %v6517_v7, %v6516_v40  ;;  %v6520_v62 = vld [vmem:[#allocation18_spill] sm:$0xff] }
 0x296   :  { %v3578_v3 = vadd.f32 %v6358_v29, %v3548_v22  ;;  %v3546_v58 = vadd.f32 %v3466_v55, %v3290_v39  ;;  %v2883_v22 = vadd.f32 %v6520_v62, %v6519_v12 }
 0x297   :  { %v4943_v44 = vpop.f32.mrf.mxu1 }
 0x298   :  { %v4280_v28 = vpack.c.bf16 %v3578_v3, %v3577_v53  ;;  %v3576_v14 = vadd.f32 %v6358_v29, %v3546_v58  ;;  %v3551_v45 = vadd.f32 %v4943_v44, %v3295_v9  ;;  %v6523_v53 = vld [vmem:[#allocation19_spill] sm:$0xff]  ;;  %v6524_v44 = vld [vmem:[#allocation13_spill] sm:$0xff] }
 0x299   :  { %v3479_v42 = vpop.f32.mrf.mxu1  ;;  %v2888_v3 = vadd.f32 %v6523_v53, %v6522_v4  ;;  %v3304_v25 = vadd.f32 %v6524_v44, %v2885_v54 }
 0x29a   :  { %4349 = vst [vmem:[%s6478_s8 + $0x18] sm:$0xff] %v4280_v28   ;;  %v4275_v1 = vpack.c.bf16 %v3576_v14, %v3575_v5  ;;  %v3549_v38 = vadd.f32 %v3479_v42, %v3293_v10  ;;  %v3581_v16 = vadd.f32 %v6358_v29, %v3551_v45  ;;  %v6525_v42 = vld [vmem:[#allocation14_spill] sm:$0xff]  ;;  %v6526_v45 = vld [vmem:[#allocation9_spill] sm:$0xff]  ;;  %v6527_v10 = vld [vmem:[#allocation20_spill] sm:$0xff] }
 0x29b   :  { %v4944_v56 = vpop.f32.mrf.mxu1 }
 0x29c   :  { %4348 = vst [vmem:[%s6478_s8 + $0x10] sm:$0xff] %v4275_v1   ;;  %v3552_v57 = vadd.f32 %v4944_v56, %v3296_v21  ;;  %v3579_v59 = vadd.f32 %v6358_v29, %v3549_v38  ;;  %v3302_v1 = vadd.f32 %v6525_v42, %v2883_v22  ;;  %v2886_v21 = vadd.f32 %v6527_v10, %v6526_v45  ;;  %v6528_v56 = vld [vmem:[#allocation15_spill] sm:$0xff] }
 0x29d   :  { %v3482_v19 = vpop.f32.mrf.mxu1  ;;  %v3307_v38 = vadd.f32 %v6528_v56, %v2888_v3 }
 0x29e   :  { %v3582_v18 = vadd.f32 %v6358_v29, %v3552_v57  ;;  %v3550_v51 = vadd.f32 %v3482_v19, %v3294_v34  ;;  %v6529_v19 = vld [vmem:[#allocation10_spill] sm:$0xff] }
 0x29f   :  { %v4947_v30 = vpop.f32.mrf.mxu1  ;;  %v2887_v27 = vadd.f32 %v6346_v0, %v6529_v19 }
 0x2a0   :  { %v4290_v20 = vpack.c.bf16 %v3582_v18, %v3581_v16  ;;  %v3580_v48 = vadd.f32 %v6358_v29, %v3550_v51  ;;  %v3555_v23 = vadd.f32 %v4947_v30, %v3299_v6 }
 0x2a1   :  { %v3495_v2 = vpop.f32.mrf.mxu1  ;;  %v3306_v0 = vadd.f32 %v3274_v13, %v2887_v27 }
 0x2a2   :  { %4351 = vst [vmem:[%s6478_s8 + $0x28] sm:$0xff] %v4290_v20   ;;  %v4285_v61 = vpack.c.bf16 %v3580_v48, %v3579_v59  ;;  %v3553_v46 = vadd.f32 %v3495_v2, %v3297_v63  ;;  %v3585_v8 = vadd.f32 %v6358_v29, %v3555_v23  ;;  %v6530_v20 = vld [vmem:[#allocation16_spill] sm:$0xff] }
 0x2a3   :  { %v4948_v15 = vpop.f32.mrf.mxu1  ;;  %v3305_v48 = vadd.f32 %v6530_v20, %v2886_v21 }
 0x2a4   :  { %4350 = vst [vmem:[%s6478_s8 + $0x20] sm:$0xff] %v4285_v61   ;;  %v3556_v41 = vadd.f32 %v4948_v15, %v3300_v26  ;;  %v3583_v31 = vadd.f32 %v6358_v29, %v3553_v46 }
 0x2a5   :  { %v3498_v36 = vpop.f32.mrf.mxu1 }
 0x2a6   :  { %v3586_v24 = vadd.f32 %v6358_v29, %v3556_v41  ;;  %v3554_v50 = vadd.f32 %v3498_v36, %v3298_v43 }
 0x2a7   :  { %v4951_v17 = vpop.f32.mrf.mxu1 }
 0x2a8   :  { %v4300_v39 = vpack.c.bf16 %v3586_v24, %v3585_v8  ;;  %v3584_v47 = vadd.f32 %v6358_v29, %v3554_v50  ;;  %v3559_v9 = vadd.f32 %v4951_v17, %v3303_v52 }
 0x2a9   :  { %v3511_v55 = vpop.f32.mrf.mxu1 }
 0x2aa   :  { %4353 = vst [vmem:[%s6478_s8 + $0x38] sm:$0xff] %v4300_v39   ;;  %v4295_v58 = vpack.c.bf16 %v3584_v47, %v3583_v31  ;;  %v3557_v28 = vadd.f32 %v3511_v55, %v3301_v35  ;;  %v3589_v57 = vadd.f32 %v6358_v29, %v3559_v9 }
 0x2ab   :  { %v4952_v5 = vpop.f32.mrf.mxu1 }
 0x2ac   :  { %4352 = vst [vmem:[%s6478_s8 + $0x30] sm:$0xff] %v4295_v58   ;;  %v3560_v14 = vadd.f32 %v4952_v5, %v3304_v25  ;;  %v3587_v18 = vadd.f32 %v6358_v29, %v3557_v28 }
 0x2ad   :  { %v3514_v60 = vpop.f32.mrf.mxu1 }
 0x2ae   :  { %v3590_v34 = vadd.f32 %v6358_v29, %v3560_v14  ;;  %v3558_v49 = vadd.f32 %v3514_v60, %v3302_v1 }
 0x2af   :  { %v4955_v16 = vpop.f32.mrf.mxu1 }
 0x2b0   :  { %v4310_v51 = vpack.c.bf16 %v3590_v34, %v3589_v57  ;;  %v3588_v6 = vadd.f32 %v6358_v29, %v3558_v49  ;;  %v3563_v30 = vadd.f32 %v4955_v16, %v3307_v38 }
 0x2b1   :  { %v3527_v59 = vpop.f32.mrf.mxu1 }
 0x2b2   :  { %4355 = vst [vmem:[%s6478_s8 + $0x48] sm:$0xff] %v4310_v51   ;;  %v4305_v2 = vpack.c.bf16 %v3588_v6, %v3587_v18  ;;  %v3593_v61 = vadd.f32 %v6358_v29, %v3563_v30  ;;  %v3561_v26 = vadd.f32 %v3527_v59, %v3305_v48 }
 0x2b3   :  { %v4956_v23 = vpop.f32.mrf.mxu1 }
 0x2b4   :  { %4354 = vst [vmem:[%s6478_s8 + $0x40] sm:$0xff] %v4305_v2   ;;  %v4107_v63 = vpack.c.bf16 %v3593_v61, %v3593_v61  ;;  %v3591_v46 = vadd.f32 %v6358_v29, %v3561_v26 }
 0x2b5   :  { %v3530_v11 = vpop.f32.mrf.mxu1 }
 0x2b6   :  { %3709 = vst [vmem:[%s6478_s8 + $0x58] sm:$0x7] %v4107_v63  ;;  %v3562_v15 = vadd.f32 %v3530_v11, %v3306_v0 }
 0x2b8   :  { %v3592_v41 = vadd.f32 %v6358_v29, %v3562_v15 }
 0x2ba   :  { %v4315_v43 = vpack.c.bf16 %v3592_v41, %v3591_v46 }
 0x2bc   :  { %4356 = vst [vmem:[%s6478_s8 + $0x50] sm:$0xff] %v4315_v43  }
 0x2bd   :  { %5139 = dma.done.wait [#allocation4], 1472  }
 0x2be   :  { %5140 = vsyncadd [#allocation4], 4294965824 }
 0x2bf   :  { %3729 = vsyncpa [#allocation4], 1 }

</bundles_post_ra>
